<compile_context>
chip_gen: v5e
topology: v5e:2x2
jax: 0.10.0
libtpu: 0.0.40
codegen_flags: <defaults>
</compile_context>

<pallas_src>
import jax
import jax.numpy as jnp
from jax.experimental import pallas as pl
from jax.experimental.pallas import tpu as pltpu

# ---------------- model hyper-parameters (small, consistent with the module) --
N            = 64    # number of graph nodes
F_IN         = 32    # input_dim
CONV_HIDDEN  = 32    # conv_hidden
MLP_HIDDEN   = 32    # mlp_hidden
NUM_CLUSTERS = 8     # num_clusters
NUM_STACKS   = 2     # ARMA K
NUM_LAYERS   = 4     # ARMA T

F_AUG   = F_IN + 1                  # features + ones column (bias fusion)
TWO_C   = NUM_STACKS * CONV_HIDDEN  # both stacks side by side on the lane axis (64)
C_PAD   = 128                       # lane-padded per-layer carry width (vreg aligned)
NC_PAD  = 128                       # lane-dense padded cluster dimension
N_GRAPH = 8                         # demo batch of graphs
GB      = 4                         # graphs per grid step (256 MXU rows; use 2 on v5e)


def _silu(x):
    return x * jax.nn.sigmoid(x)


# ------------------------------- Pallas kernel --------------------------------
def gnnpool_kernel(x_ref, a_ref, idc_ref, idr_ref, xw_ref, w_bd_ref,
                   w1_ref, b1_ref, w2_ref, b2_ref, s_ref):
    # x_ref   : [GB, N, F_AUG] bf16  (features + trailing ones column)
    # a_ref   : [GB, N, N]     bf16  (symmetric adjacency, cast once in XLA)
    # idc_ref : [GB, N, 1] f32, idr_ref : [GB, 1, N] f32  (D^-1/2, gcn_norm)
    # xw_ref  : [F_AUG, (T+1)*128] bf16  (init block + per-layer root/bias blocks,
    #                                     each 128-lane aligned, upper 64 lanes zero)
    # w_bd_ref: [T-1, 128, 128] bf16     (block-diagonal stack weights, zero-padded)
    # w1_ref  : [C, M] bf16 ; b1_ref : [1, M] f32
    # w2_ref  : [M, NC_PAD] bf16 ; b2_ref : [1, NC_PAD] f32 (padded cols = -1e30)
    # s_ref   : [GB, N, NC_PAD] f32
    gn = GB * N
    x2d = x_ref[...].reshape(gn, F_AUG)                            # bf16

    # A_hat = D^-1/2 A D^-1/2 built ONCE per grid step (bf16), so each per-layer
    # propagation is a single batched MXU matmul with no degree scaling left on
    # the serial dependency chain.
    inv_c = idc_ref[...].astype(jnp.bfloat16)                      # [GB, N, 1]
    inv_r = idr_ref[...].astype(jnp.bfloat16)                      # [GB, 1, N]
    A_hat = inv_c * a_ref[...] * inv_r                             # [GB, N, N] bf16

    def propagate(h2d):
        # L_hat @ h per graph; GB independent chains interleave on the MXU.
        h3 = h2d.reshape(GB, N, C_PAD).astype(jnp.bfloat16)
        p = jnp.einsum('gij,gjc->gic', A_hat, h3,
                       preferred_element_type=jnp.float32)
        return p.reshape(gn, C_PAD)

    # One fused lane-dense matmul: init-weight projection (block 0) and every
    # layer's root projection + bias (blocks 1..T), all 128-lane aligned.
    xproj = jnp.dot(x2d, xw_ref[...],
                    preferred_element_type=jnp.float32)            # [GB*N, (T+1)*128]

    # ---------------- ARMAConv, both stacks jointly on a [GB*N, 128] carry ----
    # (upper 64 pad lanes stay exactly zero: zero-padded weights, SiLU(0)=0)
    out = propagate(xproj[:, 0:C_PAD])
    out = _silu(out + xproj[:, C_PAD:2 * C_PAD])
    for t in range(1, NUM_LAYERS):
        h = jnp.dot(out.astype(jnp.bfloat16), w_bd_ref[t - 1],
                    preferred_element_type=jnp.float32)
        h = propagate(h)
        out = _silu(h + xproj[:, (t + 1) * C_PAD:(t + 2) * C_PAD])

    # mean over stacks
    conv_out = 0.5 * (out[:, :CONV_HIDDEN] + out[:, CONV_HIDDEN:TWO_C])

    # ---------------- f_act + MLP head -----------------------------------------
    # TODO(synk): Dropout(0.25) / ARMA dropout(0.4) are identity in eval mode.
    h = _silu(conv_out)
    h1 = _silu(jnp.dot(h.astype(jnp.bfloat16), w1_ref[...],
                       preferred_element_type=jnp.float32) + b1_ref[...])
    H = jnp.dot(h1.astype(jnp.bfloat16), w2_ref[...],
                preferred_element_type=jnp.float32) + b2_ref[...]  # [GB*N, 128]

    # softmax over the lane-dense padded cluster axis; padded columns carry a
    # -1e30 bias so they contribute exactly 0 probability mass.  EUP approx
    # reciprocal + one Newton step -> rows sum to 1 to ~f32 accuracy.
    m = jnp.max(H, axis=-1, keepdims=True)
    e = jnp.exp(H - m)
    den = jnp.sum(e, axis=-1, keepdims=True)
    r = pl.reciprocal(den, approx=True)
    r = r * (2.0 - den * r)
    S = e * r
    s_ref[...] = S.reshape(GB, N, NC_PAD).astype(s_ref.dtype)


# ------------------------------ param packing ----------------------------------
def pack_params(p):
    C = CONV_HIDDEN
    f32 = jnp.float32

    def pad_lanes(m):
        return jnp.concatenate(
            [m, jnp.zeros((m.shape[0], C_PAD - m.shape[1]), f32)], axis=1)

    # block 0: init weights of both stacks (zero row for the ones column).
    init_cat = jnp.concatenate([p["init_w"][k] for k in range(NUM_STACKS)], axis=1)
    blocks = [pad_lanes(jnp.concatenate([init_cat, jnp.zeros((1, TWO_C), f32)], 0))]
    # blocks 1..T: per-layer root weights of both stacks + bias row, 128-aligned.
    for t in range(NUM_LAYERS):
        root_cat = jnp.concatenate(
            [p["root_w"][t * NUM_STACKS + k] for k in range(NUM_STACKS)], axis=1)
        bias_cat = jnp.concatenate(
            [p["bias"][t * NUM_STACKS + k] for k in range(NUM_STACKS)], axis=1)
        blocks.append(pad_lanes(jnp.concatenate([root_cat, bias_cat], axis=0)))
    xw = jnp.concatenate(blocks, axis=1)                        # [F_AUG, (T+1)*128]

    # per-layer block-diagonal stack weights, zero-padded to [128, 128].
    w_bd = []
    for t in range(1, NUM_LAYERS):
        bd = jnp.zeros((C_PAD, C_PAD), f32)
        bd = bd.at[:C, :C].set(p["weight"][(t - 1) * NUM_STACKS + 0])
        bd = bd.at[C:TWO_C, C:TWO_C].set(p["weight"][(t - 1) * NUM_STACKS + 1])
        w_bd.append(bd)
    w_bd = jnp.stack(w_bd, axis=0)

    # MLP head, lane-dense padded output columns.
    pad = NC_PAD - NUM_CLUSTERS
    w2_pad = jnp.concatenate([p["w2"], jnp.zeros((MLP_HIDDEN, pad), f32)], axis=1)
    b2_pad = jnp.concatenate([p["b2"], jnp.full((1, pad), -1e30, f32)], axis=1)

    bf16 = jnp.bfloat16
    return {
        "xw":   xw.astype(bf16),
        "w_bd": w_bd.astype(bf16),
        "w1":   p["w1"].astype(bf16),
        "b1":   p["b1"],
        "w2":   w2_pad.astype(bf16),
        "b2":   b2_pad,
    }


# ------------------------------- wrapper ---------------------------------------
def gnnpool_forward(x, A, params):
    """x: [G, N, F_IN] f32, A: [G, N, N] f32.

    A is assumed symmetric, non-negative, zero-diagonal (gcn_norm uses a single
    degree vector).  Returns (A, S[G, N, NUM_CLUSTERS])."""
    G = x.shape[0]
    assert G % GB == 0, "number of graphs must be a multiple of GB"
    pk = pack_params(params)

    # gcn_norm degrees in f32 (tiny XLA reductions); A itself is shipped to the
    # kernel in bf16, which halves the dominant per-step DMA.
    deg = jnp.sum(A, axis=-1, keepdims=True)                       # [G, N, 1]
    inv_d = jnp.where(deg > 0.0, jax.lax.rsqrt(deg), 0.0)
    inv_d_col = inv_d                                              # [G, N, 1]
    inv_d_row = jnp.swapaxes(inv_d, -1, -2)                        # [G, 1, N]
    A_b = A.astype(jnp.bfloat16)

    x_aug = jnp.concatenate(
        [x, jnp.ones((G, N, 1), x.dtype)], axis=-1).astype(jnp.bfloat16)

    per_graph = lambda g: (g, 0, 0)
    shared2d = lambda g: (0, 0)
    shared3d = lambda g: (0, 0, 0)

    # Advisory cost estimate so XLA can schedule surrounding ops around the call.
    flops = G * (2 * N * F_AUG * (NUM_LAYERS + 1) * C_PAD          # fused x-projection
                 + 2 * N * N * C_PAD * NUM_LAYERS                  # propagation
                 + 2 * N * C_PAD * C_PAD * (NUM_LAYERS - 1)        # stack weights
                 + 2 * N * CONV_HIDDEN * MLP_HIDDEN                # mlp layer 1
                 + 2 * N * MLP_HIDDEN * NC_PAD)                    # mlp layer 2
    transcendentals = G * N * (C_PAD * (NUM_LAYERS + 1) + 2 * MLP_HIDDEN)
    bytes_accessed = (x_aug.size * 2 + A_b.size * 2 + 2 * G * N * 4
                      + pk["xw"].size * 2 + pk["w_bd"].size * 2
                      + pk["w1"].size * 2 + pk["b1"].size * 4
                      + pk["w2"].size * 2 + pk["b2"].size * 4
                      + G * N * NC_PAD * 4)

    S_pad = pl.pallas_call(
        gnnpool_kernel,
        out_shape=jax.ShapeDtypeStruct((G, N, NC_PAD), jnp.float32),
        grid=(G // GB,),
        in_specs=[
            pl.BlockSpec((GB, N, F_AUG), per_graph),                       # x_aug
            pl.BlockSpec((GB, N, N), per_graph),                           # A (bf16)
            pl.BlockSpec((GB, N, 1), per_graph),                           # inv_d col
            pl.BlockSpec((GB, 1, N), per_graph),                           # inv_d row
            pl.BlockSpec((F_AUG, (NUM_LAYERS + 1) * C_PAD), shared2d),     # xw
            pl.BlockSpec((NUM_LAYERS - 1, C_PAD, C_PAD), shared3d),        # w_bd
            pl.BlockSpec((CONV_HIDDEN, MLP_HIDDEN), shared2d),             # w1
            pl.BlockSpec((1, MLP_HIDDEN), shared2d),                       # b1
            pl.BlockSpec((MLP_HIDDEN, NC_PAD), shared2d),                  # w2
            pl.BlockSpec((1, NC_PAD), shared2d),                           # b2
        ],
        out_specs=pl.BlockSpec((GB, N, NC_PAD), per_graph),
        compiler_params=pltpu.CompilerParams(
            dimension_semantics=("parallel",)),
        cost_estimate=pl.CostEstimate(
            flops=int(flops),
            transcendentals=int(transcendentals),
            bytes_accessed=int(bytes_accessed)),
    )(x_aug, A_b, inv_d_col, inv_d_row, pk["xw"], pk["w_bd"],
      pk["w1"], pk["b1"], pk["w2"], pk["b2"])

    return A, S_pad[:, :, :NUM_CLUSTERS]


# --------------------------- pure-JAX reference (original f32 semantics) -------
def gnnpool_reference(x, A, p):
    deg = jnp.sum(A, axis=1, keepdims=True)
    inv_d = jnp.where(deg > 0, 1.0 / jnp.sqrt(deg), 0.0)
    L_hat = inv_d * A * inv_d.T
    acc = jnp.zeros((x.shape[0], CONV_HIDDEN), jnp.float32)
    for k in range(NUM_STACKS):
        out = x
        for t in range(NUM_LAYERS):
            W = p["init_w"][k] if t == 0 else p["weight"][(t - 1) * NUM_STACKS + k]
            out = L_hat @ (out @ W)
            out = out + x @ p["root_w"][t * NUM_STACKS + k] + p["bias"][t * NUM_STACKS + k]
            out = _silu(out)
        acc = acc + out
    h = _silu(acc / NUM_STACKS)
    h1 = _silu(h @ p["w1"] + p["b1"])
    H = h1 @ p["w2"] + p["b2"]
    return jax.nn.softmax(H, axis=-1)


# ------------------------------ param init -------------------------------------
def init_params(key):
    ks = jax.random.split(key, 8)

    def glorot(k, shape):
        fan_in, fan_out = shape[-2], shape[-1]
        s = jnp.sqrt(6.0 / (fan_in + fan_out))
        return jax.random.uniform(k, shape, jnp.float32, -s, s)

    return {
        "init_w": glorot(ks[0], (NUM_STACKS, F_IN, CONV_HIDDEN)),
        "weight": glorot(ks[1], ((NUM_LAYERS - 1) * NUM_STACKS, CONV_HIDDEN, CONV_HIDDEN)),
        "root_w": glorot(ks[2], (NUM_LAYERS * NUM_STACKS, F_IN, CONV_HIDDEN)),
        "bias":   0.01 * jax.random.normal(ks[3], (NUM_LAYERS * NUM_STACKS, 1, CONV_HIDDEN),
                                           jnp.float32),
        "w1": glorot(ks[4], (CONV_HIDDEN, MLP_HIDDEN)),
        "b1": 0.01 * jax.random.normal(ks[5], (1, MLP_HIDDEN), jnp.float32),
        "w2": glorot(ks[6], (MLP_HIDDEN, NUM_CLUSTERS)),
        "b2": 0.01 * jax.random.normal(ks[7], (1, NUM_CLUSTERS), jnp.float32),
    }


if __name__ == "__main__":
    key = jax.random.PRNGKey(0)
    kx, ka, kp = jax.random.split(key, 3)

    # batch of graphs: node features + symmetric, non-negative, zero-diag adjacency
    x = jax.random.normal(kx, (N_GRAPH, N, F_IN), jnp.float32)
    A0 = jax.random.uniform(ka, (N_GRAPH, N, N), jnp.float32)
    A = 0.5 * (A0 + jnp.swapaxes(A0, -1, -2)) * (1.0 - jnp.eye(N, dtype=jnp.float32))

    params = init_params(kp)

    # the kernel's single-degree gcn_norm assumes a symmetric adjacency
    assert bool(jnp.allclose(A, jnp.swapaxes(A, -1, -2)))

    A_out, S = gnnpool_forward(x, A, params)
    S = jax.block_until_ready(S)

    S_ref = jax.block_until_ready(
        jax.vmap(lambda xg, ag: gnnpool_reference(xg, ag, params))(x, A))

    assert S.shape == (N_GRAPH, N, NUM_CLUSTERS)
    # Newton-refined reciprocal: rows sum to 1 to ~f32 accuracy
    assert bool(jnp.allclose(jnp.sum(S, axis=-1), 1.0, atol=1e-3))
    # bf16 MXU operands -> compare against the f32 reference with loosened atol
    max_err = float(jnp.max(jnp.abs(S - S_ref)))
    assert bool(jnp.allclose(S, S_ref, rtol=0.05, atol=5e-2)), max_err

    print("KERNEL_OK")
</pallas_src>

<mosaic_0001>
module attributes {stable_mosaic.version = 11 : i64} {
  func.func @gnnpool_kernel(%arg0: i32, %arg1: memref<4x64x33xbf16, #tpu.memory_space<vmem>>, %arg2: memref<4x64x64xbf16, #tpu.memory_space<vmem>>, %arg3: memref<4x64x1xf32, #tpu.memory_space<vmem>>, %arg4: memref<4x1x64xf32, #tpu.memory_space<vmem>>, %arg5: memref<33x640xbf16, #tpu.memory_space<vmem>>, %arg6: memref<3x128x128xbf16, #tpu.memory_space<vmem>>, %arg7: memref<32x32xbf16, #tpu.memory_space<vmem>>, %arg8: memref<1x32xf32, #tpu.memory_space<vmem>>, %arg9: memref<32x128xbf16, #tpu.memory_space<vmem>>, %arg10: memref<1x128xf32, #tpu.memory_space<vmem>>, %arg11: memref<4x64x128xf32, #tpu.memory_space<vmem>>) attributes {dimension_semantics = [#tpu.dimension_semantics<parallel>], iteration_bounds = array<i64: 2>, scalar_prefetch = 0 : i64, scratch_operands = 0 : i64, tpu.core_type = #tpu.core_type<tc>, window_params = [{transform_indices = @transform_0, window_bounds = array<i64: 4, 64, 33>}, {transform_indices = @transform_1, window_bounds = array<i64: 4, 64, 64>}, {transform_indices = @transform_2, window_bounds = array<i64: 4, 64, 1>}, {transform_indices = @transform_3, window_bounds = array<i64: 4, 1, 64>}, {pipeline_mode = #tpu.pipeline_mode<synchronous>, transform_indices = @transform_4, window_bounds = array<i64: 33, 640>}, {pipeline_mode = #tpu.pipeline_mode<synchronous>, transform_indices = @transform_5, window_bounds = array<i64: 3, 128, 128>}, {pipeline_mode = #tpu.pipeline_mode<synchronous>, transform_indices = @transform_6, window_bounds = array<i64: 32, 32>}, {pipeline_mode = #tpu.pipeline_mode<synchronous>, transform_indices = @transform_7, window_bounds = array<i64: 1, 32>}, {pipeline_mode = #tpu.pipeline_mode<synchronous>, transform_indices = @transform_8, window_bounds = array<i64: 32, 128>}, {pipeline_mode = #tpu.pipeline_mode<synchronous>, transform_indices = @transform_9, window_bounds = array<i64: 1, 128>}, {transform_indices = @transform_10, window_bounds = array<i64: 4, 64, 128>}]} {
    %c0 = arith.constant 0 : index
    %c0_0 = arith.constant 0 : index
    %c0_1 = arith.constant 0 : index
    %0 = vector.load %arg1[%c0, %c0_0, %c0_1] : memref<4x64x33xbf16, #tpu.memory_space<vmem>>, vector<4x64x33xbf16>
    %1 = vector.shape_cast %0 : vector<4x64x33xbf16> to vector<256x33xbf16>
    %c0_2 = arith.constant 0 : index
    %c0_3 = arith.constant 0 : index
    %c0_4 = arith.constant 0 : index
    %2 = vector.load %arg3[%c0_2, %c0_3, %c0_4] : memref<4x64x1xf32, #tpu.memory_space<vmem>>, vector<4x64x1xf32>
    %3 = arith.truncf %2 : vector<4x64x1xf32> to vector<4x64x1xbf16>
    %c0_5 = arith.constant 0 : index
    %c0_6 = arith.constant 0 : index
    %c0_7 = arith.constant 0 : index
    %4 = vector.load %arg4[%c0_5, %c0_6, %c0_7] : memref<4x1x64xf32, #tpu.memory_space<vmem>>, vector<4x1x64xf32>
    %5 = arith.truncf %4 : vector<4x1x64xf32> to vector<4x1x64xbf16>
    %c0_8 = arith.constant 0 : index
    %c0_9 = arith.constant 0 : index
    %c0_10 = arith.constant 0 : index
    %6 = vector.load %arg2[%c0_8, %c0_9, %c0_10] : memref<4x64x64xbf16, #tpu.memory_space<vmem>>, vector<4x64x64xbf16>
    %7 = vector.broadcast %3 : vector<4x64x1xbf16> to vector<4x64x64xbf16>
    %8 = arith.mulf %7, %6 : vector<4x64x64xbf16>
    %9 = vector.broadcast %5 : vector<4x1x64xbf16> to vector<4x64x64xbf16>
    %10 = arith.mulf %8, %9 : vector<4x64x64xbf16>
    %c0_11 = arith.constant 0 : index
    %c0_12 = arith.constant 0 : index
    %11 = vector.load %arg5[%c0_11, %c0_12] : memref<33x640xbf16, #tpu.memory_space<vmem>>, vector<33x640xbf16>
    %cst = arith.constant dense<0.000000e+00> : vector<256x640xf32>
    %12 = tpu.matmul %1, %11, %cst {dimension_numbers = #tpu.dot_dimension_numbers<[1], [0], [0], [1], [0, 0, 1, 1], [], []>} : vector<256x33xbf16>, vector<33x640xbf16>, vector<256x640xf32> -> vector<256x640xf32>
    %13 = vector.extract_strided_slice %12 {offsets = [0, 0], sizes = [256, 128], strides = [1, 1]} : vector<256x640xf32> to vector<256x128xf32>
    %14 = vector.shape_cast %13 : vector<256x128xf32> to vector<4x64x128xf32>
    %15 = arith.truncf %14 : vector<4x64x128xf32> to vector<4x64x128xbf16>
    "tpu.trace_start"() <{level = 10 : i32, message = "gij,gjc->gic"}> : () -> ()
    %cst_13 = arith.constant dense<0.000000e+00> : vector<4x64x128xf32>
    %16 = tpu.matmul %10, %15, %cst_13 {dimension_numbers = #tpu.dot_dimension_numbers<[2], [1], [1], [2], [0, 0, 0, 1, 1, 2], [0], [0]>} : vector<4x64x64xbf16>, vector<4x64x128xbf16>, vector<4x64x128xf32> -> vector<4x64x128xf32>
    "tpu.trace_stop"() : () -> ()
    %17 = vector.shape_cast %16 : vector<4x64x128xf32> to vector<256x128xf32>
    %18 = vector.extract_strided_slice %12 {offsets = [0, 128], sizes = [256, 128], strides = [1, 1]} : vector<256x640xf32> to vector<256x128xf32>
    %19 = arith.addf %17, %18 : vector<256x128xf32>
    %20 = arith.negf %19 : vector<256x128xf32>
    %21 = math.exp %20 : vector<256x128xf32>
    %cst_14 = arith.constant 1.000000e+00 : f32
    %22 = vector.broadcast %cst_14 : f32 to vector<256x128xf32>
    %23 = arith.addf %22, %21 : vector<256x128xf32>
    %24 = arith.divf %22, %23 : vector<256x128xf32>
    %25 = arith.mulf %19, %24 : vector<256x128xf32>
    %26 = arith.truncf %25 : vector<256x128xf32> to vector<256x128xbf16>
    %c0_15 = arith.constant 0 : index
    %c0_16 = arith.constant 0 : index
    %c0_17 = arith.constant 0 : index
    %27 = vector.load %arg6[%c0_15, %c0_16, %c0_17] : memref<3x128x128xbf16, #tpu.memory_space<vmem>>, vector<1x128x128xbf16>
    %28 = vector.shape_cast %27 : vector<1x128x128xbf16> to vector<128x128xbf16>
    %cst_18 = arith.constant dense<0.000000e+00> : vector<256x128xf32>
    %29 = tpu.matmul %26, %28, %cst_18 {dimension_numbers = #tpu.dot_dimension_numbers<[1], [0], [0], [1], [0, 0, 1, 1], [], []>} : vector<256x128xbf16>, vector<128x128xbf16>, vector<256x128xf32> -> vector<256x128xf32>
    %30 = vector.shape_cast %29 : vector<256x128xf32> to vector<4x64x128xf32>
    %31 = arith.truncf %30 : vector<4x64x128xf32> to vector<4x64x128xbf16>
    "tpu.trace_start"() <{level = 10 : i32, message = "gij,gjc->gic"}> : () -> ()
    %cst_19 = arith.constant dense<0.000000e+00> : vector<4x64x128xf32>
    %32 = tpu.matmul %10, %31, %cst_19 {dimension_numbers = #tpu.dot_dimension_numbers<[2], [1], [1], [2], [0, 0, 0, 1, 1, 2], [0], [0]>} : vector<4x64x64xbf16>, vector<4x64x128xbf16>, vector<4x64x128xf32> -> vector<4x64x128xf32>
    "tpu.trace_stop"() : () -> ()
    %33 = vector.shape_cast %32 : vector<4x64x128xf32> to vector<256x128xf32>
    %34 = vector.extract_strided_slice %12 {offsets = [0, 256], sizes = [256, 128], strides = [1, 1]} : vector<256x640xf32> to vector<256x128xf32>
    %35 = arith.addf %33, %34 : vector<256x128xf32>
    %36 = arith.negf %35 : vector<256x128xf32>
    %37 = math.exp %36 : vector<256x128xf32>
    %cst_20 = arith.constant 1.000000e+00 : f32
    %38 = vector.broadcast %cst_20 : f32 to vector<256x128xf32>
    %39 = arith.addf %38, %37 : vector<256x128xf32>
    %40 = arith.divf %38, %39 : vector<256x128xf32>
    %41 = arith.mulf %35, %40 : vector<256x128xf32>
    %42 = arith.truncf %41 : vector<256x128xf32> to vector<256x128xbf16>
    %c1 = arith.constant 1 : index
    %c0_21 = arith.constant 0 : index
    %c0_22 = arith.constant 0 : index
    %43 = vector.load %arg6[%c1, %c0_21, %c0_22] : memref<3x128x128xbf16, #tpu.memory_space<vmem>>, vector<1x128x128xbf16>
    %44 = vector.shape_cast %43 : vector<1x128x128xbf16> to vector<128x128xbf16>
    %cst_23 = arith.constant dense<0.000000e+00> : vector<256x128xf32>
    %45 = tpu.matmul %42, %44, %cst_23 {dimension_numbers = #tpu.dot_dimension_numbers<[1], [0], [0], [1], [0, 0, 1, 1], [], []>} : vector<256x128xbf16>, vector<128x128xbf16>, vector<256x128xf32> -> vector<256x128xf32>
    %46 = vector.shape_cast %45 : vector<256x128xf32> to vector<4x64x128xf32>
    %47 = arith.truncf %46 : vector<4x64x128xf32> to vector<4x64x128xbf16>
    "tpu.trace_start"() <{level = 10 : i32, message = "gij,gjc->gic"}> : () -> ()
    %cst_24 = arith.constant dense<0.000000e+00> : vector<4x64x128xf32>
    %48 = tpu.matmul %10, %47, %cst_24 {dimension_numbers = #tpu.dot_dimension_numbers<[2], [1], [1], [2], [0, 0, 0, 1, 1, 2], [0], [0]>} : vector<4x64x64xbf16>, vector<4x64x128xbf16>, vector<4x64x128xf32> -> vector<4x64x128xf32>
    "tpu.trace_stop"() : () -> ()
    %49 = vector.shape_cast %48 : vector<4x64x128xf32> to vector<256x128xf32>
    %50 = vector.extract_strided_slice %12 {offsets = [0, 384], sizes = [256, 128], strides = [1, 1]} : vector<256x640xf32> to vector<256x128xf32>
    %51 = arith.addf %49, %50 : vector<256x128xf32>
    %52 = arith.negf %51 : vector<256x128xf32>
    %53 = math.exp %52 : vector<256x128xf32>
    %cst_25 = arith.constant 1.000000e+00 : f32
    %54 = vector.broadcast %cst_25 : f32 to vector<256x128xf32>
    %55 = arith.addf %54, %53 : vector<256x128xf32>
    %56 = arith.divf %54, %55 : vector<256x128xf32>
    %57 = arith.mulf %51, %56 : vector<256x128xf32>
    %58 = arith.truncf %57 : vector<256x128xf32> to vector<256x128xbf16>
    %c2 = arith.constant 2 : index
    %c0_26 = arith.constant 0 : index
    %c0_27 = arith.constant 0 : index
    %59 = vector.load %arg6[%c2, %c0_26, %c0_27] : memref<3x128x128xbf16, #tpu.memory_space<vmem>>, vector<1x128x128xbf16>
    %60 = vector.shape_cast %59 : vector<1x128x128xbf16> to vector<128x128xbf16>
    %cst_28 = arith.constant dense<0.000000e+00> : vector<256x128xf32>
    %61 = tpu.matmul %58, %60, %cst_28 {dimension_numbers = #tpu.dot_dimension_numbers<[1], [0], [0], [1], [0, 0, 1, 1], [], []>} : vector<256x128xbf16>, vector<128x128xbf16>, vector<256x128xf32> -> vector<256x128xf32>
    %62 = vector.shape_cast %61 : vector<256x128xf32> to vector<4x64x128xf32>
    %63 = arith.truncf %62 : vector<4x64x128xf32> to vector<4x64x128xbf16>
    "tpu.trace_start"() <{level = 10 : i32, message = "gij,gjc->gic"}> : () -> ()
    %cst_29 = arith.constant dense<0.000000e+00> : vector<4x64x128xf32>
    %64 = tpu.matmul %10, %63, %cst_29 {dimension_numbers = #tpu.dot_dimension_numbers<[2], [1], [1], [2], [0, 0, 0, 1, 1, 2], [0], [0]>} : vector<4x64x64xbf16>, vector<4x64x128xbf16>, vector<4x64x128xf32> -> vector<4x64x128xf32>
    "tpu.trace_stop"() : () -> ()
    %65 = vector.shape_cast %64 : vector<4x64x128xf32> to vector<256x128xf32>
    %66 = vector.extract_strided_slice %12 {offsets = [0, 512], sizes = [256, 128], strides = [1, 1]} : vector<256x640xf32> to vector<256x128xf32>
    %67 = arith.addf %65, %66 : vector<256x128xf32>
    %68 = arith.negf %67 : vector<256x128xf32>
    %69 = math.exp %68 : vector<256x128xf32>
    %cst_30 = arith.constant 1.000000e+00 : f32
    %70 = vector.broadcast %cst_30 : f32 to vector<256x128xf32>
    %71 = arith.addf %70, %69 : vector<256x128xf32>
    %72 = arith.divf %70, %71 : vector<256x128xf32>
    %73 = arith.mulf %67, %72 : vector<256x128xf32>
    %74 = vector.extract_strided_slice %73 {offsets = [0, 0], sizes = [256, 32], strides = [1, 1]} : vector<256x128xf32> to vector<256x32xf32>
    %75 = vector.extract_strided_slice %73 {offsets = [0, 32], sizes = [256, 32], strides = [1, 1]} : vector<256x128xf32> to vector<256x32xf32>
    %76 = arith.addf %74, %75 : vector<256x32xf32>
    %cst_31 = arith.constant 5.000000e-01 : f32
    %77 = vector.broadcast %cst_31 : f32 to vector<256x32xf32>
    %78 = arith.mulf %77, %76 : vector<256x32xf32>
    %79 = arith.negf %78 : vector<256x32xf32>
    %80 = math.exp %79 : vector<256x32xf32>
    %cst_32 = arith.constant 1.000000e+00 : f32
    %81 = vector.broadcast %cst_32 : f32 to vector<256x32xf32>
    %82 = arith.addf %81, %80 : vector<256x32xf32>
    %83 = arith.divf %81, %82 : vector<256x32xf32>
    %84 = arith.mulf %78, %83 : vector<256x32xf32>
    %85 = arith.truncf %84 : vector<256x32xf32> to vector<256x32xbf16>
    %c0_33 = arith.constant 0 : index
    %c0_34 = arith.constant 0 : index
    %86 = vector.load %arg7[%c0_33, %c0_34] : memref<32x32xbf16, #tpu.memory_space<vmem>>, vector<32x32xbf16>
    %cst_35 = arith.constant dense<0.000000e+00> : vector<256x32xf32>
    %87 = tpu.matmul %85, %86, %cst_35 {dimension_numbers = #tpu.dot_dimension_numbers<[1], [0], [0], [1], [0, 0, 1, 1], [], []>} : vector<256x32xbf16>, vector<32x32xbf16>, vector<256x32xf32> -> vector<256x32xf32>
    %c0_36 = arith.constant 0 : index
    %c0_37 = arith.constant 0 : index
    %88 = vector.load %arg8[%c0_36, %c0_37] : memref<1x32xf32, #tpu.memory_space<vmem>>, vector<1x32xf32>
    %89 = vector.broadcast %88 : vector<1x32xf32> to vector<256x32xf32>
    %90 = arith.addf %87, %89 : vector<256x32xf32>
    %91 = arith.negf %90 : vector<256x32xf32>
    %92 = math.exp %91 : vector<256x32xf32>
    %cst_38 = arith.constant 1.000000e+00 : f32
    %93 = vector.broadcast %cst_38 : f32 to vector<256x32xf32>
    %94 = arith.addf %93, %92 : vector<256x32xf32>
    %95 = arith.divf %93, %94 : vector<256x32xf32>
    %96 = arith.mulf %90, %95 : vector<256x32xf32>
    %97 = arith.truncf %96 : vector<256x32xf32> to vector<256x32xbf16>
    %c0_39 = arith.constant 0 : index
    %c0_40 = arith.constant 0 : index
    %98 = vector.load %arg9[%c0_39, %c0_40] : memref<32x128xbf16, #tpu.memory_space<vmem>>, vector<32x128xbf16>
    %cst_41 = arith.constant dense<0.000000e+00> : vector<256x128xf32>
    %99 = tpu.matmul %97, %98, %cst_41 {dimension_numbers = #tpu.dot_dimension_numbers<[1], [0], [0], [1], [0, 0, 1, 1], [], []>} : vector<256x32xbf16>, vector<32x128xbf16>, vector<256x128xf32> -> vector<256x128xf32>
    %c0_42 = arith.constant 0 : index
    %c0_43 = arith.constant 0 : index
    %100 = vector.load %arg10[%c0_42, %c0_43] : memref<1x128xf32, #tpu.memory_space<vmem>>, vector<1x128xf32>
    %101 = vector.broadcast %100 : vector<1x128xf32> to vector<256x128xf32>
    %102 = arith.addf %99, %101 : vector<256x128xf32>
    %cst_44 = arith.constant dense<0xFF800000> : vector<256xf32>
    %103 = vector.multi_reduction <maximumf>, %102, %cst_44 [1] : vector<256x128xf32> to vector<256xf32>
    %104 = vector.shape_cast %103 : vector<256xf32> to vector<256x1xf32>
    %105 = vector.broadcast %104 : vector<256x1xf32> to vector<256x128xf32>
    %106 = arith.subf %102, %105 : vector<256x128xf32>
    %107 = math.exp %106 : vector<256x128xf32>
    %cst_45 = arith.constant dense<0.000000e+00> : vector<256xf32>
    %108 = vector.multi_reduction <add>, %107, %cst_45 [1] : vector<256x128xf32> to vector<256xf32>
    %109 = vector.shape_cast %108 : vector<256xf32> to vector<256x1xf32>
    %110 = tpu.reciprocal %109 {approx = true} : vector<256x1xf32> -> vector<256x1xf32>
    %111 = arith.mulf %109, %110 : vector<256x1xf32>
    %cst_46 = arith.constant 2.000000e+00 : f32
    %112 = vector.broadcast %cst_46 : f32 to vector<256x1xf32>
    %113 = arith.subf %112, %111 : vector<256x1xf32>
    %114 = arith.mulf %110, %113 : vector<256x1xf32>
    %115 = vector.broadcast %114 : vector<256x1xf32> to vector<256x128xf32>
    %116 = arith.mulf %107, %115 : vector<256x128xf32>
    %117 = vector.shape_cast %116 : vector<256x128xf32> to vector<4x64x128xf32>
    %c0_47 = arith.constant 0 : index
    %c0_48 = arith.constant 0 : index
    %c0_49 = arith.constant 0 : index
    %118 = vector.load %arg11[%c0_47, %c0_48, %c0_49] : memref<4x64x128xf32, #tpu.memory_space<vmem>>, vector<4x64x128xf32>
    tpu.vector_store %arg11[%c0_47, %c0_48, %c0_49], %117 {strides = array<i32>} : memref<4x64x128xf32, #tpu.memory_space<vmem>>, vector<4x64x128xf32>,
    return
  }
  func.func @transform_0(%arg0: i32) -> (i32, i32, i32) {
    %c0_i32 = arith.constant 0 : i32
    %c0_i32_0 = arith.constant 0 : i32
    %c0_i32_1 = arith.constant 0 : i32
    return %arg0, %c0_i32, %c0_i32_0 : i32, i32, i32
  }
  func.func @transform_1(%arg0: i32) -> (i32, i32, i32) {
    %c0_i32 = arith.constant 0 : i32
    %c0_i32_0 = arith.constant 0 : i32
    %c0_i32_1 = arith.constant 0 : i32
    return %arg0, %c0_i32, %c0_i32_0 : i32, i32, i32
  }
  func.func @transform_2(%arg0: i32) -> (i32, i32, i32) {
    %c0_i32 = arith.constant 0 : i32
    %c0_i32_0 = arith.constant 0 : i32
    %c0_i32_1 = arith.constant 0 : i32
    return %arg0, %c0_i32, %c0_i32_0 : i32, i32, i32
  }
  func.func @transform_3(%arg0: i32) -> (i32, i32, i32) {
    %c0_i32 = arith.constant 0 : i32
    %c0_i32_0 = arith.constant 0 : i32
    %c0_i32_1 = arith.constant 0 : i32
    return %arg0, %c0_i32, %c0_i32_0 : i32, i32, i32
  }
  func.func @transform_4(%arg0: i32) -> (i32, i32) {
    %c0_i32 = arith.constant 0 : i32
    %c0_i32_0 = arith.constant 0 : i32
    %c0_i32_1 = arith.constant 0 : i32
    return %c0_i32, %c0_i32_0 : i32, i32
  }
  func.func @transform_5(%arg0: i32) -> (i32, i32, i32) {
    %c0_i32 = arith.constant 0 : i32
    %c0_i32_0 = arith.constant 0 : i32
    %c0_i32_1 = arith.constant 0 : i32
    %c0_i32_2 = arith.constant 0 : i32
    return %c0_i32, %c0_i32_0, %c0_i32_1 : i32, i32, i32
  }
  func.func @transform_6(%arg0: i32) -> (i32, i32) {
    %c0_i32 = arith.constant 0 : i32
    %c0_i32_0 = arith.constant 0 : i32
    %c0_i32_1 = arith.constant 0 : i32
    return %c0_i32, %c0_i32_0 : i32, i32
  }
  func.func @transform_7(%arg0: i32) -> (i32, i32) {
    %c0_i32 = arith.constant 0 : i32
    %c0_i32_0 = arith.constant 0 : i32
    %c0_i32_1 = arith.constant 0 : i32
    return %c0_i32, %c0_i32_0 : i32, i32
  }
  func.func @transform_8(%arg0: i32) -> (i32, i32) {
    %c0_i32 = arith.constant 0 : i32
    %c0_i32_0 = arith.constant 0 : i32
    %c0_i32_1 = arith.constant 0 : i32
    return %c0_i32, %c0_i32_0 : i32, i32
  }
  func.func @transform_9(%arg0: i32) -> (i32, i32) {
    %c0_i32 = arith.constant 0 : i32
    %c0_i32_0 = arith.constant 0 : i32
    %c0_i32_1 = arith.constant 0 : i32
    return %c0_i32, %c0_i32_0 : i32, i32
  }
  func.func @transform_10(%arg0: i32) -> (i32, i32, i32) {
    %c0_i32 = arith.constant 0 : i32
    %c0_i32_0 = arith.constant 0 : i32
    %c0_i32_1 = arith.constant 0 : i32
    return %arg0, %c0_i32, %c0_i32_0 : i32, i32, i32
  }
}

</mosaic_0001>

<bundles_post_ra>
// kernel: tpu_custom_call.1
= control target key start
LH: loop header
LB: loop body
LE: loop exit
PB: predicated region body
PF: predicated region fallthrough
CT: control target
= control target key end

     0   :  { %15 = vsyncpa [#allocation3], 0  ;;  %s15270_s0 = inlined_call_operand.vmem [shape: bf16[8,64,33], index: 0, kind: input, shape index: {}]   ;;  %s15271_s1 = inlined_call_operand.vmem [shape: bf16[8,64,64], index: 1, kind: input, shape index: {}]   ;;  %s15272_s2 = inlined_call_operand.vmem [shape: f32[8,64,1], index: 2, kind: input, shape index: {}]   ;;  %s15273_s3 = inlined_call_operand.vmem [shape: f32[8,1,64], index: 3, kind: input, shape index: {}]   ;;  %s15274_s4 = inlined_call_operand.vmem [shape: bf16[33,640], index: 4, kind: input, shape index: {}]   ;;  %s15275_s5 = inlined_call_operand.vmem [shape: bf16[3,128,128], index: 5, kind: input, shape index: {}]   ;;  %s15276_s6 = inlined_call_operand.vmem [shape: bf16[32,32], index: 6, kind: input, shape index: {}]   ;;  %s15277_s7 = inlined_call_operand.vmem [shape: f32[1,32], index: 7, kind: input, shape index: {}]   ;;  %s15278_s8 = inlined_call_operand.vmem [shape: bf16[32,128], index: 8, kind: input, shape index: {}]   ;;  %s15279_s9 = inlined_call_operand.vmem [shape: f32[1,128], index: 9, kind: input, shape index: {}]   ;;  %s15280_s10 = inlined_call_operand.hbm [shape: f32[8,64,128], index: 10, kind: output, shape index: {}]  }
   0x1   :  { %17 = vsyncpa [#allocation3 + $0x1], 0  ;;  %s10300_s13 = smov 0   ;;  %s10302_s14 = smov 0  }
   0x2   :  { %s10304_s15 = smov 0   ;;  %s10306_s16 = smov 0  }
   0x3 LB: > { %s10321_s17 = sadd.s32 4294967295, %s10238_s16   ;;  %s8423_s18 = sadd.s32 4294967294, %s10238_s16   ;;  %s10238_s16 = sphi %s10306_s16, %s15681_s16   ;;  %s10234_s15 = sphi %s10304_s15, %s15680_s15   ;;  %s10230_s14 = sphi %s10302_s14, %s15679_s14   ;;  %s10226_s13 = sphi %s10300_s13, %s15678_s13  }
   0x4   : > { %s10325_s19 = sadd.s32 1, %s10238_s16   ;;  %s260_s20 = sadd.s32 1, %s10234_s15 }
   0x5   : > { %s257_s21 = ssub.s32 %s10238_s16, %s10325_s19  ;;  %p270_p0 = scmp.ne.s32.totalorder %s10234_s15, %s10230_s14 }
   0x6   : > { %p258_p1 = scmp.eq.s32.totalorder %s257_s21, 0  ;;  %p271_p2 = scmp.eq.s32.totalorder %s10321_s17, 1 }
   0x7   : > { %p276_p3 = scmp.ne.s32.totalorder %s10230_s14, %s10226_s13  ;;  %p277_p4 = scmp.eq.s32.totalorder %s8423_s18, 1 }
   0x8   : > { %s10336_s22 = scalar_select %p258_p1, %s10234_s15, %s260_s20  }
   0x9   : > { %p10338_p5 = por %p271_p2, %p270_p0  ;;  %p10342_p6 = por %p277_p4, %p276_p3 }
   0xa   : > { %p8426_p7 = scmp.ge.s32.totalorder %s10238_s16, 1  ;;  %p351_p8 = scmp.lt.s32.totalorder %s10238_s16, 3 }
   0xc   : > { %p352_p9 = pnand %p8426_p7, %p351_p8 }
   0xe   : > { %355 = sbr.rel (%p352_p9) target bundleno = 2729 (0xaa9), region = 60 }
  0x13   : > { %v10351_v0 = vld [vmem:[%s15274_s4 + $0x50] sm:$0x11]  ;;  %vm1311_vm0 = vcmask 1040384   ;;  %v1115_v1 = vld [vmem:[%s15274_s4 + $0x58] sm:$0x11]  ;;  %s8428_s29 = sshll.u32 %s10321_s17, 2 }
  0x14   : > { %v1232_v2 = vunpack.c.l.b16 %v10351_v0  ;;  %v1234_v3 = vunpack.c.l.b16 %v1115_v1  ;;  %v10240_v4 = vmov 0   ;;  %v8524_v6 = vld [vmem:[%s15274_s4 + $0x28] sm:$0xf]  ;;  %v9086_v9 = vld [vmem:[%s15274_s4 + $0x38] sm:$0xf0]  ;;  %p407_p10 = scmp.lt.s32.totalorder %s8428_s29, 7  ;;  %v1235_v24 = vunpack.c.h.b16 %v1115_v1 }
  0x15   : > { %9249 = vset.pattern.permute.xlu1 %v10240_v4  ;;  %9248 = vset.pattern.permute.xlu0 %v10240_v4  ;;  %v10358_v5 = vsel %vm1311_vm0, 65535, %v10240_v4  ;;  %v8532_v10 = vld [vmem:[%s15274_s4 + $0x30] sm:$0xf]  ;;  %v9087_v11 = vld [vmem:[%s15274_s4 + $0x40] sm:$0xf0]  ;;  %v8525_v14 = vor.u32 %v9086_v9, %v8524_v6  ;;  %vm1262_vm1 = vcmask 269312  }
  0x16   : > { %15302 = vst [vmem:[#allocation5_spill] sm:$0xff] %v10358_v5  ;;  %9250 = vset.pattern.permute.xlu2 %v10240_v4  ;;  %v1247_v7 = vpack.c.b16 %v1232_v2, %v1232_v2  ;;  %v1249_v8 = vpack.c.b16 %v1234_v3, %v1234_v3  ;;  %s15683_s29 = smov (!%p407_p10, %s8428_s29), 7  ;;  %v8533_v15 = vor.u32 %v9087_v11, %v8532_v10  ;;  %v8504_v16 = vld [vmem:[%s15274_s4] sm:$0xf]  ;;  %v9081_v17 = vld [vmem:[%s15274_s4 + $0x10] sm:$0xf0]  ;;  %v1233_v4 = vunpack.c.h.b16 %v10351_v0 }
  0x17   : > { %v8512_v18 = vld [vmem:[%s15274_s4 + $0x8] sm:$0xf]  ;;  %v9082_v19 = vld [vmem:[%s15274_s4 + $0x18] sm:$0xf0]  ;;  %s9060_s25 = sshll.u32 %s15683_s29, 5  ;;  %v8505_v20 = vor.u32 %v9081_v17, %v8504_v16  ;;  %v1250_v25 = vpack.c.b16 %v1235_v24, %v1235_v24  ;;  %s9062_s30 = sshll.u32 %s15683_s29, 6 }
  0x18   : > { %v1315_v12 = vand.u32 %v10358_v5, %v1247_v7  ;;  %v1321_v13 = vand.u32 %v10358_v5, %v1249_v8  ;;  %v8513_v21 = vor.u32 %v9082_v19, %v8512_v18  ;;  %s10394_s28 = scalar_lea.vmem %s15270_s0, %s9060_s25  ;;  %v9085_v29 = vld [vmem:[%s15274_s4 + $0x34] sm:$0xf]  ;;  %v8534_v30 = vld [vmem:[%s15274_s4 + $0x44] sm:$0xf0]  ;;  %v9080_v31 = vld [vmem:[%s15274_s4 + $0xc] sm:$0xf]  ;;  %s10448_s18 = scalar_lea.vmem %s15272_s2, %s9062_s30  ;;  %v1248_v9 = vpack.c.b16 %v1233_v4, %v1233_v4 }
  0x19   : > { %v10397_v22 = vld [vmem:[%s10394_s28 + $0x40] sm:$0xff]  ;;  %v1324_v26 = vand.u32 %v10358_v5, %v1250_v25  ;;  %v10410_v27 = vld [vmem:[%s10394_s28 + $0x48] sm:$0xff]  ;;  %v8537_v32 = vor.u32 %v9085_v29, %v8534_v30  ;;  %v10440_v36 = vld [vmem:[%s10394_s28 + $0x50] sm:$0xff]  ;;  %s10613_s27 = scalar_lea.vmem %s15273_s3, %s15683_s29  ;;  %s10623_s12 = scalar_lea.vmem %s15271_s1, %s9060_s25  ;;  %vm1850_vm2 = vcmask 523264  }
  0x1a   : > { %9198 = vmatpush.bf16.msra.mxu1 %v1315_v12  ;;  %1512 = vmatpush.bf16.msra.mxu2 %v1321_v13  ;;  %v10400_v23 = vld [vmem:[%s10394_s28] sm:$0xff]  ;;  %v10413_v28 = vld [vmem:[%s10394_s28 + $0x8] sm:$0xff]  ;;  %v10443_v37 = vld [vmem:[%s10394_s28 + $0x10] sm:$0xff]  ;;  %s403_s20 = sand.u32 1, %s10230_s14   ;;  %s10196_s30 = scalar_lea.hbm %s15280_s10, 512 }
  0x1b   : > { %1334 = vmatpush.bf16.msra.mxu0 %v1315_v12  ;;  %9201 = vmatpush.bf16.msra.mxu3 %v1324_v26  ;;  %v8514_v33 = vld [vmem:[%s15274_s4 + $0x1c] sm:$0xf0]  ;;  %v468_v38 = vld [vmem:[%s10448_s18 + $0x10] sm:$0xff]  ;;  %v10458_v40 = vld [vmem:[%s10394_s28 + $0x28] sm:$0xff]  ;;  %s8427_s21 = sshll.u32 %s403_s20, 8 }
  0x1c   : > { %v8517_v34 = vor.u32 %v9080_v31, %v8514_v33  ;;  %v10434_v35 = vld [vmem:[%s10394_s28 + $0x20] sm:$0xff]  ;;  %v500_v39 = vpack.c.bf16 %v468_v38, %v468_v38  ;;  %v10463_v41 = vld [vmem:[%s10394_s28 + $0x58] sm:$0xff]  ;;  %v467_v48 = vld [vmem:[%s10448_s18 + $0x8] sm:$0xff]  ;;  %s15099_s26 = scalar_lea.vmem [#allocation2], %s8427_s21 }
  0x1d   : > { %v10466_v42 = vld [vmem:[%s10394_s28 + $0x18] sm:$0xff]  ;;  %v466_v44 = vld [vmem:[%s10448_s18] sm:$0xff]  ;;  %v10479_v49 = vld [vmem:[%s10394_s28 + $0x30] sm:$0xff]  ;;  %v499_v51 = vpack.c.bf16 %v467_v48, %v467_v48  ;;  %s8325_s29 = sshll.u32 %s15099_s26, 4  ;;  %s8326_s29 = int_to_ptr.vmem [resolvable:$true] %s8325_s29 }
  0x1e   : > { %9199 = vmatpush.bf16.msra.mxu1 %v8525_v14  ;;  %1513 = vmatpush.bf16.msra.mxu2 %v8533_v15  ;;  %v469_v43 = vld [vmem:[%s10448_s18 + $0x18] sm:$0xff]  ;;  %v498_v46 = vpack.c.bf16 %v466_v44, %v466_v44  ;;  %v10484_v52 = vld [vmem:[%s10394_s28 + $0x60] sm:$0xff]  ;;  %v476_v54 = vld [vmem:[%s10448_s18 + $0x50] sm:$0xff] }
  0x1f   : > { %1335 = vmatpush.bf16.msra.mxu0 %v8525_v14  ;;  %9202 = vmatpush.bf16.msra.mxu3 %v8537_v32  ;;  %v501_v45 = vpack.c.bf16 %v469_v43, %v469_v43  ;;  %v473_v47 = vld [vmem:[%s10448_s18 + $0x38] sm:$0xff]  ;;  %v470_v53 = vld [vmem:[%s10448_s18 + $0x20] sm:$0xff]  ;;  %v472_v55 = vld [vmem:[%s10448_s18 + $0x30] sm:$0xff]  ;;  %v508_v57 = vpack.c.bf16 %v476_v54, %v476_v54  ;;  %v1318_v14 = vand.u32 %v10358_v5, %v1248_v9 }
  0x20   : > { %590 = vperm.xlu1 %9249, %v500_v39   ;;  %572 = vperm.xlu0 %9248, %v498_v46   ;;  %v505_v50 = vpack.c.bf16 %v473_v47, %v473_v47  ;;  %v502_v56 = vpack.c.bf16 %v470_v53, %v470_v53  ;;  %v504_v58 = vpack.c.bf16 %v472_v55, %v472_v55  ;;  %v471_v59 = vld [vmem:[%s10448_s18 + $0x28] sm:$0xff]  ;;  %v10499_v62 = vld [vmem:[%s10394_s28 + $0x38] sm:$0xff]  ;;  %v474_v6 = vld [vmem:[%s10448_s18 + $0x40] sm:$0xff] }
  0x21   : > { %v479_v60 = vld [vmem:[%s10448_s18 + $0x68] sm:$0xff]  ;;  %v503_v63 = vpack.c.bf16 %v471_v59, %v471_v59  ;;  %v482_v7 = vld [vmem:[%s10448_s18 + $0x80] sm:$0xff]  ;;  %v506_v10 = vpack.c.bf16 %v474_v6, %v474_v6  ;;  %v477_v15 = vld [vmem:[%s10448_s18 + $0x58] sm:$0xff] }
  0x22   : > { %9200 = vmatpush.bf16.msra.mxu1 %v8505_v20  ;;  %1514 = vmatpush.bf16.msra.mxu2 %v8513_v21  ;;  %v475_v61 = vld [vmem:[%s10448_s18 + $0x48] sm:$0xff]  ;;  %v511_v1 = vpack.c.bf16 %v479_v60, %v479_v60  ;;  %v478_v8 = vld [vmem:[%s10448_s18 + $0x60] sm:$0xff]  ;;  %v514_v11 = vpack.c.bf16 %v482_v7, %v482_v7  ;;  %v481_v17 = vld [vmem:[%s10448_s18 + $0x78] sm:$0xff] }
  0x23   : > { %1336 = vmatpush.bf16.msra.mxu0 %v8505_v20  ;;  %9203 = vmatpush.bf16.msra.mxu3 %v8517_v34  ;;  %v507_v2 = vpack.c.bf16 %v475_v61, %v475_v61  ;;  %v10504_v3 = vld [vmem:[%s10394_s28 + $0x68] sm:$0xff]  ;;  %v510_v12 = vpack.c.bf16 %v478_v8, %v478_v8  ;;  %v8526_v13 = vld [vmem:[%s15274_s4 + $0x3c] sm:$0xf0]  ;;  %v9079_v18 = vld [vmem:[%s15274_s4 + $0x4] sm:$0xf]  ;;  %v509_v20 = vpack.c.bf16 %v477_v15, %v477_v15 }
  0x24   : > { %608 = vperm.xlu2 %9250, %v502_v56   ;;  %v9084_v0 = vld [vmem:[%s15274_s4 + $0x2c] sm:$0xf]  ;;  %v8506_v19 = vld [vmem:[%s15274_s4 + $0x14] sm:$0xf0]  ;;  %v513_v21 = vpack.c.bf16 %v481_v17, %v481_v17  ;;  %v10534_v25 = vld [vmem:[%s10394_s28 + $0x70] sm:$0xff] }
  0x25   : > { %8550 = vmatmul.msk.bf16.vlgmr.msra.gmra.mxu1 %vm1262_vm1, %v10397_v22  ;;  %8574 = vmatmul.msk.bf16.vlgmr.msra.gmra.mxu2 %vm1262_vm1, %v10400_v23  ;;  %v8529_v16 = vor.u32 %v9084_v0, %v8526_v13  ;;  %v8509_v24 = vor.u32 %v9079_v18, %v8506_v19  ;;  %v485_v29 = vld [vmem:[%s10448_s18 + $0x98] sm:$0xff]  ;;  %v484_v30 = vld [vmem:[%s10448_s18 + $0x90] sm:$0xff]  ;;  %v487_v43 = vld [vmem:[%s10448_s18 + $0xa8] sm:$0xff]  ;;  %v10241_v8 = vmov 839922192  }
  0x26   : > { %8542 = vmatmul.msk.bf16.vlgmr.msra.gmra.mxu0 %vm1262_vm1, %v10400_v23  ;;  %1601 = vmatpush.bf16.msrb.mxu2 %v1324_v26  ;;  %v480_v26 = vld [vmem:[%s10448_s18 + $0x70] sm:$0xff]  ;;  %v516_v33 = vpack.c.bf16 %v484_v30, %v484_v30  ;;  %v10549_v39 = vld [vmem:[%s10394_s28 + $0x78] sm:$0xff]  ;;  %v519_v44 = vpack.c.bf16 %v487_v43, %v487_v43  ;;  %v576_v9 = vunpack.c.l.s4 %v10241_v8 }
  0x27   : > { %8594 = vmatmul.msk.bf16.vlgmr.msra.gmra.mxu3 %vm1262_vm1, %v10434_v35  ;;  %1423 = vmatpush.bf16.msrb.mxu1 %v1318_v14  ;;  %v512_v31 = vpack.c.bf16 %v480_v26, %v480_v26  ;;  %v488_v46 = vld [vmem:[%s10448_s18 + $0xb0] sm:$0xff]  ;;  %v489_v60 = vld [vmem:[%s10448_s18 + $0xb8] sm:$0xff]  ;;  %v9120_v14 = vld [vmem:[%s10623_s12] sm:$0xff]  }
  0x28   : > { %599 = vperm.xlu1 %9249, %v501_v45   ;;  %581 = vperm.xlu0 %9248, %v499_v51   ;;  %v520_v47 = vpack.c.bf16 %v488_v46, %v488_v46  ;;  %v486_v51 = vld [vmem:[%s10448_s18 + $0xa0] sm:$0xff]  ;;  %v521_v61 = vpack.c.bf16 %v489_v60, %v489_v60  ;;  %v9121_v17 = vunpack.c.l.bf16 %v9120_v14 }
  0x29   : > { %v518_v53 = vpack.c.bf16 %v486_v51, %v486_v51  ;;  %v531_v51 = vld [vmem:[%s10613_s27 + $0x1] sm:$0x1] }
  0x2a   : > { %1602 = vmatpush.bf16.msrb.mxu2 %v8537_v32  ;;  %v517_v32 = vpack.c.bf16 %v485_v29, %v485_v29 }
  0x2b   : > { %1424 = vmatpush.bf16.msrb.mxu1 %v8529_v16 }
  0x2c   : > { %617 = vperm.xlu2 %9250, %v503_v63  }
  0x2e   : > { %1603 = vmatpush.bf16.msrb.mxu2 %v8517_v34  ;;  %v483_v34 = vld [vmem:[%s10448_s18 + $0x88] sm:$0xff] }
  0x2f   : > { %1425 = vmatpush.bf16.msrb.mxu1 %v8509_v24  ;;  %v515_v38 = vpack.c.bf16 %v483_v34, %v483_v34 }
  0x30   : > { %635 = vperm.xlu1 %9249, %v505_v50   ;;  %626 = vperm.xlu0 %9248, %v504_v58  }
  0x34   : > { %644 = vperm.xlu2 %9250, %v506_v10  }
  0x35   : > { %8551 = vmatmul.msk.bf16.gmra.mxu1 %vm1262_vm1, %v10410_v27  ;;  %8575 = vmatmul.msk.bf16.gmra.mxu2 %vm1262_vm1, %v10413_v28 }
  0x36   : > { %8543 = vmatmul.msk.bf16.gmra.mxu0 %vm1262_vm1, %v10413_v28 }
  0x37   : > { %8595 = vmatmul.msk.bf16.gmra.mxu3 %vm1262_vm1, %v10458_v40 }
  0x38   : > { %662 = vperm.xlu1 %9249, %v508_v57   ;;  %653 = vperm.xlu0 %9248, %v507_v2  }
  0x3c   : > { %671 = vperm.xlu2 %9250, %v509_v20  }
  0x40   : > { %689 = vperm.xlu1 %9249, %v511_v1   ;;  %680 = vperm.xlu0 %9248, %v510_v12  }
  0x44   : > { %698 = vperm.xlu2 %9250, %v512_v31  }
  0x45   : > { %8552 = vmatmul.msk.bf16.gmra.mxu1 %vm1262_vm1, %v10440_v36  ;;  %8576 = vmatmul.msk.bf16.gmra.mxu2 %vm1262_vm1, %v10443_v37 }
  0x46   : > { %8544 = vmatmul.msk.bf16.gmra.mxu0 %vm1262_vm1, %v10443_v37 }
  0x47   : > { %8596 = vmatmul.msk.bf16.gmra.mxu3 %vm1262_vm1, %v10479_v49 }
  0x48   : > { %716 = vperm.xlu1 %9249, %v514_v11   ;;  %707 = vperm.xlu0 %9248, %v513_v21   ;;  %v530_v11 = vld [vmem:[%s10613_s27] sm:$0x1] }
  0x4c   : > { %725 = vperm.xlu2 %9250, %v515_v38  }
  0x50   : > { %743 = vperm.xlu1 %9249, %v517_v32   ;;  %734 = vperm.xlu0 %9248, %v516_v33  }
  0x54   : > { %752 = vperm.xlu2 %9250, %v518_v53   ;;  %v9122_v53 = vunpack.c.h.bf16 %v9120_v14 }
  0x55   : > { %8553 = vmatmul.msk.bf16.gmra.mxu1 %vm1262_vm1, %v10463_v41  ;;  %8577 = vmatmul.msk.bf16.gmra.mxu2 %vm1262_vm1, %v10466_v42 }
  0x56   : > { %8545 = vmatmul.msk.bf16.gmra.mxu0 %vm1262_vm1, %v10466_v42 }
  0x57   : > { %8597 = vmatmul.msk.bf16.gmra.mxu3 %vm1262_vm1, %v10499_v62 }
  0x58   : > { %761 = vperm.xlu0 %9248, %v519_v44   ;;  %770 = vperm.xlu1 %9249, %v520_v47  }
  0x5c   : > { %779 = vperm.xlu2 %9250, %v521_v61   ;;  %v10655_v61 = vld [vmem:[%s10623_s12 + $0x20] sm:$0xff]  }
  0x65   : > { %8554 = vmatmul.msk.bf16.gmra.mxu1 %vm1262_vm1, %v10484_v52  ;;  %8578 = vmatmul.msk.bf16.gmra.mxu2 %vm1262_vm1, %v10434_v35 }
  0x66   : > { %8546 = vmatmul.msk.bf16.gmra.mxu0 %vm1262_vm1, %v10434_v35 }
  0x67   : > { %8598 = vmatmul.msk.bf16.gmra.mxu3 %vm1262_vm1, %v10397_v22 }
  0x75   : > { %8555 = vmatmul.msk.bf16.gmra.mxu1 %vm1262_vm1, %v10504_v3  ;;  %8579 = vmatmul.msk.bf16.gmra.mxu2 %vm1262_vm1, %v10458_v40 }
  0x76   : > { %8547 = vmatmul.msk.bf16.gmra.mxu0 %vm1262_vm1, %v10458_v40 }
  0x77   : > { %8599 = vmatmul.msk.bf16.gmra.mxu3 %vm1262_vm1, %v10410_v27 }
  0x7e   : > { %v10597_v2 = vpop.permute.xlu2 %608 }
  0x85   : > { %8556 = vmatmul.msk.bf16.gmra.mxu1 %vm1262_vm1, %v10534_v25  ;;  %8580 = vmatmul.msk.bf16.gmra.mxu2 %vm1262_vm1, %v10479_v49 }
  0x86   : > { %8548 = vmatmul.msk.bf16.gmra.mxu0 %vm1262_vm1, %v10479_v49  ;;  %v10627_v0 = vpop.permute.xlu2 %617 }
  0x87   : > { %8600 = vmatmul.msk.bf16.gmra.mxu3 %vm1262_vm1, %v10440_v36 }
  0x8e   : > { %v645_v31 = vpop.permute.xlu2 %644 }
  0x92   : > { %v10599_v4 = vpop.permute.xlu1 %590  ;;  %v573_v15 = vpop.permute.xlu0 %572 }
  0x95   : > { %8557 = vmatmul.msk.bf16.gmra.mxu1 %vm1262_vm1, %v10549_v39  ;;  %8581 = vmatmul.msk.bf16.gmra.mxu2 %vm1262_vm1, %v10499_v62 }
  0x96   : > { %8549 = vmatmul.msk.bf16.gmra.mxu0 %vm1262_vm1, %v10499_v62 }
  0x97   : > { %8601 = vmatmul.msk.bf16.gmra.mxu3 %vm1262_vm1, %v10463_v41 }
  0x9a   : > { %v10629_v13 = vpop.permute.xlu1 %599  ;;  %v582_v34 = vpop.permute.xlu0 %581 }
  0xa2   : > { %v10560_v45 = vpop.f32.mrf.mxu1  ;;  %v10645_v32 = vpop.permute.xlu1 %635 }
  0xa3   : > { %v10582_v56 = vpop.f32.mrf.mxu0 }
  0xa5   : > { %8558 = vmatmul.msk.bf16.vlgmr.msrb.gmra.mxu1 %vm1262_vm1, %v10400_v23  ;;  %8582 = vmatmul.msk.bf16.gmra.mxu2 %vm1262_vm1, %v10397_v22 }
  0xa7   : > { %8602 = vmatmul.msk.bf16.gmra.mxu3 %vm1262_vm1, %v10484_v52 }
  0xa8   : > { %v10567_v48 = vpop.f32.mrf.mxu2 }
  0xa9   : > { %15303 = vst [vmem:[#allocation6_spill] sm:$0xff] %v10567_v48 }
  0xaa   : > { %v10569_v50 = vpop.f32.mrf.mxu1  ;;  %v10595_v1 = vpop.f32.mrf.mxu3 }
  0xab   : > { %v10586_v58 = vpop.f32.mrf.mxu0  ;;  %15306 = vst [vmem:[#allocation9_spill] sm:$0xff] %v10595_v1  ;;  %v10665_v14 = vpop.permute.xlu1 %662 }
  0xb0   : > { %v10576_v55 = vpop.f32.mrf.mxu2 }
  0xb1   : > { %15304 = vst [vmem:[#allocation7_spill] sm:$0xff] %v10576_v55 }
  0xb2   : > { %v10574_v54 = vpop.f32.mrf.mxu1  ;;  %v10616_v12 = vpop.f32.mrf.mxu3 }
  0xb3   : > { %v10605_v6 = vpop.f32.mrf.mxu0  ;;  %15308 = vst [vmem:[#allocation11_spill] sm:$0xff] %v10616_v12 }
  0xb5   : > { %8559 = vmatmul.msk.bf16.gmra.mxu1 %vm1262_vm1, %v10413_v28  ;;  %8583 = vmatmul.msk.bf16.gmra.mxu2 %vm1262_vm1, %v10410_v27 }
  0xb7   : > { %8603 = vmatmul.msk.bf16.gmra.mxu3 %vm1262_vm1, %v10504_v3 }
  0xb8   : > { %v10588_v59 = vpop.f32.mrf.mxu2 }
  0xb9   : > { %15305 = vst [vmem:[#allocation8_spill] sm:$0xff] %v10588_v59 }
  0xba   : > { %v10584_v57 = vpop.f32.mrf.mxu1  ;;  %v10639_v29 = vpop.f32.mrf.mxu3 }
  0xbb   : > { %v10632_v16 = vpop.f32.mrf.mxu0  ;;  %15310 = vst [vmem:[#allocation13_spill] sm:$0xff] %v10639_v29 }
  0xc0   : > { %v10607_v7 = vpop.f32.mrf.mxu2 }
  0xc1   : > { %15307 = vst [vmem:[#allocation10_spill] sm:$0xff] %v10607_v7 }
  0xc2   : > { %v10593_v63 = vpop.f32.mrf.mxu1  ;;  %v10657_v8 = vpop.f32.mrf.mxu3 }
  0xc3   : > { %v10647_v38 = vpop.f32.mrf.mxu0  ;;  %15311 = vst [vmem:[#allocation14_spill] sm:$0xff] %v10657_v8 }
  0xc5   : > { %8560 = vmatmul.msk.bf16.gmra.mxu1 %vm1262_vm1, %v10443_v37  ;;  %8584 = vmatmul.msk.bf16.gmra.mxu2 %vm1262_vm1, %v10440_v36  ;;  %v534_v36 = vpack.c.bf16 %v530_v11, %v530_v11  ;;  %v10625_v37 = vunpack.c.0.s8 %v576_v9 }
  0xc7   : > { %v578_v18 = vperm.slane %v573_v15, %v10625_v37  ;;  %v987_v19 = vpack.i.b16 %v534_v36, %v534_v36  ;;  %v1794_v15 = vpack.c.bf16 %v10593_v63, %v10593_v63  ;;  %8604 = vmatmul.msk.bf16.gmra.mxu3 %vm1262_vm1, %v10534_v25  ;;  %v1793_v63 = vpack.c.bf16 %v10584_v57, %v10584_v57 }
  0xc8   : > { %v10637_v21 = vpop.f32.mrf.mxu2 }
  0xc9   : > { %v858_v20 = vunpack.c.l.bf16 %v578_v18  ;;  %15309 = vst [vmem:[#allocation12_spill] sm:$0xff] %v10637_v21  ;;  %v989_v30 = vperm.slane %v987_v19, 0  ;;  %v535_v19 = vpack.c.bf16 %v531_v51, %v531_v51  ;;  %v2008_v8 = vunpack.c.l.b16 %v1793_v63 }
  0xca   : > { %v1390_v10 = vpop.f32.mrf.mxu1 }
  0xcb   : > { %v922_v26 = vmul.f32 %v9121_v17, %v858_v20  ;;  %v10649_v44 = vunpack.c.l.bf16 %v989_v30  ;;  %v1795_v9 = vpack.c.bf16 %v1390_v10, %v1390_v10  ;;  %v10663_v20 = vpop.permute.xlu2 %671  ;;  %v10669_v10 = vpop.permute.xlu0 %626  ;;  %v991_v51 = vpack.i.b16 %v535_v19, %v535_v19 }
  0xcd   : > { %v954_v33 = vpack.c.bf16 %v922_v26, %v922_v26  ;;  %v9137_v26 = vunpack.c.l.bf16 %v10655_v61 }
  0xcf   : > { %v1002_v47 = vunpack.c.l.bf16 %v954_v33  ;;  %v10671_v33 = vpop.f32.mrf.mxu0 }
  0xd0   : > { %v10659_v11 = vpop.f32.mrf.mxu2 }
  0xd1   : > { %15312 = vst [vmem:[#allocation15_spill] sm:$0xff] %v10659_v11 }
  0xd2   : > { %v1393_v24 = vpop.f32.mrf.mxu1 }
  0xd3   : > { %v1796_v43 = vpack.c.bf16 %v1393_v24, %v1393_v24  ;;  %v1038_v24 = vmul.f32 %v10649_v44, %v1002_v47  ;;  %v1792_v47 = vpack.c.bf16 %v10574_v54, %v10574_v54  ;;  %v1790_v54 = vpack.c.bf16 %v10560_v45, %v10560_v45  ;;  %v10692_v19 = vpop.permute.xlu2 %698 }
  0xd5   : > { %8561 = vmatmul.msk.bf16.gmra.mxu1 %vm1262_vm1, %v10466_v42  ;;  %8585 = vmatmul.msk.bf16.gmra.mxu2 %vm1262_vm1, %v10463_v41  ;;  %v650_v42 = vperm.slane %v645_v31, %v10625_v37  ;;  %v587_v41 = vperm.slane %v582_v34, %v10625_v37  ;;  %v2011_v17 = vunpack.c.l.b16 %v1796_v43  ;;  %v2010_v43 = vunpack.c.l.b16 %v1795_v9 }
  0xd7   : > { %v859_v36 = vunpack.c.l.bf16 %v587_v41  ;;  %v866_v30 = vunpack.c.l.bf16 %v650_v42  ;;  %v2009_v42 = vunpack.c.l.b16 %v1794_v15  ;;  %v1070_v41 = vpack.c.bf16 %v1038_v24, %v1038_v24  ;;  %v10694_v24 = vpop.permute.xlu1 %689  ;;  %v1353_v63 = vpop.f32.mrf.mxu0  ;;  %8605 = vmatmul.msk.bf16.gmra.mxu3 %vm1262_vm1, %v10549_v39 }
  0xd8   : > { %v993_v15 = vperm.slane %v991_v51, 0  ;;  %v10696_v45 = vpop.f32.mrf.mxu2 }
  0xd9   : > { %v923_v31 = vmul.f32 %v9122_v53, %v859_v36  ;;  %v2015_v57 = vpack.c.b16 %v2010_v43, %v2009_v42  ;;  %15314 = vst [vmem:[#allocation17_spill] sm:$0xff] %v10696_v45 }
  0xda   : > { %v1395_v46 = vpop.f32.mrf.mxu1  ;;  %v10698_v51 = vunpack.c.l.bf16 %v993_v15 }
  0xdb   : > { %v1797_v60 = vpack.c.bf16 %v1395_v46, %v1395_v46  ;;  %v955_v46 = vpack.c.bf16 %v923_v31, %v923_v31  ;;  %v726_v15 = vpop.permute.xlu2 %725 }
  0xdd   : > { %v2012_v18 = vunpack.c.l.b16 %v1797_v60  ;;  %v930_v60 = vmul.f32 %v9137_v26, %v866_v30  ;;  %v1003_v36 = vunpack.c.l.bf16 %v955_v46  ;;  %v2007_v26 = vunpack.c.l.b16 %v1792_v47 }
  0xde   : > { %v2005_v46 = vunpack.c.l.b16 %v1790_v54  ;;  %v532_v54 = vld [vmem:[%s10613_s27 + $0x2] sm:$0x1] }
  0xdf   : > { %v2016_v34 = vpack.c.b16 %v2012_v18, %v2011_v17  ;;  %v10681_v17 = vpop.f32.mrf.mxu3  ;;  %v1791_v18 = vpack.c.bf16 %v10569_v50, %v10569_v50  ;;  %v1039_v9 = vmul.f32 %v10649_v44, %v1003_v36  ;;  %v1814_v50 = vunpack.c.l.b16 %v1070_v41 }
  0xe0   : > { %15313 = vst [vmem:[#allocation16_spill] sm:$0xff] %v10681_v17  ;;  %v962_v30 = vpack.c.bf16 %v930_v60, %v930_v60  ;;  %v2014_v43 = vpack.c.b16 %v2008_v8, %v2007_v26  ;;  %v9138_v60 = vunpack.c.h.bf16 %v10655_v61  ;;  %v491_v8 = vld [vmem:[%s10448_s18 + $0xc8] sm:$0xff]  ;;  %v490_v26 = vld [vmem:[%s10448_s18 + $0xc0] sm:$0xff] }
  0xe1   : > { %2037 = vmatpush.bf16.msrb.mxu3 %v2016_v34  ;;  %v1071_v31 = vpack.c.bf16 %v1039_v9, %v1039_v9  ;;  %v654_v34 = vpop.permute.xlu0 %653  ;;  %v523_v61 = vpack.c.bf16 %v491_v8, %v491_v8  ;;  %v522_v29 = vpack.c.bf16 %v490_v26, %v490_v26 }
  0xe2   : > { %v10679_v53 = vpop.f32.mrf.mxu1  ;;  %v1010_v47 = vunpack.c.l.bf16 %v962_v30  ;;  %v659_v36 = vperm.slane %v654_v34, %v10625_v37  ;;  %v9190_v30 = vld [vmem:[%s10623_s12 + $0x40] sm:$0xff]  }
  0xe3   : > { %797 = vperm.xlu1 %9249, %v523_v61   ;;  %788 = vperm.xlu0 %9248, %v522_v29   ;;  %v1778_v29 = vpack.c.bf16 %v10647_v38, %v10647_v38 }
  0xe4   : > { %v867_v9 = vunpack.c.l.bf16 %v659_v36  ;;  %v9154_v36 = vunpack.c.h.bf16 %v9190_v30 }
  0xe5   : > { %8562 = vmatmul.msk.bf16.gmra.mxu1 %vm1262_vm1, %v10434_v35  ;;  %8586 = vmatmul.msk.bf16.gmra.mxu2 %vm1262_vm1, %v10484_v52  ;;  %v2006_v35 = vunpack.c.l.b16 %v1791_v18  ;;  %v1815_v52 = vunpack.c.l.b16 %v1071_v31  ;;  %v717_v31 = vpop.permute.xlu1 %716  ;;  %v1838_v45 = vunpack.c.l.b16 %v1778_v29 }
  0xe6   : > { %2038 = vmatpush.bf16.msrb.mxu3 %v2015_v57  ;;  %v931_v17 = vmul.f32 %v9138_v60, %v867_v9  ;;  %v9153_v60 = vunpack.c.l.bf16 %v9190_v30  ;;  %v494_v30 = vld [vmem:[%s10448_s18 + $0xe0] sm:$0xff] }
  0xe7   : > { %v10702_v41 = vpack.c.b16 %v1815_v52, %v1814_v50  ;;  %v10706_v57 = vpop.f32.mrf.mxu3  ;;  %v2013_v18 = vpack.c.b16 %v2006_v35, %v2005_v46  ;;  %v1355_v52 = vpop.f32.mrf.mxu0  ;;  %v536_v35 = vpack.c.bf16 %v532_v54, %v532_v54 }
  0xe8   : > { %15315 = vst [vmem:[#allocation18_spill] sm:$0xff] %v10706_v57  ;;  %v963_v34 = vpack.c.bf16 %v931_v17, %v931_v17  ;;  %v10717_v46 = vpop.f32.mrf.mxu2  ;;  %v1780_v57 = vpack.c.bf16 %v1353_v63, %v1353_v63  ;;  %v1779_v63 = vpack.c.bf16 %v10671_v33, %v10671_v33 }
  0xe9   : > { %v10713_v50 = vpop.permute.xlu0 %680  ;;  %15316 = vst [vmem:[#allocation19_spill] sm:$0xff] %v10717_v46  ;;  %v995_v12 = vpack.i.b16 %v536_v35, %v536_v35  ;;  %v1781_v46 = vpack.c.bf16 %v1355_v52, %v1355_v52  ;;  %v497_v52 = vld [vmem:[%s10448_s18 + $0xf8] sm:$0xff] }
  0xea   : > { %2039 = vmatpush.bf16.msrb.mxu3 %v2014_v43  ;;  %v10700_v42 = vpop.f32.mrf.mxu1  ;;  %v1046_v43 = vmul.f32 %v10698_v51, %v1010_v47  ;;  %v731_v47 = vperm.slane %v726_v15, %v10625_v37  ;;  %v1011_v26 = vunpack.c.l.bf16 %v963_v34  ;;  %v493_v34 = vld [vmem:[%s10448_s18 + $0xd8] sm:$0xff] }
  0xeb   : > { %v997_v15 = vperm.slane %v995_v12, 0  ;;  %v525_v33 = vpack.c.bf16 %v493_v34, %v493_v34  ;;  %v529_v34 = vpack.c.bf16 %v497_v52, %v497_v52 }
  0xec   : > { %v1078_v8 = vpack.c.bf16 %v1046_v43, %v1046_v43  ;;  %v875_v17 = vunpack.c.l.bf16 %v731_v47  ;;  %v1047_v61 = vmul.f32 %v10698_v51, %v1011_v26 }
  0xed   : > { %v10736_v38 = vunpack.c.l.bf16 %v997_v15  ;;  %815 = vperm.xlu0 %9248, %v525_v33  }
  0xee   : > { %2040 = vmatpush.bf16.msrb.mxu3 %v2013_v18  ;;  %v722_v18 = vperm.slane %v717_v31, %v10625_v37  ;;  %v939_v31 = vmul.f32 %v9154_v36, %v875_v17  ;;  %v1900_v35 = vunpack.c.l.b16 %v1078_v8  ;;  %v1079_v47 = vpack.c.bf16 %v1047_v61, %v1047_v61 }
  0xef   : > { %v10723_v1 = vpop.f32.mrf.mxu3  ;;  %v10740_v12 = vpop.f32.mrf.mxu0  ;;  %v1839_v36 = vunpack.c.l.b16 %v1779_v63  ;;  %v1841_v17 = vunpack.c.l.b16 %v1781_v46  ;;  %v496_v63 = vld [vmem:[%s10448_s18 + $0xf0] sm:$0xff] }
  0xf0   : > { %v874_v54 = vunpack.c.l.bf16 %v722_v18  ;;  %15317 = vst [vmem:[#allocation20_spill] sm:$0xff] %v10723_v1  ;;  %v1840_v18 = vunpack.c.l.b16 %v1780_v57  ;;  %v971_v1 = vpack.c.bf16 %v939_v31, %v939_v31  ;;  %v1901_v11 = vunpack.c.l.b16 %v1079_v47  ;;  %v10751_v29 = vpop.f32.mrf.mxu2  ;;  %v744_v47 = vpop.permute.xlu1 %743 }
  0xf1   : > { %v10738_v26 = vpop.permute.xlu0 %707  ;;  %v1776_v57 = vpack.c.bf16 %v10605_v6, %v10605_v6  ;;  %15318 = vst [vmem:[#allocation21_spill] sm:$0xff] %v10751_v29  ;;  %v1774_v6 = vpack.c.bf16 %v10582_v56, %v10582_v56  ;;  %v528_v33 = vpack.c.bf16 %v496_v63, %v496_v63 }
  0xf2   : > { %v10721_v9 = vpop.f32.mrf.mxu1  ;;  %v938_v43 = vmul.f32 %v9153_v60, %v874_v54  ;;  %v1019_v60 = vunpack.c.l.bf16 %v971_v1  ;;  %v1777_v54 = vpack.c.bf16 %v10632_v16, %v10632_v16  ;;  %v10748_v15 = vpack.c.b16 %v1901_v11, %v1900_v35 }
  0xf3   : > { %v1845_v46 = vpack.c.b16 %v1841_v17, %v1840_v18  ;;  %v1775_v16 = vpack.c.bf16 %v10586_v58, %v10586_v58  ;;  %v1844_v35 = vpack.c.b16 %v1839_v36, %v1838_v45  ;;  %v749_v18 = vperm.slane %v744_v47, %v10625_v37 }
  0xf5   : > { %8563 = vmatmul.msk.bf16.gmra.mxu1 %vm1262_vm1, %v10458_v40  ;;  %8587 = vmatmul.msk.bf16.gmra.mxu2 %vm1262_vm1, %v10504_v3  ;;  %v970_v40 = vpack.c.bf16 %v938_v43, %v938_v43  ;;  %v526_v3 = vpack.c.bf16 %v494_v30, %v494_v30  ;;  %v1055_v30 = vmul.f32 %v10736_v38, %v1019_v60 }
  0xf6   : > { %1867 = vmatpush.bf16.msra.mxu1 %v1845_v46  ;;  %842 = vperm.xlu0 %9248, %v528_v33  }
  0xf7   : > { %v1018_v8 = vunpack.c.l.bf16 %v970_v40  ;;  %824 = vperm.xlu1 %9249, %v526_v3   ;;  %v10756_v31 = vpop.f32.mrf.mxu3  ;;  %v1087_v11 = vpack.c.bf16 %v1055_v30, %v1055_v30  ;;  %v1836_v40 = vunpack.c.l.b16 %v1776_v57  ;;  %v1837_v3 = vunpack.c.l.b16 %v1777_v54  ;;  %v10765_v29 = vpop.f32.mrf.mxu0 }
  0xf8   : > { %15319 = vst [vmem:[#allocation22_spill] sm:$0xff] %v10756_v31  ;;  %v9191_v31 = vld [vmem:[%s10623_s12 + $0x48] sm:$0xff]   ;;  %v877_v30 = vunpack.c.l.bf16 %v749_v18  ;;  %v1834_v57 = vunpack.c.l.b16 %v1774_v6  ;;  %v1835_v54 = vunpack.c.l.b16 %v1775_v16  ;;  %v10775_v18 = vpop.f32.mrf.mxu2 }
  0xf9   : > { %v1054_v1 = vmul.f32 %v10736_v38, %v1018_v8  ;;  %v735_v60 = vpop.permute.xlu0 %734  ;;  %v1986_v8 = vunpack.c.l.b16 %v1087_v11  ;;  %v9158_v58 = vunpack.c.h.bf16 %v9191_v31  ;;  %v9157_v45 = vunpack.c.l.bf16 %v9191_v31  ;;  %15322 = vst [vmem:[#allocation25_spill] sm:$0xff] %v10775_v18 }
  0xfa   : > { %v10746_v61 = vpop.f32.mrf.mxu1  ;;  %v740_v56 = vperm.slane %v735_v60, %v10625_v37  ;;  %1868 = vmatpush.bf16.msra.mxu1 %v1844_v35  ;;  %v1843_v63 = vpack.c.b16 %v1837_v3, %v1836_v40  ;;  %v1842_v16 = vpack.c.b16 %v1835_v54, %v1834_v57 }
  0xfb   : > { %v1086_v43 = vpack.c.bf16 %v1054_v1, %v1054_v1  ;;  %v941_v46 = vmul.f32 %v9158_v58, %v877_v30 }
  0xfc   : > { %v876_v36 = vunpack.c.l.bf16 %v740_v56  ;;  %v753_v56 = vpop.permute.xlu2 %752 }
  0xfd   : > { %v1985_v17 = vunpack.c.l.b16 %v1086_v43  ;;  %v973_v47 = vpack.c.bf16 %v941_v46, %v941_v46  ;;  %v492_v46 = vld [vmem:[%s10448_s18 + $0xd0] sm:$0xff] }
  0xfe   : > { %v940_v11 = vmul.f32 %v9157_v45, %v876_v36  ;;  %1869 = vmatpush.bf16.msra.mxu1 %v1843_v63  ;;  %v758_v36 = vperm.slane %v753_v56, %v10625_v37 }
  0xff   : > { %v10767_v1 = vpack.c.b16 %v1986_v8, %v1985_v17  ;;  %851 = vperm.xlu1 %9249, %v529_v34   ;;  %v10773_v43 = vpop.f32.mrf.mxu3  ;;  %v1021_v6 = vunpack.c.l.bf16 %v973_v47  ;;  %v10781_v35 = vpop.f32.mrf.mxu0 }
 0x100   : > { %15321 = vst [vmem:[#allocation24_spill] sm:$0xff] %v10773_v43  ;;  %v972_v31 = vpack.c.bf16 %v940_v11, %v940_v11  ;;  %v10793_v63 = vpop.f32.mrf.mxu2  ;;  %v878_v11 = vunpack.c.l.bf16 %v758_v36 }
 0x101   : > { %15320 = vst [vmem:[#allocation23_spill] sm:$0xff] %v10767_v1  ;;  %8630 = vmatmul.msk.bf16.vlgmr.msrb.gmra.mxu3 %vm1850_vm2, %v10767_v1  ;;  %v1057_v40 = vmul.f32 %v10736_v38, %v1021_v6  ;;  %v762_v30 = vpop.permute.xlu0 %761 }
 0x102   : > { %v10769_v52 = vpop.f32.mrf.mxu1  ;;  %v1020_v34 = vunpack.c.l.bf16 %v972_v31  ;;  %1870 = vmatpush.bf16.msra.mxu1 %v1842_v16  ;;  %v767_v54 = vperm.slane %v762_v30, %v10625_v37  ;;  %15324 = vst [vmem:[#allocation27_spill] sm:$0xff] %v10793_v63  ;;  %v524_v16 = vpack.c.bf16 %v492_v46, %v492_v46 }
 0x103   : > { %v1089_v60 = vpack.c.bf16 %v1057_v40, %v1057_v40 }
 0x104   : > { %v1056_v3 = vmul.f32 %v10736_v38, %v1020_v34  ;;  %v879_v47 = vunpack.c.l.bf16 %v767_v54  ;;  %806 = vperm.xlu2 %9250, %v524_v16   ;;  %v495_v16 = vld [vmem:[%s10448_s18 + $0xe8] sm:$0xff] }
 0x105   : > { %8564 = vmatmul.msk.bf16.gmra.mxu1 %vm1262_vm1, %v10479_v49  ;;  %8588 = vmatmul.msk.bf16.gmra.mxu2 %vm1262_vm1, %v10534_v25  ;;  %v9192_v49 = vld [vmem:[%s10623_s12 + $0x50] sm:$0xff]   ;;  %v1988_v25 = vunpack.c.l.b16 %v1089_v60 }
 0x106   : > { %v1088_v8 = vpack.c.bf16 %v1056_v3, %v1056_v3  ;;  %v9161_v58 = vunpack.c.l.bf16 %v9192_v49  ;;  %v9162_v57 = vunpack.c.h.bf16 %v9192_v49 }
 0x107   : > { %v10788_v17 = vpop.f32.mrf.mxu3  ;;  %v10795_v31 = vpop.f32.mrf.mxu0 }
 0x108   : > { %15323 = vst [vmem:[#allocation26_spill] sm:$0xff] %v10788_v17  ;;  %v1987_v45 = vunpack.c.l.b16 %v1088_v8  ;;  %v942_v34 = vmul.f32 %v9161_v58, %v878_v11  ;;  %v943_v40 = vmul.f32 %v9162_v57, %v879_v47  ;;  %v10811_v57 = vpop.f32.mrf.mxu2  ;;  %v9193_v47 = vld [vmem:[%s10623_s12 + $0x58] sm:$0xff]  }
 0x109   : > { %15327 = vst [vmem:[#allocation30_spill] sm:$0xff] %v10811_v57 }
 0x10a   : > { %v10785_v33 = vpop.f32.mrf.mxu1  ;;  %v10797_v6 = vpack.c.b16 %v1988_v25, %v1987_v45  ;;  %v974_v60 = vpack.c.bf16 %v942_v34, %v942_v34  ;;  %v975_v8 = vpack.c.bf16 %v943_v40, %v943_v40 }
 0x10c   : > { %15325 = vst [vmem:[#allocation28_spill] sm:$0xff] %v10797_v6  ;;  %v1022_v25 = vunpack.c.l.bf16 %v974_v60  ;;  %v1023_v56 = vunpack.c.l.bf16 %v975_v8  ;;  %v1803_v60 = vpack.c.bf16 %v10785_v33, %v10785_v33 }
 0x10e   : > { %v1058_v58 = vmul.f32 %v10736_v38, %v1022_v25  ;;  %v1059_v30 = vmul.f32 %v10736_v38, %v1023_v56  ;;  %v780_v25 = vpop.permute.xlu2 %779  ;;  %v9166_v56 = vunpack.c.h.bf16 %v9193_v47 }
 0x10f   : > { %v10801_v49 = vpop.f32.mrf.mxu3  ;;  %v10809_v45 = vpop.f32.mrf.mxu0 }
 0x110   : > { %15326 = vst [vmem:[#allocation29_spill] sm:$0xff] %v10801_v49  ;;  %v1090_v54 = vpack.c.bf16 %v1058_v58, %v1058_v58  ;;  %v1091_v46 = vpack.c.bf16 %v1059_v30, %v1059_v30  ;;  %v771_v49 = vpop.permute.xlu1 %770  ;;  %v785_v58 = vperm.slane %v780_v25, %v10625_v37  ;;  %v9165_v30 = vunpack.c.l.bf16 %v9193_v47 }
 0x111   : > { %8631 = vmatmul.msk.bf16.gmra.mxu3 %vm1850_vm2, %v10797_v6  ;;  %v776_v43 = vperm.slane %v771_v49, %v10625_v37  ;;  %v1800_v49 = vpack.c.bf16 %v10721_v9, %v10721_v9 }
 0x112   : > { %v1413_v3 = vpop.f32.mrf.mxu1  ;;  %v1989_v34 = vunpack.c.l.b16 %v1090_v54  ;;  %v1990_v40 = vunpack.c.l.b16 %v1091_v46  ;;  %v1802_v54 = vpack.c.bf16 %v10769_v52, %v10769_v52  ;;  %v10831_v52 = vpop.f32.mrf.mxu2 }
 0x113   : > { %v1804_v36 = vpack.c.bf16 %v1413_v3, %v1413_v3  ;;  %v527_v3 = vpack.c.bf16 %v495_v16, %v495_v16  ;;  %v2095_v16 = vunpack.c.l.b16 %v1803_v60  ;;  %15330 = vst [vmem:[#allocation33_spill] sm:$0xff] %v10831_v52 }
 0x114   : > { %v10823_v33 = vpack.c.b16 %v1990_v40, %v1989_v34  ;;  %v2094_v47 = vunpack.c.l.b16 %v1802_v54 }
 0x115   : > { %8565 = vmatmul.msk.bf16.gmra.mxu1 %vm1262_vm1, %v10499_v62  ;;  %8589 = vmatmul.msk.bf16.gmra.mxu2 %vm1262_vm1, %v10549_v39  ;;  %v2096_v8 = vunpack.c.l.b16 %v1804_v36  ;;  %v1801_v36 = vpack.c.bf16 %v10746_v61, %v10746_v61  ;;  %v1799_v61 = vpack.c.bf16 %v10700_v42, %v10700_v42 }
 0x116   : > { %833 = vperm.xlu2 %9250, %v527_v3   ;;  %15329 = vst [vmem:[#allocation32_spill] sm:$0xff] %v10823_v33 }
 0x117   : > { %v10815_v39 = vpop.f32.mrf.mxu3  ;;  %v1370_v63 = vpop.f32.mrf.mxu0  ;;  %v2093_v40 = vunpack.c.l.b16 %v1801_v36 }
 0x118   : > { %15328 = vst [vmem:[#allocation31_spill] sm:$0xff] %v10815_v39  ;;  %v880_v39 = vunpack.c.l.bf16 %v776_v43 }
 0x11a   : > { %v1415_v11 = vpop.f32.mrf.mxu1  ;;  %v944_v25 = vmul.f32 %v9165_v30, %v880_v39  ;;  %v2100_v39 = vpack.c.b16 %v2095_v16, %v2094_v47  ;;  %v2091_v30 = vunpack.c.l.b16 %v1799_v61 }
 0x11b   : > { %v1805_v62 = vpack.c.bf16 %v1415_v11, %v1415_v11  ;;  %v881_v11 = vunpack.c.l.bf16 %v785_v58 }
 0x11c   : > { %v976_v43 = vpack.c.bf16 %v944_v25, %v944_v25 }
 0x11d   : > { %v2097_v17 = vunpack.c.l.b16 %v1805_v62  ;;  %v945_v62 = vmul.f32 %v9166_v56, %v881_v11  ;;  %v2092_v56 = vunpack.c.l.b16 %v1800_v49  ;;  %v10851_v49 = vpop.f32.mrf.mxu2 }
 0x11e   : > { %v1024_v60 = vunpack.c.l.bf16 %v976_v43  ;;  %15333 = vst [vmem:[#allocation36_spill] sm:$0xff] %v10851_v49 }
 0x11f   : > { %v2101_v46 = vpack.c.b16 %v2097_v17, %v2096_v8  ;;  %v977_v17 = vpack.c.bf16 %v945_v62, %v945_v62  ;;  %v10835_v34 = vpop.f32.mrf.mxu3  ;;  %v1798_v8 = vpack.c.bf16 %v10679_v53, %v10679_v53  ;;  %v1373_v42 = vpop.f32.mrf.mxu0  ;;  %v2099_v54 = vpack.c.b16 %v2093_v40, %v2092_v56 }
 0x120   : > { %15331 = vst [vmem:[#allocation34_spill] sm:$0xff] %v10835_v34  ;;  %v1060_v58 = vmul.f32 %v10736_v38, %v1024_v60  ;;  %v1788_v25 = vpack.c.bf16 %v1373_v42, %v1373_v42  ;;  %v1786_v40 = vpack.c.bf16 %v10809_v45, %v10809_v45  ;;  %v1784_v56 = vpack.c.bf16 %v10781_v35, %v10781_v35  ;;  %v9187_v42 = vld [vmem:[%s10623_s12 + $0x28] sm:$0xff]  }
 0x121   : > { %2122 = vmatpush.bf16.msrb.mxu1 %v2101_v46  ;;  %8632 = vmatmul.msk.bf16.gmra.mxu3 %vm1850_vm2, %v10823_v33  ;;  %v1025_v9 = vunpack.c.l.bf16 %v977_v17  ;;  %v9142_v35 = vunpack.c.h.bf16 %v9187_v42 }
 0x122   : > { %v10829_v57 = vpop.f32.mrf.mxu1  ;;  %v1092_v11 = vpack.c.bf16 %v1060_v58, %v1060_v58  ;;  %v1926_v17 = vunpack.c.l.b16 %v1788_v25  ;;  %v1924_v45 = vunpack.c.l.b16 %v1786_v40 }
 0x123   : > { %v1061_v3 = vmul.f32 %v10736_v38, %v1025_v9 }
 0x124   : > { %v1991_v16 = vunpack.c.l.b16 %v1092_v11  ;;  %v9141_v11 = vunpack.c.l.bf16 %v9187_v42  ;;  %v686_v42 = vperm.slane %v10713_v50, %v10625_v37 }
 0x125   : > { %8566 = vmatmul.msk.bf16.gmra.mxu1 %vm1262_vm1, %v10397_v22  ;;  %8590 = vmatmul.msk.bf16.vlgmr.msrb.gmra.mxu2 %vm1262_vm1, %v10400_v23  ;;  %v1093_v46 = vpack.c.bf16 %v1061_v3, %v1061_v3  ;;  %v2090_v22 = vunpack.c.l.b16 %v1798_v8  ;;  %v677_v8 = vperm.slane %v10663_v20, %v10625_v37  ;;  %v1785_v3 = vpack.c.bf16 %v10795_v31, %v10795_v31  ;;  %v10876_v20 = vpop.f32.mrf.mxu2 }
 0x126   : > { %2123 = vmatpush.bf16.msrb.mxu1 %v2100_v39  ;;  %v1787_v39 = vpack.c.bf16 %v1370_v63, %v1370_v63  ;;  %v668_v63 = vperm.slane %v10665_v14, %v10625_v37  ;;  %15336 = vst [vmem:[#allocation39_spill] sm:$0xff] %v10876_v20  ;;  %v1782_v14 = vpack.c.bf16 %v10740_v12, %v10740_v12 }
 0x127   : > { %v1992_v23 = vunpack.c.l.b16 %v1093_v46  ;;  %v10849_v62 = vpop.f32.mrf.mxu3  ;;  %v2098_v53 = vpack.c.b16 %v2091_v30, %v2090_v22  ;;  %v1375_v38 = vpop.f32.mrf.mxu0  ;;  %v1922_v46 = vunpack.c.l.b16 %v1784_v56  ;;  %v1923_v31 = vunpack.c.l.b16 %v1785_v3  ;;  %v9188_v3 = vld [vmem:[%s10623_s12 + $0x30] sm:$0xff]  }
 0x128   : > { %15332 = vst [vmem:[#allocation35_spill] sm:$0xff] %v10849_v62  ;;  %v1789_v43 = vpack.c.bf16 %v1375_v38, %v1375_v38  ;;  %v1925_v30 = vunpack.c.l.b16 %v1787_v39  ;;  %v868_v22 = vunpack.c.l.bf16 %v668_v63  ;;  %v10149_v63 = vld [vmem:[%s10394_s28 + $0x50] sm:$0xff] }
 0x129   : > { %v10853_v47 = vpack.c.b16 %v1992_v23, %v1991_v16  ;;  %v1929_v25 = vpack.c.b16 %v1923_v31, %v1922_v46 }
 0x12a   : > { %2124 = vmatpush.bf16.msrb.mxu1 %v2099_v54  ;;  %v10847_v36 = vpop.f32.mrf.mxu1  ;;  %v1927_v9 = vunpack.c.l.b16 %v1789_v43  ;;  %v869_v54 = vunpack.c.l.bf16 %v677_v8  ;;  %v932_v38 = vmul.f32 %v9141_v11, %v868_v22  ;;  %v9145_v11 = vunpack.c.l.bf16 %v9188_v3 }
 0x12b   : > { %15334 = vst [vmem:[#allocation37_spill] sm:$0xff] %v10853_v47 }
 0x12c   : > { %v1931_v58 = vpack.c.b16 %v1927_v9, %v1926_v17  ;;  %v1920_v17 = vunpack.c.l.b16 %v1782_v14  ;;  %v964_v12 = vpack.c.bf16 %v932_v38, %v932_v38 }
 0x12d   : > { %v10886_v39 = vpop.f32.mrf.mxu2 }
 0x12e   : > { %2125 = vmatpush.bf16.msrb.mxu1 %v2098_v53  ;;  %1952 = vmatpush.bf16.msra.mxu2 %v1931_v58  ;;  %v933_v53 = vmul.f32 %v9142_v35, %v869_v54  ;;  %15338 = vst [vmem:[#allocation41_spill] sm:$0xff] %v10886_v39  ;;  %v1012_v56 = vunpack.c.l.bf16 %v964_v12  ;;  %v695_v58 = vperm.slane %v10694_v24, %v10625_v37  ;;  %v9146_v54 = vunpack.c.h.bf16 %v9188_v3 }
 0x12f   : > { %v10861_v60 = vpop.f32.mrf.mxu3  ;;  %v870_v24 = vunpack.c.l.bf16 %v686_v42 }
 0x130   : > { %15335 = vst [vmem:[#allocation38_spill] sm:$0xff] %v10861_v60  ;;  %v965_v40 = vpack.c.bf16 %v933_v53, %v933_v53  ;;  %v1048_v46 = vmul.f32 %v10698_v51, %v1012_v56  ;;  %v871_v31 = vunpack.c.l.bf16 %v695_v58  ;;  %v713_v58 = vperm.slane %v10738_v26, %v10625_v37 }
 0x131   : > { %8633 = vmatmul.msk.bf16.gmra.mxu3 %vm1850_vm2, %v10853_v47  ;;  %v934_v53 = vmul.f32 %v9145_v11, %v870_v24 }
 0x132   : > { %v10855_v61 = vpop.f32.mrf.mxu1  ;;  %v1013_v8 = vunpack.c.l.bf16 %v965_v40  ;;  %v873_v24 = vunpack.c.l.bf16 %v713_v58 }
 0x133   : > { %v966_v40 = vpack.c.bf16 %v934_v53, %v934_v53 }
 0x134   : > { %v1049_v35 = vmul.f32 %v10698_v51, %v1013_v8  ;;  %v9189_v8 = vld [vmem:[%s10623_s12 + $0x38] sm:$0xff]  }
 0x135   : > { %8567 = vmatmul.msk.bf16.gmra.mxu1 %vm1262_vm1, %v10410_v27  ;;  %8591 = vmatmul.msk.bf16.gmra.mxu2 %vm1262_vm1, %v10413_v28  ;;  %v1783_v27 = vpack.c.bf16 %v10765_v29, %v10765_v29  ;;  %v1930_v28 = vpack.c.b16 %v1925_v30, %v1924_v45  ;;  %v10150_v45 = vld [vmem:[%s10394_s28 + $0x10] sm:$0xff]  ;;  %v10905_v50 = vpop.f32.mrf.mxu2  ;;  %v1014_v3 = vunpack.c.l.bf16 %v966_v40  ;;  %v9150_v11 = vunpack.c.h.bf16 %v9189_v8 }
 0x136   : > { %15340 = vst [vmem:[#allocation43_spill] sm:$0xff] %v10905_v50  ;;  %v1081_v14 = vpack.c.bf16 %v1049_v35, %v1049_v35 }
 0x137   : > { %v10884_v16 = vpop.f32.mrf.mxu3  ;;  %1953 = vmatpush.bf16.msra.mxu2 %v1930_v28  ;;  %v1921_v43 = vunpack.c.l.b16 %v1783_v27  ;;  %v1080_v27 = vpack.c.bf16 %v1048_v46, %v1048_v46  ;;  %v935_v28 = vmul.f32 %v9146_v54, %v871_v31  ;;  %v9149_v54 = vunpack.c.l.bf16 %v9189_v8 }
 0x138   : > { %15337 = vst [vmem:[#allocation40_spill] sm:$0xff] %v10884_v16  ;;  %v1903_v38 = vunpack.c.l.b16 %v1081_v14  ;;  %v1050_v31 = vmul.f32 %v10698_v51, %v1014_v3 }
 0x139   : > { %v1928_v9 = vpack.c.b16 %v1921_v43, %v1920_v17  ;;  %v1902_v17 = vunpack.c.l.b16 %v1080_v27  ;;  %v967_v43 = vpack.c.bf16 %v935_v28, %v935_v28 }
 0x13a   : > { %v10882_v23 = vpop.f32.mrf.mxu1  ;;  %v1082_v53 = vpack.c.bf16 %v1050_v31, %v1050_v31 }
 0x13b   : > { %1954 = vmatpush.bf16.msra.mxu2 %v1929_v25  ;;  %v1015_v56 = vunpack.c.l.bf16 %v967_v43  ;;  %v10922_v35 = vpack.c.b16 %v1903_v38, %v1902_v17  ;;  %v937_v43 = vmul.f32 %v9150_v11, %v873_v24 }
 0x13d   : > { %v10916_v42 = vpop.f32.mrf.mxu2 }
 0x13e   : > { %15342 = vst [vmem:[#allocation45_spill] sm:$0xff] %v10916_v42 }
 0x13f   : > { %1955 = vmatpush.bf16.msra.mxu2 %v1928_v9  ;;  %v10899_v30 = vpop.f32.mrf.mxu3  ;;  %v704_v9 = vperm.slane %v10692_v19, %v10625_v37  ;;  %v1051_v19 = vmul.f32 %v10698_v51, %v1015_v56 }
 0x140   : > { %15339 = vst [vmem:[#allocation42_spill] sm:$0xff] %v10899_v30  ;;  %v10155_v30 = vld [vmem:[%s10394_s28 + $0x70] sm:$0xff] }
 0x141   : > { %v872_v46 = vunpack.c.l.bf16 %v704_v9  ;;  %v1083_v28 = vpack.c.bf16 %v1051_v19, %v1051_v19  ;;  %v1904_v9 = vunpack.c.l.b16 %v1082_v53  ;;  %v641_v53 = vperm.slane %v10645_v32, %v10625_v37 }
 0x142   : > { %v10888_v29 = vpop.f32.mrf.mxu1 }
 0x143   : > { %v936_v27 = vmul.f32 %v9149_v54, %v872_v46  ;;  %v1905_v17 = vunpack.c.l.b16 %v1083_v28 }
 0x145   : > { %8568 = vmatmul.msk.bf16.gmra.mxu1 %vm1262_vm1, %v10149_v63  ;;  %8592 = vmatmul.msk.bf16.gmra.mxu2 %vm1262_vm1, %v10150_v45  ;;  %v10151_v63 = vld [vmem:[%s10394_s28 + $0x58] sm:$0xff]  ;;  %v10930_v40 = vpop.f32.mrf.mxu2  ;;  %v968_v38 = vpack.c.bf16 %v936_v27, %v936_v27  ;;  %v10940_v54 = vpack.c.b16 %v1905_v17, %v1904_v9 }
 0x146   : > { %v10152_v45 = vld [vmem:[%s10394_s28 + $0x18] sm:$0xff]  ;;  %15344 = vst [vmem:[#allocation47_spill] sm:$0xff] %v10930_v40 }
 0x147   : > { %v10907_v25 = vpop.f32.mrf.mxu3  ;;  %v1016_v8 = vunpack.c.l.bf16 %v968_v38  ;;  %v9185_v38 = vld [vmem:[%s10623_s12 + $0x18] sm:$0xff]  }
 0x148   : > { %15341 = vst [vmem:[#allocation44_spill] sm:$0xff] %v10907_v25 }
 0x149   : > { %v1052_v46 = vmul.f32 %v10698_v51, %v1016_v8  ;;  %v9134_v8 = vunpack.c.h.bf16 %v9185_v38 }
 0x14a   : > { %v10903_v22 = vpop.f32.mrf.mxu1 }
 0x14b   : > { %v1084_v24 = vpack.c.bf16 %v1052_v46, %v1052_v46 }
 0x14d   : > { %v10944_v31 = vpop.f32.mrf.mxu2  ;;  %v1906_v17 = vunpack.c.l.b16 %v1084_v24 }
 0x14e   : > { %15346 = vst [vmem:[#allocation49_spill] sm:$0xff] %v10944_v31 }
 0x14f   : > { %v10926_v26 = vpop.f32.mrf.mxu3 }
 0x150   : > { %15343 = vst [vmem:[#allocation46_spill] sm:$0xff] %v10926_v26 }
 0x152   : > { %v10909_v12 = vpop.f32.mrf.mxu1 }
 0x155   : > { %8569 = vmatmul.msk.bf16.gmra.mxu1 %vm1262_vm1, %v10151_v63  ;;  %8593 = vmatmul.msk.bf16.gmra.mxu2 %vm1262_vm1, %v10152_v45  ;;  %v969_v63 = vpack.c.bf16 %v937_v43, %v937_v43  ;;  %v10153_v45 = vld [vmem:[%s10394_s28 + $0x60] sm:$0xff]  ;;  %v632_v43 = vperm.slane %v10669_v10, %v10625_v37  ;;  %v789_v42 = vpop.permute.xlu0 %788 }
 0x157   : > { %v10934_v3 = vpop.f32.mrf.mxu3  ;;  %v1017_v58 = vunpack.c.l.bf16 %v969_v63  ;;  %v864_v46 = vunpack.c.l.bf16 %v632_v43  ;;  %v596_v43 = vperm.slane %v10599_v4, %v10625_v37 }
 0x158   : > { %15345 = vst [vmem:[#allocation48_spill] sm:$0xff] %v10934_v3 }
 0x159   : > { %v1053_v19 = vmul.f32 %v10698_v51, %v1017_v58  ;;  %v10957_v51 = vpop.f32.mrf.mxu2  ;;  %v865_v58 = vunpack.c.l.bf16 %v641_v53 }
 0x15a   : > { %v10928_v14 = vpop.f32.mrf.mxu1  ;;  %15348 = vst [vmem:[#allocation51_spill] sm:$0xff] %v10957_v51 }
 0x15b   : > { %v1085_v27 = vpack.c.bf16 %v1053_v19, %v1053_v19  ;;  %v10154_v19 = vld [vmem:[%s10394_s28 + $0x68] sm:$0xff]  ;;  %v929_v24 = vmul.f32 %v9134_v8, %v865_v58 }
 0x15d   : > { %v1907_v9 = vunpack.c.l.b16 %v1085_v27  ;;  %v961_v3 = vpack.c.bf16 %v929_v24, %v929_v24 }
 0x15f   : > { %v10948_v28 = vpop.f32.mrf.mxu3  ;;  %v10963_v32 = vpack.c.b16 %v1907_v9, %v1906_v17  ;;  %v1009_v17 = vunpack.c.l.bf16 %v961_v3 }
 0x160   : > { %15347 = vst [vmem:[#allocation50_spill] sm:$0xff] %v10948_v28 }
 0x161   : > { %15349 = vst [vmem:[#allocation52_spill] sm:$0xff] %v10963_v32  ;;  %v10969_v53 = vpop.f32.mrf.mxu2 }
 0x162   : > { %v10932_v56 = vpop.f32.mrf.mxu1  ;;  %15351 = vst [vmem:[#allocation54_spill] sm:$0xff] %v10969_v53 }
 0x165   : > { %8570 = vmatmul.msk.bf16.gmra.mxu1 %vm1262_vm1, %v10153_v45  ;;  %8626 = vmatmul.msk.bf16.vlgmr.msra.gmra.mxu2 %vm1850_vm2, %v10748_v15  ;;  %v9133_v45 = vunpack.c.l.bf16 %v9185_v38  ;;  %v9183_v38 = vld [vmem:[%s10623_s12 + $0x8] sm:$0xff]  }
 0x166   : > { %v9125_v58 = vunpack.c.l.bf16 %v9183_v38 }
 0x167   : > { %v10965_v10 = vpop.f32.mrf.mxu3  ;;  %v928_v27 = vmul.f32 %v9133_v45, %v864_v46  ;;  %v860_v45 = vunpack.c.l.bf16 %v596_v43  ;;  %v9126_v46 = vunpack.c.h.bf16 %v9183_v38 }
 0x168   : > { %15350 = vst [vmem:[#allocation53_spill] sm:$0xff] %v10965_v10 }
 0x169   : > { %v960_v26 = vpack.c.bf16 %v928_v27, %v928_v27  ;;  %v1045_v27 = vmul.f32 %v10649_v44, %v1009_v17  ;;  %v10986_v4 = vpop.f32.mrf.mxu2 }
 0x16a   : > { %v10946_v11 = vpop.f32.mrf.mxu1  ;;  %15353 = vst [vmem:[#allocation56_spill] sm:$0xff] %v10986_v4 }
 0x16b   : > { %v1008_v9 = vunpack.c.l.bf16 %v960_v26  ;;  %v1077_v3 = vpack.c.bf16 %v1045_v27, %v1045_v27 }
 0x16d   : > { %v1044_v10 = vmul.f32 %v10649_v44, %v1008_v9  ;;  %v1821_v9 = vunpack.c.l.b16 %v1077_v3 }
 0x16f   : > { %v10976_v25 = vpop.f32.mrf.mxu3 }
 0x170   : > { %15352 = vst [vmem:[#allocation55_spill] sm:$0xff] %v10976_v25  ;;  %v1076_v25 = vpack.c.bf16 %v1044_v10, %v1044_v10 }
 0x171   : > { %v10998_v10 = vpop.f32.mrf.mxu2 }
 0x172   : > { %v10955_v63 = vpop.f32.mrf.mxu1  ;;  %v1820_v16 = vunpack.c.l.b16 %v1076_v25  ;;  %15355 = vst [vmem:[#allocation58_spill] sm:$0xff] %v10998_v10 }
 0x174   : > { %v10992_v62 = vpack.c.b16 %v1821_v9, %v1820_v16 }
 0x175   : > { %8571 = vmatmul.msk.bf16.gmra.mxu1 %vm1262_vm1, %v10154_v19  ;;  %8627 = vmatmul.msk.bf16.gmra.mxu2 %vm1850_vm2, %v10922_v35  ;;  %v605_v19 = vperm.slane %v10629_v13, %v10625_v37  ;;  %v924_v13 = vmul.f32 %v9125_v58, %v860_v45  ;;  %v614_v58 = vperm.slane %v10597_v2, %v10625_v37 }
 0x176   : > { %v623_v45 = vperm.slane %v10627_v0, %v10625_v37 }
 0x177   : > { %v861_v24 = vunpack.c.l.bf16 %v605_v19  ;;  %v10990_v38 = vpop.f32.mrf.mxu3  ;;  %v956_v19 = vpack.c.bf16 %v924_v13, %v924_v13 }
 0x178   : > { %15354 = vst [vmem:[#allocation57_spill] sm:$0xff] %v10990_v38  ;;  %v863_v16 = vunpack.c.l.bf16 %v623_v45 }
 0x179   : > { %v925_v26 = vmul.f32 %v9126_v46, %v861_v24  ;;  %v9184_v46 = vld [vmem:[%s10623_s12 + $0x10] sm:$0xff]  }
 0x17a   : > { %v10967_v28 = vpop.f32.mrf.mxu1  ;;  %v9129_v25 = vunpack.c.l.bf16 %v9184_v46  ;;  %v9130_v3 = vunpack.c.h.bf16 %v9184_v46 }
 0x17b   : > { %v957_v17 = vpack.c.bf16 %v925_v26, %v925_v26  ;;  %v862_v26 = vunpack.c.l.bf16 %v614_v58 }
 0x17c   : > { %v927_v38 = vmul.f32 %v9130_v3, %v863_v16 }
 0x17d   : > { %v1005_v60 = vunpack.c.l.bf16 %v957_v17  ;;  %v926_v9 = vmul.f32 %v9129_v25, %v862_v26 }
 0x17e   : > { %v959_v46 = vpack.c.bf16 %v927_v38, %v927_v38 }
 0x17f   : > { %v1041_v13 = vmul.f32 %v10649_v44, %v1005_v60  ;;  %v958_v58 = vpack.c.bf16 %v926_v9, %v926_v9 }
 0x180   : > { %v1007_v53 = vunpack.c.l.bf16 %v959_v46 }
 0x181   : > { %v1073_v17 = vpack.c.bf16 %v1041_v13, %v1041_v13 }
 0x182   : > { %v10978_v8 = vpop.f32.mrf.mxu1  ;;  %v1043_v13 = vmul.f32 %v10649_v44, %v1007_v53 }
 0x183   : > { %v1817_v10 = vunpack.c.l.b16 %v1073_v17 }
 0x184   : > { %v2042_v2 = vpop.f32.mrf.mxu3  ;;  %v1075_v3 = vpack.c.bf16 %v1043_v13, %v1043_v13 }
 0x185   : > { %8572 = vmatmul.msk.bf16.gmra.mxu1 %vm1262_vm1, %v10155_v30  ;;  %8628 = vmatmul.msk.bf16.gmra.mxu2 %vm1850_vm2, %v10940_v54  ;;  %v1004_v30 = vunpack.c.l.bf16 %v956_v19  ;;  %v10156_v19 = vld [vmem:[%s10394_s28 + $0x78] sm:$0xff] }
 0x186   : > { %v1819_v17 = vunpack.c.l.b16 %v1075_v3 }
 0x187   : > { %v1040_v27 = vmul.f32 %v10649_v44, %v1004_v30  ;;  %v11011_v30 = vpop.f32.mrf.mxu2 }
 0x188   : > { %15356 = vst [vmem:[#allocation59_spill] sm:$0xff] %v11011_v30 }
 0x189   : > { %v1072_v0 = vpack.c.bf16 %v1040_v27, %v1040_v27 }
 0x18a   : > { %v10988_v43 = vpop.f32.mrf.mxu1 }
 0x18b   : > { %v1816_v60 = vunpack.c.l.b16 %v1072_v0 }
 0x18c   : > { %v2044_v45 = vpop.f32.mrf.mxu3 }
 0x18d   : > { %v11013_v4 = vpack.c.b16 %v1817_v10, %v1816_v60 }
 0x18f   : > { %v11019_v25 = vpop.f32.mrf.mxu2 }
 0x190   : > { %15357 = vst [vmem:[#allocation60_spill] sm:$0xff] %v11019_v25 }
 0x192   : > { %v11001_v24 = vpop.f32.mrf.mxu1 }
 0x194   : > { %v2047_v38 = vpop.f32.mrf.mxu3 }
 0x195   : > { %8573 = vmatmul.msk.bf16.gmra.mxu1 %vm1262_vm1, %v10156_v19  ;;  %8629 = vmatmul.msk.bf16.gmra.mxu2 %vm1850_vm2, %v10963_v32  ;;  %v1006_v19 = vunpack.c.l.bf16 %v958_v58 }
 0x197   : > { %v1042_v27 = vmul.f32 %v10649_v44, %v1006_v19  ;;  %v11027_v53 = vpop.f32.mrf.mxu2 }
 0x198   : > { %15358 = vst [vmem:[#allocation61_spill] sm:$0xff] %v11027_v53  ;;  %v798_v53 = vpop.permute.xlu1 %797 }
 0x199   : > { %v1074_v10 = vpack.c.bf16 %v1042_v27, %v1042_v27 }
 0x19a   : > { %v11009_v34 = vpop.f32.mrf.mxu1 }
 0x19c   : > { %v2049_v60 = vpop.f32.mrf.mxu3 }
 0x19f   : > { %v11036_v3 = vpop.f32.mrf.mxu2 }
 0x1a0   : > { %15359 = vst [vmem:[#allocation62_spill] sm:$0xff] %v11036_v3 }
 0x1a2   : > { %v1467_v51 = vpop.f32.mrf.mxu1 }
 0x1a3   : > { %v11015_v31 = vadd.f32 %v2042_v2, %v1467_v51  ;;  %v1818_v2 = vunpack.c.l.b16 %v1074_v10 }
 0x1a5   : > { %v8654_v26 = vmul.f32 -1.442695, %v11015_v31  ;;  %8622 = vmatmul.msk.bf16.vlgmr.msra.gmra.mxu1 %vm1850_vm2, %v10702_v41  ;;  %v11029_v58 = vpack.c.b16 %v1819_v17, %v1818_v2  ;;  %v2052_v2 = vpop.f32.mrf.mxu3 }
 0x1a7   : > { %9253 = vpow2.f32 %v8654_v26 }
 0x1aa   : > { %v1469_v16 = vpop.f32.mrf.mxu1 }
 0x1ab   : > { %v11024_v0 = vadd.f32 %v2044_v45, %v1469_v16 }
 0x1ad   : > { %v9254_v51 = vpop.eup %9253  ;;  %v8655_v9 = vmul.f32 -1.442695, %v11024_v0  ;;  %v2054_v21 = vpop.f32.mrf.mxu3 }
 0x1ae   : > { %v2291_v44 = vadd.f32 1.0, %v9254_v51 }
 0x1af   : > { %9255 = vpow2.f32 %v8655_v9 }
 0x1b0   : > { %9257 = vrcp.f32 %v2291_v44  ;;  %vm2552_vm4 = vweird.f32 %v2291_v44 }
 0x1b2   : > { %v1472_v46 = vpop.f32.mrf.mxu1 }
 0x1b3   : > { %v11031_v19 = vadd.f32 %v2047_v38, %v1472_v46  ;;  %v533_v46 = vld [vmem:[%s10613_s27 + $0x3] sm:$0x1]  ;;  %s10242_s27 = smov 96  }
 0x1b4   : > { %v537_v3 = vpack.c.bf16 %v533_v46, %v533_v46 }
 0x1b5   : > { %v9256_v27 = vpop.eup %9255  ;;  %v8656_v45 = vmul.f32 -1.442695, %v11031_v19  ;;  %8623 = vmatmul.msk.bf16.gmra.mxu1 %vm1850_vm2, %v11013_v4 }
 0x1b6   : > { %v9258_v13 = vpop.eup %9257  ;;  %v2292_v26 = vadd.f32 1.0, %v9256_v27  ;;  %v803_v27 = vperm.slane %v798_v53, %v10625_v37  ;;  %v999_v18 = vpack.i.b16 %v537_v3, %v537_v3 }
 0x1b7   : > { %v2548_v10 = vmul.f32 %v9258_v13, %v2291_v44  ;;  %9259 = vpow2.f32 %v8656_v45  ;;  %v9194_v45 = vld [vmem:[%s10623_s12 + $0x60] sm:$0xff]   ;;  %vm2553_vm3 = vweird.f32 %v9258_v13 }
 0x1b8   : > { %9261 = vrcp.f32 %v2292_v26  ;;  %v9170_v39 = vunpack.c.h.bf16 %v9194_v45  ;;  %v883_v52 = vunpack.c.l.bf16 %v803_v27  ;;  %vm11048_vm5 = vmor %vm2552_vm4, %vm2553_vm3  ;;  %v9169_v47 = vunpack.c.l.bf16 %v9194_v45 }
 0x1b9   : > { %v2549_v16 = vsub.f32 1.0, %v2548_v10  ;;  %vm2567_vm8 = vweird.f32 %v2292_v26 }
 0x1ba   : > { %v1474_v51 = vpop.f32.mrf.mxu1 }
 0x1bb   : > { %v2550_v38 = vmul.f32 %v9258_v13, %v2549_v16  ;;  %v11038_v17 = vadd.f32 %v2049_v60, %v1474_v51  ;;  %v794_v60 = vperm.slane %v789_v42, %v10625_v37  ;;  %v2558_v16 = vand.u32 2147483648, %v2291_v44 }
 0x1bc   : > { %v2556_v51 = vand.u32 2147483647, %v2291_v44 }
 0x1bd   : > { %v9260_v9 = vpop.eup %9259  ;;  %v8657_v30 = vmul.f32 -1.442695, %v11038_v17  ;;  %v2551_v50 = vadd.f32 %v9258_v13, %v2550_v38  ;;  %v2573_v38 = vand.u32 2147483648, %v2292_v26  ;;  %v882_v44 = vunpack.c.l.bf16 %v794_v60 }
 0x1be   : > { %v9262_v25 = vpop.eup %9261  ;;  %v11043_v40 = vadd.f32 1.0, %v9260_v9  ;;  %v2571_v9 = vand.u32 2147483647, %v2292_v26  ;;  %v2559_v27 = vor.u32 1.1754944e-38, %v2558_v16  ;;  %vm2557_vm7 = vcmp.eq.f32.partialorder %v2556_v51, 8.507059e+37 }
 0x1bf   : > { %v2563_v10 = vmul.f32 %v9262_v25, %v2292_v26  ;;  %9263 = vpow2.f32 %v8657_v30  ;;  %v2555_v30 = vsel %vm11048_vm5, %v9258_v13, %v2551_v50  ;;  %vm2568_vm6 = vweird.f32 %v9262_v25 }
 0x1c0   : > { %9265 = vrcp.f32 %v11043_v40  ;;  %v2560_v50 = vsel %vm2557_vm7, %v2559_v27, %v2555_v30  ;;  %vm2569_vm9 = vmor %vm2567_vm8, %vm2568_vm6  ;;  %v2574_v13 = vor.u32 1.1754944e-38, %v2573_v38  ;;  %vm2572_vm10 = vcmp.eq.f32.partialorder %v2571_v9, 8.507059e+37  ;;  %v807_v38 = vpop.permute.xlu2 %806 }
 0x1c1   : > { %v2564_v20 = vsub.f32 1.0, %v2563_v10  ;;  %v11056_v10 = vpop.f32.mrf.mxu2  ;;  %v11070_v60 = vmul.f32 %v2560_v50, %v11015_v31  ;;  %v1001_v16 = vperm.slane %v999_v18, 0  ;;  %v946_v51 = vmul.f32 %v9169_v47, %v882_v44  ;;  %v9195_v18 = vld [vmem:[%s10623_s12 + $0x68] sm:$0xff]   ;;  %v2057_v44 = vpop.f32.mrf.mxu3 }
 0x1c2   : > { %v1477_v49 = vpop.f32.mrf.mxu1  ;;  %15362 = vst [vmem:[#allocation63_spill] sm:$0xff] %v11056_v10  ;;  %vm2582_vm12 = vweird.f32 %v11043_v40 }
 0x1c3   : > { %v2565_v46 = vmul.f32 %v9262_v25, %v2564_v20  ;;  %v11054_v42 = vadd.f32 %v2052_v2, %v1477_v49  ;;  %v947_v49 = vmul.f32 %v9170_v39, %v883_v52  ;;  %v978_v27 = vpack.c.bf16 %v946_v51, %v946_v51 }
 0x1c5   : > { %v9264_v33 = vpop.eup %9263  ;;  %v2566_v7 = vadd.f32 %v9262_v25, %v2565_v46  ;;  %v8658_v59 = vmul.f32 -1.442695, %v11054_v42  ;;  %8624 = vmatmul.msk.bf16.gmra.mxu1 %vm1850_vm2, %v11029_v58  ;;  %v1026_v51 = vunpack.c.l.bf16 %v978_v27 }
 0x1c6   : > { %v11061_v20 = vpop.eup %9265  ;;  %v11064_v3 = vadd.f32 1.0, %v9264_v33  ;;  %v979_v33 = vpack.c.bf16 %v947_v49, %v947_v49 }
 0x1c7   : > { %v2570_v2 = vsel %vm2569_vm9, %v9262_v25, %v2566_v7  ;;  %v2578_v45 = vmul.f32 %v11061_v20, %v11043_v40  ;;  %9267 = vpow2.f32 %v8658_v59  ;;  %vm2583_vm11 = vweird.f32 %v11061_v20 }
 0x1c8   : > { %v2575_v26 = vsel %vm2572_vm10, %v2574_v13, %v2570_v2  ;;  %9269 = vrcp.f32 %v11064_v3  ;;  %v1027_v46 = vunpack.c.l.bf16 %v979_v33  ;;  %vm11097_vm13 = vmor %vm2582_vm12, %vm2583_vm11  ;;  %vm2597_vm0 = vweird.f32 %v11064_v3 }
 0x1c9   : > { %v11073_v52 = vmul.f32 %v2575_v26, %v11024_v0  ;;  %v2579_v39 = vsub.f32 1.0, %v2578_v45  ;;  %v11081_v0 = vunpack.c.l.bf16 %v1001_v16  ;;  %v11084_v49 = vpop.f32.mrf.mxu2  ;;  %v812_v45 = vperm.slane %v807_v38, %v10625_v37 }
 0x1ca   : > { %v1479_v7 = vpop.f32.mrf.mxu1  ;;  %15363 = vst [vmem:[#allocation64_spill] sm:$0xff] %v11084_v49  ;;  %v2588_v26 = vand.u32 2147483648, %v11043_v40  ;;  %v2586_v16 = vand.u32 2147483647, %v11043_v40  ;;  %v2603_v38 = vand.u32 2147483648, %v11064_v3 }
 0x1cb   : > { %v2580_v25 = vmul.f32 %v11061_v20, %v2579_v39  ;;  %v11076_v53 = vadd.f32 %v2054_v21, %v1479_v7  ;;  %v816_v21 = vpop.permute.xlu0 %815  ;;  %v9174_v39 = vunpack.c.h.bf16 %v9195_v18  ;;  %v9173_v7 = vunpack.c.l.bf16 %v9195_v18 }
 0x1cc   : > { %v821_v2 = vperm.slane %v816_v21, %v10625_v37  ;;  %v1063_v40 = vmul.f32 %v11081_v0, %v1027_v46  ;;  %v884_v18 = vunpack.c.l.bf16 %v812_v45  ;;  %vm2587_vm15 = vcmp.eq.f32.partialorder %v2586_v16, 8.507059e+37 }
 0x1cd   : > { %v9268_v9 = vpop.eup %9267  ;;  %v8659_v31 = vmul.f32 -1.442695, %v11076_v53  ;;  %v2581_v50 = vadd.f32 %v11061_v20, %v2580_v25  ;;  %v2604_v46 = vor.u32 1.1754944e-38, %v2603_v38 }
 0x1ce   : > { %v9270_v30 = vpop.eup %9269  ;;  %v11086_v47 = vadd.f32 1.0, %v9268_v9  ;;  %v2601_v9 = vand.u32 2147483647, %v11064_v3  ;;  %v885_v27 = vunpack.c.l.bf16 %v821_v2 }
 0x1cf   : > { %v2593_v13 = vmul.f32 %v9270_v30, %v11064_v3  ;;  %9271 = vpow2.f32 %v8659_v31  ;;  %v2585_v21 = vsel %vm11097_vm13, %v11061_v20, %v2581_v50  ;;  %vm2598_vm14 = vweird.f32 %v9270_v30 }
 0x1d0   : > { %9273 = vrcp.f32 %v11086_v47  ;;  %vm2599_vm3 = vmor %vm2597_vm0, %vm2598_vm14  ;;  %vm2602_vm4 = vcmp.eq.f32.partialorder %v2601_v9, 8.507059e+37  ;;  %vm2612_vm6 = vweird.f32 %v11086_v47 }
 0x1d1   : > { %v2594_v33 = vsub.f32 1.0, %v2593_v13  ;;  %v2589_v13 = vor.u32 1.1754944e-38, %v2588_v26  ;;  %v948_v26 = vmul.f32 %v9173_v7, %v884_v18  ;;  %v11121_v16 = vpop.f32.mrf.mxu2 }
 0x1d2   : > { %v1482_v31 = vpop.f32.mrf.mxu1  ;;  %15366 = vst [vmem:[#allocation65_spill] sm:$0xff] %v11121_v16 }
 0x1d3   : > { %v2595_v59 = vmul.f32 %v9270_v30, %v2594_v33  ;;  %v11106_v10 = vadd.f32 %v2057_v44, %v1482_v31  ;;  %v1062_v44 = vmul.f32 %v11081_v0, %v1026_v51  ;;  %v2590_v50 = vsel %vm2587_vm15, %v2589_v13, %v2585_v21  ;;  %v2059_v51 = vpop.f32.mrf.mxu3 }
 0x1d4   : > { %v11125_v25 = vmul.f32 %v2590_v50, %v11031_v19  ;;  %v980_v21 = vpack.c.bf16 %v948_v26, %v948_v26  ;;  %v825_v19 = vpop.permute.xlu1 %824 }
 0x1d5   : > { %v9272_v49 = vpop.eup %9271  ;;  %v2596_v6 = vadd.f32 %v9270_v30, %v2595_v59  ;;  %v8660_v55 = vmul.f32 -1.442695, %v11106_v10  ;;  %8625 = vmatmul.msk.bf16.gmra.mxu1 %vm1850_vm2, %v10992_v62  ;;  %v949_v59 = vmul.f32 %v9174_v39, %v885_v27  ;;  %v1094_v9 = vpack.c.bf16 %v1062_v44, %v1062_v44 }
 0x1d6   : > { %v11113_v20 = vpop.eup %9273  ;;  %v11117_v2 = vadd.f32 1.0, %v9272_v49 }
 0x1d7   : > { %v2600_v45 = vsel %vm2599_vm3, %v9270_v30, %v2596_v6  ;;  %v2608_v3 = vmul.f32 %v11113_v20, %v11086_v47  ;;  %9275 = vpow2.f32 %v8660_v55  ;;  %v1095_v30 = vpack.c.bf16 %v1063_v40, %v1063_v40 }
 0x1d8   : > { %v2605_v33 = vsel %vm2602_vm4, %v2604_v46, %v2600_v45  ;;  %9277 = vrcp.f32 %v11117_v2  ;;  %v981_v31 = vpack.c.bf16 %v949_v59, %v949_v59  ;;  %v2070_v50 = vunpack.c.l.b16 %v1094_v9  ;;  %v9196_v46 = vld [vmem:[%s10623_s12 + $0x70] sm:$0xff]   ;;  %v834_v45 = vpop.permute.xlu2 %833 }
 0x1d9   : > { %v11128_v49 = vmul.f32 %v2605_v33, %v11038_v17  ;;  %v2609_v6 = vsub.f32 1.0, %v2608_v3  ;;  %v2071_v13 = vunpack.c.l.b16 %v1095_v30  ;;  %v830_v40 = vperm.slane %v825_v19, %v10625_v37 }
 0x1da   : > { %v1484_v38 = vpop.f32.mrf.mxu1  ;;  %vm2613_vm5 = vweird.f32 %v11113_v20  ;;  %v1029_v26 = vunpack.c.l.bf16 %v981_v31  ;;  %v1028_v33 = vunpack.c.l.bf16 %v980_v21  ;;  %v2633_v31 = vand.u32 2147483648, %v11117_v2 }
 0x1db   : > { %v2610_v55 = vmul.f32 %v11113_v20, %v2609_v6  ;;  %v11131_v39 = vadd.f32 %v2059_v51, %v1484_v38  ;;  %v2618_v51 = vand.u32 2147483648, %v11086_v47  ;;  %v2616_v6 = vand.u32 2147483647, %v11086_v47  ;;  %vm11152_vm7 = vmor %vm2612_vm6, %vm2613_vm5 }
 0x1dc   : > { %v11147_v9 = vpack.c.b16 %v2071_v13, %v2070_v50  ;;  %v9177_v38 = vunpack.c.l.bf16 %v9196_v46  ;;  %v2631_v13 = vand.u32 2147483647, %v11117_v2  ;;  %v886_v50 = vunpack.c.l.bf16 %v830_v40 }
 0x1dd   : > { %v9276_v27 = vpop.eup %9275  ;;  %v8661_v18 = vmul.f32 -1.442695, %v11131_v39  ;;  %v2611_v3 = vadd.f32 %v11113_v20, %v2610_v55  ;;  %v839_v55 = vperm.slane %v834_v45, %v10625_v37  ;;  %v1065_v45 = vmul.f32 %v11081_v0, %v1029_v26 }
 0x1de   : > { %v9278_v17 = vpop.eup %9277  ;;  %v11137_v44 = vadd.f32 1.0, %v9276_v27  ;;  %15367 = vst [vmem:[#allocation66_spill] sm:$0xff] %v11147_v9  ;;  %v11150_v27 = vpop.f32.mrf.mxu2  ;;  %v2619_v7 = vor.u32 1.1754944e-38, %v2618_v51  ;;  %vm2617_vm9 = vcmp.eq.f32.partialorder %v2616_v6, 8.507059e+37  ;;  %vm2627_vm10 = vweird.f32 %v11117_v2 }
 0x1df   : > { %v2623_v59 = vmul.f32 %v9278_v17, %v11117_v2  ;;  %9279 = vpow2.f32 %v8661_v18  ;;  %15368 = vst [vmem:[#allocation67_spill] sm:$0xff] %v11150_v27  ;;  %v2615_v47 = vsel %vm11152_vm7, %v11113_v20, %v2611_v3  ;;  %vm2628_vm8 = vweird.f32 %v9278_v17 }
 0x1e0   : > { %9281 = vrcp.f32 %v11137_v44  ;;  %v9178_v27 = vunpack.c.h.bf16 %v9196_v46  ;;  %v887_v3 = vunpack.c.l.bf16 %v839_v55  ;;  %vm2629_vm11 = vmor %vm2627_vm10, %vm2628_vm8  ;;  %v2634_v40 = vor.u32 1.1754944e-38, %v2633_v31 }
 0x1e1   : > { %v2624_v30 = vsub.f32 1.0, %v2623_v59  ;;  %v1064_v59 = vmul.f32 %v11081_v0, %v1028_v33  ;;  %vm2632_vm12 = vcmp.eq.f32.partialorder %v2631_v13, 8.507059e+37  ;;  %v950_v51 = vmul.f32 %v9177_v38, %v886_v50  ;;  %v852_v50 = vpop.permute.xlu1 %851 }
 0x1e2   : > { %v11157_v21 = vpop.f32.mrf.mxu1  ;;  %v1097_v55 = vpack.c.bf16 %v1065_v45, %v1065_v45  ;;  %vm2642_vm14 = vweird.f32 %v11137_v44 }
 0x1e3   : > { %v2625_v18 = vmul.f32 %v9278_v17, %v2624_v30  ;;  %v2620_v30 = vsel %vm2617_vm9, %v2619_v7, %v2615_v47  ;;  %v1096_v7 = vpack.c.bf16 %v1064_v59, %v1064_v59  ;;  %v951_v47 = vmul.f32 %v9178_v27, %v887_v3  ;;  %v9197_v3 = vld [vmem:[%s10623_s12 + $0x78] sm:$0xff]  }
 0x1e4   : > { %v11171_v6 = vmul.f32 %v2620_v30, %v11054_v42  ;;  %v2073_v42 = vunpack.c.l.b16 %v1097_v55  ;;  %v843_v30 = vpop.permute.xlu0 %842  ;;  %v2648_v59 = vand.u32 2147483648, %v11137_v44 }
 0x1e5   : > { %v9280_v16 = vpop.eup %9279  ;;  %v2626_v48 = vadd.f32 %v9278_v17, %v2625_v18  ;;  %8634 = vmatmul.msk.bf16.vlgmr.msrb.gmra.mxu1 %vm1850_vm2, %v11147_v9  ;;  %v2072_v13 = vunpack.c.l.b16 %v1096_v7 }
 0x1e6   : > { %v9282_v20 = vpop.eup %9281  ;;  %v2298_v19 = vadd.f32 1.0, %v9280_v16  ;;  %v11180_v38 = vpop.f32.mrf.mxu2 }
 0x1e7   : > { %v2630_v26 = vsel %vm2629_vm11, %v9278_v17, %v2626_v48  ;;  %v2638_v33 = vmul.f32 %v9282_v20, %v11137_v44  ;;  %v982_v17 = vpack.c.bf16 %v950_v51, %v950_v51  ;;  %15371 = vst [vmem:[#allocation68_spill] sm:$0xff] %v11180_v38  ;;  %vm2643_vm13 = vweird.f32 %v9282_v20 }
 0x1e8   : > { %v2635_v46 = vsel %vm2632_vm12, %v2634_v40, %v2630_v26  ;;  %9283 = vrcp.f32 %v2298_v19  ;;  %v857_v26 = vperm.slane %v852_v50, %v10625_v37  ;;  %vm11188_vm15 = vmor %vm2642_vm14, %vm2643_vm13  ;;  %v2663_v7 = vand.u32 2147483648, %v2298_v19 }
 0x1e9   : > { %v11174_v2 = vmul.f32 %v2635_v46, %v11076_v53  ;;  %v2639_v18 = vsub.f32 1.0, %v2638_v33  ;;  %v983_v53 = vpack.c.bf16 %v951_v47, %v951_v47  ;;  %v1030_v27 = vunpack.c.l.bf16 %v982_v17 }
 0x1ea   : > { %v11176_v9 = vpop.f32.mrf.mxu1  ;;  %v2646_v33 = vand.u32 2147483647, %v11137_v44  ;;  %v848_v46 = vperm.slane %v843_v30, %v10625_v37  ;;  %v2661_v16 = vand.u32 2147483647, %v2298_v19  ;;  %v9182_v44 = vunpack.c.h.bf16 %v9197_v3 }
 0x1eb   : > { %v2640_v48 = vmul.f32 %v9282_v20, %v2639_v18  ;;  %v1031_v18 = vunpack.c.l.bf16 %v983_v53  ;;  %v9181_v38 = vunpack.c.l.bf16 %v9197_v3  ;;  %vm2657_vm4 = vweird.f32 %v2298_v19 }
 0x1ec   : > { %vm2647_vm3 = vcmp.eq.f32.partialorder %v2646_v33, 8.507059e+37  ;;  %v1066_v53 = vmul.f32 %v11081_v0, %v1030_v27  ;;  %v889_v30 = vunpack.c.l.bf16 %v857_v26  ;;  %vm2662_vm6 = vcmp.eq.f32.partialorder %v2661_v16, 8.507059e+37 }
 0x1ed   : > { %v2641_v40 = vadd.f32 %v9282_v20, %v2640_v48  ;;  %v11194_v48 = vpack.c.b16 %v2073_v42, %v2072_v13 }
 0x1ee   : > { %v9284_v31 = vpop.eup %9283  ;;  %v11201_v42 = vpop.f32.mrf.mxu2  ;;  %v1098_v33 = vpack.c.bf16 %v1066_v53, %v1066_v53  ;;  %v953_v26 = vmul.f32 %v9182_v44, %v889_v30 }
 0x1ef   : > { %v2653_v45 = vmul.f32 %v9284_v31, %v2298_v19  ;;  %15374 = vst [vmem:[#allocation69_spill] sm:$0xff] %v11194_v48  ;;  %v2645_v17 = vsel %vm11188_vm15, %v9282_v20, %v2641_v40  ;;  %vm2658_vm0 = vweird.f32 %v9284_v31  ;;  %v2664_v20 = vor.u32 1.1754944e-38, %v2663_v7 }
 0x1f0   : > { %15375 = vst [vmem:[#allocation70_spill] sm:$0xff] %v11201_v42  ;;  %vm2659_vm5 = vmor %vm2657_vm4, %vm2658_vm0  ;;  %v888_v40 = vunpack.c.l.bf16 %v848_v46  ;;  %v2074_v7 = vunpack.c.l.b16 %v1098_v33 }
 0x1f1   : > { %v2654_v51 = vsub.f32 1.0, %v2653_v45  ;;  %v2649_v45 = vor.u32 1.1754944e-38, %v2648_v59 }
 0x1f2   : > { %v11192_v47 = vpop.f32.mrf.mxu1 }
 0x1f3   : > { %v2655_v50 = vmul.f32 %v9284_v31, %v2654_v51  ;;  %v2650_v13 = vsel %vm2647_vm3, %v2649_v45, %v2645_v17  ;;  %v1067_v51 = vmul.f32 %v11081_v0, %v1031_v18  ;;  %v985_v18 = vpack.c.bf16 %v953_v26, %v953_v26 }
 0x1f4   : > { %v11205_v3 = vmul.f32 %v2650_v13, %v11106_v10 }
 0x1f5   : > { %v2656_v37 = vadd.f32 %v9284_v31, %v2655_v50  ;;  %8635 = vmatmul.msk.bf16.gmra.mxu1 %vm1850_vm2, %v11194_v48  ;;  %v952_v50 = vmul.f32 %v9181_v38, %v888_v40  ;;  %v1099_v17 = vpack.c.bf16 %v1067_v51, %v1067_v51 }
 0x1f6   : > { %v11214_v45 = vpop.f32.mrf.mxu2 }
 0x1f7   : > { %v2660_v55 = vsel %vm2659_vm5, %v9284_v31, %v2656_v37  ;;  %v984_v31 = vpack.c.bf16 %v952_v50, %v952_v50  ;;  %v2075_v16 = vunpack.c.l.b16 %v1099_v17  ;;  %15376 = vst [vmem:[#allocation71_spill] sm:$0xff] %v11214_v45  ;;  %v1033_v37 = vunpack.c.l.bf16 %v985_v18  ;;  %v9096_v17 = vld [vmem:[%s15275_s5 + $0x38] sm:$0xff] }
 0x1f8   : > { %v2665_v59 = vsel %vm2662_vm6, %v2664_v20, %v2660_v55  ;;  %2899 = vmatpush.bf16.msrb.mxu2 %v9096_v17 }
 0x1f9   : > { %v11208_v19 = vmul.f32 %v2665_v59, %v11131_v39  ;;  %v1032_v39 = vunpack.c.l.bf16 %v984_v31  ;;  %v11218_v13 = vpack.c.b16 %v2075_v16, %v2074_v7  ;;  %v1069_v38 = vmul.f32 %v11081_v0, %v1033_v37  ;;  %v9095_v31 = vld [vmem:[%s15275_s5 + $0x30] sm:$0xff] }
 0x1fa   : > { %v11210_v27 = vpop.f32.mrf.mxu1 }
 0x1fb   : > { %15377 = vst [vmem:[#allocation72_spill] sm:$0xff] %v11218_v13  ;;  %v1068_v44 = vmul.f32 %v11081_v0, %v1032_v39  ;;  %v1101_v20 = vpack.c.bf16 %v1069_v38, %v1069_v38  ;;  %v9094_v39 = vld [vmem:[%s15275_s5 + $0x28] sm:$0xff] }
 0x1fc   : > { %2900 = vmatpush.bf16.msrb.mxu2 %v9095_v31 }
 0x1fd   : > { %v1100_v40 = vpack.c.bf16 %v1068_v44, %v1068_v44  ;;  %v2077_v51 = vunpack.c.l.b16 %v1101_v20  ;;  %v9093_v20 = vld [vmem:[%s15275_s5 + $0x20] sm:$0xff] }
 0x1fe   : > { %v11224_v53 = vpop.f32.mrf.mxu2 }
 0x1ff   : > { %15378 = vst [vmem:[#allocation73_spill] sm:$0xff] %v11224_v53  ;;  %v2076_v55 = vunpack.c.l.b16 %v1100_v40 }
 0x200   : > { %2901 = vmatpush.bf16.msrb.mxu2 %v9094_v39  ;;  %v9091_v39 = vld [vmem:[%s15275_s5 + $0x10] sm:$0xff] }
 0x201   : > { %v11230_v33 = vpack.c.b16 %v2077_v51, %v2076_v55  ;;  %v9092_v55 = vld [vmem:[%s15275_s5 + $0x18] sm:$0xff] }
 0x202   : > { %v11216_v10 = vpop.f32.mrf.mxu1 }
 0x203   : > { %15379 = vst [vmem:[#allocation74_spill] sm:$0xff] %v11230_v33 }
 0x204   : > { %2902 = vmatpush.bf16.msrb.mxu2 %v9093_v20 }
 0x205   : > { %8636 = vmatmul.msk.bf16.gmra.mxu1 %vm1850_vm2, %v11218_v13 }
 0x206   : > { %v11232_v26 = vpop.f32.mrf.mxu2 }
 0x207   : > { %15380 = vst [vmem:[#allocation75_spill] sm:$0xff] %v11232_v26 }
 0x208   : > { %2903 = vmatpush.bf16.msrb.mxu2 %v9092_v55 }
 0x20a   : > { %v11226_v30 = vpop.f32.mrf.mxu1 }
 0x20c   : > { %2904 = vmatpush.bf16.msrb.mxu2 %v9091_v39 }
 0x20e   : > { %v11238_v0 = vpop.f32.mrf.mxu2 }
 0x20f   : > { %15381 = vst [vmem:[#allocation76_spill] sm:$0xff] %v11238_v0 }
 0x212   : > { %v11228_v59 = vpop.f32.mrf.mxu1 }
 0x215   : > { %8637 = vmatmul.msk.bf16.gmra.mxu1 %vm1850_vm2, %v11230_v33 }
 0x216   : > { %v11250_v37 = vpop.f32.mrf.mxu2 }
 0x217   : > { %15382 = vst [vmem:[#allocation77_spill] sm:$0xff] %v11250_v37 }
 0x21a   : > { %v11236_v50 = vpop.f32.mrf.mxu1 }
 0x21e   : > { %v11265_v17 = vpop.f32.mrf.mxu2 }
 0x21f   : > { %15383 = vst [vmem:[#allocation78_spill] sm:$0xff] %v11265_v17 }
 0x222   : > { %v1872_v7 = vpop.f32.mrf.mxu1 }
 0x223   : > { %v11244_v18 = vadd.f32 %v1872_v7, %v10829_v57 }
 0x225   : > { %v8638_v16 = vmul.f32 -1.442695, %v11244_v18 }
 0x226   : > { %v1957_v46 = vpop.f32.mrf.mxu2 }
 0x227   : > { %9285 = vpow2.f32 %v8638_v16 }
 0x22a   : > { %v1874_v38 = vpop.f32.mrf.mxu1 }
 0x22b   : > { %v11256_v44 = vadd.f32 %v1874_v38, %v10847_v36 }
 0x22d   : > { %v8639_v57 = vmul.f32 -1.442695, %v11256_v44  ;;  %v9286_v40 = vpop.eup %9285 }
 0x22e   : > { %v2275_v51 = vadd.f32 1.0, %v9286_v40  ;;  %v9090_v40 = vld [vmem:[%s15275_s5 + $0x8] sm:$0xff]  ;;  %v1959_v13 = vpop.f32.mrf.mxu2 }
 0x22f   : > { %9287 = vpow2.f32 %v8639_v57  ;;  %2905 = vmatpush.bf16.msrb.mxu2 %v9090_v40 }
 0x230   : > { %9289 = vrcp.f32 %v2275_v51  ;;  %vm2312_vm8 = vweird.f32 %v2275_v51 }
 0x232   : > { %v1877_v36 = vpop.f32.mrf.mxu1 }
 0x233   : > { %v11268_v7 = vadd.f32 %v1877_v36, %v10855_v61 }
 0x235   : > { %v9288_v31 = vpop.eup %9287  ;;  %v8640_v16 = vmul.f32 -1.442695, %v11268_v7 }
 0x236   : > { %v2276_v38 = vadd.f32 1.0, %v9288_v31  ;;  %v9290_v57 = vpop.eup %9289 }
 0x237   : > { %9291 = vpow2.f32 %v8640_v16  ;;  %v2308_v20 = vmul.f32 %v9290_v57, %v2275_v51  ;;  %v9089_v16 = vld [vmem:[%s15275_s5] sm:$0xff]  ;;  %vm2313_vm7 = vweird.f32 %v9290_v57 }
 0x238   : > { %9293 = vrcp.f32 %v2276_v38  ;;  %2906 = vmatpush.bf16.msrb.mxu2 %v9089_v16  ;;  %vm11287_vm9 = vmor %vm2312_vm8, %vm2313_vm7  ;;  %v2333_v45 = vand.u32 2147483648, %v2276_v38  ;;  %vm2327_vm12 = vweird.f32 %v2276_v38 }
 0x239   : > { %v2309_v36 = vsub.f32 1.0, %v2308_v20  ;;  %v2318_v20 = vand.u32 2147483648, %v2275_v51 }
 0x23a   : > { %v1879_v61 = vpop.f32.mrf.mxu1  ;;  %v2334_v1 = vor.u32 1.1754944e-38, %v2333_v45 }
 0x23b   : > { %v11278_v55 = vadd.f32 %v1879_v61, %v10882_v23  ;;  %v2310_v37 = vmul.f32 %v9290_v57, %v2309_v36  ;;  %v2316_v23 = vand.u32 2147483647, %v2275_v51  ;;  %v2331_v36 = vand.u32 2147483647, %v2276_v38 }
 0x23c   : > { %v2319_v33 = vor.u32 1.1754944e-38, %v2318_v20 }
 0x23d   : > { %v9292_v17 = vpop.eup %9291  ;;  %v8641_v31 = vmul.f32 -1.442695, %v11278_v55  ;;  %v2311_v26 = vadd.f32 %v9290_v57, %v2310_v37  ;;  %vm2317_vm11 = vcmp.eq.f32.partialorder %v2316_v23, 8.507059e+37  ;;  %vm2332_vm14 = vcmp.eq.f32.partialorder %v2331_v36, 8.507059e+37 }
 0x23e   : > { %v9294_v39 = vpop.eup %9293  ;;  %v11284_v0 = vadd.f32 1.0, %v9292_v17 }
 0x23f   : > { %v2323_v53 = vmul.f32 %v9294_v39, %v2276_v38  ;;  %v2315_v37 = vsel %vm11287_vm9, %v9290_v57, %v2311_v26  ;;  %vm2328_vm10 = vweird.f32 %v9294_v39 }
 0x240   : > { %9295 = vrcp.f32 %v11284_v0  ;;  %v2320_v48 = vsel %vm2317_vm11, %v2319_v33, %v2315_v37  ;;  %vm2329_vm13 = vmor %vm2327_vm12, %vm2328_vm10  ;;  %v2348_v37 = vand.u32 2147483648, %v11284_v0  ;;  %vm2342_vm0 = vweird.f32 %v11284_v0 }
 0x241   : > { %v2324_v40 = vsub.f32 1.0, %v2323_v53  ;;  %9297 = vpow2.f32 %v8641_v31 }
 0x242   : > { %v1882_v42 = vpop.f32.mrf.mxu1 }
 0x243   : > { %v2325_v17 = vmul.f32 %v9294_v39, %v2324_v40  ;;  %v11294_v16 = vadd.f32 %v1882_v42, %v10888_v29  ;;  %v2787_v42 = vmul.f32 %v2320_v48, %v11244_v18  ;;  %v11313_v18 = vadd.f32 %v1957_v46, %v10932_v56 }
 0x245   : > { %v2326_v51 = vadd.f32 %v9294_v39, %v2325_v17  ;;  %v8642_v53 = vmul.f32 -1.442695, %v11294_v16 }
 0x246   : > { %v9296_v31 = vpop.eup %9295 }
 0x247   : > { %v9298_v32 = vpop.eup %9297  ;;  %v2330_v5 = vsel %vm2329_vm13, %v9294_v39, %v2326_v51  ;;  %v2338_v26 = vmul.f32 %v9296_v31, %v11284_v0  ;;  %9299 = vpow2.f32 %v8642_v53  ;;  %vm2343_vm15 = vweird.f32 %v9296_v31 }
 0x248   : > { %v2335_v57 = vsel %vm2332_vm14, %v2334_v1, %v2330_v5  ;;  %v2278_v29 = vadd.f32 1.0, %v9298_v32  ;;  %v11307_v1 = vadd.f32 %v1959_v13, %v10946_v11  ;;  %v11309_v32 = vpop.f32.mrf.mxu2  ;;  %vm11322_vm3 = vmor %vm2342_vm0, %vm2343_vm15 }
 0x249   : > { %v2788_v20 = vmul.f32 %v2335_v57, %v11256_v44  ;;  %v2339_v38 = vsub.f32 1.0, %v2338_v26  ;;  %v2346_v44 = vand.u32 2147483647, %v11284_v0 }
 0x24a   : > { %9301 = vrcp.f32 %v2278_v29  ;;  %v1884_v23 = vpop.f32.mrf.mxu1  ;;  %v8647_v13 = vmul.f32 -1.442695, %v11307_v1  ;;  %v2361_v26 = vand.u32 2147483647, %v2278_v29  ;;  %v2363_v56 = vand.u32 2147483648, %v2278_v29 }
 0x24b   : > { %v2819_v40 = vpack.c.bf16 %v2788_v20, %v2787_v42  ;;  %v11301_v33 = vadd.f32 %v1884_v23, %v10903_v22  ;;  %v2340_v61 = vmul.f32 %v9296_v31, %v2339_v38  ;;  %vm2347_vm5 = vcmp.eq.f32.partialorder %v2346_v44, 8.507059e+37 }
 0x24c   : > { %v2349_v38 = vor.u32 1.1754944e-38, %v2348_v37  ;;  %vm2357_vm6 = vweird.f32 %v2278_v29  ;;  %vm2362_vm8 = vcmp.eq.f32.partialorder %v2361_v26, 8.507059e+37 }
 0x24d   : > { %v9300_v45 = vpop.eup %9299  ;;  %v8643_v39 = vmul.f32 -1.442695, %v11301_v33  ;;  %2907 = vmatmul.bf16.vlgmr.msrb.gmra.mxu2 %v2819_v40  ;;  %v2341_v48 = vadd.f32 %v9296_v31, %v2340_v61 }
 0x24e   : > { %v11304_v36 = vadd.f32 1.0, %v9300_v45 }
 0x24f   : > { %9303 = vpow2.f32 %v8643_v39  ;;  %v2345_v57 = vsel %vm11322_vm3, %v9296_v31, %v2341_v48  ;;  %v2364_v39 = vor.u32 1.1754944e-38, %v2363_v56 }
 0x250   : > { %v9302_v5 = vpop.eup %9301  ;;  %9305 = vrcp.f32 %v11304_v36  ;;  %v2350_v61 = vsel %vm2347_vm5, %v2349_v38, %v2345_v57  ;;  %vm2372_vm10 = vweird.f32 %v11304_v36 }
 0x251   : > { %v2353_v22 = vmul.f32 %v9302_v5, %v2278_v29  ;;  %vm2358_vm4 = vweird.f32 %v9302_v5  ;;  %v2789_v44 = vmul.f32 %v2350_v61, %v11268_v7 }
 0x252   : > { %v1887_v17 = vpop.f32.mrf.mxu1  ;;  %vm2359_vm7 = vmor %vm2357_vm6, %vm2358_vm4 }
 0x253   : > { %v2354_v51 = vsub.f32 1.0, %v2353_v22  ;;  %v11319_v11 = vadd.f32 %v1887_v17, %v10909_v12  ;;  %v8646_v12 = vmul.f32 -1.442695, %v11313_v18  ;;  %v1964_v22 = vpop.f32.mrf.mxu2 }
 0x255   : > { %v9304_v46 = vpop.eup %9303  ;;  %v2355_v42 = vmul.f32 %v9302_v5, %v2354_v51  ;;  %v8644_v0 = vmul.f32 -1.442695, %v11319_v11 }
 0x256   : > { %v9306_v20 = vpop.eup %9305  ;;  %v2280_v23 = vadd.f32 1.0, %v9304_v46 }
 0x257   : > { %v2356_v40 = vadd.f32 %v9302_v5, %v2355_v42  ;;  %v2368_v45 = vmul.f32 %v9306_v20, %v11304_v36  ;;  %9307 = vpow2.f32 %v8644_v0  ;;  %vm2373_vm9 = vweird.f32 %v9306_v20 }
 0x258   : > { %9309 = vrcp.f32 %v2280_v23  ;;  %vm11345_vm11 = vmor %vm2372_vm10, %vm2373_vm9  ;;  %vm2387_vm14 = vweird.f32 %v2280_v23 }
 0x259   : > { %9311 = vpow2.f32 %v8647_v13  ;;  %v2360_v31 = vsel %vm2359_vm7, %v9302_v5, %v2356_v40  ;;  %v2369_v48 = vsub.f32 1.0, %v2368_v45  ;;  %v2393_v45 = vand.u32 2147483648, %v2280_v23 }
 0x25a   : > { %9313 = vpow2.f32 %v8646_v12  ;;  %v2365_v17 = vsel %vm2362_vm8, %v2364_v39, %v2360_v31  ;;  %v1889_v51 = vpop.f32.mrf.mxu1  ;;  %v2391_v31 = vand.u32 2147483647, %v2280_v23 }
 0x25b   : > { %v2790_v37 = vmul.f32 %v2365_v17, %v11278_v55  ;;  %v2370_v29 = vmul.f32 %v9306_v20, %v2369_v48  ;;  %v11334_v53 = vadd.f32 %v1889_v51, %v10928_v14  ;;  %v2378_v55 = vand.u32 2147483648, %v11304_v36  ;;  %v1967_v17 = vpop.f32.mrf.mxu2 }
 0x25c   : > { %v2376_v14 = vand.u32 2147483647, %v11304_v36  ;;  %v11354_v36 = vadd.f32 %v1964_v22, %v10967_v28  ;;  %vm2392_vm0 = vcmp.eq.f32.partialorder %v2391_v31, 8.507059e+37 }
 0x25d   : > { %v9308_v46 = vpop.eup %9307  ;;  %v8645_v56 = vmul.f32 -1.442695, %v11334_v53  ;;  %v2820_v57 = vpack.c.bf16 %v2790_v37, %v2789_v44  ;;  %v2371_v42 = vadd.f32 %v9306_v20, %v2370_v29  ;;  %v2379_v51 = vor.u32 1.1754944e-38, %v2378_v55 }
 0x25e   : > { %v9310_v13 = vpop.eup %9309  ;;  %v11337_v5 = vadd.f32 1.0, %v9308_v46  ;;  %vm2377_vm13 = vcmp.eq.f32.partialorder %v2376_v14, 8.507059e+37  ;;  %v11358_v46 = vadd.f32 %v11309_v32, %v10955_v63  ;;  %v8649_v22 = vmul.f32 -1.442695, %v11354_v36 }
 0x25f   : > { %v9312_v26 = vpop.eup %9311  ;;  %v2383_v0 = vmul.f32 %v9310_v13, %v2280_v23  ;;  %9315 = vpow2.f32 %v8645_v56  ;;  %2912 = vmatmul.bf16.gmra.mxu2 %v2820_v57  ;;  %v2375_v61 = vsel %vm11345_vm11, %v9306_v20, %v2371_v42  ;;  %vm2388_vm12 = vweird.f32 %v9310_v13 }
 0x260   : > { %v9314_v7 = vpop.eup %9313  ;;  %9317 = vrcp.f32 %v11337_v5  ;;  %v11343_v38 = vadd.f32 1.0, %v9312_v26  ;;  %v2380_v20 = vsel %vm2377_vm13, %v2379_v51, %v2375_v61  ;;  %vm2389_vm15 = vmor %vm2387_vm14, %vm2388_vm12  ;;  %v2394_v56 = vor.u32 1.1754944e-38, %v2393_v45 }
 0x261   : > { %v2384_v12 = vsub.f32 1.0, %v2383_v0  ;;  %v11351_v48 = vadd.f32 1.0, %v9314_v7  ;;  %v2791_v23 = vmul.f32 %v2380_v20, %v11294_v16  ;;  %v8648_v32 = vmul.f32 -1.442695, %v11358_v46 }
 0x262   : > { %9319 = vrcp.f32 %v11343_v38  ;;  %v2408_v16 = vand.u32 2147483648, %v11337_v5  ;;  %vm2402_vm4 = vweird.f32 %v11337_v5  ;;  %v2406_v61 = vand.u32 2147483647, %v11337_v5 }
 0x263   : > { %v2385_v39 = vmul.f32 %v9310_v13, %v2384_v12  ;;  %v1969_v12 = vpop.f32.mrf.mxu2  ;;  %vm2447_vm13 = vweird.f32 %v11343_v38 }
 0x264   : > { %vm2407_vm7 = vcmp.eq.f32.partialorder %v2406_v61, 8.507059e+37 }
 0x265   : > { %v9316_v44 = vpop.eup %9315  ;;  %v2386_v37 = vadd.f32 %v9310_v13, %v2385_v39 }
 0x266   : > { %v9318_v29 = vpop.eup %9317  ;;  %v2282_v57 = vadd.f32 1.0, %v9316_v44 }
 0x267   : > { %v2390_v26 = vsel %vm2389_vm15, %v9310_v13, %v2386_v37  ;;  %v2398_v42 = vmul.f32 %v9318_v29, %v11337_v5  ;;  %vm2403_vm3 = vweird.f32 %v9318_v29  ;;  %v2409_v5 = vor.u32 1.1754944e-38, %v2408_v16 }
 0x268   : > { %v2395_v28 = vsel %vm2392_vm0, %v2394_v56, %v2390_v26  ;;  %9321 = vrcp.f32 %v2282_v57  ;;  %v11367_v14 = vpop.eup %9319  ;;  %vm11376_vm5 = vmor %vm2402_vm4, %vm2403_vm3  ;;  %v2423_v44 = vand.u32 2147483648, %v2282_v57  ;;  %v2421_v26 = vand.u32 2147483647, %v2282_v57 }
 0x269   : > { %v2792_v0 = vmul.f32 %v2395_v28, %v11301_v33  ;;  %v2399_v63 = vsub.f32 1.0, %v2398_v42  ;;  %9323 = vrcp.f32 %v11351_v48  ;;  %v2443_v31 = vmul.f32 %v11367_v14, %v11343_v38 }
 0x26a   : > { %9325 = vpow2.f32 %v8649_v22  ;;  %v11385_v22 = vadd.f32 %v1969_v12, %v10988_v43  ;;  %vm2417_vm8 = vweird.f32 %v2282_v57  ;;  %vm2422_vm10 = vcmp.eq.f32.partialorder %v2421_v26, 8.507059e+37 }
 0x26b   : > { %v2400_v7 = vmul.f32 %v9318_v29, %v2399_v63  ;;  %v2821_v55 = vpack.c.bf16 %v2792_v0, %v2791_v23  ;;  %9327 = vpow2.f32 %v8648_v32  ;;  %v2424_v32 = vor.u32 1.1754944e-38, %v2423_v44 }
 0x26c   : > { %v8651_v12 = vmul.f32 -1.442695, %v11385_v22  ;;  %vm2448_vm11 = vweird.f32 %v11367_v14  ;;  %v2451_v44 = vand.u32 2147483647, %v11343_v38  ;;  %vm2432_vm15 = vweird.f32 %v11351_v48 }
 0x26d   : > { %v2401_v40 = vadd.f32 %v9318_v29, %v2400_v7  ;;  %v11390_v7 = vadd.f32 %v1967_v17, %v10978_v8  ;;  %vm11414_vm14 = vmor %vm2447_vm13, %vm2448_vm11 }
 0x26e   : > { %v9322_v13 = vpop.eup %9321  ;;  %vm2452_vm3 = vcmp.eq.f32.partialorder %v2451_v44, 8.507059e+37 }
 0x26f   : > { %v2413_v45 = vmul.f32 %v9322_v13, %v2282_v57  ;;  %2917 = vmatmul.bf16.gmra.mxu2 %v2821_v55  ;;  %v11370_v33 = vpop.eup %9323  ;;  %v2405_v20 = vsel %vm11376_vm5, %v9318_v29, %v2401_v40  ;;  %vm2418_vm6 = vweird.f32 %v9322_v13  ;;  %v2444_v29 = vsub.f32 1.0, %v2443_v31 }
 0x270   : > { %v9326_v37 = vpop.eup %9325  ;;  %v2428_v42 = vmul.f32 %v11370_v33, %v11351_v48  ;;  %v2410_v63 = vsel %vm2407_vm7, %v2409_v5, %v2405_v20  ;;  %vm2419_vm9 = vmor %vm2417_vm8, %vm2418_vm6  ;;  %v8650_v8 = vmul.f32 -1.442695, %v11390_v7  ;;  %vm2433_vm12 = vweird.f32 %v11370_v33 }
 0x271   : > { %v2414_v39 = vsub.f32 1.0, %v2413_v45  ;;  %v9328_v28 = vpop.eup %9327  ;;  %v11387_v0 = vadd.f32 1.0, %v9326_v37  ;;  %v1972_v45 = vpop.f32.mrf.mxu2  ;;  %v2793_v57 = vmul.f32 %v2410_v63, %v11319_v11  ;;  %v2438_v20 = vand.u32 2147483648, %v11351_v48  ;;  %vm2434_vm0 = vmor %vm2432_vm15, %vm2433_vm12 }
 0x272   : > { %v11392_v40 = vadd.f32 1.0, %v9328_v28  ;;  %v2429_v43 = vsub.f32 1.0, %v2428_v42  ;;  %v2436_v5 = vand.u32 2147483647, %v11351_v48 }
 0x273   : > { %v2415_v56 = vmul.f32 %v9322_v13, %v2414_v39  ;;  %9329 = vrcp.f32 %v11387_v0  ;;  %v2445_v39 = vmul.f32 %v11367_v14, %v2444_v29  ;;  %v2439_v48 = vor.u32 1.1754944e-38, %v2438_v20 }
 0x274   : > { %9331 = vrcp.f32 %v11392_v40  ;;  %vm2437_vm4 = vcmp.eq.f32.partialorder %v2436_v5, 8.507059e+37  ;;  %vm2477_vm7 = vweird.f32 %v11387_v0  ;;  %v2468_v20 = vand.u32 2147483648, %v11392_v40 }
 0x275   : > { %v2416_v23 = vadd.f32 %v9322_v13, %v2415_v56  ;;  %9333 = vpow2.f32 %v8651_v12  ;;  %v2446_v31 = vadd.f32 %v11367_v14, %v2445_v39  ;;  %v11434_v12 = vadd.f32 %v1972_v45, %v11001_v24 }
 0x276   : > { %9335 = vpow2.f32 %v8650_v8 }
 0x277   : > { %v2420_v55 = vsel %vm2419_vm9, %v9322_v13, %v2416_v23  ;;  %v2430_v13 = vmul.f32 %v11370_v33, %v2429_v43  ;;  %v2450_v28 = vsel %vm11414_vm14, %v11367_v14, %v2446_v31  ;;  %vm2462_vm9 = vweird.f32 %v11392_v40 }
 0x278   : > { %v2425_v16 = vsel %vm2422_vm10, %v2424_v32, %v2420_v55 }
 0x279   : > { %v2794_v61 = vmul.f32 %v2425_v16, %v11334_v53  ;;  %v11404_v11 = vpop.eup %9329  ;;  %v2453_v53 = vand.u32 2147483648, %v11343_v38  ;;  %v2431_v51 = vadd.f32 %v11370_v33, %v2430_v13  ;;  %v1974_v26 = vpop.f32.mrf.mxu2  ;;  %v8652_v13 = vmul.f32 -1.442695, %v11434_v12 }
 0x27a   : > { %v11411_v37 = vpop.eup %9331  ;;  %v2473_v38 = vmul.f32 %v11404_v11, %v11387_v0  ;;  %v11429_v55 = vadd.f32 %v1974_v26, %v11009_v34  ;;  %vm2478_vm5 = vweird.f32 %v11404_v11  ;;  %v2466_v26 = vand.u32 2147483647, %v11392_v40 }
 0x27b   : > { %v2822_v17 = vpack.c.bf16 %v2794_v61, %v2793_v57  ;;  %v9334_v42 = vpop.eup %9333  ;;  %v2454_v23 = vor.u32 1.1754944e-38, %v2453_v53  ;;  %v2435_v32 = vsel %vm2434_vm0, %v11370_v33, %v2431_v51  ;;  %v2458_v29 = vmul.f32 %v11411_v37, %v11392_v40  ;;  %vm2479_vm8 = vmor %vm2477_vm7, %vm2478_vm5 }
 0x27c   : > { %v9336_v63 = vpop.eup %9335  ;;  %v11431_v43 = vadd.f32 1.0, %v9334_v42  ;;  %v2474_v14 = vsub.f32 1.0, %v2473_v38  ;;  %v2440_v57 = vsel %vm2437_vm4, %v2439_v48, %v2435_v32  ;;  %v8653_v8 = vmul.f32 -1.442695, %v11429_v55 }
 0x27d   : > { %v2455_v16 = vsel %vm2452_vm3, %v2454_v23, %v2450_v28  ;;  %v11436_v61 = vadd.f32 1.0, %v9336_v63  ;;  %v2459_v39 = vsub.f32 1.0, %v2458_v29  ;;  %v2795_v34 = vmul.f32 %v2440_v57, %v11313_v18 }
 0x27e   : > { %v2796_v33 = vmul.f32 %v2455_v16, %v11307_v1  ;;  %9337 = vrcp.f32 %v11431_v43  ;;  %v2483_v53 = vand.u32 2147483648, %v11387_v0  ;;  %vm2463_vm6 = vweird.f32 %v11411_v37 }
 0x27f   : > { %2922 = vmatmul.bf16.gmra.mxu2 %v2822_v17  ;;  %v2475_v17 = vmul.f32 %v11404_v11, %v2474_v14  ;;  %9339 = vrcp.f32 %v11436_v61  ;;  %v2460_v24 = vmul.f32 %v11411_v37, %v2459_v39  ;;  %v2481_v51 = vand.u32 2147483647, %v11387_v0  ;;  %vm2464_vm10 = vmor %vm2462_vm9, %vm2463_vm6 }
 0x280   : > { %9341 = vpow2.f32 %v8653_v8  ;;  %v2823_v45 = vpack.c.bf16 %v2796_v33, %v2795_v34  ;;  %v2484_v28 = vor.u32 1.1754944e-38, %v2483_v53  ;;  %v2469_v63 = vor.u32 1.1754944e-38, %v2468_v20 }
 0x281   : > { %v2476_v31 = vadd.f32 %v11404_v11, %v2475_v17  ;;  %9343 = vpow2.f32 %v8652_v13  ;;  %v2461_v18 = vadd.f32 %v11411_v37, %v2460_v24  ;;  %vm2482_vm11 = vcmp.eq.f32.partialorder %v2481_v51, 8.507059e+37 }
 0x282   : > { %vm2467_vm12 = vcmp.eq.f32.partialorder %v2466_v26, 8.507059e+37  ;;  %v2513_v17 = vand.u32 2147483648, %v11431_v43  ;;  %vm2507_vm15 = vweird.f32 %v11431_v43  ;;  %vm2492_vm3 = vweird.f32 %v11436_v61 }
 0x283   : > { %v2480_v42 = vsel %vm2479_vm8, %v11404_v11, %v2476_v31  ;;  %v2465_v23 = vsel %vm2464_vm10, %v11411_v37, %v2461_v18 }
 0x284   : > { %v9338_v1 = vpop.eup %9337  ;;  %v2485_v32 = vsel %vm2482_vm11, %v2484_v28, %v2480_v42  ;;  %v2470_v16 = vsel %vm2467_vm12, %v2469_v63, %v2465_v23  ;;  %v2514_v18 = vor.u32 1.1754944e-38, %v2513_v17 }
 0x285   : > { %v9340_v44 = vpop.eup %9339  ;;  %v2503_v5 = vmul.f32 %v9338_v1, %v11431_v43  ;;  %v2798_v40 = vmul.f32 %v2485_v32, %v11354_v36  ;;  %v2797_v57 = vmul.f32 %v2470_v16, %v11358_v46  ;;  %vm2508_vm13 = vweird.f32 %v9338_v1 }
 0x286   : > { %v9342_v56 = vpop.eup %9341  ;;  %v2488_v0 = vmul.f32 %v9340_v44, %v11436_v61  ;;  %vm2493_vm14 = vweird.f32 %v9340_v44  ;;  %v2511_v36 = vand.u32 2147483647, %v11431_v43  ;;  %vm2509_vm0 = vmor %vm2507_vm15, %vm2508_vm13  ;;  %v2496_v46 = vand.u32 2147483647, %v11436_v61 }
 0x287   : > { %v9344_v38 = vpop.eup %9343  ;;  %v2290_v29 = vadd.f32 1.0, %v9342_v56  ;;  %v2504_v48 = vsub.f32 1.0, %v2503_v5  ;;  %v2824_v37 = vpack.c.bf16 %v2798_v40, %v2797_v57  ;;  %vm2494_vm4 = vmor %vm2492_vm3, %vm2493_vm14 }
 0x288   : > { %v2289_v14 = vadd.f32 1.0, %v9344_v38  ;;  %v2489_v11 = vsub.f32 1.0, %v2488_v0  ;;  %vm2512_vm5 = vcmp.eq.f32.partialorder %v2511_v36, 8.507059e+37  ;;  %vm2497_vm6 = vcmp.eq.f32.partialorder %v2496_v46, 8.507059e+37 }
 0x289   : > { %9345 = vrcp.f32 %v2290_v29  ;;  %v2505_v33 = vmul.f32 %v9338_v1, %v2504_v48  ;;  %v2543_v63 = vand.u32 2147483648, %v2290_v29  ;;  %vm2537_vm9 = vweird.f32 %v2290_v29 }
 0x28a   : > { %9347 = vrcp.f32 %v2289_v14  ;;  %v2490_v39 = vmul.f32 %v9340_v44, %v2489_v11  ;;  %v2541_v32 = vand.u32 2147483647, %v2290_v29  ;;  %v2528_v48 = vand.u32 2147483648, %v2289_v14 }
 0x28b   : > { %v2506_v8 = vadd.f32 %v9338_v1, %v2505_v33  ;;  %vm2522_vm11 = vweird.f32 %v2289_v14  ;;  %v2526_v16 = vand.u32 2147483647, %v2289_v14 }
 0x28c   : > { %v2491_v13 = vadd.f32 %v9340_v44, %v2490_v39  ;;  %vm2542_vm13 = vcmp.eq.f32.partialorder %v2541_v32, 8.507059e+37 }
 0x28d   : > { %v2510_v31 = vsel %vm2509_vm0, %v9338_v1, %v2506_v8  ;;  %vm2527_vm14 = vcmp.eq.f32.partialorder %v2526_v16, 8.507059e+37  ;;  %v2127_v8 = vpop.f32.mrf.mxu1 }
 0x28e   : > { %v2495_v51 = vsel %vm2494_vm4, %v9340_v44, %v2491_v13  ;;  %v2515_v26 = vsel %vm2512_vm5, %v2514_v18, %v2510_v31 }
 0x28f   : > { %2927 = vmatmul.bf16.gmra.mxu2 %v2823_v45  ;;  %v9346_v34 = vpop.eup %9345  ;;  %v2498_v45 = vand.u32 2147483648, %v11436_v61  ;;  %v2800_v5 = vmul.f32 %v2515_v26, %v11385_v22  ;;  %v2544_v22 = vor.u32 1.1754944e-38, %v2543_v63 }
 0x290   : > { %v9348_v24 = vpop.eup %9347  ;;  %v2533_v53 = vmul.f32 %v9346_v34, %v2290_v29  ;;  %vm2538_vm7 = vweird.f32 %v9346_v34 }
 0x291   : > { %v2518_v20 = vmul.f32 %v9348_v24, %v2289_v14  ;;  %v2499_v56 = vor.u32 1.1754944e-38, %v2498_v45  ;;  %vm2523_vm8 = vweird.f32 %v9348_v24  ;;  %vm2539_vm10 = vmor %vm2537_vm9, %vm2538_vm7  ;;  %v15394_v14 = vpack.c.bf16 %v11073_v52, %v11070_v60 }
 0x292   : > { %v2534_v42 = vsub.f32 1.0, %v2533_v53  ;;  %vm2524_vm12 = vmor %vm2522_vm11, %vm2523_vm8  ;;  %v15395_v60 = vpack.c.bf16 %v11128_v49, %v11125_v25 }
 0x293   : > { %v2500_v43 = vsel %vm2497_vm6, %v2499_v56, %v2495_v51  ;;  %v2519_v28 = vsub.f32 1.0, %v2518_v20 }
 0x294   : > { %v2799_v38 = vmul.f32 %v2500_v43, %v11390_v7  ;;  %v2535_v23 = vmul.f32 %v9346_v34, %v2534_v42  ;;  %v2529_v7 = vor.u32 1.1754944e-38, %v2528_v48 }
 0x295   : > { %v2520_v0 = vmul.f32 %v9348_v24, %v2519_v28  ;;  %v2129_v29 = vpop.f32.mrf.mxu1 }
 0x296   : > { %v2825_v61 = vpack.c.bf16 %v2800_v5, %v2799_v38  ;;  %v2536_v1 = vadd.f32 %v9346_v34, %v2535_v23  ;;  %v11478_v36 = vadd.f32 %v2129_v29, %v11176_v9 }
 0x297   : > { %v2521_v44 = vadd.f32 %v9348_v24, %v2520_v0 }
 0x298   : > { %v2540_v40 = vsel %vm2539_vm10, %v9346_v34, %v2536_v1 }
 0x299   : > { %v2525_v11 = vsel %vm2524_vm12, %v9348_v24, %v2521_v44  ;;  %v2545_v57 = vsel %vm2542_vm13, %v2544_v22, %v2540_v40  ;;  %v11481_v24 = vadd.f32 %v2127_v8, %v11157_v21 }
 0x29a   : > { %v2530_v33 = vsel %vm2527_vm14, %v2529_v7, %v2525_v11  ;;  %v2802_v39 = vmul.f32 %v2545_v57, %v11429_v55  ;;  %v8663_v55 = vmul.f32 -1.442695, %v11478_v36  ;;  %v15397_v7 = vpack.c.bf16 %v11208_v19, %v11205_v3 }
 0x29b   : > { %v8662_v45 = vmul.f32 -1.442695, %v11481_v24 }
 0x29c   : > { %9349 = vpow2.f32 %v8663_v55 }
 0x29d   : > { %v2132_v34 = vpop.f32.mrf.mxu1  ;;  %9351 = vpow2.f32 %v8662_v45 }
 0x29e   : > { %v11496_v51 = vadd.f32 %v2132_v34, %v11192_v47 }
 0x29f   : > { %2932 = vmatmul.bf16.gmra.mxu2 %v2824_v37  ;;  %v2801_v37 = vmul.f32 %v2530_v33, %v11434_v12 }
 0x2a0   : > { %v8664_v26 = vmul.f32 -1.442695, %v11496_v51 }
 0x2a1   : > { %v2826_v17 = vpack.c.bf16 %v2802_v39, %v2801_v37 }
 0x2a2   : > { %v9350_v52 = vpop.eup %9349 }
 0x2a3   : > { %v9352_v9 = vpop.eup %9351  ;;  %v2300_v18 = vadd.f32 1.0, %v9350_v52 }
 0x2a4   : > { %v2299_v20 = vadd.f32 1.0, %v9352_v9 }
 0x2a5   : > { %v2134_v46 = vpop.f32.mrf.mxu1  ;;  %9353 = vrcp.f32 %v2300_v18  ;;  %vm2687_vm3 = vweird.f32 %v2300_v18  ;;  %v2691_v33 = vand.u32 2147483647, %v2300_v18 }
 0x2a6   : > { %v11493_v21 = vadd.f32 %v2134_v46, %v11210_v27  ;;  %9355 = vrcp.f32 %v2299_v20  ;;  %v15396_v27 = vpack.c.bf16 %v11174_v2, %v11171_v6  ;;  %v2678_v37 = vand.u32 2147483648, %v2299_v20 }
 0x2a7   : > { %vm2672_vm5 = vweird.f32 %v2299_v20  ;;  %vm2692_vm7 = vcmp.eq.f32.partialorder %v2691_v33, 8.507059e+37 }
 0x2a8   : > { %v8665_v56 = vmul.f32 -1.442695, %v11493_v21  ;;  %v2679_v52 = vor.u32 1.1754944e-38, %v2678_v37 }
 0x2aa   : > { %9357 = vpow2.f32 %v8665_v56 }
 0x2ab   : > { %9359 = vpow2.f32 %v8664_v26  ;;  %v9354_v42 = vpop.eup %9353 }
 0x2ac   : > { %v9356_v43 = vpop.eup %9355  ;;  %v2683_v5 = vmul.f32 %v9354_v42, %v2300_v18  ;;  %vm2688_vm15 = vweird.f32 %v9354_v42 }
 0x2ad   : > { %v2137_v53 = vpop.f32.mrf.mxu1  ;;  %v2668_v23 = vmul.f32 %v9356_v43, %v2299_v20  ;;  %vm2673_vm0 = vweird.f32 %v9356_v43  ;;  %vm11528_vm4 = vmor %vm2687_vm3, %vm2688_vm15 }
 0x2ae   : > { %v2684_v1 = vsub.f32 1.0, %v2683_v5  ;;  %v11515_v44 = vadd.f32 %v2137_v53, %v11216_v10  ;;  %v2693_v10 = vand.u32 2147483648, %v2300_v18  ;;  %vm2674_vm6 = vmor %vm2672_vm5, %vm2673_vm0 }
 0x2af   : > { %2937 = vmatmul.bf16.gmra.mxu2 %v2825_v61  ;;  %v2669_v6 = vsub.f32 1.0, %v2668_v23 }
 0x2b0   : > { %v9358_v47 = vpop.eup %9357  ;;  %v2685_v48 = vmul.f32 %v9354_v42, %v2684_v1  ;;  %v8666_v40 = vmul.f32 -1.442695, %v11515_v44  ;;  %v2694_v55 = vor.u32 1.1754944e-38, %v2693_v10 }
 0x2b1   : > { %v9360_v38 = vpop.eup %9359  ;;  %v11507_v0 = vadd.f32 1.0, %v9358_v47 }
 0x2b2   : > { %v11512_v63 = vadd.f32 1.0, %v9360_v38  ;;  %v2686_v22 = vadd.f32 %v9354_v42, %v2685_v48 }
 0x2b3   : > { %9361 = vrcp.f32 %v11507_v0  ;;  %vm2717_vm10 = vweird.f32 %v11507_v0  ;;  %v2721_v10 = vand.u32 2147483647, %v11507_v0 }
 0x2b4   : > { %9363 = vrcp.f32 %v11512_v63  ;;  %v2690_v29 = vsel %vm11528_vm4, %v9354_v42, %v2686_v22  ;;  %vm2702_vm13 = vweird.f32 %v11512_v63  ;;  %v2706_v8 = vand.u32 2147483647, %v11512_v63 }
 0x2b5   : > { %v2139_v49 = vpop.f32.mrf.mxu1  ;;  %v2695_v9 = vsel %vm2692_vm7, %v2694_v55, %v2690_v29  ;;  %vm2722_vm15 = vcmp.eq.f32.partialorder %v2721_v10, 8.507059e+37 }
 0x2b6   : > { %v11510_v61 = vadd.f32 %v2139_v49, %v11226_v30  ;;  %v2670_v30 = vmul.f32 %v9356_v43, %v2669_v6  ;;  %v2812_v49 = vmul.f32 %v2695_v9, %v11478_v36  ;;  %vm2707_vm0 = vcmp.eq.f32.partialorder %v2706_v8, 8.507059e+37 }
 0x2b8   : > { %v8667_v32 = vmul.f32 -1.442695, %v11510_v61  ;;  %v2671_v57 = vadd.f32 %v9356_v43, %v2670_v30 }
 0x2b9   : > { %v11521_v11 = vpop.eup %9361 }
 0x2ba   : > { %9365 = vpow2.f32 %v8667_v32  ;;  %v11526_v39 = vpop.eup %9363  ;;  %v2713_v3 = vmul.f32 %v11521_v11, %v11507_v0  ;;  %v2675_v45 = vsel %vm2674_vm6, %v9356_v43, %v2671_v57  ;;  %vm2718_vm9 = vweird.f32 %v11521_v11 }
 0x2bb   : > { %9367 = vpow2.f32 %v8666_v40  ;;  %v2698_v46 = vmul.f32 %v11526_v39, %v11512_v63  ;;  %vm2703_vm11 = vweird.f32 %v11526_v39  ;;  %vm11569_vm12 = vmor %vm2717_vm10, %vm2718_vm9 }
 0x2bc   : > { %v2714_v18 = vsub.f32 1.0, %v2713_v3  ;;  %vm11591_vm14 = vmor %vm2702_vm13, %vm2703_vm11 }
 0x2bd   : > { %v2142_v2 = vpop.f32.mrf.mxu1  ;;  %v2699_v42 = vsub.f32 1.0, %v2698_v46 }
 0x2be   : > { %v11544_v26 = vadd.f32 %v2142_v2, %v11228_v59 }
 0x2bf   : > { %2942 = vmatmul.bf16.gmra.mxu2 %v2826_v17  ;;  %v2676_v17 = vand.u32 2147483647, %v2299_v20  ;;  %v2700_v6 = vmul.f32 %v11526_v39, %v2699_v42 }
 0x2c0   : > { %v9366_v34 = vpop.eup %9365  ;;  %v8668_v23 = vmul.f32 -1.442695, %v11544_v26 }
 0x2c1   : > { %vm2677_vm8 = vcmp.eq.f32.partialorder %v2676_v17, 8.507059e+37  ;;  %v11541_v20 = vadd.f32 1.0, %v9366_v34 }
 0x2c2   : > { %v2680_v56 = vsel %vm2677_vm8, %v2679_v52, %v2675_v45 }
 0x2c3   : > { %v2811_v5 = vmul.f32 %v2680_v56, %v11481_v24  ;;  %9369 = vrcp.f32 %v11541_v20  ;;  %vm2747_vm5 = vweird.f32 %v11541_v20 }
 0x2c5   : > { %v2144_v19 = vpop.f32.mrf.mxu1  ;;  %v2831_v36 = vpack.c.bf16 %v2812_v49, %v2811_v5 }
 0x2c6   : > { %v11539_v53 = vadd.f32 %v2144_v19, %v11236_v50  ;;  %v2715_v50 = vmul.f32 %v11521_v11, %v2714_v18 }
 0x2c8   : > { %v8669_v43 = vmul.f32 -1.442695, %v11539_v53  ;;  %v2716_v48 = vadd.f32 %v11521_v11, %v2715_v50 }
 0x2ca   : > { %v2720_v17 = vsel %vm11569_vm12, %v11521_v11, %v2716_v48 }
 0x2cf   : > { %2947 = vmatmul.bf16.gmra.mxu2 %v15394_v14 }
 0x2d0   : > { %v11475_v13 = vpop.f32.mrf.mxu2 }
 0x2d8   : > { %v11484_v12 = vpop.f32.mrf.mxu2 }
 0x2d9   : > { %v2989_v19 = vpack.c.bf16 %v11484_v12, %v11484_v12  ;;  %v2988_v12 = vpack.c.bf16 %v11475_v13, %v11475_v13 }
 0x2db   : > { %v3029_v49 = vunpack.c.l.b16 %v2989_v19  ;;  %v3028_v50 = vunpack.c.l.b16 %v2988_v12 }
 0x2df   : > { %2952 = vmatmul.bf16.gmra.mxu2 %v15395_v60  ;;  %v9368_v60 = vpop.eup %9367 }
 0x2e0   : > { %v11562_v22 = vpop.eup %9369 }
 0x2e1   : > { %vm2748_vm3 = vweird.f32 %v11562_v22 }
 0x2e2   : > { %v11490_v31 = vpop.f32.mrf.mxu2  ;;  %vm2749_vm6 = vmor %vm2747_vm5, %vm2748_vm3 }
 0x2ea   : > { %v11500_v25 = vpop.f32.mrf.mxu2 }
 0x2ef   : > { %2957 = vmatmul.bf16.gmra.mxu2 %v15396_v27  ;;  %v11547_v27 = vadd.f32 1.0, %v9368_v60 }
 0x2f1   : > { %9371 = vrcp.f32 %v11547_v27  ;;  %v2738_v48 = vand.u32 2147483648, %v11547_v27  ;;  %vm2732_vm7 = vweird.f32 %v11547_v27 }
 0x2f2   : > { %v11505_v28 = vpop.f32.mrf.mxu2  ;;  %9373 = vpow2.f32 %v8669_v43 }
 0x2f3   : > { %v2992_v2 = vpack.c.bf16 %v11505_v28, %v11505_v28  ;;  %9375 = vpow2.f32 %v8668_v23  ;;  %v2723_v28 = vand.u32 2147483648, %v11507_v0  ;;  %v2708_v0 = vand.u32 2147483648, %v11512_v63 }
 0x2f4   : > { %v2739_v57 = vor.u32 1.1754944e-38, %v2738_v48 }
 0x2f5   : > { %v3032_v33 = vunpack.c.l.b16 %v2992_v2  ;;  %v2724_v63 = vor.u32 1.1754944e-38, %v2723_v28  ;;  %v2709_v52 = vor.u32 1.1754944e-38, %v2708_v0  ;;  %v2753_v2 = vand.u32 2147483648, %v11541_v20 }
 0x2f7   : > { %v11575_v37 = vpop.eup %9371  ;;  %v2725_v9 = vsel %vm2722_vm15, %v2724_v63, %v2720_v17  ;;  %v2754_v28 = vor.u32 1.1754944e-38, %v2753_v2 }
 0x2f8   : > { %v9374_v3 = vpop.eup %9373  ;;  %v2728_v46 = vmul.f32 %v11575_v37, %v11547_v27  ;;  %vm2733_vm4 = vweird.f32 %v11575_v37 }
 0x2f9   : > { %v9376_v11 = vpop.eup %9375  ;;  %v11602_v18 = vadd.f32 1.0, %v9374_v3  ;;  %vm2734_vm8 = vmor %vm2732_vm7, %vm2733_vm4 }
 0x2fa   : > { %v2920_v16 = vpop.f32.mrf.mxu2  ;;  %v2729_v5 = vsub.f32 1.0, %v2728_v46 }
 0x2fb   : > { %v2993_v1 = vpack.c.bf16 %v2920_v16, %v2920_v16  ;;  %v2991_v16 = vpack.c.bf16 %v11500_v25, %v11500_v25  ;;  %v2990_v25 = vpack.c.bf16 %v11490_v31, %v11490_v31  ;;  %v2743_v31 = vmul.f32 %v11562_v22, %v11541_v20 }
 0x2fc   : > { %9377 = vrcp.f32 %v11602_v18  ;;  %vm2777_vm13 = vweird.f32 %v11602_v18 }
 0x2fd   : > { %v3033_v40 = vunpack.c.l.b16 %v2993_v1  ;;  %v3030_v60 = vunpack.c.l.b16 %v2990_v25  ;;  %v2744_v56 = vsub.f32 1.0, %v2743_v31  ;;  %v3036_v1 = vpack.c.b16 %v3029_v49, %v3028_v50 }
 0x2ff   : > { %2962 = vmatmul.bf16.gmra.mxu2 %v15397_v7  ;;  %v2701_v7 = vadd.f32 %v11526_v39, %v2700_v6  ;;  %v3038_v34 = vpack.c.b16 %v3033_v40, %v3032_v33  ;;  %v2745_v23 = vmul.f32 %v11562_v22, %v2744_v56  ;;  %v2736_v40 = vand.u32 2147483647, %v11547_v27 }
 0x301   : > { %v2705_v45 = vsel %vm11591_vm14, %v11526_v39, %v2701_v7  ;;  %v2814_v39 = vmul.f32 %v2725_v9, %v11493_v21  ;;  %v2746_v21 = vadd.f32 %v11562_v22, %v2745_v23  ;;  %vm2737_vm10 = vcmp.eq.f32.partialorder %v2736_v40, 8.507059e+37 }
 0x302   : > { %v2923_v14 = vpop.f32.mrf.mxu2  ;;  %v2710_v43 = vsel %vm2707_vm0, %v2709_v52, %v2705_v45 }
 0x303   : > { %v2994_v47 = vpack.c.bf16 %v2923_v14, %v2923_v14  ;;  %v3031_v14 = vunpack.c.l.b16 %v2991_v16 }
 0x305   : > { %v3034_v32 = vunpack.c.l.b16 %v2994_v47  ;;  %v3037_v42 = vpack.c.b16 %v3031_v14, %v3030_v60  ;;  %v11604_v47 = vadd.f32 1.0, %v9376_v11 }
 0x307   : > { %9379 = vrcp.f32 %v11604_v47  ;;  %v2768_v55 = vand.u32 2147483648, %v11604_v47  ;;  %vm2762_vm15 = vweird.f32 %v11604_v47  ;;  %v2766_v63 = vand.u32 2147483647, %v11604_v47 }
 0x309   : > { %v2769_v12 = vor.u32 1.1754944e-38, %v2768_v55  ;;  %vm2767_vm4 = vcmp.eq.f32.partialorder %v2766_v63, 8.507059e+37  ;;  %v15405_v55 = vld [vmem:[#allocation52_spill] sm:$0xff] }
 0x30a   : > { %v2925_v38 = vpop.f32.mrf.mxu2 }
 0x30b   : > { %v2995_v59 = vpack.c.bf16 %v2925_v38, %v2925_v38  ;;  %v2813_v38 = vmul.f32 %v2710_v43, %v11496_v51 }
 0x30d   : > { %v3035_v24 = vunpack.c.l.b16 %v2995_v59  ;;  %v2730_v59 = vmul.f32 %v11575_v37, %v2729_v5  ;;  %v2832_v6 = vpack.c.bf16 %v2814_v39, %v2813_v38 }
 0x30f   : > { %v3039_v30 = vpack.c.b16 %v3035_v24, %v3034_v32  ;;  %2967 = vmatmul.bf16.gmra.mxu2 %v2831_v36  ;;  %v9378_v36 = vpop.eup %9377  ;;  %v2731_v51 = vadd.f32 %v11575_v37, %v2730_v59  ;;  %v2751_v32 = vand.u32 2147483647, %v11541_v20 }
 0x310   : > { %v9380_v24 = vpop.eup %9379  ;;  %v2773_v10 = vmul.f32 %v9378_v36, %v11602_v18  ;;  %vm2778_vm11 = vweird.f32 %v9378_v36 }
 0x311   : > { %3048 = vmatpush.bf16.msra.mxu3 %v3039_v30  ;;  %v2750_v30 = vsel %vm2749_vm6, %v11562_v22, %v2746_v21  ;;  %v2735_v7 = vsel %vm2734_vm8, %v11575_v37, %v2731_v51  ;;  %vm2752_vm9 = vcmp.eq.f32.partialorder %v2751_v32, 8.507059e+37  ;;  %v2758_v20 = vmul.f32 %v9380_v24, %v11604_v47  ;;  %vm2779_vm14 = vmor %vm2777_vm13, %vm2778_vm11 }
 0x312   : > { %v11583_v29 = vpop.f32.mrf.mxu2  ;;  %v2755_v25 = vsel %vm2752_vm9, %v2754_v28, %v2750_v30  ;;  %v2774_v33 = vsub.f32 1.0, %v2773_v10  ;;  %v2740_v8 = vsel %vm2737_vm10, %v2739_v57, %v2735_v7  ;;  %v2783_v37 = vand.u32 2147483648, %v11602_v18 }
 0x313   : > { %v2816_v0 = vmul.f32 %v2755_v25, %v11510_v61  ;;  %v2759_v17 = vsub.f32 1.0, %v2758_v20  ;;  %v2815_v22 = vmul.f32 %v2740_v8, %v11515_v44  ;;  %vm2763_vm12 = vweird.f32 %v9380_v24 }
 0x314   : > { %v2775_v3 = vmul.f32 %v9378_v36, %v2774_v33  ;;  %v2781_v61 = vand.u32 2147483647, %v11602_v18  ;;  %vm2764_vm0 = vmor %vm2762_vm15, %vm2763_vm12  ;;  %v2784_v45 = vor.u32 1.1754944e-38, %v2783_v37  ;;  %v2996_v32 = vpack.c.bf16 %v11583_v29, %v11583_v29  ;;  %v1116_v33 = vld [vmem:[%s15274_s4 + $0x60] sm:$0x1] }
 0x315   : > { %3049 = vmatpush.bf16.msra.mxu3 %v3038_v34  ;;  %v2760_v31 = vmul.f32 %v9380_v24, %v2759_v17  ;;  %v2833_v19 = vpack.c.bf16 %v2816_v0, %v2815_v22  ;;  %v1236_v17 = vunpack.c.l.b16 %v1116_v33 }
 0x316   : > { %v2776_v14 = vadd.f32 %v9378_v36, %v2775_v3  ;;  %vm2782_vm3 = vcmp.eq.f32.partialorder %v2781_v61, 8.507059e+37  ;;  %v3081_v30 = vunpack.c.l.b16 %v2996_v32 }
 0x317   : > { %v2761_v34 = vadd.f32 %v9380_v24, %v2760_v31  ;;  %v1251_v31 = vpack.c.b16 %v1236_v17, %v1236_v17 }
 0x318   : > { %v2780_v11 = vsel %vm2779_vm14, %v9378_v36, %v2776_v14 }
 0x319   : > { %3050 = vmatpush.bf16.msra.mxu3 %v3037_v42  ;;  %v2765_v46 = vsel %vm2764_vm0, %v9380_v24, %v2761_v34  ;;  %v2785_v60 = vsel %vm2782_vm3, %v2784_v45, %v2780_v11  ;;  %v15404_v34 = vld [vmem:[#allocation5_spill] sm:$0xff]  ;;  %v8540_v45 = vld [vmem:[%s15274_s4 + $0x38] sm:$0xf] }
 0x31a   : > { %v11608_v13 = vpop.f32.mrf.mxu2  ;;  %v2770_v52 = vsel %vm2767_vm4, %v2769_v12, %v2765_v46  ;;  %v2818_v9 = vmul.f32 %v2785_v60, %v11539_v53  ;;  %v1327_v61 = vand.u32 %v15404_v34, %v1251_v31  ;;  %v9088_v46 = vld [vmem:[%s15274_s4 + $0x48] sm:$0xf0] }
 0x31b   : > { %v2817_v56 = vmul.f32 %v2770_v52, %v11544_v26  ;;  %v2997_v36 = vpack.c.bf16 %v11608_v13, %v11608_v13 }
 0x31c   : > { %1690 = vmatpush.bf16.msrb.mxu0 %v1327_v61  ;;  %v9100_v61 = vld [vmem:[%s15275_s5 + $0x58] sm:$0xff] }
 0x31d   : > { %3051 = vmatpush.bf16.msra.mxu3 %v3036_v1  ;;  %v2834_v49 = vpack.c.bf16 %v2818_v9, %v2817_v56  ;;  %v3082_v48 = vunpack.c.l.b16 %v2997_v36  ;;  %v8541_v9 = vor.u32 %v9088_v46, %v8540_v45 }
 0x31f   : > { %2972 = vmatmul.bf16.gmra.mxu2 %v2832_v6  ;;  %v3089_v28 = vpack.c.b16 %v3082_v48, %v3081_v30 }
 0x320   : > { %8702 = vmatmul.msk.bf16.vlgmr.msra.gmra.mxu3 %vm1850_vm2, %v10702_v41  ;;  %1691 = vmatpush.bf16.msrb.mxu0 %v8541_v9 }
 0x322   : > { %v11624_v16 = vpop.f32.mrf.mxu2 }
 0x323   : > { %v2998_v53 = vpack.c.bf16 %v11624_v16, %v11624_v16 }
 0x325   : > { %v3083_v24 = vunpack.c.l.b16 %v2998_v53  ;;  %v15407_v53 = vld [vmem:[#allocation6_spill] sm:$0xff] }
 0x32a   : > { %v2935_v27 = vpop.f32.mrf.mxu2 }
 0x32b   : > { %v2999_v1 = vpack.c.bf16 %v2935_v27, %v2935_v27 }
 0x32d   : > { %v3084_v2 = vunpack.c.l.b16 %v2999_v1  ;;  %v15406_v1 = vld [vmem:[#allocation23_spill] sm:$0xff] }
 0x32f   : > { %2977 = vmatmul.bf16.gmra.mxu2 %v2833_v19  ;;  %v3090_v40 = vpack.c.b16 %v3084_v2, %v3083_v24  ;;  %v10158_v24 = vld [vmem:[%s10394_s28 + $0x8] sm:$0xff] }
 0x330   : > { %8703 = vmatmul.msk.bf16.gmra.mxu3 %vm1850_vm2, %v11013_v4 }
 0x332   : > { %v2938_v44 = vpop.f32.mrf.mxu2 }
 0x333   : > { %v3000_v50 = vpack.c.bf16 %v2938_v44, %v2938_v44 }
 0x335   : > { %v3085_v26 = vunpack.c.l.b16 %v3000_v50 }
 0x33a   : > { %v2940_v18 = vpop.f32.mrf.mxu2 }
 0x33b   : > { %v3001_v39 = vpack.c.bf16 %v2940_v18, %v2940_v18 }
 0x33d   : > { %v3086_v59 = vunpack.c.l.b16 %v3001_v39 }
 0x33f   : > { %2982 = vmatmul.bf16.gmra.mxu2 %v2834_v49  ;;  %v3091_v51 = vpack.c.b16 %v3086_v59, %v3085_v26  ;;  %v8520_v49 = vld [vmem:[%s15274_s4 + $0x10] sm:$0xf] }
 0x340   : > { %8704 = vmatmul.msk.bf16.gmra.mxu3 %vm1850_vm2, %v11029_v58 }
 0x342   : > { %v2943_v42 = vpop.f32.mrf.mxu2 }
 0x343   : > { %v3002_v43 = vpack.c.bf16 %v2943_v42, %v2943_v42  ;;  %v9083_v42 = vld [vmem:[%s15274_s4 + $0x20] sm:$0xf0] }
 0x344   : > { %v8521_v39 = vor.u32 %v9083_v42, %v8520_v49 }
 0x345   : > { %v3087_v38 = vunpack.c.l.b16 %v3002_v43 }
 0x346   : > { %1692 = vmatpush.bf16.msrb.mxu0 %v8521_v39 }
 0x34a   : > { %v2945_v47 = vpop.f32.mrf.mxu2 }
 0x34b   : > { %v3003_v5 = vpack.c.bf16 %v2945_v47, %v2945_v47 }
 0x34d   : > { %v3088_v23 = vunpack.c.l.b16 %v3003_v5 }
 0x34f   : > { %v3092_v6 = vpack.c.b16 %v3088_v23, %v3087_v38  ;;  %v10157_v23 = vld [vmem:[%s10394_s28] sm:$0xff] }
 0x350   : > { %8705 = vmatmul.msk.bf16.gmra.mxu3 %vm1850_vm2, %v10992_v62  ;;  %8606 = vmatmul.msk.bf16.vlgmr.msrb.gmra.mxu0 %vm1262_vm1, %v10157_v23 }
 0x351   : > { %3101 = vmatpush.bf16.msra.mxu1 %v3092_v6 }
 0x352   : > { %v2948_v21 = vpop.f32.mrf.mxu2 }
 0x353   : > { %v3004_v18 = vpack.c.bf16 %v2948_v21, %v2948_v21 }
 0x355   : > { %3102 = vmatpush.bf16.msra.mxu1 %v3091_v51  ;;  %v3134_v5 = vunpack.c.l.b16 %v3004_v18  ;;  %v15408_v51 = vld [vmem:[#allocation7_spill] sm:$0xff]  ;;  %v15413_v18 = vld [vmem:[#allocation12_spill] sm:$0xff] }
 0x359   : > { %3103 = vmatpush.bf16.msra.mxu1 %v3090_v40  ;;  %v15409_v40 = vld [vmem:[#allocation28_spill] sm:$0xff] }
 0x35a   : > { %v2950_v10 = vpop.f32.mrf.mxu2 }
 0x35b   : > { %v3005_v12 = vpack.c.bf16 %v2950_v10, %v2950_v10  ;;  %v9104_v10 = vld [vmem:[%s15275_s5 + $0x78] sm:$0xff] }
 0x35d   : > { %3104 = vmatpush.bf16.msra.mxu1 %v3089_v28  ;;  %v3135_v43 = vunpack.c.l.b16 %v3005_v12 }
 0x35f   : > { %v3142_v38 = vpack.c.b16 %v3135_v43, %v3134_v5  ;;  %v9098_v5 = vld [vmem:[%s15275_s5 + $0x48] sm:$0xff] }
 0x360   : > { %8706 = vmatmul.msk.bf16.vlgmr.msra.gmra.mxu1 %vm1850_vm2, %v10748_v15  ;;  %8607 = vmatmul.msk.bf16.gmra.mxu0 %vm1262_vm1, %v10158_v24 }
 0x362   : > { %v2953_v16 = vpop.f32.mrf.mxu2 }
 0x363   : > { %v3006_v44 = vpack.c.bf16 %v2953_v16, %v2953_v16 }
 0x365   : > { %v3136_v56 = vunpack.c.l.b16 %v3006_v44 }
 0x36a   : > { %v2955_v7 = vpop.f32.mrf.mxu2 }
 0x36b   : > { %v3007_v19 = vpack.c.bf16 %v2955_v7, %v2955_v7 }
 0x36d   : > { %v3137_v60 = vunpack.c.l.b16 %v3007_v19  ;;  %v9101_v19 = vld [vmem:[%s15275_s5 + $0x60] sm:$0xff] }
 0x36f   : > { %v3143_v47 = vpack.c.b16 %v3137_v60, %v3136_v56 }
 0x370   : > { %8707 = vmatmul.msk.bf16.gmra.mxu1 %vm1850_vm2, %v10922_v35 }
 0x372   : > { %v2958_v13 = vpop.f32.mrf.mxu2 }
 0x373   : > { %v3008_v27 = vpack.c.bf16 %v2958_v13, %v2958_v13  ;;  %v9103_v13 = vld [vmem:[%s15275_s5 + $0x70] sm:$0xff] }
 0x375   : > { %v3138_v63 = vunpack.c.l.b16 %v3008_v27  ;;  %v15411_v27 = vld [vmem:[#allocation10_spill] sm:$0xff] }
 0x37a   : > { %v2960_v20 = vpop.f32.mrf.mxu2 }
 0x37b   : > { %v3009_v8 = vpack.c.bf16 %v2960_v20, %v2960_v20 }
 0x37d   : > { %v3139_v14 = vunpack.c.l.b16 %v3009_v8  ;;  %v9102_v8 = vld [vmem:[%s15275_s5 + $0x68] sm:$0xff] }
 0x37f   : > { %v3144_v52 = vpack.c.b16 %v3139_v14, %v3138_v63  ;;  %v15412_v14 = vld [vmem:[#allocation32_spill] sm:$0xff] }
 0x380   : > { %8708 = vmatmul.msk.bf16.gmra.mxu1 %vm1850_vm2, %v10940_v54 }
 0x382   : > { %v2963_v29 = vpop.f32.mrf.mxu2 }
 0x383   : > { %v3010_v57 = vpack.c.bf16 %v2963_v29, %v2963_v29  ;;  %v15410_v29 = vld [vmem:[#allocation8_spill] sm:$0xff] }
 0x385   : > { %v3140_v22 = vunpack.c.l.b16 %v3010_v57 }
 0x38a   : > { %v2965_v25 = vpop.f32.mrf.mxu2 }
 0x38b   : > { %v3011_v0 = vpack.c.bf16 %v2965_v25, %v2965_v25 }
 0x38d   : > { %v3141_v3 = vunpack.c.l.b16 %v3011_v0 }
 0x38f   : > { %v3145_v37 = vpack.c.b16 %v3141_v3, %v3140_v22  ;;  %v10159_v3 = vld [vmem:[%s10394_s28 + $0x10] sm:$0xff] }
 0x390   : > { %8709 = vmatmul.msk.bf16.gmra.mxu1 %vm1850_vm2, %v15405_v55  ;;  %8608 = vmatmul.msk.bf16.gmra.mxu0 %vm1262_vm1, %v10159_v3 }
 0x391   : > { %3154 = vmatpush.bf16.msrb.mxu3 %v3145_v37 }
 0x392   : > { %v11666_v11 = vpop.f32.mrf.mxu2 }
 0x395   : > { %3155 = vmatpush.bf16.msrb.mxu3 %v3144_v52  ;;  %v9099_v52 = vld [vmem:[%s15275_s5 + $0x50] sm:$0xff] }
 0x399   : > { %3156 = vmatpush.bf16.msrb.mxu3 %v3143_v47 }
 0x39a   : > { %v11680_v50 = vpop.f32.mrf.mxu2 }
 0x39d   : > { %3157 = vmatpush.bf16.msrb.mxu3 %v3142_v38 }
 0x3a0   : > { %8710 = vmatmul.msk.bf16.vlgmr.msrb.gmra.mxu3 %vm1850_vm2, %v15406_v1 }
 0x3a1   : > { %3985 = vmatpush.bf16.msra.mxu3 %v9104_v10 }
 0x3a2   : > { %v11686_v59 = vpop.f32.mrf.mxu2 }
 0x3a3   : > { %v3053_v6 = vpop.f32.mrf.mxu3 }
 0x3a4   : > { %v11689_v26 = vadd.f32 %v3053_v6, %v15407_v53 }
 0x3a5   : > { %3986 = vmatpush.bf16.msra.mxu3 %v9103_v13  ;;  %v9097_v13 = vld [vmem:[%s15275_s5 + $0x40] sm:$0xff] }
 0x3a6   : > { %v8718_v36 = vmul.f32 -1.442695, %v11689_v26 }
 0x3a8   : > { %9381 = vpow2.f32 %v8718_v36 }
 0x3a9   : > { %3987 = vmatpush.bf16.msra.mxu3 %v9102_v8 }
 0x3aa   : > { %v11691_v21 = vpop.f32.mrf.mxu2 }
 0x3ab   : > { %v3055_v2 = vpop.f32.mrf.mxu3  ;;  %v3015_v36 = vpack.c.bf16 %v11691_v21, %v11691_v21 }
 0x3ac   : > { %v11695_v32 = vadd.f32 %v3055_v2, %v15408_v51  ;;  %v15414_v51 = vld [vmem:[#allocation15_spill] sm:$0xff] }
 0x3ad   : > { %3988 = vmatpush.bf16.msra.mxu3 %v9101_v19  ;;  %v3190_v3 = vunpack.c.l.b16 %v3015_v36 }
 0x3ae   : > { %v8719_v48 = vmul.f32 -1.442695, %v11695_v32  ;;  %v9382_v16 = vpop.eup %9381 }
 0x3af   : > { %v11715_v25 = vadd.f32 1.0, %v9382_v16 }
 0x3b0   : > { %9383 = vpow2.f32 %v8719_v48  ;;  %8711 = vmatmul.msk.bf16.gmra.mxu3 %vm1850_vm2, %v15409_v40  ;;  %v10160_v48 = vld [vmem:[%s10394_s28 + $0x18] sm:$0xff] }
 0x3b1   : > { %3989 = vmatpush.bf16.msra.mxu3 %v9100_v61  ;;  %8609 = vmatmul.msk.bf16.gmra.mxu0 %vm1262_vm1, %v10160_v48  ;;  %vm3397_vm9 = vweird.f32 %v11715_v25 }
 0x3b2   : > { %v11702_v30 = vpop.f32.mrf.mxu2 }
 0x3b3   : > { %v3058_v28 = vpop.f32.mrf.mxu3  ;;  %v3016_v10 = vpack.c.bf16 %v11702_v30, %v11702_v30 }
 0x3b4   : > { %v11713_v57 = vadd.f32 %v3058_v28, %v15410_v29  ;;  %v3014_v29 = vpack.c.bf16 %v11686_v59, %v11686_v59 }
 0x3b5   : > { %3990 = vmatpush.bf16.msra.mxu3 %v9099_v52  ;;  %v3191_v59 = vunpack.c.l.b16 %v3016_v10 }
 0x3b6   : > { %v9384_v7 = vpop.eup %9383  ;;  %v8720_v0 = vmul.f32 -1.442695, %v11713_v57 }
 0x3b7   : > { %v11710_v20 = vadd.f32 1.0, %v9384_v7 }
 0x3b9   : > { %9385 = vrcp.f32 %v11710_v20  ;;  %3991 = vmatpush.bf16.msra.mxu3 %v9098_v5  ;;  %vm3412_vm7 = vweird.f32 %v11710_v20 }
 0x3ba   : > { %v2980_v33 = vpop.f32.mrf.mxu2  ;;  %9387 = vrcp.f32 %v11715_v25 }
 0x3bb   : > { %v3060_v17 = vpop.f32.mrf.mxu3  ;;  %9389 = vpow2.f32 %v8720_v0  ;;  %v3017_v38 = vpack.c.bf16 %v2980_v33, %v2980_v33  ;;  %v15415_v0 = vld [vmem:[#allocation37_spill] sm:$0xff] }
 0x3bc   : > { %v11723_v22 = vadd.f32 %v3060_v17, %v15411_v27  ;;  %v3013_v27 = vpack.c.bf16 %v11680_v50, %v11680_v50 }
 0x3bd   : > { %v3192_v33 = vunpack.c.l.b16 %v3017_v38  ;;  %3992 = vmatpush.bf16.msra.mxu3 %v9097_v13 }
 0x3be   : > { %v8721_v31 = vmul.f32 -1.442695, %v11723_v22 }
 0x3bf   : > { %v11734_v37 = vpop.eup %9385 }
 0x3c0   : > { %9391 = vpow2.f32 %v8721_v31  ;;  %8712 = vmatmul.msk.bf16.gmra.mxu3 %vm1850_vm2, %v15412_v14  ;;  %v11739_v44 = vpop.eup %9387  ;;  %v3408_v45 = vmul.f32 %v11734_v37, %v11710_v20  ;;  %vm3413_vm5 = vweird.f32 %v11734_v37  ;;  %v3418_v31 = vand.u32 2147483648, %v11710_v20 }
 0x3c1   : > { %v9390_v46 = vpop.eup %9389  ;;  %v3393_v60 = vmul.f32 %v11739_v44, %v11715_v25  ;;  %vm3398_vm6 = vweird.f32 %v11739_v44  ;;  %vm11796_vm8 = vmor %vm3412_vm7, %vm3413_vm5 }
 0x3c2   : > { %v2983_v34 = vpop.f32.mrf.mxu2  ;;  %v3409_v49 = vsub.f32 1.0, %v3408_v45  ;;  %v11753_v42 = vadd.f32 1.0, %v9390_v46  ;;  %v3403_v45 = vand.u32 2147483648, %v11715_v25  ;;  %vm11811_vm10 = vmor %vm3397_vm9, %vm3398_vm6 }
 0x3c3   : > { %v3063_v63 = vpop.f32.mrf.mxu3  ;;  %v3018_v43 = vpack.c.bf16 %v2983_v34, %v2983_v34  ;;  %v3394_v47 = vsub.f32 1.0, %v3393_v60  ;;  %v3416_v34 = vand.u32 2147483647, %v11710_v20  ;;  %v3401_v60 = vand.u32 2147483647, %v11715_v25 }
 0x3c4   : > { %v11751_v56 = vadd.f32 %v3063_v63, %v15413_v18  ;;  %v3410_v2 = vmul.f32 %v11734_v37, %v3409_v49  ;;  %v3189_v63 = vunpack.c.l.b16 %v3014_v29  ;;  %v3012_v49 = vpack.c.bf16 %v11666_v11, %v11666_v11 }
 0x3c5   : > { %v3193_v28 = vunpack.c.l.b16 %v3018_v43  ;;  %v3395_v7 = vmul.f32 %v11739_v44, %v3394_v47  ;;  %v3188_v43 = vunpack.c.l.b16 %v3013_v27  ;;  %vm3417_vm11 = vcmp.eq.f32.partialorder %v3416_v34, 8.507059e+37 }
 0x3c6   : > { %v9392_v12 = vpop.eup %9391  ;;  %v8722_v23 = vmul.f32 -1.442695, %v11751_v56  ;;  %v3411_v30 = vadd.f32 %v11734_v37, %v3410_v2  ;;  %v3196_v38 = vpack.c.b16 %v3190_v3, %v3189_v63  ;;  %v3404_v11 = vor.u32 1.1754944e-38, %v3403_v45 }
 0x3c7   : > { %v11748_v9 = vadd.f32 1.0, %v9392_v12  ;;  %v3396_v19 = vadd.f32 %v11739_v44, %v3395_v7  ;;  %v3197_v12 = vpack.c.b16 %v3192_v33, %v3191_v59  ;;  %vm3402_vm12 = vcmp.eq.f32.partialorder %v3401_v60, 8.507059e+37  ;;  %v15421_v33 = vld [vmem:[#allocation19_spill] sm:$0xff]  ;;  %v15422_v59 = vld [vmem:[#allocation66_spill] sm:$0xff] }
 0x3c8   : > { %v3415_v20 = vsel %vm11796_vm8, %v11734_v37, %v3411_v30  ;;  %v10161_v30 = vld [vmem:[%s10394_s28 + $0x20] sm:$0xff]  ;;  %vm3427_vm3 = vweird.f32 %v11753_v42  ;;  %v3431_v60 = vand.u32 2147483647, %v11753_v42 }
 0x3c9   : > { %9393 = vrcp.f32 %v11748_v9  ;;  %v3400_v37 = vsel %vm11811_vm10, %v11739_v44, %v3396_v19  ;;  %8610 = vmatmul.msk.bf16.gmra.mxu0 %vm1262_vm1, %v10161_v30  ;;  %v3448_v34 = vand.u32 2147483648, %v11748_v9  ;;  %vm3442_vm15 = vweird.f32 %v11748_v9 }
 0x3ca   : > { %v2985_v39 = vpop.f32.mrf.mxu2  ;;  %9395 = vrcp.f32 %v11753_v42  ;;  %v3405_v48 = vsel %vm3402_vm12, %v3404_v11, %v3400_v37  ;;  %v3446_v45 = vand.u32 2147483647, %v11748_v9  ;;  %vm3432_vm6 = vcmp.eq.f32.partialorder %v3431_v60, 8.507059e+37  ;;  %v15426_v11 = vld [vmem:[#allocation21_spill] sm:$0xff] }
 0x3cb   : > { %v3019_v6 = vpack.c.bf16 %v2985_v39, %v2985_v39  ;;  %v3065_v53 = vpop.f32.mrf.mxu3  ;;  %9397 = vpow2.f32 %v8722_v23  ;;  %v3419_v39 = vor.u32 1.1754944e-38, %v3418_v31  ;;  %v3872_v13 = vmul.f32 %v3405_v48, %v11689_v26 }
 0x3cc   : > { %v11764_v24 = vadd.f32 %v3065_v53, %v15414_v51  ;;  %v15420_v53 = vld [vmem:[#allocation17_spill] sm:$0xff]  ;;  %v3187_v51 = vunpack.c.l.b16 %v3012_v49  ;;  %vm3447_vm5 = vcmp.eq.f32.partialorder %v3446_v45, 8.507059e+37 }
 0x3cd   : > { %v3194_v16 = vunpack.c.l.b16 %v3019_v6  ;;  %v3420_v23 = vsel %vm3417_vm11, %v3419_v39, %v3415_v20 }
 0x3ce   : > { %v8723_v21 = vmul.f32 -1.442695, %v11764_v24  ;;  %v3873_v44 = vmul.f32 %v3420_v23, %v11695_v32 }
 0x3cf   : > { %v3198_v8 = vpack.c.b16 %v3194_v16, %v3193_v28  ;;  %v11782_v17 = vpop.eup %9393 }
 0x3d0   : > { %9399 = vpow2.f32 %v8723_v21  ;;  %8713 = vmatmul.msk.bf16.gmra.mxu3 %vm1850_vm2, %v15415_v0  ;;  %v11791_v61 = vpop.eup %9395  ;;  %v3438_v52 = vmul.f32 %v11782_v17, %v11748_v9  ;;  %v3195_v21 = vpack.c.b16 %v3188_v43, %v3187_v51  ;;  %v3904_v27 = vpack.c.bf16 %v3873_v44, %v3872_v13 }
 0x3d1   : > { %3207 = vmatpush.bf16.msrb.mxu1 %v3198_v8  ;;  %v9398_v18 = vpop.eup %9397  ;;  %v3423_v5 = vmul.f32 %v11791_v61, %v11753_v42  ;;  %vm3443_vm13 = vweird.f32 %v11782_v17  ;;  %vm3428_vm14 = vweird.f32 %v11791_v61 }
 0x3d2   : > { %v3439_v2 = vsub.f32 1.0, %v3438_v52  ;;  %v11825_v10 = vadd.f32 1.0, %v9398_v18  ;;  %vm11854_vm0 = vmor %vm3442_vm15, %vm3443_vm13  ;;  %v3449_v18 = vor.u32 1.1754944e-38, %v3448_v34 }
 0x3d3   : > { %v3068_v46 = vpop.f32.mrf.mxu3  ;;  %v3424_v28 = vsub.f32 1.0, %v3423_v5  ;;  %vm3429_vm4 = vmor %vm3427_vm3, %vm3428_vm14 }
 0x3d4   : > { %v11823_v36 = vadd.f32 %v3068_v46, %v15420_v53  ;;  %v3440_v29 = vmul.f32 %v11782_v17, %v3439_v2  ;;  %v3433_v46 = vand.u32 2147483648, %v11753_v42  ;;  %vm3457_vm11 = vweird.f32 %v11825_v10 }
 0x3d5   : > { %3208 = vmatpush.bf16.msrb.mxu1 %v3197_v12  ;;  %v3425_v3 = vmul.f32 %v11791_v61, %v3424_v28 }
 0x3d6   : > { %v9400_v25 = vpop.eup %9399  ;;  %v8724_v16 = vmul.f32 -1.442695, %v11823_v36  ;;  %v3441_v26 = vadd.f32 %v11782_v17, %v3440_v29  ;;  %v3434_v37 = vor.u32 1.1754944e-38, %v3433_v46 }
 0x3d7   : > { %v11820_v6 = vadd.f32 1.0, %v9400_v25  ;;  %v3426_v63 = vadd.f32 %v11791_v61, %v3425_v3  ;;  %v15425_v25 = vld [vmem:[#allocation25_spill] sm:$0xff] }
 0x3d8   : > { %v3445_v20 = vsel %vm11854_vm0, %v11782_v17, %v3441_v26 }
 0x3d9   : > { %3209 = vmatpush.bf16.msrb.mxu1 %v3196_v38  ;;  %9401 = vrcp.f32 %v11820_v6  ;;  %v3430_v47 = vsel %vm3429_vm4, %v11791_v61, %v3426_v63  ;;  %v3450_v17 = vsel %vm3447_vm5, %v3449_v18, %v3445_v20  ;;  %v3478_v30 = vand.u32 2147483648, %v11820_v6 }
 0x3da   : > { %9403 = vrcp.f32 %v11825_v10  ;;  %v3435_v53 = vsel %vm3432_vm6, %v3434_v37, %v3430_v47  ;;  %v3875_v61 = vmul.f32 %v3450_v17, %v11723_v22  ;;  %vm3472_vm9 = vweird.f32 %v11820_v6  ;;  %v15431_v47 = vld [vmem:[#allocation27_spill] sm:$0xff] }
 0x3db   : > { %v3070_v7 = vpop.f32.mrf.mxu3  ;;  %9405 = vpow2.f32 %v8724_v16  ;;  %v3874_v44 = vmul.f32 %v3435_v53, %v11713_v57  ;;  %v15427_v57 = vld [vmem:[#allocation69_spill] sm:$0xff]  ;;  %v3461_v63 = vand.u32 2147483647, %v11825_v10  ;;  %v3479_v46 = vor.u32 1.1754944e-38, %v3478_v30 }
 0x3dc   : > { %v11833_v8 = vadd.f32 %v3070_v7, %v15421_v33  ;;  %v10162_v7 = vld [vmem:[%s10394_s28 + $0x28] sm:$0xff] }
 0x3dd   : > { %v3106_v32 = vpop.f32.mrf.mxu1  ;;  %3210 = vmatpush.bf16.msrb.mxu1 %v3195_v21  ;;  %8611 = vmatmul.msk.bf16.gmra.mxu0 %vm1262_vm1, %v10162_v7  ;;  %v3905_v22 = vpack.c.bf16 %v3875_v61, %v3874_v44  ;;  %vm3462_vm14 = vcmp.eq.f32.partialorder %v3461_v63, 8.507059e+37 }
 0x3de   : > { %v8725_v31 = vmul.f32 -1.442695, %v11833_v8  ;;  %v11874_v23 = vadd.f32 %v3106_v32, %v15426_v11 }
 0x3df   : > { %v11844_v19 = vpop.eup %9401 }
 0x3e0   : > { %9407 = vpow2.f32 %v8725_v31  ;;  %8714 = vmatmul.msk.bf16.vlgmr.msrb.gmra.mxu1 %vm1850_vm2, %v15422_v59  ;;  %3993 = vmatmul.bf16.vlgmr.msra.gmra.mxu3 %v3904_v27  ;;  %v11851_v50 = vpop.eup %9403  ;;  %v3468_v52 = vmul.f32 %v11844_v19, %v11820_v6  ;;  %v8726_v16 = vmul.f32 -1.442695, %v11874_v23  ;;  %vm3473_vm7 = vweird.f32 %v11844_v19 }
 0x3e1   : > { %v9406_v9 = vpop.eup %9405  ;;  %v3453_v39 = vmul.f32 %v11851_v50, %v11825_v10  ;;  %vm3458_vm8 = vweird.f32 %v11851_v50  ;;  %v3476_v27 = vand.u32 2147483647, %v11820_v6  ;;  %v3463_v31 = vand.u32 2147483648, %v11825_v10  ;;  %vm11902_vm10 = vmor %vm3472_vm9, %vm3473_vm7 }
 0x3e2   : > { %v3469_v38 = vsub.f32 1.0, %v3468_v52  ;;  %v11876_v2 = vadd.f32 1.0, %v9406_v9  ;;  %vm3459_vm12 = vmor %vm3457_vm11, %vm3458_vm8  ;;  %v15430_v9 = vld [vmem:[#allocation30_spill] sm:$0xff] }
 0x3e3   : > { %v3454_v51 = vsub.f32 1.0, %v3453_v39  ;;  %vm3477_vm13 = vcmp.eq.f32.partialorder %v3476_v27, 8.507059e+37  ;;  %v3464_v10 = vor.u32 1.1754944e-38, %v3463_v31 }
 0x3e4   : > { %v3470_v28 = vmul.f32 %v11844_v19, %v3469_v38  ;;  %vm3487_vm5 = vweird.f32 %v11876_v2  ;;  %v3491_v27 = vand.u32 2147483647, %v11876_v2 }
 0x3e5   : > { %v3108_v49 = vpop.f32.mrf.mxu1  ;;  %v3455_v13 = vmul.f32 %v11851_v50, %v3454_v51  ;;  %v10163_v51 = vld [vmem:[%s10394_s28 + $0x30] sm:$0xff] }
 0x3e6   : > { %v9408_v43 = vpop.eup %9407  ;;  %v11869_v42 = vadd.f32 %v3108_v49, %v15425_v25  ;;  %v3471_v29 = vadd.f32 %v11844_v19, %v3470_v28  ;;  %vm3492_vm8 = vcmp.eq.f32.partialorder %v3491_v27, 8.507059e+37 }
 0x3e7   : > { %v11871_v5 = vadd.f32 1.0, %v9408_v43  ;;  %v3456_v32 = vadd.f32 %v11851_v50, %v3455_v13 }
 0x3e8   : > { %v8727_v48 = vmul.f32 -1.442695, %v11869_v42  ;;  %v3475_v45 = vsel %vm11902_vm10, %v11844_v19, %v3471_v29  ;;  %v3493_v29 = vand.u32 2147483648, %v11876_v2 }
 0x3e9   : > { %9409 = vrcp.f32 %v11871_v5  ;;  %v3460_v20 = vsel %vm3459_vm12, %v11851_v50, %v3456_v32  ;;  %v3480_v49 = vsel %vm3477_vm13, %v3479_v46, %v3475_v45  ;;  %v3508_v7 = vand.u32 2147483648, %v11871_v5  ;;  %v15435_v46 = vld [vmem:[#allocation36_spill] sm:$0xff] }
 0x3ea   : > { %9411 = vrcp.f32 %v11876_v2  ;;  %v3465_v25 = vsel %vm3462_vm14, %v3464_v10, %v3460_v20  ;;  %v3877_v50 = vmul.f32 %v3480_v49, %v11764_v24  ;;  %vm3502_vm3 = vweird.f32 %v11871_v5 }
 0x3eb   : > { %9413 = vpow2.f32 %v8727_v48  ;;  %v3876_v11 = vmul.f32 %v3465_v25, %v11751_v56  ;;  %v15432_v56 = vld [vmem:[#allocation72_spill] sm:$0xff]  ;;  %v3506_v13 = vand.u32 2147483647, %v11871_v5  ;;  %v3509_v26 = vor.u32 1.1754944e-38, %v3508_v7 }
 0x3ec   : > { %9415 = vpow2.f32 %v8726_v16 }
 0x3ed   : > { %v3111_v21 = vpop.f32.mrf.mxu1  ;;  %8612 = vmatmul.msk.bf16.gmra.mxu0 %vm1262_vm1, %v10163_v51  ;;  %v3906_v24 = vpack.c.bf16 %v3877_v50, %v3876_v11  ;;  %vm3507_vm7 = vcmp.eq.f32.partialorder %v3506_v13, 8.507059e+37 }
 0x3ee   : > { %v11922_v39 = vadd.f32 %v3111_v21, %v15431_v47 }
 0x3ef   : > { %v11892_v33 = vpop.eup %9409 }
 0x3f0   : > { %8715 = vmatmul.msk.bf16.gmra.mxu1 %vm1850_vm2, %v15427_v57  ;;  %3998 = vmatmul.bf16.gmra.mxu3 %v3905_v22  ;;  %v11899_v3 = vpop.eup %9411  ;;  %v3498_v6 = vmul.f32 %v11892_v33, %v11871_v5  ;;  %v8728_v61 = vmul.f32 -1.442695, %v11922_v39  ;;  %vm3503_vm15 = vweird.f32 %v11892_v33 }
 0x3f1   : > { %v9414_v34 = vpop.eup %9413  ;;  %v3483_v52 = vmul.f32 %v11899_v3, %v11876_v2  ;;  %vm3488_vm0 = vweird.f32 %v11899_v3  ;;  %vm11950_vm4 = vmor %vm3502_vm3, %vm3503_vm15  ;;  %v3494_v2 = vor.u32 1.1754944e-38, %v3493_v29 }
 0x3f2   : > { %v9416_v60 = vpop.eup %9415  ;;  %v11919_v19 = vadd.f32 1.0, %v9414_v34  ;;  %v3499_v43 = vsub.f32 1.0, %v3498_v6  ;;  %vm3489_vm6 = vmor %vm3487_vm5, %vm3488_vm0 }
 0x3f3   : > { %v11924_v37 = vadd.f32 1.0, %v9416_v60  ;;  %v3484_v17 = vsub.f32 1.0, %v3483_v52  ;;  %v15436_v52 = vld [vmem:[#allocation33_spill] sm:$0xff] }
 0x3f4   : > { %9417 = vrcp.f32 %v11919_v19  ;;  %v3500_v53 = vmul.f32 %v11892_v33, %v3499_v43  ;;  %vm3532_vm11 = vweird.f32 %v11919_v19 }
 0x3f5   : > { %v3113_v12 = vpop.f32.mrf.mxu1  ;;  %9419 = vrcp.f32 %v11924_v37  ;;  %v3485_v44 = vmul.f32 %v11899_v3, %v3484_v17  ;;  %v3523_v7 = vand.u32 2147483648, %v11924_v37  ;;  %vm3517_vm13 = vweird.f32 %v11924_v37 }
 0x3f6   : > { %v11917_v18 = vadd.f32 %v3113_v12, %v15430_v9  ;;  %v3501_v28 = vadd.f32 %v11892_v33, %v3500_v53  ;;  %v3521_v29 = vand.u32 2147483647, %v11924_v37 }
 0x3f7   : > { %v3486_v21 = vadd.f32 %v11899_v3, %v3485_v44 }
 0x3f8   : > { %v8729_v38 = vmul.f32 -1.442695, %v11917_v18  ;;  %v3505_v31 = vsel %vm11950_vm4, %v11892_v33, %v3501_v28  ;;  %vm3522_vm0 = vcmp.eq.f32.partialorder %v3521_v29, 8.507059e+37 }
 0x3f9   : > { %v3490_v45 = vsel %vm3489_vm6, %v11899_v3, %v3486_v21  ;;  %v3510_v60 = vsel %vm3507_vm7, %v3509_v26, %v3505_v31 }
 0x3fa   : > { %9421 = vpow2.f32 %v8729_v38  ;;  %v11940_v16 = vpop.eup %9417  ;;  %v3495_v10 = vsel %vm3492_vm8, %v3494_v2, %v3490_v45  ;;  %v3879_v3 = vmul.f32 %v3510_v60, %v11833_v8  ;;  %v10164_v38 = vld [vmem:[%s10394_s28 + $0x38] sm:$0xff] }
 0x3fb   : > { %9423 = vpow2.f32 %v8728_v61  ;;  %v11947_v22 = vpop.eup %9419  ;;  %v3528_v5 = vmul.f32 %v11940_v16, %v11919_v19  ;;  %v3878_v25 = vmul.f32 %v3495_v10, %v11823_v36  ;;  %vm3533_vm9 = vweird.f32 %v11940_v16  ;;  %v15437_v36 = vld [vmem:[#allocation74_spill] sm:$0xff] }
 0x3fc   : > { %v3513_v6 = vmul.f32 %v11947_v22, %v11924_v37  ;;  %vm3518_vm10 = vweird.f32 %v11947_v22  ;;  %vm11998_vm12 = vmor %vm3532_vm11, %vm3533_vm9  ;;  %v3524_v37 = vor.u32 1.1754944e-38, %v3523_v7 }
 0x3fd   : > { %v3116_v48 = vpop.f32.mrf.mxu1  ;;  %v3529_v20 = vsub.f32 1.0, %v3528_v5  ;;  %8613 = vmatmul.msk.bf16.gmra.mxu0 %vm1262_vm1, %v10164_v38  ;;  %v3907_v8 = vpack.c.bf16 %v3879_v3, %v3878_v25  ;;  %vm3519_vm14 = vmor %vm3517_vm13, %vm3518_vm10 }
 0x3fe   : > { %v11970_v9 = vadd.f32 %v3116_v48, %v15436_v52  ;;  %v3514_v43 = vsub.f32 1.0, %v3513_v6  ;;  %v3538_v48 = vand.u32 2147483648, %v11919_v19 }
 0x3ff   : > { %v3530_v50 = vmul.f32 %v11940_v16, %v3529_v20 }
 0x400   : > { %8716 = vmatmul.msk.bf16.gmra.mxu1 %vm1850_vm2, %v15432_v56  ;;  %4003 = vmatmul.bf16.gmra.mxu3 %v3906_v24  ;;  %v9422_v32 = vpop.eup %9421  ;;  %v8730_v17 = vmul.f32 -1.442695, %v11970_v9  ;;  %v3515_v53 = vmul.f32 %v11947_v22, %v3514_v43  ;;  %v3536_v24 = vand.u32 2147483647, %v11919_v19 }
 0x401   : > { %v9424_v63 = vpop.eup %9423  ;;  %v11967_v33 = vadd.f32 1.0, %v9422_v32  ;;  %v3531_v61 = vadd.f32 %v11940_v16, %v3530_v50  ;;  %v3539_v32 = vor.u32 1.1754944e-38, %v3538_v48  ;;  %v10165_v50 = vld [vmem:[%s10394_s28 + $0x40] sm:$0xff] }
 0x402   : > { %v11972_v49 = vadd.f32 1.0, %v9424_v63  ;;  %v3516_v44 = vadd.f32 %v11947_v22, %v3515_v53  ;;  %vm3537_vm15 = vcmp.eq.f32.partialorder %v3536_v24, 8.507059e+37 }
 0x403   : > { %9425 = vrcp.f32 %v11967_v33  ;;  %v3535_v30 = vsel %vm11998_vm12, %v11940_v16, %v3531_v61  ;;  %vm3562_vm5 = vweird.f32 %v11967_v33  ;;  %v3566_v61 = vand.u32 2147483647, %v11967_v33 }
 0x404   : > { %9427 = vrcp.f32 %v11972_v49  ;;  %v3520_v5 = vsel %vm3519_vm14, %v11947_v22, %v3516_v44  ;;  %v3540_v45 = vsel %vm3537_vm15, %v3539_v32, %v3535_v30  ;;  %v12022_v22 = vpop.f32.mrf.mxu0  ;;  %v3553_v44 = vand.u32 2147483648, %v11972_v49 }
 0x405   : > { %v3118_v34 = vpop.f32.mrf.mxu1  ;;  %v3525_v60 = vsel %vm3522_vm0, %v3524_v37, %v3520_v5  ;;  %v3881_v52 = vmul.f32 %v3540_v45, %v11869_v42  ;;  %vm3547_vm7 = vweird.f32 %v11972_v49  ;;  %v3551_v21 = vand.u32 2147483647, %v11972_v49 }
 0x406   : > { %v11965_v12 = vadd.f32 %v3118_v34, %v15435_v46  ;;  %v15440_v34 = vld [vmem:[#allocation41_spill] sm:$0xff]  ;;  %v15441_v46 = vld [vmem:[#allocation39_spill] sm:$0xff]  ;;  %v3880_v43 = vmul.f32 %v3525_v60, %v11874_v23  ;;  %vm3567_vm9 = vcmp.eq.f32.partialorder %v3566_v61, 8.507059e+37 }
 0x407   : > { %vm3552_vm10 = vcmp.eq.f32.partialorder %v3551_v21, 8.507059e+37 }
 0x408   : > { %v8731_v47 = vmul.f32 -1.442695, %v11965_v12  ;;  %v3908_v42 = vpack.c.bf16 %v3881_v52, %v3880_v43 }
 0x409   : > { %v11988_v51 = vpop.eup %9425 }
 0x40a   : > { %9429 = vpow2.f32 %v8731_v47  ;;  %v11995_v28 = vpop.eup %9427  ;;  %v3558_v19 = vmul.f32 %v11988_v51, %v11967_v33  ;;  %vm3563_vm3 = vweird.f32 %v11988_v51 }
 0x40b   : > { %9431 = vpow2.f32 %v8730_v17  ;;  %v3543_v26 = vmul.f32 %v11995_v28, %v11972_v49  ;;  %vm3548_vm4 = vweird.f32 %v11995_v28  ;;  %vm3564_vm6 = vmor %vm3562_vm5, %vm3563_vm3  ;;  %v15442_v49 = vld [vmem:[#allocation43_spill] sm:$0xff] }
 0x40c   : > { %v3559_v6 = vsub.f32 1.0, %v3558_v19  ;;  %v12039_v53 = vpop.f32.mrf.mxu0  ;;  %vm3549_vm8 = vmor %vm3547_vm7, %vm3548_vm4 }
 0x40d   : > { %v3121_v11 = vpop.f32.mrf.mxu1  ;;  %v3544_v10 = vsub.f32 1.0, %v3543_v26  ;;  %8614 = vmatmul.msk.bf16.gmra.mxu0 %vm1262_vm1, %v10165_v50 }
 0x40e   : > { %v12018_v2 = vadd.f32 %v3121_v11, %v15441_v46  ;;  %v3560_v47 = vmul.f32 %v11988_v51, %v3559_v6  ;;  %v3568_v11 = vand.u32 2147483648, %v11967_v33 }
 0x40f   : > { %v3545_v17 = vmul.f32 %v11995_v28, %v3544_v10 }
 0x410   : > { %8717 = vmatmul.msk.bf16.gmra.mxu1 %vm1850_vm2, %v15437_v36  ;;  %4008 = vmatmul.bf16.gmra.mxu3 %v3907_v8  ;;  %v9430_v13 = vpop.eup %9429  ;;  %v8732_v25 = vmul.f32 -1.442695, %v12018_v2  ;;  %v3561_v38 = vadd.f32 %v11988_v51, %v3560_v47  ;;  %v3569_v30 = vor.u32 1.1754944e-38, %v3568_v11  ;;  %v10166_v47 = vld [vmem:[%s10394_s28 + $0x48] sm:$0xff] }
 0x411   : > { %v9432_v31 = vpop.eup %9431  ;;  %v12015_v16 = vadd.f32 1.0, %v9430_v13  ;;  %v3546_v8 = vadd.f32 %v11995_v28, %v3545_v17 }
 0x412   : > { %v12020_v20 = vadd.f32 1.0, %v9432_v31  ;;  %v3565_v13 = vsel %vm3564_vm6, %v11988_v51, %v3561_v38 }
 0x413   : > { %9433 = vrcp.f32 %v12015_v16  ;;  %v3550_v33 = vsel %vm3549_vm8, %v11995_v28, %v3546_v8  ;;  %v3570_v31 = vsel %vm3567_vm9, %v3569_v30, %v3565_v13  ;;  %vm3592_vm13 = vweird.f32 %v12015_v16 }
 0x414   : > { %9435 = vrcp.f32 %v12020_v20  ;;  %v12063_v45 = vpop.f32.mrf.mxu0  ;;  %v3883_v28 = vmul.f32 %v3570_v31, %v11917_v18  ;;  %v3596_v8 = vand.u32 2147483647, %v12015_v16  ;;  %vm3577_vm15 = vweird.f32 %v12020_v20 }
 0x415   : > { %v3123_v27 = vpop.f32.mrf.mxu1 }
 0x416   : > { %v12013_v63 = vadd.f32 %v3123_v27, %v15440_v34  ;;  %v3554_v27 = vor.u32 1.1754944e-38, %v3553_v44  ;;  %v3583_v44 = vand.u32 2147483648, %v12020_v20  ;;  %vm3597_vm3 = vcmp.eq.f32.partialorder %v3596_v8, 8.507059e+37 }
 0x418   : > { %v8733_v3 = vmul.f32 -1.442695, %v12013_v63  ;;  %v3555_v34 = vsel %vm3552_vm10, %v3554_v27, %v3550_v33 }
 0x419   : > { %v12036_v23 = vpop.eup %9433  ;;  %v3882_v52 = vmul.f32 %v3555_v34, %v11922_v39 }
 0x41a   : > { %9437 = vpow2.f32 %v8733_v3  ;;  %v12045_v48 = vpop.eup %9435  ;;  %v3588_v29 = vmul.f32 %v12036_v23, %v12015_v16  ;;  %v15443_v3 = vld [vmem:[#allocation45_spill] sm:$0xff]  ;;  %vm3593_vm11 = vweird.f32 %v12036_v23 }
 0x41b   : > { %9439 = vpow2.f32 %v8732_v25  ;;  %v3573_v32 = vmul.f32 %v12045_v48, %v12020_v20  ;;  %v3909_v50 = vpack.c.bf16 %v3883_v28, %v3882_v52  ;;  %vm3578_vm12 = vweird.f32 %v12045_v48  ;;  %vm3594_vm14 = vmor %vm3592_vm13, %vm3593_vm11 }
 0x41c   : > { %v3589_v51 = vsub.f32 1.0, %v3588_v29  ;;  %v12083_v38 = vpop.f32.mrf.mxu0  ;;  %vm3579_vm0 = vmor %vm3577_vm15, %vm3578_vm12 }
 0x41d   : > { %v3574_v6 = vsub.f32 1.0, %v3573_v32  ;;  %8615 = vmatmul.msk.bf16.gmra.mxu0 %vm1262_vm1, %v10166_v47  ;;  %v3584_v32 = vor.u32 1.1754944e-38, %v3583_v44 }
 0x41e   : > { %v3590_v10 = vmul.f32 %v12036_v23, %v3589_v51 }
 0x41f   : > { %v3575_v18 = vmul.f32 %v12045_v48, %v3574_v6 }
 0x420   : > { %4013 = vmatmul.bf16.gmra.mxu3 %v3908_v42  ;;  %v9438_v7 = vpop.eup %9437  ;;  %v3591_v17 = vadd.f32 %v12036_v23, %v3590_v10  ;;  %v3598_v42 = vand.u32 2147483648, %v12015_v16 }
 0x421   : > { %v9440_v19 = vpop.eup %9439  ;;  %v12056_v5 = vadd.f32 1.0, %v9438_v7  ;;  %v3576_v11 = vadd.f32 %v12045_v48, %v3575_v18  ;;  %v3581_v7 = vand.u32 2147483647, %v12020_v20  ;;  %v15444_v20 = vld [vmem:[#allocation47_spill] sm:$0xff] }
 0x422   : > { %v12061_v37 = vadd.f32 1.0, %v9440_v19  ;;  %v3595_v21 = vsel %vm3594_vm14, %v12036_v23, %v3591_v17  ;;  %v3599_v30 = vor.u32 1.1754944e-38, %v3598_v42  ;;  %v10167_v18 = vld [vmem:[%s10394_s28 + $0x50] sm:$0xff] }
 0x423   : > { %v3159_v24 = vpop.f32.mrf.mxu3  ;;  %9441 = vrcp.f32 %v12056_v5  ;;  %v3580_v16 = vsel %vm3579_vm0, %v12045_v48, %v3576_v11  ;;  %vm3582_vm4 = vcmp.eq.f32.partialorder %v3581_v7, 8.507059e+37  ;;  %v3628_v42 = vand.u32 2147483648, %v12056_v5 }
 0x424   : > { %v12059_v26 = vadd.f32 %v3159_v24, %v15442_v49  ;;  %9443 = vrcp.f32 %v12061_v37  ;;  %v3600_v27 = vsel %vm3597_vm3, %v3599_v30, %v3595_v21  ;;  %v3585_v51 = vsel %vm3582_vm4, %v3584_v32, %v3580_v16  ;;  %v12107_v28 = vpop.f32.mrf.mxu0 }
 0x425   : > { %v3885_v48 = vmul.f32 %v3600_v27, %v11965_v12  ;;  %v3884_v52 = vmul.f32 %v3585_v51, %v11970_v9  ;;  %vm3622_vm7 = vweird.f32 %v12056_v5  ;;  %v3626_v44 = vand.u32 2147483647, %v12056_v5 }
 0x426   : > { %v8734_v46 = vmul.f32 -1.442695, %v12059_v26  ;;  %v3613_v7 = vand.u32 2147483648, %v12061_v37  ;;  %vm3607_vm9 = vweird.f32 %v12061_v37  ;;  %v3629_v16 = vor.u32 1.1754944e-38, %v3628_v42 }
 0x427   : > { %vm3627_vm11 = vcmp.eq.f32.partialorder %v3626_v44, 8.507059e+37 }
 0x428   : > { %9445 = vpow2.f32 %v8734_v46  ;;  %v3614_v27 = vor.u32 1.1754944e-38, %v3613_v7 }
 0x429   : > { %v12080_v39 = vpop.eup %9441 }
 0x42a   : > { %v12089_v61 = vpop.eup %9443  ;;  %v3618_v13 = vmul.f32 %v12080_v39, %v12056_v5  ;;  %vm3623_vm5 = vweird.f32 %v12080_v39 }
 0x42b   : > { %v3161_v60 = vpop.f32.mrf.mxu3  ;;  %v3603_v33 = vmul.f32 %v12089_v61, %v12061_v37  ;;  %vm3608_vm6 = vweird.f32 %v12089_v61  ;;  %vm3624_vm8 = vmor %vm3622_vm7, %vm3623_vm5 }
 0x42c   : > { %v12071_v43 = vadd.f32 %v3161_v60, %v15443_v3  ;;  %v3619_v49 = vsub.f32 1.0, %v3618_v13  ;;  %v15445_v3 = vld [vmem:[#allocation49_spill] sm:$0xff]  ;;  %v12127_v11 = vpop.f32.mrf.mxu0  ;;  %v3611_v13 = vand.u32 2147483647, %v12061_v37  ;;  %vm3609_vm10 = vmor %vm3607_vm9, %vm3608_vm6  ;;  %v15446_v37 = vld [vmem:[#allocation51_spill] sm:$0xff] }
 0x42d   : > { %v3604_v6 = vsub.f32 1.0, %v3603_v33  ;;  %8616 = vmatmul.msk.bf16.gmra.mxu0 %vm1262_vm1, %v10167_v18 }
 0x42e   : > { %v8735_v25 = vmul.f32 -1.442695, %v12071_v43  ;;  %v9446_v29 = vpop.eup %9445  ;;  %v3620_v10 = vmul.f32 %v12080_v39, %v3619_v49  ;;  %vm3612_vm12 = vcmp.eq.f32.partialorder %v3611_v13, 8.507059e+37 }
 0x42f   : > { %v12105_v34 = vadd.f32 1.0, %v9446_v29  ;;  %v3605_v12 = vmul.f32 %v12089_v61, %v3604_v6 }
 0x430   : > { %9447 = vpow2.f32 %v8735_v25  ;;  %4018 = vmatmul.bf16.gmra.mxu3 %v3909_v50  ;;  %v3910_v50 = vpack.c.bf16 %v3885_v48, %v3884_v52  ;;  %v3621_v17 = vadd.f32 %v12080_v39, %v3620_v10 }
 0x431   : > { %v3606_v8 = vadd.f32 %v12089_v61, %v3605_v12  ;;  %v15447_v12 = vld [vmem:[#allocation54_spill] sm:$0xff]  ;;  %vm3637_vm3 = vweird.f32 %v12105_v34 }
 0x432   : > { %v3625_v29 = vsel %vm3624_vm8, %v12080_v39, %v3621_v17 }
 0x433   : > { %v3164_v24 = vpop.f32.mrf.mxu3  ;;  %v3610_v5 = vsel %vm3609_vm10, %v12089_v61, %v3606_v8 }
 0x434   : > { %v12103_v23 = vadd.f32 %v3164_v24, %v15444_v20  ;;  %v3630_v20 = vsel %vm3627_vm11, %v3629_v16, %v3625_v29  ;;  %v3615_v48 = vsel %vm3612_vm12, %v3614_v27, %v3610_v5  ;;  %v3641_v16 = vand.u32 2147483647, %v12105_v34 }
 0x435   : > { %v3887_v61 = vmul.f32 %v3630_v20, %v12013_v63 }
 0x436   : > { %v9448_v19 = vpop.eup %9447  ;;  %v8736_v46 = vmul.f32 -1.442695, %v12103_v23  ;;  %vm3642_vm6 = vcmp.eq.f32.partialorder %v3641_v16, 8.507059e+37 }
 0x437   : > { %v12100_v31 = vadd.f32 1.0, %v9448_v19 }
 0x439   : > { %9449 = vrcp.f32 %v12100_v31  ;;  %v3658_v44 = vand.u32 2147483648, %v12100_v31  ;;  %vm3652_vm15 = vweird.f32 %v12100_v31  ;;  %v3656_v13 = vand.u32 2147483647, %v12100_v31 }
 0x43a   : > { %9451 = vrcp.f32 %v12105_v34 }
 0x43b   : > { %v3166_v60 = vpop.f32.mrf.mxu3  ;;  %9453 = vpow2.f32 %v8736_v46  ;;  %v12151_v46 = vpop.f32.mrf.mxu0  ;;  %v3659_v27 = vor.u32 1.1754944e-38, %v3658_v44  ;;  %vm3657_vm5 = vcmp.eq.f32.partialorder %v3656_v13, 8.507059e+37  ;;  %v10169_v44 = vld [vmem:[%s10394_s28 + $0x60] sm:$0xff] }
 0x43c   : > { %v12115_v47 = vadd.f32 %v3166_v60, %v15445_v3  ;;  %v3886_v3 = vmul.f32 %v3615_v48, %v12018_v2 }
 0x43e   : > { %v8737_v25 = vmul.f32 -1.442695, %v12115_v47  ;;  %v3911_v42 = vpack.c.bf16 %v3887_v61, %v3886_v3 }
 0x43f   : > { %v12124_v9 = vpop.eup %9449 }
 0x440   : > { %9455 = vpow2.f32 %v8737_v25  ;;  %4023 = vmatmul.bf16.gmra.mxu3 %v3910_v50  ;;  %v12133_v24 = vpop.eup %9451  ;;  %v3648_v30 = vmul.f32 %v12124_v9, %v12100_v31  ;;  %v10168_v50 = vld [vmem:[%s10394_s28 + $0x58] sm:$0xff]  ;;  %vm3653_vm13 = vweird.f32 %v12124_v9 }
 0x441   : > { %v9454_v19 = vpop.eup %9453  ;;  %v3633_v32 = vmul.f32 %v12133_v24, %v12105_v34  ;;  %8617 = vmatmul.msk.bf16.gmra.mxu0 %vm1262_vm1, %v10168_v50  ;;  %vm3638_vm14 = vweird.f32 %v12133_v24  ;;  %vm3654_vm0 = vmor %vm3652_vm15, %vm3653_vm13 }
 0x442   : > { %v3649_v51 = vsub.f32 1.0, %v3648_v30  ;;  %v12149_v6 = vadd.f32 1.0, %v9454_v19  ;;  %v3643_v30 = vand.u32 2147483648, %v12105_v34  ;;  %vm3639_vm4 = vmor %vm3637_vm3, %vm3638_vm14  ;;  %v15449_v34 = vld [vmem:[#allocation56_spill] sm:$0xff] }
 0x443   : > { %v3169_v21 = vpop.f32.mrf.mxu3  ;;  %v3634_v60 = vsub.f32 1.0, %v3633_v32  ;;  %v12171_v7 = vpop.f32.mrf.mxu0 }
 0x444   : > { %v12147_v39 = vadd.f32 %v3169_v21, %v15446_v37  ;;  %v3650_v18 = vmul.f32 %v12124_v9, %v3649_v51  ;;  %15448 = vst [vmem:[#allocation5_spill] sm:$0xff] %v12171_v7  ;;  %v3644_v51 = vor.u32 1.1754944e-38, %v3643_v30  ;;  %vm3667_vm11 = vweird.f32 %v12149_v6 }
 0x445   : > { %v3635_v63 = vmul.f32 %v12133_v24, %v3634_v60 }
 0x446   : > { %v9456_v33 = vpop.eup %9455  ;;  %v8738_v52 = vmul.f32 -1.442695, %v12147_v39  ;;  %v3651_v8 = vadd.f32 %v12124_v9, %v3650_v18 }
 0x447   : > { %v12144_v49 = vadd.f32 1.0, %v9456_v33  ;;  %v3636_v21 = vadd.f32 %v12133_v24, %v3635_v63 }
 0x448   : > { %v3655_v33 = vsel %vm3654_vm0, %v12124_v9, %v3651_v8 }
 0x449   : > { %9457 = vrcp.f32 %v12144_v49  ;;  %v3640_v31 = vsel %vm3639_vm4, %v12133_v24, %v3636_v21  ;;  %v3660_v48 = vsel %vm3657_vm5, %v3659_v27, %v3655_v33  ;;  %v3688_v16 = vand.u32 2147483648, %v12144_v49 }
 0x44a   : > { %9459 = vrcp.f32 %v12149_v6  ;;  %v3889_v24 = vmul.f32 %v3660_v48, %v12071_v43  ;;  %vm3682_vm9 = vweird.f32 %v12144_v49 }
 0x44b   : > { %v3171_v10 = vpop.f32.mrf.mxu3  ;;  %9461 = vpow2.f32 %v8738_v52  ;;  %v3645_v52 = vsel %vm3642_vm6, %v3644_v51, %v3640_v31  ;;  %v12195_v3 = vpop.f32.mrf.mxu0  ;;  %v3671_v51 = vand.u32 2147483647, %v12149_v6 }
 0x44c   : > { %v12159_v25 = vadd.f32 %v3171_v10, %v15447_v12  ;;  %15450 = vst [vmem:[#allocation52_spill] sm:$0xff] %v12195_v3  ;;  %v3888_v63 = vmul.f32 %v3645_v52, %v12059_v26 }
 0x44d   : > { %vm3672_vm14 = vcmp.eq.f32.partialorder %v3671_v51, 8.507059e+37  ;;  %v10170_v51 = vld [vmem:[%s10394_s28 + $0x68] sm:$0xff] }
 0x44e   : > { %v8739_v17 = vmul.f32 -1.442695, %v12159_v25  ;;  %v3912_v30 = vpack.c.bf16 %v3889_v24, %v3888_v63 }
 0x44f   : > { %v12168_v2 = vpop.eup %9457 }
 0x450   : > { %9463 = vpow2.f32 %v8739_v17  ;;  %4028 = vmatmul.bf16.gmra.mxu3 %v3911_v42  ;;  %v12177_v29 = vpop.eup %9459  ;;  %v3678_v5 = vmul.f32 %v12168_v2, %v12144_v49  ;;  %v15451_v42 = vld [vmem:[#allocation58_spill] sm:$0xff]  ;;  %vm3683_vm7 = vweird.f32 %v12168_v2 }
 0x451   : > { %v9462_v32 = vpop.eup %9461  ;;  %v3663_v37 = vmul.f32 %v12177_v29, %v12149_v6  ;;  %8618 = vmatmul.msk.bf16.gmra.mxu0 %vm1262_vm1, %v10169_v44  ;;  %vm3668_vm8 = vweird.f32 %v12177_v29  ;;  %vm12224_vm10 = vmor %vm3682_vm9, %vm3683_vm7 }
 0x452   : > { %v3679_v60 = vsub.f32 1.0, %v3678_v5  ;;  %v12193_v10 = vadd.f32 1.0, %v9462_v32  ;;  %v3686_v32 = vand.u32 2147483647, %v12144_v49  ;;  %vm3669_vm12 = vmor %vm3667_vm11, %vm3668_vm8 }
 0x453   : > { %v3174_v19 = vpop.f32.mrf.mxu3  ;;  %v3664_v18 = vsub.f32 1.0, %v3663_v37  ;;  %v12215_v33 = vpop.f32.mrf.mxu0 }
 0x454   : > { %v12191_v9 = vadd.f32 %v3174_v19, %v15449_v34  ;;  %v3680_v17 = vmul.f32 %v12168_v2, %v3679_v60  ;;  %15452 = vst [vmem:[#allocation23_spill] sm:$0xff] %v12215_v33  ;;  %v3689_v60 = vor.u32 1.1754944e-38, %v3688_v16  ;;  %vm3687_vm13 = vcmp.eq.f32.partialorder %v3686_v32, 8.507059e+37 }
 0x455   : > { %v3665_v43 = vmul.f32 %v12177_v29, %v3664_v18  ;;  %vm3697_vm5 = vweird.f32 %v12193_v10 }
 0x456   : > { %v9464_v20 = vpop.eup %9463  ;;  %v8740_v12 = vmul.f32 -1.442695, %v12191_v9  ;;  %v3681_v19 = vadd.f32 %v12168_v2, %v3680_v17 }
 0x457   : > { %v12188_v61 = vadd.f32 1.0, %v9464_v20  ;;  %v3666_v5 = vadd.f32 %v12177_v29, %v3665_v43  ;;  %v3673_v20 = vand.u32 2147483648, %v12149_v6 }
 0x458   : > { %v3685_v48 = vsel %vm12224_vm10, %v12168_v2, %v3681_v19 }
 0x459   : > { %9465 = vrcp.f32 %v12188_v61  ;;  %v3670_v18 = vsel %vm3669_vm12, %v12177_v29, %v3666_v5  ;;  %v3674_v63 = vor.u32 1.1754944e-38, %v3673_v20  ;;  %v3690_v17 = vsel %vm3687_vm13, %v3689_v60, %v3685_v48 }
 0x45a   : > { %9467 = vrcp.f32 %v12193_v10  ;;  %v3891_v19 = vmul.f32 %v3690_v17, %v12115_v47  ;;  %vm3712_vm3 = vweird.f32 %v12188_v61 }
 0x45b   : > { %v3176_v50 = vpop.f32.mrf.mxu3  ;;  %9469 = vpow2.f32 %v8740_v12  ;;  %v12250_v29 = vpop.f32.mrf.mxu0 }
 0x45c   : > { %v12203_v8 = vadd.f32 %v3176_v50, %v15451_v42  ;;  %v15455_v50 = vld [vmem:[#allocation60_spill] sm:$0xff]  ;;  %v15456_v42 = vld [vmem:[#allocation59_spill] sm:$0xff]  ;;  %15457 = vst [vmem:[#allocation6_spill] sm:$0xff] %v12250_v29 }
 0x45d   : > { %v3212_v21 = vpop.f32.mrf.mxu1 }
 0x45e   : > { %v8741_v13 = vmul.f32 -1.442695, %v12203_v8  ;;  %v12246_v44 = vadd.f32 %v3212_v21, %v15456_v42 }
 0x45f   : > { %v12212_v26 = vpop.eup %9465 }
 0x460   : > { %9471 = vpow2.f32 %v8741_v13  ;;  %4033 = vmatmul.bf16.gmra.mxu3 %v3912_v30  ;;  %v12221_v27 = vpop.eup %9467  ;;  %v3708_v49 = vmul.f32 %v12212_v26, %v12188_v61  ;;  %v3675_v13 = vsel %vm3672_vm14, %v3674_v63, %v3670_v18  ;;  %v8742_v32 = vmul.f32 -1.442695, %v12246_v44 }
 0x461   : > { %v9470_v34 = vpop.eup %9469  ;;  %v3693_v12 = vmul.f32 %v12221_v27, %v12193_v10  ;;  %v3890_v21 = vmul.f32 %v3675_v13, %v12103_v23  ;;  %8619 = vmatmul.msk.bf16.gmra.mxu0 %vm1262_vm1, %v10170_v51  ;;  %vm3713_vm15 = vweird.f32 %v12212_v26  ;;  %v3718_v23 = vand.u32 2147483648, %v12188_v61 }
 0x462   : > { %v3709_v43 = vsub.f32 1.0, %v3708_v49  ;;  %v12248_v30 = vadd.f32 1.0, %v9470_v34  ;;  %vm3698_vm0 = vweird.f32 %v12221_v27  ;;  %v3716_v18 = vand.u32 2147483647, %v12188_v61  ;;  %vm12278_vm4 = vmor %vm3712_vm3, %vm3713_vm15 }
 0x463   : > { %v12228_v37 = vpop.f32.mrf.mxu3  ;;  %v3694_v16 = vsub.f32 1.0, %v3693_v12  ;;  %v3913_v49 = vpack.c.bf16 %v3891_v19, %v3890_v21  ;;  %vm3699_vm6 = vmor %vm3697_vm5, %vm3698_vm0 }
 0x464   : > { %v3710_v31 = vmul.f32 %v12212_v26, %v3709_v43  ;;  %v3701_v43 = vand.u32 2147483647, %v12193_v10  ;;  %vm3717_vm7 = vcmp.eq.f32.partialorder %v3716_v18, 8.507059e+37  ;;  %vm3727_vm13 = vweird.f32 %v12248_v30 }
 0x465   : > { %v3214_v52 = vpop.f32.mrf.mxu1  ;;  %v3695_v47 = vmul.f32 %v12221_v27, %v3694_v16  ;;  %v3719_v16 = vor.u32 1.1754944e-38, %v3718_v23 }
 0x466   : > { %v9472_v24 = vpop.eup %9471  ;;  %v12241_v6 = vadd.f32 %v3214_v52, %v15455_v50  ;;  %v3711_v34 = vadd.f32 %v12212_v26, %v3710_v31  ;;  %v12269_v52 = vpop.f32.mrf.mxu0  ;;  %v3703_v50 = vand.u32 2147483648, %v12193_v10  ;;  %v15461_v31 = vld [vmem:[#allocation62_spill] sm:$0xff]  ;;  %vm3702_vm8 = vcmp.eq.f32.partialorder %v3701_v43, 8.507059e+37 }
 0x467   : > { %v12243_v2 = vadd.f32 1.0, %v9472_v24  ;;  %15458 = vst [vmem:[#allocation7_spill] sm:$0xff] %v12269_v52  ;;  %v3696_v24 = vadd.f32 %v12221_v27, %v3695_v47 }
 0x468   : > { %v8743_v5 = vmul.f32 -1.442695, %v12241_v6  ;;  %v3715_v13 = vsel %vm12278_vm4, %v12212_v26, %v3711_v34  ;;  %v3704_v10 = vor.u32 1.1754944e-38, %v3703_v50  ;;  %v15462_v26 = vld [vmem:[#allocation61_spill] sm:$0xff] }
 0x469   : > { %9473 = vrcp.f32 %v12243_v2  ;;  %v3720_v47 = vsel %vm3717_vm7, %v3719_v16, %v3715_v13  ;;  %v10171_v13 = vld [vmem:[%s10394_s28 + $0x70] sm:$0xff]  ;;  %vm3742_vm11 = vweird.f32 %v12243_v2 }
 0x46a   : > { %9475 = vrcp.f32 %v12248_v30  ;;  %v3893_v18 = vmul.f32 %v3720_v47, %v12159_v25  ;;  %v3733_v47 = vand.u32 2147483648, %v12248_v30 }
 0x46b   : > { %v12256_v20 = vpop.f32.mrf.mxu3  ;;  %9477 = vpow2.f32 %v8743_v5 }
 0x46c   : > { %9479 = vpow2.f32 %v8742_v32  ;;  %v3700_v32 = vsel %vm3699_vm6, %v12221_v27, %v3696_v24 }
 0x46d   : > { %v3217_v48 = vpop.f32.mrf.mxu1  ;;  %v3705_v27 = vsel %vm3702_vm8, %v3704_v10, %v3700_v32 }
 0x46e   : > { %v12300_v34 = vadd.f32 %v3217_v48, %v15462_v26  ;;  %v12304_v24 = vpop.f32.mrf.mxu0  ;;  %v3892_v48 = vmul.f32 %v3705_v27, %v12147_v39  ;;  %v3748_v39 = vand.u32 2147483648, %v12243_v2 }
 0x46f   : > { %v12266_v60 = vpop.eup %9473  ;;  %15463 = vst [vmem:[#allocation28_spill] sm:$0xff] %v12304_v24 }
 0x470   : > { %4038 = vmatmul.bf16.gmra.mxu3 %v3913_v49  ;;  %v12275_v12 = vpop.eup %9475  ;;  %v3738_v61 = vmul.f32 %v12266_v60, %v12243_v2  ;;  %v8744_v50 = vmul.f32 -1.442695, %v12300_v34  ;;  %vm3743_vm9 = vweird.f32 %v12266_v60 }
 0x471   : > { %v9478_v42 = vpop.eup %9477  ;;  %v3723_v21 = vmul.f32 %v12275_v12, %v12248_v30  ;;  %8620 = vmatmul.msk.bf16.gmra.mxu0 %vm1262_vm1, %v10171_v13  ;;  %vm3728_vm10 = vweird.f32 %v12275_v12  ;;  %vm12332_vm12 = vmor %vm3742_vm11, %vm3743_vm9 }
 0x472   : > { %v9480_v19 = vpop.eup %9479  ;;  %v12297_v49 = vadd.f32 1.0, %v9478_v42  ;;  %v3739_v23 = vsub.f32 1.0, %v3738_v61  ;;  %vm3729_vm14 = vmor %vm3727_vm13, %vm3728_vm10 }
 0x473   : > { %v12282_v17 = vpop.f32.mrf.mxu3  ;;  %v12302_v63 = vadd.f32 1.0, %v9480_v19  ;;  %v3724_v52 = vsub.f32 1.0, %v3723_v21  ;;  %v3914_v19 = vpack.c.bf16 %v3893_v18, %v3892_v48  ;;  %v3731_v18 = vand.u32 2147483647, %v12248_v30 }
 0x474   : > { %9481 = vrcp.f32 %v12297_v49  ;;  %v3740_v43 = vmul.f32 %v12266_v60, %v3739_v23  ;;  %v3749_v48 = vor.u32 1.1754944e-38, %v3748_v39  ;;  %v3734_v30 = vor.u32 1.1754944e-38, %v3733_v47  ;;  %v15468_v39 = vld [vmem:[#allocation63_spill] sm:$0xff] }
 0x475   : > { %v3219_v5 = vpop.f32.mrf.mxu1  ;;  %9483 = vrcp.f32 %v12302_v63  ;;  %v3725_v25 = vmul.f32 %v12275_v12, %v3724_v52  ;;  %v3746_v52 = vand.u32 2147483647, %v12243_v2  ;;  %vm3732_vm0 = vcmp.eq.f32.partialorder %v3731_v18, 8.507059e+37  ;;  %v10172_v18 = vld [vmem:[%s10394_s28 + $0x78] sm:$0xff] }
 0x476   : > { %v12295_v51 = vadd.f32 %v3219_v5, %v15461_v31  ;;  %v3741_v16 = vadd.f32 %v12266_v60, %v3740_v43  ;;  %v12323_v21 = vpop.f32.mrf.mxu0  ;;  %vm3757_vm5 = vweird.f32 %v12302_v63 }
 0x477   : > { %15464 = vst [vmem:[#allocation8_spill] sm:$0xff] %v12323_v21  ;;  %v3726_v10 = vadd.f32 %v12275_v12, %v3725_v25  ;;  %vm3747_vm15 = vcmp.eq.f32.partialorder %v3746_v52, 8.507059e+37 }
 0x478   : > { %v8745_v5 = vmul.f32 -1.442695, %v12295_v51 }
 0x479   : > { %v3730_v25 = vsel %vm3729_vm14, %v12275_v12, %v3726_v10 }
 0x47a   : > { %9485 = vpow2.f32 %v8745_v5  ;;  %v12320_v32 = vpop.eup %9481  ;;  %v3745_v5 = vsel %vm12332_vm12, %v12266_v60, %v3741_v16  ;;  %v3735_v33 = vsel %vm3732_vm0, %v3734_v30, %v3730_v25  ;;  %v3761_v25 = vand.u32 2147483647, %v12302_v63 }
 0x47b   : > { %v12310_v42 = vpop.f32.mrf.mxu3  ;;  %9487 = vpow2.f32 %v8744_v50  ;;  %v12325_v31 = vpop.eup %9483  ;;  %v3768_v2 = vmul.f32 %v12320_v32, %v12297_v49  ;;  %v3750_v24 = vsel %vm3747_vm15, %v3749_v48, %v3745_v5  ;;  %v3894_v47 = vmul.f32 %v3735_v33, %v12191_v9 }
 0x47c   : > { %v3753_v43 = vmul.f32 %v12325_v31, %v12302_v63  ;;  %v3895_v12 = vmul.f32 %v3750_v24, %v12203_v8  ;;  %vm3773_vm3 = vweird.f32 %v12320_v32  ;;  %vm3758_vm4 = vweird.f32 %v12325_v31 }
 0x47d   : > { %v3222_v61 = vpop.f32.mrf.mxu1  ;;  %v3769_v60 = vsub.f32 1.0, %v3768_v2  ;;  %vm3759_vm7 = vmor %vm3757_vm5, %vm3758_vm4  ;;  %vm3762_vm9 = vcmp.eq.f32.partialorder %v3761_v25, 8.507059e+37 }
 0x47e   : > { %v12356_v29 = vadd.f32 %v3222_v61, %v15468_v39  ;;  %v3754_v3 = vsub.f32 1.0, %v3753_v43  ;;  %v12358_v7 = vpop.f32.mrf.mxu0  ;;  %v3915_v24 = vpack.c.bf16 %v3895_v12, %v3894_v47  ;;  %v3763_v43 = vand.u32 2147483648, %v12302_v63 }
 0x47f   : > { %15469 = vst [vmem:[#allocation10_spill] sm:$0xff] %v12358_v7 }
 0x480   : > { %4043 = vmatmul.bf16.gmra.mxu3 %v3914_v19  ;;  %v9486_v27 = vpop.eup %9485  ;;  %v15467_v19 = vld [vmem:[#allocation64_spill] sm:$0xff]  ;;  %v8746_v61 = vmul.f32 -1.442695, %v12356_v29  ;;  %v3755_v5 = vmul.f32 %v12325_v31, %v3754_v3 }
 0x481   : > { %v9488_v50 = vpop.eup %9487  ;;  %v12351_v26 = vadd.f32 1.0, %v9486_v27  ;;  %v3770_v27 = vmul.f32 %v12320_v32, %v3769_v60  ;;  %8621 = vmatmul.msk.bf16.gmra.mxu0 %vm1262_vm1, %v10172_v18  ;;  %vm3772_vm1 = vweird.f32 %v12297_v49  ;;  %v15473_v18 = vld [vmem:[#allocation67_spill] sm:$0xff] }
 0x482   : > { %v12353_v16 = vadd.f32 1.0, %v9488_v50  ;;  %v3756_v33 = vadd.f32 %v12325_v31, %v3755_v5  ;;  %v3778_v50 = vand.u32 2147483648, %v12297_v49  ;;  %vm12388_vm6 = vmor %vm3772_vm1, %vm3773_vm3 }
 0x483   : > { %v12336_v23 = vpop.f32.mrf.mxu3  ;;  %9489 = vrcp.f32 %v12351_v26  ;;  %v3771_v2 = vadd.f32 %v12320_v32, %v3770_v27  ;;  %vm3802_vm12 = vweird.f32 %v12351_v26 }
 0x484   : > { %9491 = vrcp.f32 %v12353_v16  ;;  %vm3787_vm13 = vweird.f32 %v12353_v16 }
 0x485   : > { %v3224_v13 = vpop.f32.mrf.mxu1  ;;  %v3775_v39 = vsel %vm12388_vm6, %v12320_v32, %v3771_v2 }
 0x486   : > { %v12349_v21 = vadd.f32 %v3224_v13, %v15467_v19  ;;  %v12379_v48 = vpop.f32.mrf.mxu0  ;;  %v3776_v13 = vand.u32 2147483647, %v12297_v49  ;;  %v3760_v49 = vsel %vm3759_vm7, %v12325_v31, %v3756_v33 }
 0x487   : > { %15470 = vst [vmem:[#allocation32_spill] sm:$0xff] %v12379_v48  ;;  %v15474_v48 = vld [vmem:[#allocation65_spill] sm:$0xff] }
 0x488   : > { %v8747_v10 = vmul.f32 -1.442695, %v12349_v21  ;;  %vm3777_vm8 = vcmp.eq.f32.partialorder %v3776_v13, 8.507059e+37 }
 0x489   : > { %v12374_v9 = vpop.eup %9489 }
 0x48a   : > { %9493 = vpow2.f32 %v8747_v10  ;;  %v12381_v3 = vpop.eup %9491  ;;  %v3798_v12 = vmul.f32 %v12374_v9, %v12351_v26  ;;  %v3779_v10 = vor.u32 1.1754944e-38, %v3778_v50  ;;  %vm3803_vm10 = vweird.f32 %v12374_v9 }
 0x48b   : > { %v12363_v52 = vpop.f32.mrf.mxu3  ;;  %9495 = vpow2.f32 %v8746_v61  ;;  %v3783_v63 = vmul.f32 %v12381_v3, %v12353_v16  ;;  %v3764_v61 = vor.u32 1.1754944e-38, %v3763_v43  ;;  %vm3788_vm11 = vweird.f32 %v12381_v3  ;;  %vm12448_vm14 = vmor %vm3802_vm12, %vm3803_vm10 }
 0x48c   : > { %v3799_v2 = vsub.f32 1.0, %v3798_v12  ;;  %vm12463_vm15 = vmor %vm3787_vm13, %vm3788_vm11 }
 0x48d   : > { %v3227_v8 = vpop.f32.mrf.mxu1  ;;  %v3765_v32 = vsel %vm3762_vm9, %v3764_v61, %v3760_v49  ;;  %v3784_v31 = vsub.f32 1.0, %v3783_v63  ;;  %v4077_v63 = vpack.c.bf16 %v12310_v42, %v12310_v42  ;;  %v3806_v42 = vand.u32 2147483647, %v12351_v26 }
 0x48e   : > { %v12406_v7 = vadd.f32 %v3227_v8, %v15474_v48  ;;  %v12410_v50 = vpop.f32.mrf.mxu0  ;;  %v3896_v25 = vmul.f32 %v3765_v32, %v12246_v44  ;;  %v4079_v8 = vpack.c.bf16 %v12363_v52, %v12363_v52 }
 0x48f   : > { %v3785_v49 = vmul.f32 %v12381_v3, %v3784_v31  ;;  %vm3807_vm0 = vcmp.eq.f32.partialorder %v3806_v42, 8.507059e+37 }
 0x490   : > { %4048 = vmatmul.bf16.gmra.mxu3 %v3915_v24  ;;  %v9494_v60 = vpop.eup %9493  ;;  %v3780_v24 = vsel %vm3777_vm8, %v3779_v10, %v3775_v39  ;;  %v3800_v39 = vmul.f32 %v12374_v9, %v3799_v2  ;;  %v8748_v48 = vmul.f32 -1.442695, %v12406_v7 }
 0x491   : > { %v9496_v27 = vpop.eup %9495  ;;  %v12403_v19 = vadd.f32 1.0, %v9494_v60  ;;  %v3897_v43 = vmul.f32 %v3780_v24, %v12241_v6  ;;  %v4078_v6 = vpack.c.bf16 %v12336_v23, %v12336_v23  ;;  %v4076_v23 = vpack.c.bf16 %v12282_v17, %v12282_v17 }
 0x492   : > { %v12408_v33 = vadd.f32 1.0, %v9496_v27  ;;  %v3801_v52 = vadd.f32 %v12374_v9, %v3800_v39  ;;  %v4119_v27 = vunpack.c.l.b16 %v4079_v8  ;;  %v3808_v24 = vand.u32 2147483648, %v12351_v26 }
 0x493   : > { %v4009_v30 = vpop.f32.mrf.mxu3  ;;  %9497 = vrcp.f32 %v12403_v19  ;;  %v3916_v10 = vpack.c.bf16 %v3897_v43, %v3896_v25  ;;  %v3786_v2 = vadd.f32 %v12381_v3, %v3785_v49  ;;  %v4118_v31 = vunpack.c.l.b16 %v4078_v6 }
 0x494   : > { %v4080_v13 = vpack.c.bf16 %v4009_v30, %v4009_v30  ;;  %9499 = vrcp.f32 %v12408_v33  ;;  %v3791_v17 = vand.u32 2147483647, %v12353_v16  ;;  %v3805_v39 = vsel %vm12448_vm14, %v12374_v9, %v3801_v52 }
 0x495   : > { %v3229_v47 = vpop.f32.mrf.mxu1  ;;  %v3809_v49 = vor.u32 1.1754944e-38, %v3808_v24  ;;  %v3790_v9 = vsel %vm12463_vm15, %v12381_v3, %v3786_v2  ;;  %vm3832_vm5 = vweird.f32 %v12403_v19  ;;  %vm3817_vm7 = vweird.f32 %v12408_v33 }
 0x496   : > { %v12401_v5 = vadd.f32 %v3229_v47, %v15473_v18  ;;  %v4120_v30 = vunpack.c.l.b16 %v4080_v13  ;;  %v12434_v32 = vpop.f32.mrf.mxu0  ;;  %v4075_v13 = vpack.c.bf16 %v12256_v20, %v12256_v20  ;;  %v4117_v20 = vunpack.c.l.b16 %v4077_v63 }
 0x497   : > { %vm3792_vm3 = vcmp.eq.f32.partialorder %v3791_v17, 8.507059e+37 }
 0x498   : > { %v8749_v47 = vmul.f32 -1.442695, %v12401_v5  ;;  %v4115_v52 = vunpack.c.l.b16 %v4075_v13 }
 0x499   : > { %v12428_v18 = vpop.eup %9497 }
 0x49a   : > { %9501 = vpow2.f32 %v8749_v47  ;;  %v12439_v43 = vpop.eup %9499  ;;  %v3793_v47 = vand.u32 2147483648, %v12353_v16  ;;  %v3828_v8 = vmul.f32 %v12428_v18, %v12403_v19  ;;  %v4074_v16 = vpack.c.bf16 %v12228_v37, %v12228_v37 }
 0x49b   : > { %v4011_v60 = vpop.f32.mrf.mxu3  ;;  %9503 = vpow2.f32 %v8748_v48  ;;  %v4124_v48 = vpack.c.b16 %v4119_v27, %v4118_v31  ;;  %v3810_v37 = vsel %vm3807_vm0, %v3809_v49, %v3805_v39  ;;  %vm3833_vm4 = vweird.f32 %v12428_v18 }
 0x49c   : > { %v4081_v12 = vpack.c.bf16 %v4011_v60, %v4011_v60  ;;  %v3829_v27 = vsub.f32 1.0, %v3828_v8  ;;  %v4114_v3 = vunpack.c.l.b16 %v4074_v16  ;;  %v3838_v8 = vand.u32 2147483648, %v12403_v19  ;;  %vm3834_vm6 = vmor %vm3832_vm5, %vm3833_vm4 }
 0x49d   : > { %vm3818_vm1 = vweird.f32 %v12439_v43  ;;  %v3836_v16 = vand.u32 2147483647, %v12403_v19  ;;  %v3823_v49 = vand.u32 2147483648, %v12408_v33 }
 0x49e   : > { %v4121_v44 = vunpack.c.l.b16 %v4081_v12  ;;  %v12476_v25 = vpop.f32.mrf.mxu0  ;;  %v3830_v13 = vmul.f32 %v12428_v18, %v3829_v27  ;;  %v4122_v17 = vpack.c.b16 %v4115_v52, %v4114_v3  ;;  %vm3819_vm8 = vmor %vm3817_vm7, %vm3818_vm1 }
 0x49f   : > { %vm3837_vm9 = vcmp.eq.f32.partialorder %v3836_v16, 8.507059e+37  ;;  %v3824_v52 = vor.u32 1.1754944e-38, %v3823_v49 }
 0x4a0   : > { %v4125_v61 = vpack.c.b16 %v4121_v44, %v4120_v30  ;;  %4053 = vmatmul.bf16.gmra.mxu3 %v3916_v10  ;;  %v9502_v60 = vpop.eup %9501  ;;  %v4116_v30 = vunpack.c.l.b16 %v4076_v23  ;;  %v3813_v44 = vmul.f32 %v12439_v43, %v12408_v33  ;;  %v3794_v10 = vor.u32 1.1754944e-38, %v3793_v47 }
 0x4a1   : > { %v9504_v6 = vpop.eup %9503  ;;  %v12472_v63 = vadd.f32 1.0, %v9502_v60  ;;  %v3899_v23 = vmul.f32 %v3810_v37, %v12295_v51 }
 0x4a2   : > { %4134 = vmatpush.bf16.msra.mxu0 %v4125_v61  ;;  %v4123_v61 = vpack.c.b16 %v4117_v20, %v4116_v30  ;;  %v3795_v24 = vsel %vm3792_vm3, %v3794_v10, %v3790_v9  ;;  %v12474_v31 = vadd.f32 1.0, %v9504_v6  ;;  %v3814_v2 = vsub.f32 1.0, %v3813_v44 }
 0x4a3   : > { %v12452_v26 = vpop.f32.mrf.mxu3  ;;  %9505 = vrcp.f32 %v12472_v63  ;;  %v3898_v47 = vmul.f32 %v3795_v24, %v12300_v34  ;;  %v3831_v20 = vadd.f32 %v12428_v18, %v3830_v13  ;;  %v3821_v9 = vand.u32 2147483647, %v12408_v33 }
 0x4a4   : > { %9507 = vrcp.f32 %v12474_v31  ;;  %v3815_v60 = vmul.f32 %v12439_v43, %v3814_v2  ;;  %v3839_v10 = vor.u32 1.1754944e-38, %v3838_v8  ;;  %vm3862_vm13 = vweird.f32 %v12472_v63 }
 0x4a5   : > { %v3917_v39 = vpack.c.bf16 %v3899_v23, %v3898_v47  ;;  %v3835_v30 = vsel %vm3834_vm6, %v12428_v18, %v3831_v20  ;;  %vm3822_vm10 = vcmp.eq.f32.partialorder %v3821_v9, 8.507059e+37  ;;  %vm3847_vm15 = vweird.f32 %v12474_v31 }
 0x4a6   : > { %4135 = vmatpush.bf16.msra.mxu0 %v4124_v48  ;;  %v12491_v34 = vpop.f32.mrf.mxu0  ;;  %v3816_v48 = vadd.f32 %v12439_v43, %v3815_v60  ;;  %v3840_v27 = vsel %vm3837_vm9, %v3839_v10, %v3835_v30  ;;  %v3868_v60 = vand.u32 2147483648, %v12472_v63 }
 0x4a7   : > { %v3901_v33 = vmul.f32 %v3840_v27, %v12349_v21  ;;  %v3866_v21 = vand.u32 2147483647, %v12472_v63 }
 0x4a8   : > { %v3820_v37 = vsel %vm3819_vm8, %v12439_v43, %v3816_v48  ;;  %v3851_v48 = vand.u32 2147483647, %v12474_v31  ;;  %v3869_v49 = vor.u32 1.1754944e-38, %v3868_v60 }
 0x4a9   : > { %v9506_v51 = vpop.eup %9505  ;;  %v3825_v24 = vsel %vm3822_vm10, %v3824_v52, %v3820_v37  ;;  %vm3867_vm3 = vcmp.eq.f32.partialorder %v3866_v21, 8.507059e+37 }
 0x4aa   : > { %4136 = vmatpush.bf16.msra.mxu0 %v4123_v61  ;;  %v9508_v12 = vpop.eup %9507  ;;  %v3858_v44 = vmul.f32 %v9506_v51, %v12472_v63  ;;  %v3900_v2 = vmul.f32 %v3825_v24, %v12356_v29  ;;  %vm3863_vm11 = vweird.f32 %v9506_v51  ;;  %v3853_v29 = vand.u32 2147483648, %v12474_v31 }
 0x4ab   : > { %v12480_v42 = vpop.f32.mrf.mxu3  ;;  %v3843_v19 = vmul.f32 %v9508_v12, %v12474_v31  ;;  %vm3848_vm12 = vweird.f32 %v9508_v12  ;;  %vm3864_vm14 = vmor %vm3862_vm13, %vm3863_vm11  ;;  %vm3852_vm4 = vcmp.eq.f32.partialorder %v3851_v48, 8.507059e+37 }
 0x4ac   : > { %v3859_v61 = vsub.f32 1.0, %v3858_v44  ;;  %vm3849_vm0 = vmor %vm3847_vm15, %vm3848_vm12  ;;  %v3854_v30 = vor.u32 1.1754944e-38, %v3853_v29  ;;  %v4083_v21 = vpack.c.bf16 %v12480_v42, %v12480_v42 }
 0x4ad   : > { %v3844_v23 = vsub.f32 1.0, %v3843_v19 }
 0x4ae   : > { %4137 = vmatpush.bf16.msra.mxu0 %v4122_v17  ;;  %v12506_v3 = vpop.f32.mrf.mxu0  ;;  %v3860_v47 = vmul.f32 %v9506_v51, %v3859_v61  ;;  %v3918_v17 = vpack.c.bf16 %v3901_v33, %v3900_v2 }
 0x4af   : > { %v3845_v13 = vmul.f32 %v9508_v12, %v3844_v23 }
 0x4b0   : > { %4058 = vmatmul.bf16.gmra.mxu3 %v3917_v39  ;;  %v3861_v43 = vadd.f32 %v9506_v51, %v3860_v47 }
 0x4b1   : > { %8798 = vmatmul.msk.bf16.vlgmr.msra.gmra.mxu0 %vm1850_vm2, %v10702_v41  ;;  %v3846_v39 = vadd.f32 %v9508_v12, %v3845_v13 }
 0x4b2   : > { %v3865_v16 = vsel %vm3864_vm14, %v9506_v51, %v3861_v43 }
 0x4b3   : > { %v12498_v6 = vpop.f32.mrf.mxu3  ;;  %v3850_v9 = vsel %vm3849_vm0, %v9508_v12, %v3846_v39  ;;  %v3870_v44 = vsel %vm3867_vm3, %v3869_v49, %v3865_v16  ;;  %v4168_v16 = vunpack.c.l.b16 %v4083_v21 }
 0x4b4   : > { %v3855_v10 = vsel %vm3852_vm4, %v3854_v30, %v3850_v9  ;;  %v3903_v63 = vmul.f32 %v3870_v44, %v12401_v5  ;;  %v4084_v43 = vpack.c.bf16 %v12498_v6, %v12498_v6 }
 0x4b5   : > { %v3902_v19 = vmul.f32 %v3855_v10, %v12406_v7 }
 0x4b6   : > { %v12515_v20 = vpop.f32.mrf.mxu0  ;;  %v4169_v48 = vunpack.c.l.b16 %v4084_v43 }
 0x4b7   : > { %v3919_v27 = vpack.c.bf16 %v3903_v63, %v3902_v19 }
 0x4bb   : > { %v4021_v18 = vpop.f32.mrf.mxu3 }
 0x4bc   : > { %v4085_v47 = vpack.c.bf16 %v4021_v18, %v4021_v18  ;;  %v4082_v18 = vpack.c.bf16 %v12452_v26, %v12452_v26 }
 0x4be   : > { %v12522_v52 = vpop.f32.mrf.mxu0  ;;  %v4170_v29 = vunpack.c.l.b16 %v4085_v47  ;;  %v4167_v9 = vunpack.c.l.b16 %v4082_v18 }
 0x4bf   : > { %15479 = vst [vmem:[#allocation12_spill] sm:$0xff] %v12522_v52 }
 0x4c0   : > { %4063 = vmatmul.bf16.gmra.mxu3 %v3918_v17  ;;  %v4176_v49 = vpack.c.b16 %v4170_v29, %v4169_v48  ;;  %v4175_v44 = vpack.c.b16 %v4168_v16, %v4167_v9 }
 0x4c1   : > { %8799 = vmatmul.msk.bf16.gmra.mxu0 %vm1850_vm2, %v11013_v4 }
 0x4c3   : > { %v4024_v8 = vpop.f32.mrf.mxu3 }
 0x4c4   : > { %v4086_v23 = vpack.c.bf16 %v4024_v8, %v4024_v8 }
 0x4c6   : > { %v12526_v51 = vpop.f32.mrf.mxu0  ;;  %v4171_v60 = vunpack.c.l.b16 %v4086_v23 }
 0x4c7   : > { %15480 = vst [vmem:[#allocation15_spill] sm:$0xff] %v12526_v51 }
 0x4cb   : > { %v4026_v37 = vpop.f32.mrf.mxu3 }
 0x4cc   : > { %v4087_v24 = vpack.c.bf16 %v4026_v37, %v4026_v37 }
 0x4ce   : > { %v4172_v13 = vunpack.c.l.b16 %v4087_v24  ;;  %v12528_v17 = vpop.f32.mrf.mxu0 }
 0x4cf   : > { %15481 = vst [vmem:[#allocation37_spill] sm:$0xff] %v12528_v17 }
 0x4d0   : > { %4068 = vmatmul.bf16.gmra.mxu3 %v3919_v27  ;;  %v4177_v8 = vpack.c.b16 %v4172_v13, %v4171_v60 }
 0x4d1   : > { %8800 = vmatmul.msk.bf16.gmra.mxu0 %vm1850_vm2, %v11029_v58 }
 0x4d3   : > { %v4029_v31 = vpop.f32.mrf.mxu3 }
 0x4d4   : > { %v4088_v12 = vpack.c.bf16 %v4029_v31, %v4029_v31 }
 0x4d6   : > { %v4173_v2 = vunpack.c.l.b16 %v4088_v12  ;;  %v12538_v30 = vpop.f32.mrf.mxu0 }
 0x4d7   : > { %15482 = vst [vmem:[#allocation17_spill] sm:$0xff] %v12538_v30 }
 0x4db   : > { %v4031_v61 = vpop.f32.mrf.mxu3 }
 0x4dc   : > { %v4089_v33 = vpack.c.bf16 %v4031_v61, %v4031_v61 }
 0x4de   : > { %v4174_v5 = vunpack.c.l.b16 %v4089_v33  ;;  %v12542_v10 = vpop.f32.mrf.mxu0 }
 0x4df   : > { %15483 = vst [vmem:[#allocation19_spill] sm:$0xff] %v12542_v10 }
 0x4e0   : > { %v4178_v7 = vpack.c.b16 %v4174_v5, %v4173_v2 }
 0x4e1   : > { %8801 = vmatmul.msk.bf16.gmra.mxu0 %vm1850_vm2, %v10992_v62 }
 0x4e2   : > { %4187 = vmatpush.bf16.msra.mxu1 %v4178_v7 }
 0x4e3   : > { %v4034_v39 = vpop.f32.mrf.mxu3 }
 0x4e6   : > { %4188 = vmatpush.bf16.msra.mxu1 %v4177_v8  ;;  %v12544_v37 = vpop.f32.mrf.mxu0 }
 0x4e7   : > { %15484 = vst [vmem:[#allocation66_spill] sm:$0xff] %v12544_v37 }
 0x4ea   : > { %4189 = vmatpush.bf16.msra.mxu1 %v4176_v49  ;;  %v4090_v49 = vpack.c.bf16 %v4034_v39, %v4034_v39 }
 0x4eb   : > { %v4036_v6 = vpop.f32.mrf.mxu3 }
 0x4ec   : > { %v4091_v18 = vpack.c.bf16 %v4036_v6, %v4036_v6 }
 0x4ee   : > { %4190 = vmatpush.bf16.msra.mxu1 %v4175_v44  ;;  %v12548_v19 = vpop.f32.mrf.mxu0 }
 0x4ef   : > { %15485 = vst [vmem:[#allocation25_spill] sm:$0xff] %v12548_v19 }
 0x4f1   : > { %8802 = vmatmul.msk.bf16.vlgmr.msra.gmra.mxu1 %vm1850_vm2, %v10748_v15 }
 0x4f3   : > { %v4039_v42 = vpop.f32.mrf.mxu3 }
 0x4f4   : > { %v4092_v21 = vpack.c.bf16 %v4039_v42, %v4039_v42  ;;  %v9112_v42 = vld [vmem:[%s15275_s5 + $0xb8] sm:$0xff] }
 0x4f5   : > { %5071 = vmatpush.bf16.msra.mxu2 %v9112_v42 }
 0x4f6   : > { %v12552_v31 = vpop.f32.mrf.mxu0  ;;  %v4222_v9 = vunpack.c.l.b16 %v4092_v21 }
 0x4f7   : > { %15486 = vst [vmem:[#allocation21_spill] sm:$0xff] %v12552_v31 }
 0x4fb   : > { %v4041_v63 = vpop.f32.mrf.mxu3 }
 0x4fc   : > { %v4093_v7 = vpack.c.bf16 %v4041_v63, %v4041_v63 }
 0x4fe   : > { %v12554_v2 = vpop.f32.mrf.mxu0  ;;  %v4223_v48 = vunpack.c.l.b16 %v4093_v7  ;;  %v15490_v7 = vld [vmem:[#allocation70_spill] sm:$0xff] }
 0x4ff   : > { %15487 = vst [vmem:[#allocation69_spill] sm:$0xff] %v12554_v2 }
 0x500   : > { %v4229_v63 = vpack.c.b16 %v4223_v48, %v4222_v9  ;;  %v15491_v9 = vld [vmem:[#allocation71_spill] sm:$0xff] }
 0x501   : > { %8803 = vmatmul.msk.bf16.gmra.mxu1 %vm1850_vm2, %v10922_v35 }
 0x503   : > { %v4044_v26 = vpop.f32.mrf.mxu3 }
 0x504   : > { %v4094_v5 = vpack.c.bf16 %v4044_v26, %v4044_v26  ;;  %v4221_v26 = vunpack.c.l.b16 %v4091_v18 }
 0x506   : > { %v4224_v29 = vunpack.c.l.b16 %v4094_v5  ;;  %v12560_v44 = vpop.f32.mrf.mxu0 }
 0x507   : > { %15488 = vst [vmem:[#allocation30_spill] sm:$0xff] %v12560_v44 }
 0x50b   : > { %v4046_v27 = vpop.f32.mrf.mxu3 }
 0x50c   : > { %v4095_v33 = vpack.c.bf16 %v4046_v27, %v4046_v27  ;;  %v4220_v27 = vunpack.c.l.b16 %v4090_v49 }
 0x50e   : > { %v4225_v43 = vunpack.c.l.b16 %v4095_v33  ;;  %v9111_v33 = vld [vmem:[%s15275_s5 + $0xb0] sm:$0xff] }
 0x50f   : > { %5072 = vmatpush.bf16.msra.mxu2 %v9111_v33 }
 0x510   : > { %v4230_v16 = vpack.c.b16 %v4225_v43, %v4224_v29 }
 0x511   : > { %8804 = vmatmul.msk.bf16.gmra.mxu1 %vm1850_vm2, %v10940_v54 }
 0x513   : > { %v4049_v12 = vpop.f32.mrf.mxu3 }
 0x514   : > { %v4096_v61 = vpack.c.bf16 %v4049_v12, %v4049_v12 }
 0x516   : > { %v4226_v47 = vunpack.c.l.b16 %v4096_v61  ;;  %v4228_v61 = vpack.c.b16 %v4221_v26, %v4220_v27 }
 0x51b   : > { %v4051_v24 = vpop.f32.mrf.mxu3 }
 0x51c   : > { %v4097_v23 = vpack.c.bf16 %v4051_v24, %v4051_v24  ;;  %v15489_v24 = vld [vmem:[#allocation68_spill] sm:$0xff] }
 0x51e   : > { %v4227_v13 = vunpack.c.l.b16 %v4097_v23 }
 0x520   : > { %v4231_v60 = vpack.c.b16 %v4227_v13, %v4226_v47  ;;  %v9110_v47 = vld [vmem:[%s15275_s5 + $0xa8] sm:$0xff] }
 0x521   : > { %8805 = vmatmul.msk.bf16.gmra.mxu1 %vm1850_vm2, %v15405_v55  ;;  %5073 = vmatpush.bf16.msra.mxu2 %v9110_v47 }
 0x522   : > { %4240 = vmatpush.bf16.msrb.mxu0 %v4231_v60  ;;  %v9109_v60 = vld [vmem:[%s15275_s5 + $0xa0] sm:$0xff] }
 0x523   : > { %v12558_v8 = vpop.f32.mrf.mxu3 }
 0x525   : > { %5074 = vmatpush.bf16.msra.mxu2 %v9109_v60  ;;  %v15492_v60 = vld [vmem:[#allocation73_spill] sm:$0xff] }
 0x526   : > { %4241 = vmatpush.bf16.msrb.mxu0 %v4230_v16  ;;  %v9108_v16 = vld [vmem:[%s15275_s5 + $0x98] sm:$0xff] }
 0x529   : > { %5075 = vmatpush.bf16.msra.mxu2 %v9108_v16 }
 0x52a   : > { %4242 = vmatpush.bf16.msrb.mxu0 %v4229_v63  ;;  %v9107_v63 = vld [vmem:[%s15275_s5 + $0x90] sm:$0xff] }
 0x52b   : > { %v12562_v12 = vpop.f32.mrf.mxu3 }
 0x52d   : > { %5076 = vmatpush.bf16.msra.mxu2 %v9107_v63 }
 0x52e   : > { %v4139_v6 = vpop.f32.mrf.mxu0  ;;  %4243 = vmatpush.bf16.msrb.mxu0 %v4228_v61 }
 0x52f   : > { %v12568_v39 = vadd.f32 %v4139_v6, %v15489_v24 }
 0x531   : > { %v8814_v23 = vmul.f32 -1.442695, %v12568_v39  ;;  %8806 = vmatmul.msk.bf16.vlgmr.msrb.gmra.mxu0 %vm1850_vm2, %v15406_v1 }
 0x533   : > { %9509 = vpow2.f32 %v8814_v23  ;;  %v12576_v5 = vpop.f32.mrf.mxu3  ;;  %v9106_v23 = vld [vmem:[%s15275_s5 + $0x88] sm:$0xff] }
 0x534   : > { %5077 = vmatpush.bf16.msra.mxu2 %v9106_v23 }
 0x536   : > { %v4141_v13 = vpop.f32.mrf.mxu0 }
 0x537   : > { %v12582_v43 = vadd.f32 %v4141_v13, %v15490_v7 }
 0x539   : > { %v9510_v21 = vpop.eup %9509  ;;  %v8815_v29 = vmul.f32 -1.442695, %v12582_v43 }
 0x53a   : > { %v4446_v18 = vadd.f32 1.0, %v9510_v21 }
 0x53b   : > { %9511 = vpow2.f32 %v8815_v29  ;;  %v12588_v48 = vpop.f32.mrf.mxu3  ;;  %v9105_v29 = vld [vmem:[%s15275_s5 + $0x80] sm:$0xff] }
 0x53c   : > { %9513 = vrcp.f32 %v4446_v18  ;;  %5078 = vmatpush.bf16.msra.mxu2 %v9105_v29  ;;  %v4489_v23 = vand.u32 2147483648, %v4446_v18  ;;  %vm4483_vm5 = vweird.f32 %v4446_v18 }
 0x53e   : > { %v4144_v49 = vpop.f32.mrf.mxu0  ;;  %v4490_v19 = vor.u32 1.1754944e-38, %v4489_v23 }
 0x53f   : > { %v12594_v26 = vadd.f32 %v4144_v49, %v15491_v9 }
 0x541   : > { %v9512_v27 = vpop.eup %9511  ;;  %v8816_v42 = vmul.f32 -1.442695, %v12594_v26  ;;  %8807 = vmatmul.msk.bf16.gmra.mxu0 %vm1850_vm2, %v15409_v40 }
 0x542   : > { %v9514_v61 = vpop.eup %9513  ;;  %v4447_v6 = vadd.f32 1.0, %v9512_v27 }
 0x543   : > { %v4479_v24 = vmul.f32 %v9514_v61, %v4446_v18  ;;  %9515 = vpow2.f32 %v8816_v42  ;;  %v12602_v33 = vpop.f32.mrf.mxu3  ;;  %vm4484_vm1 = vweird.f32 %v9514_v61 }
 0x544   : > { %9517 = vrcp.f32 %v4447_v6  ;;  %vm12619_vm6 = vmor %vm4483_vm5, %vm4484_vm1  ;;  %v4502_v29 = vand.u32 2147483647, %v4447_v6  ;;  %v4504_v44 = vand.u32 2147483648, %v4447_v6  ;;  %vm4498_vm9 = vweird.f32 %v4447_v6 }
 0x545   : > { %v4480_v47 = vsub.f32 1.0, %v4479_v24 }
 0x546   : > { %v4146_v13 = vpop.f32.mrf.mxu0  ;;  %vm4503_vm11 = vcmp.eq.f32.partialorder %v4502_v29, 8.507059e+37 }
 0x547   : > { %v4481_v7 = vmul.f32 %v9514_v61, %v4480_v47  ;;  %v12608_v21 = vadd.f32 %v4146_v13, %v15492_v60  ;;  %v4487_v47 = vand.u32 2147483647, %v4446_v18  ;;  %v4505_v60 = vor.u32 1.1754944e-38, %v4504_v44 }
 0x549   : > { %v9516_v16 = vpop.eup %9515  ;;  %v8817_v49 = vmul.f32 -1.442695, %v12608_v21  ;;  %v4482_v27 = vadd.f32 %v9514_v61, %v4481_v7  ;;  %vm4488_vm8 = vcmp.eq.f32.partialorder %v4487_v47, 8.507059e+37 }
 0x54a   : > { %v9518_v9 = vpop.eup %9517  ;;  %v12614_v63 = vadd.f32 1.0, %v9516_v16 }
 0x54b   : > { %v4494_v42 = vmul.f32 %v9518_v9, %v4447_v6  ;;  %9519 = vpow2.f32 %v8817_v49  ;;  %v12616_v24 = vpop.f32.mrf.mxu3  ;;  %v4486_v7 = vsel %vm12619_vm6, %v9514_v61, %v4482_v27  ;;  %vm4499_vm7 = vweird.f32 %v9518_v9  ;;  %v15495_v49 = vld [vmem:[#allocation75_spill] sm:$0xff] }
 0x54c   : > { %9521 = vrcp.f32 %v12614_v63  ;;  %v4491_v30 = vsel %vm4488_vm8, %v4490_v19, %v4486_v7  ;;  %vm4500_vm10 = vmor %vm4498_vm9, %vm4499_vm7  ;;  %v15496_v19 = vld [vmem:[#allocation76_spill] sm:$0xff]  ;;  %vm4513_vm13 = vweird.f32 %v12614_v63 }
 0x54d   : > { %v4495_v13 = vsub.f32 1.0, %v4494_v42 }
 0x54e   : > { %v4149_v16 = vpop.f32.mrf.mxu0 }
 0x54f   : > { %v4496_v2 = vmul.f32 %v9518_v9, %v4495_v13  ;;  %v12626_v31 = vadd.f32 %v4149_v16, %v15495_v49 }
 0x551   : > { %v9520_v37 = vpop.eup %9519  ;;  %v4497_v18 = vadd.f32 %v9518_v9, %v4496_v2  ;;  %v8818_v42 = vmul.f32 -1.442695, %v12626_v31  ;;  %8808 = vmatmul.msk.bf16.gmra.mxu0 %vm1850_vm2, %v15412_v14  ;;  %v4958_v2 = vmul.f32 %v4491_v30, %v12568_v39  ;;  %v4101_v39 = vpack.c.bf16 %v12588_v48, %v12588_v48 }
 0x552   : > { %v9522_v10 = vpop.eup %9521  ;;  %v4449_v61 = vadd.f32 1.0, %v9520_v37  ;;  %v4103_v48 = vpack.c.bf16 %v12616_v24, %v12616_v24 }
 0x553   : > { %v4501_v27 = vsel %vm4500_vm10, %v9518_v9, %v4497_v18  ;;  %v4509_v13 = vmul.f32 %v9522_v10, %v12614_v63  ;;  %9523 = vpow2.f32 %v8818_v42  ;;  %v4069_v23 = vpop.f32.mrf.mxu3  ;;  %vm4514_vm12 = vweird.f32 %v9522_v10 }
 0x554   : > { %v4506_v16 = vsel %vm4503_vm11, %v4505_v60, %v4501_v27  ;;  %9525 = vrcp.f32 %v4449_v61  ;;  %v4104_v60 = vpack.c.bf16 %v4069_v23, %v4069_v23  ;;  %vm12646_vm14 = vmor %vm4513_vm13, %vm4514_vm12  ;;  %vm4528_vm3 = vweird.f32 %v4449_v61 }
 0x555   : > { %v4959_v6 = vmul.f32 %v4506_v16, %v12582_v43  ;;  %v4510_v47 = vsub.f32 1.0, %v4509_v13  ;;  %v4519_v43 = vand.u32 2147483648, %v12614_v63  ;;  %v4534_v16 = vand.u32 2147483648, %v4449_v61 }
 0x556   : > { %v4151_v49 = vpop.f32.mrf.mxu0 }
 0x557   : > { %v4990_v17 = vpack.c.bf16 %v4959_v6, %v4958_v2  ;;  %v4511_v51 = vmul.f32 %v9522_v10, %v4510_v47  ;;  %v12635_v7 = vadd.f32 %v4151_v49, %v15496_v19  ;;  %v15499_v49 = vld [vmem:[#allocation77_spill] sm:$0xff]  ;;  %v4520_v19 = vor.u32 1.1754944e-38, %v4519_v43 }
 0x559   : > { %v9524_v37 = vpop.eup %9523  ;;  %5079 = vmatmul.bf16.vlgmr.msra.gmra.mxu2 %v4990_v17  ;;  %v8819_v29 = vmul.f32 -1.442695, %v12635_v7  ;;  %v4512_v18 = vadd.f32 %v9522_v10, %v4511_v51  ;;  %v4517_v17 = vand.u32 2147483647, %v12614_v63  ;;  %v4532_v51 = vand.u32 2147483647, %v4449_v61 }
 0x55a   : > { %v9526_v44 = vpop.eup %9525  ;;  %v12637_v9 = vadd.f32 1.0, %v9524_v37  ;;  %v4102_v37 = vpack.c.bf16 %v12602_v33, %v12602_v33 }
 0x55b   : > { %v4524_v42 = vmul.f32 %v9526_v44, %v4449_v61  ;;  %v4071_v30 = vpop.f32.mrf.mxu3  ;;  %v4516_v23 = vsel %vm12646_vm14, %v9522_v10, %v4512_v18  ;;  %vm4529_vm15 = vweird.f32 %v9526_v44  ;;  %vm4518_vm0 = vcmp.eq.f32.partialorder %v4517_v17, 8.507059e+37 }
 0x55c   : > { %9527 = vrcp.f32 %v12637_v9  ;;  %v4105_v2 = vpack.c.bf16 %v4071_v30, %v4071_v30  ;;  %v4521_v18 = vsel %vm4518_vm0, %v4520_v19, %v4516_v23  ;;  %vm4530_vm4 = vmor %vm4528_vm3, %vm4529_vm15  ;;  %v4535_v30 = vor.u32 1.1754944e-38, %v4534_v16 }
 0x55d   : > { %v4525_v27 = vsub.f32 1.0, %v4524_v42  ;;  %9529 = vpow2.f32 %v8819_v29  ;;  %v4279_v29 = vunpack.c.l.b16 %v4104_v60  ;;  %vm4533_vm1 = vcmp.eq.f32.partialorder %v4532_v51, 8.507059e+37 }
 0x55e   : > { %v4154_v6 = vpop.f32.mrf.mxu0  ;;  %v4280_v42 = vunpack.c.l.b16 %v4105_v2  ;;  %v4100_v61 = vpack.c.bf16 %v12576_v5, %v12576_v5  ;;  %v4277_v60 = vunpack.c.l.b16 %v4102_v37  ;;  %v4960_v23 = vmul.f32 %v4521_v18, %v12594_v26 }
 0x55f   : > { %v4526_v47 = vmul.f32 %v9526_v44, %v4525_v27  ;;  %v12655_v63 = vadd.f32 %v4154_v6, %v15499_v49  ;;  %v4278_v27 = vunpack.c.l.b16 %v4103_v48  ;;  %v15500_v49 = vld [vmem:[#allocation78_spill] sm:$0xff]  ;;  %v4098_v37 = vpack.c.bf16 %v12558_v8, %v12558_v8 }
 0x560   : > { %v4284_v43 = vpack.c.b16 %v4280_v42, %v4279_v29  ;;  %v4275_v29 = vunpack.c.l.b16 %v4100_v61  ;;  %vm4543_vm6 = vweird.f32 %v12637_v9 }
 0x561   : > { %v4527_v52 = vadd.f32 %v9526_v44, %v4526_v47  ;;  %v8820_v24 = vmul.f32 -1.442695, %v12655_v63  ;;  %8809 = vmatmul.msk.bf16.gmra.mxu0 %vm1850_vm2, %v15415_v0  ;;  %v4283_v47 = vpack.c.b16 %v4278_v27, %v4277_v60  ;;  %v15501_v60 = vld [vmem:[#allocation9_spill] sm:$0xff] }
 0x562   : > { %v12662_v10 = vpop.eup %9527  ;;  %4293 = vmatpush.bf16.msrb.mxu1 %v4284_v43  ;;  %v4547_v43 = vand.u32 2147483647, %v12637_v9 }
 0x563   : > { %v9530_v13 = vpop.eup %9529  ;;  %v4531_v6 = vsel %vm4530_vm4, %v9526_v44, %v4527_v52  ;;  %v4539_v33 = vmul.f32 %v12662_v10, %v12637_v9  ;;  %9531 = vpow2.f32 %v8820_v24  ;;  %v4099_v52 = vpack.c.bf16 %v12562_v12, %v12562_v12 }
 0x564   : > { %v4536_v17 = vsel %vm4533_vm1, %v4535_v30, %v4531_v6  ;;  %v4451_v2 = vadd.f32 1.0, %v9530_v13  ;;  %v4276_v44 = vunpack.c.l.b16 %v4101_v39  ;;  %v4273_v30 = vunpack.c.l.b16 %v4098_v37 }
 0x565   : > { %v4961_v16 = vmul.f32 %v4536_v17, %v12608_v21  ;;  %v4540_v48 = vsub.f32 1.0, %v4539_v33  ;;  %v4274_v12 = vunpack.c.l.b16 %v4099_v52  ;;  %vm4544_vm5 = vweird.f32 %v12662_v10 }
 0x566   : > { %9533 = vrcp.f32 %v4451_v2  ;;  %v4156_v51 = vpop.f32.mrf.mxu0  ;;  %4294 = vmatpush.bf16.msrb.mxu1 %v4283_v47  ;;  %v4282_v24 = vpack.c.b16 %v4276_v44, %v4275_v29  ;;  %v4549_v13 = vand.u32 2147483648, %v12637_v9  ;;  %vm12690_vm7 = vmor %vm4543_vm6, %vm4544_vm5  ;;  %vm4548_vm9 = vcmp.eq.f32.partialorder %v4547_v43, 8.507059e+37 }
 0x567   : > { %v12673_v19 = vadd.f32 %v4156_v51, %v15500_v49  ;;  %v4991_v5 = vpack.c.bf16 %v4961_v16, %v4960_v23  ;;  %v4541_v21 = vmul.f32 %v12662_v10, %v4540_v48  ;;  %v4281_v33 = vpack.c.b16 %v4274_v12, %v4273_v30 }
 0x568   : > { %v4562_v16 = vand.u32 2147483647, %v4451_v2  ;;  %v4564_v48 = vand.u32 2147483648, %v4451_v2  ;;  %v4550_v49 = vor.u32 1.1754944e-38, %v4549_v13  ;;  %vm4558_vm10 = vweird.f32 %v4451_v2 }
 0x569   : > { %v9532_v26 = vpop.eup %9531  ;;  %v8821_v42 = vmul.f32 -1.442695, %v12673_v19  ;;  %5084 = vmatmul.bf16.gmra.mxu2 %v4991_v5  ;;  %v4542_v8 = vadd.f32 %v12662_v10, %v4541_v21 }
 0x56a   : > { %v12679_v39 = vadd.f32 1.0, %v9532_v26  ;;  %4295 = vmatpush.bf16.msrb.mxu1 %v4282_v24  ;;  %v4565_v21 = vor.u32 1.1754944e-38, %v4564_v48  ;;  %vm4563_vm12 = vcmp.eq.f32.partialorder %v4562_v16, 8.507059e+37 }
 0x56b   : > { %9535 = vpow2.f32 %v8821_v42  ;;  %v4546_v44 = vsel %vm12690_vm7, %v12662_v10, %v4542_v8 }
 0x56c   : > { %v9534_v18 = vpop.eup %9533  ;;  %9537 = vrcp.f32 %v12679_v39  ;;  %v4551_v26 = vsel %vm4548_vm9, %v4550_v49, %v4546_v44  ;;  %vm4573_vm14 = vweird.f32 %v12679_v39 }
 0x56d   : > { %v4554_v27 = vmul.f32 %v9534_v18, %v4451_v2  ;;  %vm4559_vm8 = vweird.f32 %v9534_v18  ;;  %v4962_v30 = vmul.f32 %v4551_v26, %v12626_v31  ;;  %v4579_v31 = vand.u32 2147483648, %v12679_v39 }
 0x56e   : > { %v4192_v6 = vpop.f32.mrf.mxu1  ;;  %4296 = vmatpush.bf16.msrb.mxu1 %v4281_v33  ;;  %vm4560_vm11 = vmor %vm4558_vm10, %vm4559_vm8 }
 0x56f   : > { %v4555_v61 = vsub.f32 1.0, %v4554_v27  ;;  %v12688_v17 = vadd.f32 %v4192_v6, %v15501_v60  ;;  %v15504_v27 = vld [vmem:[#allocation11_spill] sm:$0xff]  ;;  %v4580_v26 = vor.u32 1.1754944e-38, %v4579_v31 }
 0x571   : > { %v9536_v52 = vpop.eup %9535  ;;  %v4556_v51 = vmul.f32 %v9534_v18, %v4555_v61  ;;  %v8822_v9 = vmul.f32 -1.442695, %v12688_v17  ;;  %8810 = vmatmul.msk.bf16.vlgmr.msrb.gmra.mxu1 %vm1850_vm2, %v15422_v59 }
 0x572   : > { %v9538_v47 = vpop.eup %9537  ;;  %v4453_v5 = vadd.f32 1.0, %v9536_v52 }
 0x573   : > { %v4557_v37 = vadd.f32 %v9534_v18, %v4556_v51  ;;  %v4569_v29 = vmul.f32 %v9538_v47, %v12679_v39  ;;  %9539 = vpow2.f32 %v8822_v9  ;;  %vm4574_vm13 = vweird.f32 %v9538_v47 }
 0x574   : > { %9541 = vrcp.f32 %v4453_v5  ;;  %vm12713_vm15 = vmor %vm4573_vm14, %vm4574_vm13  ;;  %v4592_v52 = vand.u32 2147483647, %v4453_v5  ;;  %v4594_v44 = vand.u32 2147483648, %v4453_v5  ;;  %vm4588_vm4 = vweird.f32 %v4453_v5 }
 0x575   : > { %v4561_v10 = vsel %vm4560_vm11, %v9534_v18, %v4557_v37  ;;  %v4570_v42 = vsub.f32 1.0, %v4569_v29  ;;  %v15507_v37 = vld [vmem:[#allocation13_spill] sm:$0xff] }
 0x576   : > { %v4566_v12 = vsel %vm4563_vm12, %v4565_v21, %v4561_v10  ;;  %v4194_v24 = vpop.f32.mrf.mxu1  ;;  %vm4593_vm5 = vcmp.eq.f32.partialorder %v4592_v52, 8.507059e+37 }
 0x577   : > { %v4963_v8 = vmul.f32 %v4566_v12, %v12635_v7  ;;  %v4571_v2 = vmul.f32 %v9538_v47, %v4570_v42  ;;  %v12704_v43 = vadd.f32 %v4194_v24, %v15504_v27  ;;  %v4577_v7 = vand.u32 2147483647, %v12679_v39 }
 0x578   : > { %v4595_v24 = vor.u32 1.1754944e-38, %v4594_v44 }
 0x579   : > { %v9540_v13 = vpop.eup %9539  ;;  %v8823_v6 = vmul.f32 -1.442695, %v12704_v43  ;;  %v4992_v33 = vpack.c.bf16 %v4963_v8, %v4962_v30  ;;  %v4572_v18 = vadd.f32 %v9538_v47, %v4571_v2  ;;  %vm4578_vm3 = vcmp.eq.f32.partialorder %v4577_v7, 8.507059e+37 }
 0x57a   : > { %v9542_v61 = vpop.eup %9541  ;;  %v12707_v60 = vadd.f32 1.0, %v9540_v13 }
 0x57b   : > { %v4584_v23 = vmul.f32 %v9542_v61, %v4453_v5  ;;  %9543 = vpow2.f32 %v8823_v6  ;;  %5089 = vmatmul.bf16.gmra.mxu2 %v4992_v33  ;;  %v4576_v9 = vsel %vm12713_vm15, %v9538_v47, %v4572_v18  ;;  %vm4589_vm0 = vweird.f32 %v9542_v61  ;;  %v15508_v18 = vld [vmem:[#allocation14_spill] sm:$0xff] }
 0x57c   : > { %9545 = vrcp.f32 %v12707_v60  ;;  %v4581_v12 = vsel %vm4578_vm3, %v4580_v26, %v4576_v9  ;;  %vm4590_vm1 = vmor %vm4588_vm4, %vm4589_vm0  ;;  %vm4603_vm7 = vweird.f32 %v12707_v60 }
 0x57d   : > { %v4585_v16 = vsub.f32 1.0, %v4584_v23  ;;  %v4964_v27 = vmul.f32 %v4581_v12, %v12655_v63  ;;  %v4609_v63 = vand.u32 2147483648, %v12707_v60 }
 0x57e   : > { %v4197_v51 = vpop.f32.mrf.mxu1 }
 0x57f   : > { %v4586_v49 = vmul.f32 %v9542_v61, %v4585_v16  ;;  %v12720_v29 = vadd.f32 %v4197_v51, %v15507_v37 }
 0x581   : > { %v9544_v21 = vpop.eup %9543  ;;  %v4587_v39 = vadd.f32 %v9542_v61, %v4586_v49  ;;  %v8824_v10 = vmul.f32 -1.442695, %v12720_v29  ;;  %8811 = vmatmul.msk.bf16.gmra.mxu1 %vm1850_vm2, %v15427_v57 }
 0x582   : > { %v9546_v42 = vpop.eup %9545  ;;  %v4455_v30 = vadd.f32 1.0, %v9544_v21 }
 0x583   : > { %v4591_v8 = vsel %vm4590_vm1, %v9542_v61, %v4587_v39  ;;  %v4599_v47 = vmul.f32 %v9546_v42, %v12707_v60  ;;  %9547 = vpow2.f32 %v8824_v10  ;;  %vm4604_vm6 = vweird.f32 %v9546_v42  ;;  %v15511_v10 = vld [vmem:[#allocation16_spill] sm:$0xff] }
 0x584   : > { %v4596_v2 = vsel %vm4593_vm5, %v4595_v24, %v4591_v8  ;;  %9549 = vrcp.f32 %v4455_v30  ;;  %vm12738_vm8 = vmor %vm4603_vm7, %vm4604_vm6  ;;  %v4622_v49 = vand.u32 2147483647, %v4455_v30  ;;  %v4624_v37 = vand.u32 2147483648, %v4455_v30 }
 0x585   : > { %v4965_v5 = vmul.f32 %v4596_v2, %v12673_v19  ;;  %v4600_v13 = vsub.f32 1.0, %v4599_v47  ;;  %v4607_v19 = vand.u32 2147483647, %v12707_v60  ;;  %v4610_v24 = vor.u32 1.1754944e-38, %v4609_v63 }
 0x586   : > { %v4199_v6 = vpop.f32.mrf.mxu1  ;;  %vm4618_vm11 = vweird.f32 %v4455_v30  ;;  %vm4623_vm13 = vcmp.eq.f32.partialorder %v4622_v49, 8.507059e+37 }
 0x587   : > { %v4601_v33 = vmul.f32 %v9546_v42, %v4600_v13  ;;  %v12729_v23 = vadd.f32 %v4199_v6, %v15508_v18  ;;  %v4993_v61 = vpack.c.bf16 %v4965_v5, %v4964_v27  ;;  %vm4608_vm10 = vcmp.eq.f32.partialorder %v4607_v19, 8.507059e+37 }
 0x588   : > { %v4625_v5 = vor.u32 1.1754944e-38, %v4624_v37 }
 0x589   : > { %v9548_v31 = vpop.eup %9547  ;;  %v8825_v7 = vmul.f32 -1.442695, %v12729_v23  ;;  %v4602_v52 = vadd.f32 %v9546_v42, %v4601_v33 }
 0x58a   : > { %v9550_v16 = vpop.eup %9549  ;;  %v12732_v48 = vadd.f32 1.0, %v9548_v31 }
 0x58b   : > { %v4614_v44 = vmul.f32 %v9550_v16, %v4455_v30  ;;  %9551 = vpow2.f32 %v8825_v7  ;;  %5094 = vmatmul.bf16.gmra.mxu2 %v4993_v61  ;;  %v4606_v21 = vsel %vm12738_vm8, %v9546_v42, %v4602_v52  ;;  %vm4619_vm9 = vweird.f32 %v9550_v16  ;;  %v15512_v52 = vld [vmem:[#allocation18_spill] sm:$0xff] }
 0x58c   : > { %9553 = vrcp.f32 %v12732_v48  ;;  %v4611_v27 = vsel %vm4608_vm10, %v4610_v24, %v4606_v21  ;;  %vm4620_vm12 = vmor %vm4618_vm11, %vm4619_vm9  ;;  %vm4633_vm15 = vweird.f32 %v12732_v48 }
 0x58d   : > { %v4615_v51 = vsub.f32 1.0, %v4614_v44  ;;  %v4966_v18 = vmul.f32 %v4611_v27, %v12688_v17  ;;  %v4639_v17 = vand.u32 2147483648, %v12732_v48 }
 0x58e   : > { %v4202_v26 = vpop.f32.mrf.mxu1 }
 0x58f   : > { %v4616_v39 = vmul.f32 %v9550_v16, %v4615_v51  ;;  %v12745_v12 = vadd.f32 %v4202_v26, %v15511_v10 }
 0x591   : > { %v9552_v8 = vpop.eup %9551  ;;  %v4617_v60 = vadd.f32 %v9550_v16, %v4616_v39  ;;  %v8826_v47 = vmul.f32 -1.442695, %v12745_v12  ;;  %8812 = vmatmul.msk.bf16.gmra.mxu1 %vm1850_vm2, %v15432_v56 }
 0x592   : > { %v9554_v2 = vpop.eup %9553  ;;  %v4457_v13 = vadd.f32 1.0, %v9552_v8 }
 0x593   : > { %v4621_v6 = vsel %vm4620_vm12, %v9550_v16, %v4617_v60  ;;  %v4629_v42 = vmul.f32 %v9554_v2, %v12732_v48  ;;  %9555 = vpow2.f32 %v8826_v47  ;;  %vm4634_vm14 = vweird.f32 %v9554_v2  ;;  %v15515_v47 = vld [vmem:[#allocation20_spill] sm:$0xff] }
 0x594   : > { %v4626_v33 = vsel %vm4623_vm13, %v4625_v5, %v4621_v6  ;;  %9557 = vrcp.f32 %v4457_v13  ;;  %vm12763_vm0 = vmor %vm4633_vm15, %vm4634_vm14  ;;  %v4652_v39 = vand.u32 2147483647, %v4457_v13  ;;  %v4654_v10 = vand.u32 2147483648, %v4457_v13 }
 0x595   : > { %v4967_v30 = vmul.f32 %v4626_v33, %v12704_v43  ;;  %v4630_v61 = vsub.f32 1.0, %v4629_v42  ;;  %v4637_v43 = vand.u32 2147483647, %v12732_v48  ;;  %v4640_v5 = vor.u32 1.1754944e-38, %v4639_v17 }
 0x596   : > { %v4204_v31 = vpop.f32.mrf.mxu1  ;;  %vm4648_vm1 = vweird.f32 %v4457_v13  ;;  %vm4653_vm6 = vcmp.eq.f32.partialorder %v4652_v39, 8.507059e+37 }
 0x597   : > { %v4631_v7 = vmul.f32 %v9554_v2, %v4630_v61  ;;  %v12754_v44 = vadd.f32 %v4204_v31, %v15512_v52  ;;  %v4994_v16 = vpack.c.bf16 %v4967_v30, %v4966_v18  ;;  %vm4638_vm4 = vcmp.eq.f32.partialorder %v4637_v43, 8.507059e+37 }
 0x598   : > { %v4655_v30 = vor.u32 1.1754944e-38, %v4654_v10 }
 0x599   : > { %v9556_v63 = vpop.eup %9555  ;;  %v8827_v19 = vmul.f32 -1.442695, %v12754_v44  ;;  %v4632_v49 = vadd.f32 %v9554_v2, %v4631_v7 }
 0x59a   : > { %v9558_v51 = vpop.eup %9557  ;;  %v12757_v9 = vadd.f32 1.0, %v9556_v63 }
 0x59b   : > { %v4644_v37 = vmul.f32 %v9558_v51, %v4457_v13  ;;  %9559 = vpow2.f32 %v8827_v19  ;;  %5099 = vmatmul.bf16.gmra.mxu2 %v4994_v16  ;;  %v4636_v8 = vsel %vm12763_vm0, %v9554_v2, %v4632_v49  ;;  %vm4649_vm3 = vweird.f32 %v9558_v51  ;;  %v15516_v49 = vld [vmem:[#allocation22_spill] sm:$0xff] }
 0x59c   : > { %9561 = vrcp.f32 %v12757_v9  ;;  %v4641_v18 = vsel %vm4638_vm4, %v4640_v5, %v4636_v8  ;;  %vm4650_vm5 = vmor %vm4648_vm1, %vm4649_vm3  ;;  %vm4663_vm8 = vweird.f32 %v12757_v9 }
 0x59d   : > { %v4645_v26 = vsub.f32 1.0, %v4644_v37  ;;  %v4968_v52 = vmul.f32 %v4641_v18, %v12720_v29  ;;  %v4669_v29 = vand.u32 2147483648, %v12757_v9 }
 0x59e   : > { %v4207_v24 = vpop.f32.mrf.mxu1 }
 0x59f   : > { %v4646_v60 = vmul.f32 %v9558_v51, %v4645_v26  ;;  %v12770_v27 = vadd.f32 %v4207_v24, %v15515_v47 }
 0x5a1   : > { %v9560_v6 = vpop.eup %9559  ;;  %v4647_v48 = vadd.f32 %v9558_v51, %v4646_v60  ;;  %v8828_v42 = vmul.f32 -1.442695, %v12770_v27  ;;  %8813 = vmatmul.msk.bf16.gmra.mxu1 %vm1850_vm2, %v15437_v36 }
 0x5a2   : > { %v9562_v33 = vpop.eup %9561  ;;  %v4459_v61 = vadd.f32 1.0, %v9560_v6 }
 0x5a3   : > { %v4651_v31 = vsel %vm4650_vm5, %v9558_v51, %v4647_v48  ;;  %v4659_v2 = vmul.f32 %v9562_v33, %v12757_v9  ;;  %9563 = vpow2.f32 %v8828_v42  ;;  %vm4664_vm7 = vweird.f32 %v9562_v33  ;;  %v15519_v42 = vld [vmem:[#allocation24_spill] sm:$0xff] }
 0x5a4   : > { %v4656_v7 = vsel %vm4653_vm6, %v4655_v30, %v4651_v31  ;;  %9565 = vrcp.f32 %v4459_v61  ;;  %vm12788_vm9 = vmor %vm4663_vm8, %vm4664_vm7  ;;  %v4682_v60 = vand.u32 2147483647, %v4459_v61  ;;  %v4684_v47 = vand.u32 2147483648, %v4459_v61 }
 0x5a5   : > { %v4969_v13 = vmul.f32 %v4656_v7, %v12729_v23  ;;  %v4660_v16 = vsub.f32 1.0, %v4659_v2  ;;  %v4667_v23 = vand.u32 2147483647, %v12757_v9  ;;  %v4670_v30 = vor.u32 1.1754944e-38, %v4669_v29 }
 0x5a6   : > { %v4209_v63 = vpop.f32.mrf.mxu1  ;;  %vm4678_vm12 = vweird.f32 %v4459_v61  ;;  %vm4683_vm14 = vcmp.eq.f32.partialorder %v4682_v60, 8.507059e+37 }
 0x5a7   : > { %v4661_v19 = vmul.f32 %v9562_v33, %v4660_v16  ;;  %v12779_v37 = vadd.f32 %v4209_v63, %v15516_v49  ;;  %v4995_v51 = vpack.c.bf16 %v4969_v13, %v4968_v52  ;;  %vm4668_vm11 = vcmp.eq.f32.partialorder %v4667_v23, 8.507059e+37 }
 0x5a8   : > { %v4685_v13 = vor.u32 1.1754944e-38, %v4684_v47 }
 0x5a9   : > { %v9564_v17 = vpop.eup %9563  ;;  %v8829_v43 = vmul.f32 -1.442695, %v12779_v37  ;;  %v4662_v39 = vadd.f32 %v9562_v33, %v4661_v19 }
 0x5aa   : > { %v9566_v26 = vpop.eup %9565  ;;  %v12782_v21 = vadd.f32 1.0, %v9564_v17 }
 0x5ab   : > { %v4674_v10 = vmul.f32 %v9566_v26, %v4459_v61  ;;  %9567 = vpow2.f32 %v8829_v43  ;;  %5104 = vmatmul.bf16.gmra.mxu2 %v4995_v51  ;;  %v4666_v6 = vsel %vm12788_vm9, %v9562_v33, %v4662_v39  ;;  %vm4679_vm10 = vweird.f32 %v9566_v26  ;;  %v15520_v39 = vld [vmem:[#allocation26_spill] sm:$0xff] }
 0x5ac   : > { %9569 = vrcp.f32 %v12782_v21  ;;  %v4671_v52 = vsel %vm4668_vm11, %v4670_v30, %v4666_v6  ;;  %vm4680_vm13 = vmor %vm4678_vm12, %vm4679_vm10  ;;  %vm4693_vm0 = vweird.f32 %v12782_v21 }
 0x5ad   : > { %v4675_v24 = vsub.f32 1.0, %v4674_v10  ;;  %v4970_v49 = vmul.f32 %v4671_v52, %v12745_v12  ;;  %v4699_v12 = vand.u32 2147483648, %v12782_v21 }
 0x5ae   : > { %v4245_v5 = vpop.f32.mrf.mxu0 }
 0x5af   : > { %v4676_v48 = vmul.f32 %v9566_v26, %v4675_v24  ;;  %v12795_v18 = vadd.f32 %v4245_v5, %v15519_v42 }
 0x5b1   : > { %v9568_v31 = vpop.eup %9567  ;;  %v4677_v9 = vadd.f32 %v9566_v26, %v4676_v48  ;;  %v8830_v2 = vmul.f32 -1.442695, %v12795_v18 }
 0x5b2   : > { %v9570_v7 = vpop.eup %9569  ;;  %v4461_v16 = vadd.f32 1.0, %v9568_v31 }
 0x5b3   : > { %v4681_v63 = vsel %vm4680_vm13, %v9566_v26, %v4677_v9  ;;  %v4689_v33 = vmul.f32 %v9570_v7, %v12782_v21  ;;  %9571 = vpow2.f32 %v8830_v2  ;;  %vm4694_vm15 = vweird.f32 %v9570_v7  ;;  %v15523_v2 = vld [vmem:[#allocation29_spill] sm:$0xff] }
 0x5b4   : > { %v4686_v19 = vsel %vm4683_vm14, %v4685_v13, %v4681_v63  ;;  %9573 = vrcp.f32 %v4461_v16  ;;  %vm12811_vm3 = vmor %vm4693_vm0, %vm4694_vm15  ;;  %v4712_v48 = vand.u32 2147483647, %v4461_v16  ;;  %v4714_v42 = vand.u32 2147483648, %v4461_v16 }
 0x5b5   : > { %v4971_v51 = vmul.f32 %v4686_v19, %v12754_v44  ;;  %v4690_v17 = vsub.f32 1.0, %v4689_v33  ;;  %v4697_v44 = vand.u32 2147483647, %v12782_v21  ;;  %v4700_v13 = vor.u32 1.1754944e-38, %v4699_v12 }
 0x5b6   : > { %v4247_v61 = vpop.f32.mrf.mxu0  ;;  %vm4708_vm5 = vweird.f32 %v4461_v16  ;;  %vm4713_vm7 = vcmp.eq.f32.partialorder %v4712_v48, 8.507059e+37 }
 0x5b7   : > { %v4691_v43 = vmul.f32 %v9570_v7, %v4690_v17  ;;  %v12802_v10 = vadd.f32 %v4247_v61, %v15520_v39  ;;  %v4996_v29 = vpack.c.bf16 %v4971_v51, %v4970_v49  ;;  %vm4698_vm1 = vcmp.eq.f32.partialorder %v4697_v44, 8.507059e+37 }
 0x5b8   : > { %v4715_v51 = vor.u32 1.1754944e-38, %v4714_v42 }
 0x5b9   : > { %v9572_v23 = vpop.eup %9571  ;;  %v8831_v26 = vmul.f32 -1.442695, %v12802_v10  ;;  %v4692_v60 = vadd.f32 %v9570_v7, %v4691_v43 }
 0x5ba   : > { %v9574_v24 = vpop.eup %9573  ;;  %v12805_v8 = vadd.f32 1.0, %v9572_v23 }
 0x5bb   : > { %v4704_v47 = vmul.f32 %v9574_v24, %v4461_v16  ;;  %9575 = vpow2.f32 %v8831_v26  ;;  %5109 = vmatmul.bf16.gmra.mxu2 %v4996_v29  ;;  %v4696_v31 = vsel %vm12811_vm3, %v9570_v7, %v4692_v60  ;;  %vm4709_vm4 = vweird.f32 %v9574_v24  ;;  %v15524_v60 = vld [vmem:[#allocation31_spill] sm:$0xff] }
 0x5bc   : > { %9577 = vrcp.f32 %v12805_v8  ;;  %v4701_v49 = vsel %vm4698_vm1, %v4700_v13, %v4696_v31  ;;  %vm4710_vm6 = vmor %vm4708_vm5, %vm4709_vm4  ;;  %vm4723_vm9 = vweird.f32 %v12805_v8 }
 0x5bd   : > { %v4705_v5 = vsub.f32 1.0, %v4704_v47  ;;  %v4972_v39 = vmul.f32 %v4701_v49, %v12770_v27  ;;  %v4729_v27 = vand.u32 2147483648, %v12805_v8 }
 0x5be   : > { %v4250_v30 = vpop.f32.mrf.mxu0 }
 0x5bf   : > { %v4706_v9 = vmul.f32 %v9574_v24, %v4705_v5  ;;  %v12818_v52 = vadd.f32 %v4250_v30, %v15523_v2 }
 0x5c1   : > { %v9576_v63 = vpop.eup %9575  ;;  %v4707_v21 = vadd.f32 %v9574_v24, %v4706_v9  ;;  %v8832_v33 = vmul.f32 -1.442695, %v12818_v52 }
 0x5c2   : > { %v9578_v19 = vpop.eup %9577  ;;  %v4463_v17 = vadd.f32 1.0, %v9576_v63 }
 0x5c3   : > { %v4711_v61 = vsel %vm4710_vm6, %v9574_v24, %v4707_v21  ;;  %v4719_v7 = vmul.f32 %v9578_v19, %v12805_v8  ;;  %9579 = vpow2.f32 %v8832_v33  ;;  %vm4724_vm8 = vweird.f32 %v9578_v19  ;;  %v15527_v33 = vld [vmem:[#allocation34_spill] sm:$0xff] }
 0x5c4   : > { %v4716_v43 = vsel %vm4713_vm7, %v4715_v51, %v4711_v61  ;;  %9581 = vrcp.f32 %v4463_v17  ;;  %vm12834_vm10 = vmor %vm4723_vm9, %vm4724_vm8  ;;  %v4742_v9 = vand.u32 2147483647, %v4463_v17  ;;  %v4744_v2 = vand.u32 2147483648, %v4463_v17 }
 0x5c5   : > { %v4973_v29 = vmul.f32 %v4716_v43, %v12779_v37  ;;  %v4720_v23 = vsub.f32 1.0, %v4719_v7  ;;  %v4727_v37 = vand.u32 2147483647, %v12805_v8  ;;  %v4730_v51 = vor.u32 1.1754944e-38, %v4729_v27 }
 0x5c6   : > { %v4252_v16 = vpop.f32.mrf.mxu0  ;;  %vm4738_vm13 = vweird.f32 %v4463_v17  ;;  %vm4743_vm15 = vcmp.eq.f32.partialorder %v4742_v9, 8.507059e+37 }
 0x5c7   : > { %v4721_v26 = vmul.f32 %v9578_v19, %v4720_v23  ;;  %v12825_v47 = vadd.f32 %v4252_v16, %v15524_v60  ;;  %v4997_v12 = vpack.c.bf16 %v4973_v29, %v4972_v39  ;;  %vm4728_vm12 = vcmp.eq.f32.partialorder %v4727_v37, 8.507059e+37 }
 0x5c8   : > { %v4745_v29 = vor.u32 1.1754944e-38, %v4744_v2 }
 0x5c9   : > { %v9580_v44 = vpop.eup %9579  ;;  %v8833_v24 = vmul.f32 -1.442695, %v12825_v47  ;;  %v4722_v48 = vadd.f32 %v9578_v19, %v4721_v26 }
 0x5ca   : > { %v9582_v5 = vpop.eup %9581  ;;  %v12828_v6 = vadd.f32 1.0, %v9580_v44 }
 0x5cb   : > { %v4734_v42 = vmul.f32 %v9582_v5, %v4463_v17  ;;  %9583 = vpow2.f32 %v8833_v24  ;;  %5114 = vmatmul.bf16.gmra.mxu2 %v4997_v12  ;;  %v4726_v63 = vsel %vm12834_vm10, %v9578_v19, %v4722_v48  ;;  %vm4739_vm11 = vweird.f32 %v9582_v5  ;;  %v15528_v24 = vld [vmem:[#allocation35_spill] sm:$0xff] }
 0x5cc   : > { %9585 = vrcp.f32 %v12828_v6  ;;  %v4731_v39 = vsel %vm4728_vm12, %v4730_v51, %v4726_v63  ;;  %vm4740_vm14 = vmor %vm4738_vm13, %vm4739_vm11  ;;  %vm4753_vm3 = vweird.f32 %v12828_v6  ;;  %v4757_v63 = vand.u32 2147483647, %v12828_v6 }
 0x5cd   : > { %v4735_v30 = vsub.f32 1.0, %v4734_v42  ;;  %v4974_v60 = vmul.f32 %v4731_v39, %v12795_v18 }
 0x5ce   : > { %v4255_v13 = vpop.f32.mrf.mxu0  ;;  %vm4758_vm6 = vcmp.eq.f32.partialorder %v4757_v63, 8.507059e+37 }
 0x5cf   : > { %v4736_v21 = vmul.f32 %v9582_v5, %v4735_v30  ;;  %v12841_v49 = vadd.f32 %v4255_v13, %v15527_v33 }
 0x5d1   : > { %v9584_v61 = vpop.eup %9583  ;;  %v4737_v8 = vadd.f32 %v9582_v5, %v4736_v21  ;;  %v8834_v7 = vmul.f32 -1.442695, %v12841_v49 }
 0x5d2   : > { %v9586_v43 = vpop.eup %9585  ;;  %v4465_v23 = vadd.f32 1.0, %v9584_v61 }
 0x5d3   : > { %v4741_v16 = vsel %vm4740_vm14, %v9582_v5, %v4737_v8  ;;  %v4749_v19 = vmul.f32 %v9586_v43, %v12828_v6  ;;  %9587 = vpow2.f32 %v8834_v7  ;;  %vm4754_vm0 = vweird.f32 %v9586_v43  ;;  %v15531_v7 = vld [vmem:[#allocation38_spill] sm:$0xff] }
 0x5d4   : > { %v4746_v26 = vsel %vm4743_vm15, %v4745_v29, %v4741_v16  ;;  %9589 = vrcp.f32 %v4465_v23  ;;  %v4772_v21 = vand.u32 2147483647, %v4465_v23  ;;  %v4774_v33 = vand.u32 2147483648, %v4465_v23  ;;  %vm12859_vm4 = vmor %vm4753_vm3, %vm4754_vm0 }
 0x5d5   : > { %v4975_v12 = vmul.f32 %v4746_v26, %v12802_v10  ;;  %v4750_v44 = vsub.f32 1.0, %v4749_v19  ;;  %v4759_v10 = vand.u32 2147483648, %v12828_v6  ;;  %vm4768_vm5 = vweird.f32 %v4465_v23 }
 0x5d6   : > { %v4257_v17 = vpop.f32.mrf.mxu0  ;;  %vm4773_vm8 = vcmp.eq.f32.partialorder %v4772_v21, 8.507059e+37 }
 0x5d7   : > { %v12848_v48 = vadd.f32 %v4257_v17, %v15528_v24  ;;  %v4998_v42 = vpack.c.bf16 %v4975_v12, %v4974_v60  ;;  %v4751_v27 = vmul.f32 %v9586_v43, %v4750_v44  ;;  %v4760_v19 = vor.u32 1.1754944e-38, %v4759_v10  ;;  %v15532_v10 = vld [vmem:[#allocation40_spill] sm:$0xff] }
 0x5d8   : > { %v4775_v12 = vor.u32 1.1754944e-38, %v4774_v33 }
 0x5d9   : > { %v9588_v37 = vpop.eup %9587  ;;  %v8835_v5 = vmul.f32 -1.442695, %v12848_v48  ;;  %v4752_v2 = vadd.f32 %v9586_v43, %v4751_v27 }
 0x5da   : > { %v9590_v30 = vpop.eup %9589  ;;  %v12851_v31 = vadd.f32 1.0, %v9588_v37 }
 0x5db   : > { %v4764_v9 = vmul.f32 %v9590_v30, %v4465_v23  ;;  %9591 = vpow2.f32 %v8835_v5  ;;  %5119 = vmatmul.bf16.gmra.mxu2 %v4998_v42  ;;  %vm4769_vm1 = vweird.f32 %v9590_v30  ;;  %v4756_v29 = vsel %vm12859_vm4, %v9586_v43, %v4752_v2 }
 0x5dc   : > { %9593 = vrcp.f32 %v12851_v31  ;;  %v12854_v18 = vpop.f32.mrf.mxu2  ;;  %vm4770_vm7 = vmor %vm4768_vm5, %vm4769_vm1  ;;  %v4761_v17 = vsel %vm4758_vm6, %v4760_v19, %v4756_v29  ;;  %vm4783_vm10 = vweird.f32 %v12851_v31 }
 0x5dd   : > { %v4765_v13 = vsub.f32 1.0, %v4764_v9  ;;  %v4976_v5 = vmul.f32 %v4761_v17, %v12818_v52 }
 0x5de   : > { %v4260_v51 = vpop.f32.mrf.mxu0 }
 0x5df   : > { %v4766_v8 = vmul.f32 %v9590_v30, %v4765_v13  ;;  %v12864_v39 = vadd.f32 %v4260_v51, %v15531_v7  ;;  %v4787_v7 = vand.u32 2147483647, %v12851_v31 }
 0x5e1   : > { %v9592_v16 = vpop.eup %9591  ;;  %v4767_v26 = vadd.f32 %v9590_v30, %v4766_v8  ;;  %v8836_v6 = vmul.f32 -1.442695, %v12864_v39  ;;  %vm4788_vm13 = vcmp.eq.f32.partialorder %v4787_v7, 8.507059e+37 }
 0x5e2   : > { %v9594_v60 = vpop.eup %9593  ;;  %v4467_v44 = vadd.f32 1.0, %v9592_v16 }
 0x5e3   : > { %v4771_v24 = vsel %vm4770_vm7, %v9590_v30, %v4767_v26  ;;  %v4779_v42 = vmul.f32 %v9594_v60, %v12851_v31  ;;  %9595 = vpow2.f32 %v8836_v6  ;;  %vm4784_vm9 = vweird.f32 %v9594_v60 }
 0x5e4   : > { %v4776_v27 = vsel %vm4773_vm8, %v4775_v12, %v4771_v24  ;;  %9597 = vrcp.f32 %v4467_v44  ;;  %v12870_v43 = vpop.f32.mrf.mxu2  ;;  %vm4785_vm11 = vmor %vm4783_vm10, %vm4784_vm9  ;;  %v4804_v16 = vand.u32 2147483648, %v4467_v44  ;;  %v4802_v6 = vand.u32 2147483647, %v4467_v44 }
 0x5e5   : > { %v4977_v37 = vmul.f32 %v4776_v27, %v12825_v47  ;;  %v4780_v23 = vsub.f32 1.0, %v4779_v42  ;;  %v4789_v47 = vand.u32 2147483648, %v12851_v31  ;;  %vm4798_vm14 = vweird.f32 %v4467_v44  ;;  %v15533_v27 = vld [vmem:[#allocation42_spill] sm:$0xff] }
 0x5e6   : > { %v4262_v9 = vpop.f32.mrf.mxu0  ;;  %v4805_v31 = vor.u32 1.1754944e-38, %v4804_v16  ;;  %vm4803_vm0 = vcmp.eq.f32.partialorder %v4802_v6, 8.507059e+37 }
 0x5e7   : > { %v4781_v2 = vmul.f32 %v9594_v60, %v4780_v23  ;;  %v12875_v13 = vadd.f32 %v4262_v9, %v15532_v10  ;;  %v4999_v63 = vpack.c.bf16 %v4977_v37, %v4976_v5  ;;  %v4790_v12 = vor.u32 1.1754944e-38, %v4789_v47 }
 0x5e9   : > { %v9596_v21 = vpop.eup %9595  ;;  %v8837_v30 = vmul.f32 -1.442695, %v12875_v13  ;;  %v4782_v61 = vadd.f32 %v9594_v60, %v4781_v2 }
 0x5ea   : > { %v9598_v33 = vpop.eup %9597  ;;  %v12878_v51 = vadd.f32 1.0, %v9596_v21 }
 0x5eb   : > { %v4794_v8 = vmul.f32 %v9598_v33, %v4467_v44  ;;  %9599 = vpow2.f32 %v8837_v30  ;;  %5124 = vmatmul.bf16.gmra.mxu2 %v4999_v63  ;;  %v4786_v19 = vsel %vm4785_vm11, %v9594_v60, %v4782_v61  ;;  %vm4799_vm12 = vweird.f32 %v9598_v33 }
 0x5ec   : > { %9601 = vrcp.f32 %v12878_v51  ;;  %v12882_v52 = vpop.f32.mrf.mxu2  ;;  %v4791_v5 = vsel %vm4788_vm13, %v4790_v12, %v4786_v19  ;;  %vm4800_vm15 = vmor %vm4798_vm14, %vm4799_vm12  ;;  %vm4813_vm4 = vweird.f32 %v12878_v51 }
 0x5ed   : > { %v4795_v29 = vsub.f32 1.0, %v4794_v8  ;;  %v4978_v44 = vmul.f32 %v4791_v5, %v12841_v49  ;;  %v4819_v49 = vand.u32 2147483648, %v12878_v51 }
 0x5ee   : > { %v4298_v17 = vpop.f32.mrf.mxu1 }
 0x5ef   : > { %v4796_v26 = vmul.f32 %v9598_v33, %v4795_v29  ;;  %v12887_v37 = vadd.f32 %v4298_v17, %v15533_v27  ;;  %v15534_v29 = vld [vmem:[#allocation44_spill] sm:$0xff] }
 0x5f1   : > { %v9600_v24 = vpop.eup %9599  ;;  %v4797_v42 = vadd.f32 %v9598_v33, %v4796_v26  ;;  %v8838_v10 = vmul.f32 -1.442695, %v12887_v37 }
 0x5f2   : > { %v9602_v23 = vpop.eup %9601  ;;  %v4469_v9 = vadd.f32 1.0, %v9600_v24 }
 0x5f3   : > { %v4801_v2 = vsel %vm4800_vm15, %v9598_v33, %v4797_v42  ;;  %v4809_v60 = vmul.f32 %v9602_v23, %v12878_v51  ;;  %vm4814_vm3 = vweird.f32 %v9602_v23 }
 0x5f4   : > { %v4806_v63 = vsel %vm4803_vm0, %v4805_v31, %v4801_v2  ;;  %9603 = vrcp.f32 %v4469_v9  ;;  %v12891_v21 = vpop.f32.mrf.mxu2  ;;  %vm4815_vm1 = vmor %vm4813_vm4, %vm4814_vm3  ;;  %v4834_v42 = vand.u32 2147483648, %v4469_v9  ;;  %v4832_v2 = vand.u32 2147483647, %v4469_v9 }
 0x5f5   : > { %v4979_v30 = vmul.f32 %v4806_v63, %v12848_v48  ;;  %v4810_v61 = vsub.f32 1.0, %v4809_v60  ;;  %9605 = vpow2.f32 %v8838_v10  ;;  %v4817_v48 = vand.u32 2147483647, %v12878_v51 }
 0x5f6   : > { %v4300_v7 = vpop.f32.mrf.mxu1  ;;  %v4820_v60 = vor.u32 1.1754944e-38, %v4819_v49  ;;  %vm4828_vm7 = vweird.f32 %v4469_v9  ;;  %vm4833_vm9 = vcmp.eq.f32.partialorder %v4832_v2, 8.507059e+37 }
 0x5f7   : > { %v4811_v8 = vmul.f32 %v9602_v23, %v4810_v61  ;;  %v5000_v47 = vpack.c.bf16 %v4979_v30, %v4978_v44  ;;  %v12896_v33 = vadd.f32 %v4300_v7, %v15534_v29  ;;  %vm4818_vm6 = vcmp.eq.f32.partialorder %v4817_v48, 8.507059e+37  ;;  %v15535_v44 = vld [vmem:[#allocation46_spill] sm:$0xff] }
 0x5f8   : > { %v4835_v61 = vor.u32 1.1754944e-38, %v4834_v42  ;;  %v15536_v42 = vld [vmem:[#allocation48_spill] sm:$0xff] }
 0x5f9   : > { %v4812_v26 = vadd.f32 %v9602_v23, %v4811_v8  ;;  %v8839_v12 = vmul.f32 -1.442695, %v12896_v33 }
 0x5fa   : > { %v9604_v16 = vpop.eup %9603 }
 0x5fb   : > { %v9606_v19 = vpop.eup %9605  ;;  %v4824_v6 = vmul.f32 %v9604_v16, %v4469_v9  ;;  %5129 = vmatmul.bf16.gmra.mxu2 %v5000_v47  ;;  %9607 = vpow2.f32 %v8839_v12  ;;  %v4816_v5 = vsel %vm4815_vm1, %v9602_v23, %v4812_v26  ;;  %vm4829_vm5 = vweird.f32 %v9604_v16 }
 0x5fc   : > { %v12900_v17 = vadd.f32 1.0, %v9606_v19  ;;  %v4821_v51 = vsel %vm4818_vm6, %v4820_v60, %v4816_v5  ;;  %vm4830_vm8 = vmor %vm4828_vm7, %vm4829_vm5 }
 0x5fd   : > { %v4825_v24 = vsub.f32 1.0, %v4824_v6  ;;  %v4980_v26 = vmul.f32 %v4821_v51, %v12864_v39 }
 0x5fe   : > { %9609 = vrcp.f32 %v12900_v17  ;;  %v12905_v27 = vpop.f32.mrf.mxu2  ;;  %v4303_v10 = vpop.f32.mrf.mxu1  ;;  %vm4843_vm11 = vweird.f32 %v12900_v17  ;;  %v4847_v51 = vand.u32 2147483647, %v12900_v17 }
 0x5ff   : > { %v4826_v31 = vmul.f32 %v9604_v16, %v4825_v24  ;;  %v12908_v30 = vadd.f32 %v4303_v10, %v15535_v44 }
 0x600   : > { %vm4848_vm14 = vcmp.eq.f32.partialorder %v4847_v51, 8.507059e+37 }
 0x601   : > { %v4827_v63 = vadd.f32 %v9604_v16, %v4826_v31  ;;  %v9608_v8 = vpop.eup %9607  ;;  %v8840_v7 = vmul.f32 -1.442695, %v12908_v30 }
 0x602   : > { %v4471_v19 = vadd.f32 1.0, %v9608_v8 }
 0x603   : > { %v4831_v47 = vsel %vm4830_vm8, %v9604_v16, %v4827_v63  ;;  %9611 = vpow2.f32 %v8840_v7  ;;  %v4849_v63 = vand.u32 2147483648, %v12900_v17 }
 0x604   : > { %v9610_v23 = vpop.eup %9609  ;;  %v4836_v29 = vsel %vm4833_vm9, %v4835_v61, %v4831_v47  ;;  %9613 = vrcp.f32 %v4471_v19  ;;  %v4862_v47 = vand.u32 2147483647, %v4471_v19  ;;  %v4864_v7 = vand.u32 2147483648, %v4471_v19 }
 0x605   : > { %v4981_v6 = vmul.f32 %v4836_v29, %v12875_v13  ;;  %v4839_v9 = vmul.f32 %v9610_v23, %v12900_v17  ;;  %vm4844_vm10 = vweird.f32 %v9610_v23  ;;  %vm4858_vm15 = vweird.f32 %v4471_v19 }
 0x606   : > { %v12914_v12 = vpop.f32.mrf.mxu2  ;;  %v4305_v24 = vpop.f32.mrf.mxu1  ;;  %vm12926_vm12 = vmor %vm4843_vm11, %vm4844_vm10  ;;  %vm4863_vm3 = vcmp.eq.f32.partialorder %v4862_v47, 8.507059e+37 }
 0x607   : > { %v4840_v49 = vsub.f32 1.0, %v4839_v9  ;;  %v5001_v48 = vpack.c.bf16 %v4981_v6, %v4980_v26  ;;  %v12917_v5 = vadd.f32 %v4305_v24, %v15536_v42  ;;  %v15539_v9 = vld [vmem:[#allocation50_spill] sm:$0xff] }
 0x609   : > { %v4841_v16 = vmul.f32 %v9610_v23, %v4840_v49  ;;  %v9612_v31 = vpop.eup %9611  ;;  %v8841_v2 = vmul.f32 -1.442695, %v12917_v5 }
 0x60a   : > { %v9614_v39 = vpop.eup %9613  ;;  %v12920_v60 = vadd.f32 1.0, %v9612_v31 }
 0x60b   : > { %5134 = vmatmul.bf16.gmra.mxu2 %v5001_v48  ;;  %v4842_v13 = vadd.f32 %v9610_v23, %v4841_v16  ;;  %v4854_v10 = vmul.f32 %v9614_v39, %v4471_v19  ;;  %9615 = vpow2.f32 %v8841_v2  ;;  %vm4859_vm13 = vweird.f32 %v9614_v39 }
 0x60c   : > { %9617 = vrcp.f32 %v12920_v60  ;;  %v4850_v48 = vor.u32 1.1754944e-38, %v4849_v63  ;;  %vm4860_vm0 = vmor %vm4858_vm15, %vm4859_vm13  ;;  %v4865_v2 = vor.u32 1.1754944e-38, %v4864_v7  ;;  %vm4873_vm1 = vweird.f32 %v12920_v60 }
 0x60d   : > { %v4855_v61 = vsub.f32 1.0, %v4854_v10  ;;  %v4846_v26 = vsel %vm12926_vm12, %v9610_v23, %v4842_v13 }
 0x60e   : > { %v5095_v44 = vpop.f32.mrf.mxu2  ;;  %v4308_v29 = vpop.f32.mrf.mxu1  ;;  %v4851_v31 = vsel %vm4848_vm14, %v4850_v48, %v4846_v26 }
 0x60f   : > { %v4856_v6 = vmul.f32 %v9614_v39, %v4855_v61  ;;  %v12933_v49 = vadd.f32 %v4308_v29, %v15539_v9  ;;  %v5166_v61 = vpack.c.bf16 %v5095_v44, %v5095_v44  ;;  %v5165_v29 = vpack.c.bf16 %v12914_v12, %v12914_v12  ;;  %v15540_v9 = vld [vmem:[#allocation53_spill] sm:$0xff] }
 0x610   : > { %v4982_v7 = vmul.f32 %v4851_v31, %v12887_v37  ;;  %v5162_v12 = vpack.c.bf16 %v12882_v52, %v12882_v52 }
 0x611   : > { %v9616_v24 = vpop.eup %9615  ;;  %v4857_v17 = vadd.f32 %v9614_v39, %v4856_v6  ;;  %v8842_v16 = vmul.f32 -1.442695, %v12933_v49  ;;  %v5206_v6 = vunpack.c.l.b16 %v5166_v61  ;;  %v5205_v37 = vunpack.c.l.b16 %v5165_v29 }
 0x612   : > { %v12936_v42 = vpop.eup %9617  ;;  %v12938_v10 = vadd.f32 1.0, %v9616_v24  ;;  %v5163_v24 = vpack.c.bf16 %v12891_v21, %v12891_v21  ;;  %v5161_v21 = vpack.c.bf16 %v12870_v43, %v12870_v43  ;;  %v4877_v43 = vand.u32 2147483647, %v12920_v60 }
 0x613   : > { %v4861_v23 = vsel %vm4860_vm0, %v9614_v39, %v4857_v17  ;;  %v4869_v13 = vmul.f32 %v12936_v42, %v12920_v60  ;;  %9619 = vpow2.f32 %v8842_v16  ;;  %v5164_v39 = vpack.c.bf16 %v12905_v27, %v12905_v27 }
 0x614   : > { %v4866_v63 = vsel %vm4863_vm3, %v4865_v2, %v4861_v23  ;;  %9621 = vrcp.f32 %v12938_v10  ;;  %v5160_v23 = vpack.c.bf16 %v12854_v18, %v12854_v18  ;;  %v5203_v52 = vunpack.c.l.b16 %v5163_v24 }
 0x615   : > { %v4983_v51 = vmul.f32 %v4866_v63, %v12896_v33  ;;  %v4870_v8 = vsub.f32 1.0, %v4869_v13  ;;  %v5204_v61 = vunpack.c.l.b16 %v5164_v39  ;;  %vm4874_vm4 = vweird.f32 %v12936_v42 }
 0x616   : > { %v5097_v19 = vpop.f32.mrf.mxu2  ;;  %v4310_v26 = vpop.f32.mrf.mxu1  ;;  %v5202_v18 = vunpack.c.l.b16 %v5162_v12  ;;  %vm12975_vm5 = vmor %vm4873_vm1, %vm4874_vm4  ;;  %vm4888_vm7 = vweird.f32 %v12938_v10  ;;  %vm4878_vm8 = vcmp.eq.f32.partialorder %v4877_v43, 8.507059e+37 }
 0x617   : > { %v5167_v47 = vpack.c.bf16 %v5097_v19, %v5097_v19  ;;  %v12950_v48 = vadd.f32 %v4310_v26, %v15540_v9  ;;  %v4871_v33 = vmul.f32 %v12936_v42, %v4870_v8  ;;  %v5002_v17 = vpack.c.bf16 %v4983_v51, %v4982_v7  ;;  %v15543_v9 = vld [vmem:[#allocation55_spill] sm:$0xff] }
 0x618   : > { %v4879_v8 = vand.u32 2147483648, %v12920_v60  ;;  %v4892_v7 = vand.u32 2147483647, %v12938_v10  ;;  %v4894_v26 = vand.u32 2147483648, %v12938_v10 }
 0x619   : > { %v5207_v44 = vunpack.c.l.b16 %v5167_v47  ;;  %v9620_v16 = vpop.eup %9619  ;;  %v8843_v2 = vmul.f32 -1.442695, %v12950_v48  ;;  %v4872_v19 = vadd.f32 %v12936_v42, %v4871_v33  ;;  %v5210_v47 = vpack.c.b16 %v5205_v37, %v5204_v61 }
 0x61a   : > { %v9622_v27 = vpop.eup %9621  ;;  %v12960_v13 = vadd.f32 1.0, %v9620_v16  ;;  %v5200_v33 = vunpack.c.l.b16 %v5160_v23  ;;  %v5209_v16 = vpack.c.b16 %v5203_v52, %v5202_v18  ;;  %v4880_v37 = vor.u32 1.1754944e-38, %v4879_v8 }
 0x61b   : > { %v5211_v31 = vpack.c.b16 %v5207_v44, %v5206_v6  ;;  %5139 = vmatmul.bf16.gmra.mxu2 %v5002_v17  ;;  %v4884_v63 = vmul.f32 %v9622_v27, %v12938_v10  ;;  %9623 = vpow2.f32 %v8843_v2  ;;  %vm4889_vm6 = vweird.f32 %v9622_v27 }
 0x61c   : > { %9625 = vrcp.f32 %v12960_v13  ;;  %v5201_v17 = vunpack.c.l.b16 %v5161_v21  ;;  %v4876_v60 = vsel %vm12975_vm5, %v12936_v42, %v4872_v19  ;;  %vm4890_vm9 = vmor %vm4888_vm7, %vm4889_vm6  ;;  %vm4893_vm10 = vcmp.eq.f32.partialorder %v4892_v7, 8.507059e+37 }
 0x61d   : > { %5220 = vmatpush.bf16.msra.mxu0 %v5211_v31  ;;  %v4885_v29 = vsub.f32 1.0, %v4884_v63  ;;  %v4895_v63 = vor.u32 1.1754944e-38, %v4894_v26  ;;  %v4881_v23 = vsel %vm4878_vm8, %v4880_v37, %v4876_v60  ;;  %v15544_v26 = vld [vmem:[#allocation57_spill] sm:$0xff]  ;;  %vm4903_vm12 = vweird.f32 %v12960_v13 }
 0x61e   : > { %v12968_v51 = vpop.f32.mrf.mxu2  ;;  %v4313_v39 = vpop.f32.mrf.mxu1  ;;  %v5208_v18 = vpack.c.b16 %v5201_v17, %v5200_v33  ;;  %v4984_v8 = vmul.f32 %v4881_v23, %v12908_v30  ;;  %v4909_v30 = vand.u32 2147483648, %v12960_v13 }
 0x61f   : > { %v4886_v44 = vmul.f32 %v9622_v27, %v4885_v29  ;;  %v12980_v24 = vadd.f32 %v4313_v39, %v15543_v9 }
 0x621   : > { %5221 = vmatpush.bf16.msra.mxu0 %v5210_v47  ;;  %v9624_v12 = vpop.eup %9623  ;;  %v4887_v31 = vadd.f32 %v9622_v27, %v4886_v44  ;;  %v8844_v2 = vmul.f32 -1.442695, %v12980_v24 }
 0x622   : > { %v9626_v61 = vpop.eup %9625  ;;  %v4475_v29 = vadd.f32 1.0, %v9624_v12 }
 0x623   : > { %v4891_v21 = vsel %vm4890_vm9, %v9622_v27, %v4887_v31  ;;  %v4899_v47 = vmul.f32 %v9626_v61, %v12960_v13  ;;  %9627 = vpow2.f32 %v8844_v2  ;;  %vm4904_vm11 = vweird.f32 %v9626_v61 }
 0x624   : > { %v4896_v42 = vsel %vm4893_vm10, %v4895_v63, %v4891_v21  ;;  %9629 = vrcp.f32 %v4475_v29  ;;  %vm4905_vm13 = vmor %vm4903_vm12, %vm4904_vm11  ;;  %v4924_v37 = vand.u32 2147483648, %v4475_v29  ;;  %v4910_v63 = vor.u32 1.1754944e-38, %v4909_v30 }
 0x625   : > { %5222 = vmatpush.bf16.msra.mxu0 %v5209_v16  ;;  %v4985_v10 = vmul.f32 %v4896_v42, %v12917_v5  ;;  %v4900_v19 = vsub.f32 1.0, %v4899_v47  ;;  %v4907_v16 = vand.u32 2147483647, %v12960_v13  ;;  %vm4918_vm0 = vweird.f32 %v4475_v29 }
 0x626   : > { %v12988_v52 = vpop.f32.mrf.mxu2  ;;  %v4315_v43 = vpop.f32.mrf.mxu1 }
 0x627   : > { %v4901_v7 = vmul.f32 %v9626_v61, %v4900_v19  ;;  %v12993_v39 = vadd.f32 %v4315_v43, %v15544_v26  ;;  %v5003_v27 = vpack.c.bf16 %v4985_v10, %v4984_v8  ;;  %vm4908_vm15 = vcmp.eq.f32.partialorder %v4907_v16, 8.507059e+37 }
 0x628   : > { %v4925_v10 = vor.u32 1.1754944e-38, %v4924_v37 }
 0x629   : > { %5223 = vmatpush.bf16.msra.mxu0 %v5208_v18  ;;  %v9628_v6 = vpop.eup %9627  ;;  %v8845_v44 = vmul.f32 -1.442695, %v12993_v39  ;;  %v4902_v5 = vadd.f32 %v9626_v61, %v4901_v7 }
 0x62a   : > { %v9630_v9 = vpop.eup %9629  ;;  %v4476_v60 = vadd.f32 1.0, %v9628_v6 }
 0x62b   : > { %5144 = vmatmul.bf16.gmra.mxu2 %v5003_v27  ;;  %v4914_v33 = vmul.f32 %v9630_v9, %v4475_v29  ;;  %9631 = vpow2.f32 %v8845_v44  ;;  %v4906_v31 = vsel %vm4905_vm13, %v9626_v61, %v4902_v5  ;;  %vm4919_vm14 = vweird.f32 %v9630_v9 }
 0x62c   : > { %8894 = vmatmul.msk.bf16.vlgmr.msra.gmra.mxu0 %vm1850_vm2, %v10702_v41  ;;  %9633 = vrcp.f32 %v4476_v60  ;;  %v4922_v41 = vand.u32 2147483647, %v4475_v29  ;;  %v4911_v42 = vsel %vm4908_vm15, %v4910_v63, %v4906_v31  ;;  %vm4920_vm3 = vmor %vm4918_vm0, %vm4919_vm14  ;;  %v4939_v5 = vand.u32 2147483648, %v4476_v60 }
 0x62d   : > { %v4915_v12 = vsub.f32 1.0, %v4914_v33  ;;  %v4986_v61 = vmul.f32 %v4911_v42, %v12933_v49  ;;  %vm4933_vm5 = vweird.f32 %v4476_v60  ;;  %v4937_v30 = vand.u32 2147483647, %v4476_v60 }
 0x62e   : > { %v12999_v17 = vpop.f32.mrf.mxu2  ;;  %vm4923_vm4 = vcmp.eq.f32.partialorder %v4922_v41, 8.507059e+37  ;;  %v4940_v31 = vor.u32 1.1754944e-38, %v4939_v5 }
 0x62f   : > { %v4916_v2 = vmul.f32 %v9630_v9, %v4915_v12  ;;  %vm4938_vm8 = vcmp.eq.f32.partialorder %v4937_v30, 8.507059e+37 }
 0x631   : > { %v9632_v23 = vpop.eup %9631  ;;  %v4917_v21 = vadd.f32 %v9630_v9, %v4916_v2 }
 0x632   : > { %v9634_v47 = vpop.eup %9633  ;;  %v4477_v19 = vadd.f32 1.0, %v9632_v23 }
 0x633   : > { %v4921_v18 = vsel %vm4920_vm3, %v9630_v9, %v4917_v21  ;;  %v4929_v13 = vmul.f32 %v9634_v47, %v4476_v60  ;;  %vm4934_vm1 = vweird.f32 %v9634_v47 }
 0x634   : > { %v4926_v8 = vsel %vm4923_vm4, %v4925_v10, %v4921_v18  ;;  %9635 = vrcp.f32 %v4477_v19  ;;  %vm4935_vm6 = vmor %vm4933_vm5, %vm4934_vm1  ;;  %v4954_v49 = vand.u32 2147483648, %v4477_v19  ;;  %v4952_v37 = vand.u32 2147483647, %v4477_v19 }
 0x635   : > { %v4987_v7 = vmul.f32 %v4926_v8, %v12950_v48  ;;  %v4930_v26 = vsub.f32 1.0, %v4929_v13  ;;  %vm4948_vm9 = vweird.f32 %v4477_v19 }
 0x636   : > { %v5107_v43 = vpop.f32.mrf.mxu2  ;;  %vm4953_vm11 = vcmp.eq.f32.partialorder %v4952_v37, 8.507059e+37 }
 0x637   : > { %v4931_v27 = vmul.f32 %v9634_v47, %v4930_v26  ;;  %v5004_v6 = vpack.c.bf16 %v4987_v7, %v4986_v61 }
 0x639   : > { %v4932_v29 = vadd.f32 %v9634_v47, %v4931_v27  ;;  %v5171_v27 = vpack.c.bf16 %v5107_v43, %v5107_v43 }
 0x63a   : > { %v9636_v44 = vpop.eup %9635 }
 0x63b   : > { %5149 = vmatmul.bf16.gmra.mxu2 %v5004_v6  ;;  %v4944_v9 = vmul.f32 %v9636_v44, %v4477_v19  ;;  %v4936_v12 = vsel %vm4935_vm6, %v9634_v47, %v4932_v29  ;;  %vm4949_vm7 = vweird.f32 %v9636_v44  ;;  %v5169_v29 = vpack.c.bf16 %v12988_v52, %v12988_v52 }
 0x63c   : > { %8895 = vmatmul.msk.bf16.gmra.mxu0 %vm1850_vm2, %v11013_v4  ;;  %v4941_v41 = vsel %vm4938_vm8, %v4940_v31, %v4936_v12  ;;  %vm4950_vm10 = vmor %vm4948_vm9, %vm4949_vm7  ;;  %v4955_v4 = vor.u32 1.1754944e-38, %v4954_v49 }
 0x63d   : > { %v4945_v16 = vsub.f32 1.0, %v4944_v9  ;;  %v4988_v60 = vmul.f32 %v4941_v41, %v12980_v24  ;;  %v5170_v24 = vpack.c.bf16 %v12999_v17, %v12999_v17  ;;  %v5256_v9 = vunpack.c.l.b16 %v5171_v27 }
 0x63e   : > { %v5110_v33 = vpop.f32.mrf.mxu2  ;;  %v5254_v30 = vunpack.c.l.b16 %v5169_v29 }
 0x63f   : > { %v4946_v48 = vmul.f32 %v9636_v44, %v4945_v16  ;;  %v5172_v61 = vpack.c.bf16 %v5110_v33, %v5110_v33  ;;  %v5168_v33 = vpack.c.bf16 %v12968_v51, %v12968_v51  ;;  %v5255_v43 = vunpack.c.l.b16 %v5170_v24 }
 0x641   : > { %v4947_v2 = vadd.f32 %v9636_v44, %v4946_v48  ;;  %v5262_v16 = vpack.c.b16 %v5256_v9, %v5255_v43  ;;  %v5253_v49 = vunpack.c.l.b16 %v5168_v33 }
 0x643   : > { %v4951_v63 = vsel %vm4950_vm10, %v9636_v44, %v4947_v2  ;;  %v5261_v12 = vpack.c.b16 %v5254_v30, %v5253_v49 }
 0x644   : > { %v4956_v23 = vsel %vm4953_vm11, %v4955_v4, %v4951_v63 }
 0x645   : > { %v4989_v42 = vmul.f32 %v4956_v23, %v12993_v39  ;;  %v5257_v39 = vunpack.c.l.b16 %v5172_v61 }
 0x646   : > { %v5112_v21 = vpop.f32.mrf.mxu2 }
 0x647   : > { %v5005_v10 = vpack.c.bf16 %v4989_v42, %v4988_v60  ;;  %v5173_v19 = vpack.c.bf16 %v5112_v21, %v5112_v21 }
 0x649   : > { %v5258_v6 = vunpack.c.l.b16 %v5173_v19 }
 0x64b   : > { %5154 = vmatmul.bf16.gmra.mxu2 %v5005_v10  ;;  %v5263_v5 = vpack.c.b16 %v5258_v6, %v5257_v39 }
 0x64c   : > { %8896 = vmatmul.msk.bf16.gmra.mxu0 %vm1850_vm2, %v11029_v58 }
 0x64e   : > { %v5115_v47 = vpop.f32.mrf.mxu2 }
 0x64f   : > { %v5174_v18 = vpack.c.bf16 %v5115_v47, %v5115_v47 }
 0x651   : > { %v5259_v7 = vunpack.c.l.b16 %v5174_v18 }
 0x656   : > { %v5117_v13 = vpop.f32.mrf.mxu2 }
 0x657   : > { %v5175_v8 = vpack.c.bf16 %v5117_v13, %v5117_v13 }
 0x659   : > { %v5260_v26 = vunpack.c.l.b16 %v5175_v8 }
 0x65b   : > { %v5264_v44 = vpack.c.b16 %v5260_v26, %v5259_v7 }
 0x65c   : > { %8897 = vmatmul.msk.bf16.gmra.mxu0 %vm1850_vm2, %v10992_v62 }
 0x65d   : > { %5273 = vmatpush.bf16.msra.mxu1 %v5264_v44 }
 0x65e   : > { %v5120_v58 = vpop.f32.mrf.mxu2 }
 0x65f   : > { %v5176_v19 = vpack.c.bf16 %v5120_v58, %v5120_v58 }
 0x661   : > { %5274 = vmatpush.bf16.msra.mxu1 %v5263_v5  ;;  %v5306_v26 = vunpack.c.l.b16 %v5176_v19 }
 0x665   : > { %5275 = vmatpush.bf16.msra.mxu1 %v5262_v16 }
 0x666   : > { %v5122_v62 = vpop.f32.mrf.mxu2 }
 0x667   : > { %v5177_v47 = vpack.c.bf16 %v5122_v62, %v5122_v62 }
 0x669   : > { %5276 = vmatpush.bf16.msra.mxu1 %v5261_v12  ;;  %v5307_v61 = vunpack.c.l.b16 %v5177_v47 }
 0x66b   : > { %v5314_v27 = vpack.c.b16 %v5307_v61, %v5306_v26 }
 0x66c   : > { %8898 = vmatmul.msk.bf16.vlgmr.msra.gmra.mxu1 %vm1850_vm2, %v10748_v15 }
 0x66e   : > { %v5125_v17 = vpop.f32.mrf.mxu2 }
 0x676   : > { %v5127_v48 = vpop.f32.mrf.mxu2 }
 0x677   : > { %v5179_v60 = vpack.c.bf16 %v5127_v48, %v5127_v48 }
 0x679   : > { %v5309_v18 = vunpack.c.l.b16 %v5179_v60 }
 0x67c   : > { %8899 = vmatmul.msk.bf16.gmra.mxu1 %vm1850_vm2, %v10922_v35  ;;  %v5178_v35 = vpack.c.bf16 %v5125_v17, %v5125_v17 }
 0x67e   : > { %v5130_v52 = vpop.f32.mrf.mxu2  ;;  %v5308_v8 = vunpack.c.l.b16 %v5178_v35 }
 0x67f   : > { %v5180_v63 = vpack.c.bf16 %v5130_v52, %v5130_v52 }
 0x680   : > { %v5315_v7 = vpack.c.b16 %v5309_v18, %v5308_v8 }
 0x681   : > { %v5310_v10 = vunpack.c.l.b16 %v5180_v63 }
 0x686   : > { %v5132_v37 = vpop.f32.mrf.mxu2 }
 0x687   : > { %v5181_v41 = vpack.c.bf16 %v5132_v37, %v5132_v37 }
 0x689   : > { %v5311_v15 = vunpack.c.l.b16 %v5181_v41 }
 0x68c   : > { %8900 = vmatmul.msk.bf16.gmra.mxu1 %vm1850_vm2, %v10940_v54  ;;  %v5316_v54 = vpack.c.b16 %v5311_v15, %v5310_v10 }
 0x68e   : > { %v5135_v51 = vpop.f32.mrf.mxu2 }
 0x68f   : > { %v5182_v31 = vpack.c.bf16 %v5135_v51, %v5135_v51 }
 0x691   : > { %v5312_v23 = vunpack.c.l.b16 %v5182_v31 }
 0x696   : > { %v5137_v2 = vpop.f32.mrf.mxu2 }
 0x697   : > { %v5183_v4 = vpack.c.bf16 %v5137_v2, %v5137_v2 }
 0x699   : > { %v5313_v21 = vunpack.c.l.b16 %v5183_v4 }
 0x69b   : > { %v5317_v42 = vpack.c.b16 %v5313_v21, %v5312_v23 }
 0x69c   : > { %8901 = vmatmul.msk.bf16.gmra.mxu1 %vm1850_vm2, %v15405_v55 }
 0x69d   : > { %5326 = vmatpush.bf16.msrb.mxu0 %v5317_v42 }
 0x69e   : > { %v13027_v13 = vpop.f32.mrf.mxu2 }
 0x6a1   : > { %5327 = vmatpush.bf16.msrb.mxu0 %v5316_v54 }
 0x6a5   : > { %5328 = vmatpush.bf16.msrb.mxu0 %v5315_v7 }
 0x6a6   : > { %v13029_v6 = vpop.f32.mrf.mxu2 }
 0x6a9   : > { %v5225_v44 = vpop.f32.mrf.mxu0  ;;  %5329 = vmatpush.bf16.msrb.mxu0 %v5314_v27 }
 0x6aa   : > { %v5404_v55 = vadd.f32 %v5225_v44, %v12022_v22 }
 0x6ac   : > { %v8910_v24 = vmul.f32 -1.442695, %v5404_v55  ;;  %8902 = vmatmul.msk.bf16.vlgmr.msrb.gmra.mxu0 %vm1850_vm2, %v15406_v1 }
 0x6ae   : > { %9637 = vpow2.f32 %v8910_v24  ;;  %v13034_v39 = vpop.f32.mrf.mxu2 }
 0x6b1   : > { %v5227_v58 = vpop.f32.mrf.mxu0 }
 0x6b2   : > { %v13037_v29 = vadd.f32 %v5227_v58, %v12039_v53 }
 0x6b4   : > { %v9638_v9 = vpop.eup %9637  ;;  %v8911_v5 = vmul.f32 -1.442695, %v13037_v29 }
 0x6b5   : > { %v5532_v33 = vadd.f32 1.0, %v9638_v9 }
 0x6b6   : > { %9639 = vpow2.f32 %v8911_v5  ;;  %v13040_v43 = vpop.f32.mrf.mxu2 }
 0x6b7   : > { %9641 = vrcp.f32 %v5532_v33  ;;  %v5575_v48 = vand.u32 2147483648, %v5532_v33  ;;  %vm5569_vm13 = vweird.f32 %v5532_v33 }
 0x6b9   : > { %v5230_v22 = vpop.f32.mrf.mxu0  ;;  %v5576_v4 = vor.u32 1.1754944e-38, %v5575_v48 }
 0x6ba   : > { %v13043_v30 = vadd.f32 %v5230_v22, %v12063_v45  ;;  %v5573_v45 = vand.u32 2147483647, %v5532_v33 }
 0x6bc   : > { %v9640_v1 = vpop.eup %9639  ;;  %v8912_v16 = vmul.f32 -1.442695, %v13043_v30  ;;  %8903 = vmatmul.msk.bf16.gmra.mxu0 %vm1850_vm2, %v15409_v40  ;;  %vm5574_vm15 = vcmp.eq.f32.partialorder %v5573_v45, 8.507059e+37 }
 0x6bd   : > { %v9642_v53 = vpop.eup %9641  ;;  %v5533_v49 = vadd.f32 1.0, %v9640_v1 }
 0x6be   : > { %v5565_v62 = vmul.f32 %v9642_v53, %v5532_v33  ;;  %9643 = vpow2.f32 %v8912_v16  ;;  %v13048_v12 = vpop.f32.mrf.mxu2  ;;  %vm5570_vm12 = vweird.f32 %v9642_v53 }
 0x6bf   : > { %9645 = vrcp.f32 %v5533_v49  ;;  %vm5571_vm14 = vmor %vm5569_vm13, %vm5570_vm12  ;;  %v5590_v35 = vand.u32 2147483648, %v5533_v49  ;;  %v5588_v18 = vand.u32 2147483647, %v5533_v49  ;;  %vm5584_vm3 = vweird.f32 %v5533_v49 }
 0x6c0   : > { %v5566_v17 = vsub.f32 1.0, %v5565_v62 }
 0x6c1   : > { %v5232_v52 = vpop.f32.mrf.mxu0  ;;  %v5591_v26 = vor.u32 1.1754944e-38, %v5590_v35  ;;  %vm5589_vm1 = vcmp.eq.f32.partialorder %v5588_v18, 8.507059e+37 }
 0x6c2   : > { %v5567_v37 = vmul.f32 %v9642_v53, %v5566_v17  ;;  %v13051_v51 = vadd.f32 %v5232_v52, %v12083_v38 }
 0x6c4   : > { %v9644_v31 = vpop.eup %9643  ;;  %v5568_v2 = vadd.f32 %v9642_v53, %v5567_v37  ;;  %v8913_v40 = vmul.f32 -1.442695, %v13051_v51 }
 0x6c5   : > { %v9646_v41 = vpop.eup %9645  ;;  %v5534_v63 = vadd.f32 1.0, %v9644_v31 }
 0x6c6   : > { %v5572_v23 = vsel %vm5571_vm14, %v9642_v53, %v5568_v2  ;;  %v5580_v21 = vmul.f32 %v9646_v41, %v5533_v49  ;;  %9647 = vpow2.f32 %v8913_v40  ;;  %v13054_v15 = vpop.f32.mrf.mxu2  ;;  %vm5585_vm0 = vweird.f32 %v9646_v41 }
 0x6c7   : > { %v5577_v60 = vsel %vm5574_vm15, %v5576_v4, %v5572_v23  ;;  %9649 = vrcp.f32 %v5534_v63  ;;  %vm5586_vm4 = vmor %vm5584_vm3, %vm5585_vm0  ;;  %v5605_v5 = vand.u32 2147483648, %v5534_v63  ;;  %v5603_v22 = vand.u32 2147483647, %v5534_v63 }
 0x6c8   : > { %v13056_v42 = vmul.f32 %v5577_v60, %v5404_v55  ;;  %v5581_v38 = vsub.f32 1.0, %v5580_v21  ;;  %vm5599_vm6 = vweird.f32 %v5534_v63  ;;  %v5189_v45 = vpack.c.bf16 %v13054_v15, %v13054_v15 }
 0x6c9   : > { %v5235_v10 = vpop.f32.mrf.mxu0  ;;  %vm5604_vm8 = vcmp.eq.f32.partialorder %v5603_v22, 8.507059e+37  ;;  %v5188_v4 = vpack.c.bf16 %v13048_v12, %v13048_v12 }
 0x6ca   : > { %v5582_v47 = vmul.f32 %v9646_v41, %v5581_v38  ;;  %v13059_v54 = vadd.f32 %v5235_v10, %v12107_v28  ;;  %6108 = vrot.lane.b32.xlu2 %v13056_v42, %s10242_s27  ;;  %v5364_v10 = vunpack.c.l.b16 %v5189_v45 }
 0x6cc   : > { %v9648_v19 = vpop.eup %9647  ;;  %v5583_v8 = vadd.f32 %v9646_v41, %v5582_v47  ;;  %v8914_v61 = vmul.f32 -1.442695, %v13059_v54  ;;  %8904 = vmatmul.msk.bf16.gmra.mxu0 %vm1850_vm2, %v15412_v14 }
 0x6cd   : > { %v9650_v7 = vpop.eup %9649  ;;  %v13066_v27 = vadd.f32 1.0, %v9648_v19 }
 0x6ce   : > { %v5587_v44 = vsel %vm5586_vm4, %v9646_v41, %v5583_v8  ;;  %v5595_v28 = vmul.f32 %v9650_v7, %v5534_v63  ;;  %9651 = vpow2.f32 %v8914_v61  ;;  %v5155_v24 = vpop.f32.mrf.mxu2  ;;  %vm5600_vm5 = vweird.f32 %v9650_v7 }
 0x6cf   : > { %v5592_v55 = vsel %vm5589_vm1, %v5591_v26, %v5587_v44  ;;  %9653 = vrcp.f32 %v13066_v27  ;;  %vm5601_vm7 = vmor %vm5599_vm6, %vm5600_vm5  ;;  %v5190_v48 = vpack.c.bf16 %v5155_v24, %v5155_v24  ;;  %v5618_v63 = vand.u32 2147483647, %v13066_v27 }
 0x6d0   : > { %v13070_v58 = vmul.f32 %v5592_v55, %v13037_v29  ;;  %v5596_v9 = vsub.f32 1.0, %v5595_v28  ;;  %v5606_v29 = vor.u32 1.1754944e-38, %v5605_v5  ;;  %v5620_v23 = vand.u32 2147483648, %v13066_v27 }
 0x6d1   : > { %v5237_v33 = vpop.f32.mrf.mxu0  ;;  %v5365_v21 = vunpack.c.l.b16 %v5190_v48  ;;  %vm5614_vm10 = vweird.f32 %v13066_v27  ;;  %v5363_v61 = vunpack.c.l.b16 %v5188_v4  ;;  %vm5619_vm12 = vcmp.eq.f32.partialorder %v5618_v63, 8.507059e+37 }
 0x6d2   : > { %v5597_v14 = vmul.f32 %v9650_v7, %v5596_v9  ;;  %v13073_v1 = vadd.f32 %v5237_v33, %v12127_v11  ;;  %6110 = vrot.lane.b32.xlu0 %v13070_v58, %s10242_s27  ;;  %v5185_v44 = vpack.c.bf16 %v13029_v6, %v13029_v6  ;;  %v5184_v9 = vpack.c.bf16 %v13027_v13, %v13027_v13 }
 0x6d3   : > { %v5369_v55 = vpack.c.b16 %v5364_v10, %v5363_v61 }
 0x6d4   : > { %v9652_v16 = vpop.eup %9651  ;;  %v5598_v53 = vadd.f32 %v9650_v7, %v5597_v14  ;;  %v8915_v49 = vmul.f32 -1.442695, %v13073_v1 }
 0x6d5   : > { %v9654_v62 = vpop.eup %9653  ;;  %v13078_v17 = vadd.f32 1.0, %v9652_v16  ;;  %v15545_v16 = vld [vmem:[#allocation5_spill] sm:$0xff] }
 0x6d6   : > { %v5602_v52 = vsel %vm5601_vm7, %v9650_v7, %v5598_v53  ;;  %v5610_v37 = vmul.f32 %v9654_v62, %v13066_v27  ;;  %9655 = vpow2.f32 %v8915_v49  ;;  %v5157_v31 = vpop.f32.mrf.mxu2  ;;  %vm5615_vm9 = vweird.f32 %v9654_v62 }
 0x6d7   : > { %v5607_v11 = vsel %vm5604_vm8, %v5606_v29, %v5602_v52  ;;  %9657 = vrcp.f32 %v13078_v17  ;;  %v5191_v41 = vpack.c.bf16 %v5157_v31, %v5157_v31  ;;  %vm5616_vm11 = vmor %vm5614_vm10, %vm5615_vm9  ;;  %v5621_v7 = vor.u32 1.1754944e-38, %v5620_v23 }
 0x6d8   : > { %v13085_v2 = vmul.f32 %v5607_v11, %v13043_v30  ;;  %v5611_v40 = vsub.f32 1.0, %v5610_v37  ;;  %v5187_v30 = vpack.c.bf16 %v13040_v43, %v13040_v43  ;;  %v5635_v33 = vand.u32 2147483648, %v13078_v17 }
 0x6d9   : > { %v5240_v60 = vpop.f32.mrf.mxu0  ;;  %v5366_v15 = vunpack.c.l.b16 %v5191_v41  ;;  %v5633_v6 = vand.u32 2147483647, %v13078_v17  ;;  %vm5629_vm14 = vweird.f32 %v13078_v17  ;;  %v5359_v52 = vunpack.c.l.b16 %v5184_v9 }
 0x6da   : > { %v5612_v38 = vmul.f32 %v9654_v62, %v5611_v40  ;;  %v13092_v35 = vadd.f32 %v5240_v60, %v12151_v46  ;;  %6112 = vrot.lane.b32.xlu1 %v13085_v2, %s10242_s27  ;;  %v5186_v46 = vpack.c.bf16 %v13034_v39, %v13034_v39  ;;  %v5362_v28 = vunpack.c.l.b16 %v5187_v30 }
 0x6db   : > { %v5370_v18 = vpack.c.b16 %v5366_v15, %v5365_v21  ;;  %v5636_v37 = vor.u32 1.1754944e-38, %v5635_v33  ;;  %vm5634_vm0 = vcmp.eq.f32.partialorder %v5633_v6, 8.507059e+37 }
 0x6dc   : > { %v9656_v12 = vpop.eup %9655  ;;  %v5613_v47 = vadd.f32 %v9654_v62, %v5612_v38  ;;  %v8916_v19 = vmul.f32 -1.442695, %v13092_v35  ;;  %8905 = vmatmul.msk.bf16.gmra.mxu0 %vm1850_vm2, %v15415_v0  ;;  %v5361_v5 = vunpack.c.l.b16 %v5186_v46  ;;  %v15546_v38 = vld [vmem:[#allocation52_spill] sm:$0xff] }
 0x6dd   : > { %v9658_v8 = vpop.eup %9657  ;;  %v13105_v43 = vadd.f32 1.0, %v9656_v12  ;;  %5379 = vmatpush.bf16.msrb.mxu1 %v5370_v18 }
 0x6de   : > { %v5617_v26 = vsel %vm5616_vm11, %v9654_v62, %v5613_v47  ;;  %v5625_v27 = vmul.f32 %v9658_v8, %v13078_v17  ;;  %9659 = vpow2.f32 %v8916_v19  ;;  %vm5630_vm13 = vweird.f32 %v9658_v8 }
 0x6df   : > { %v5622_v0 = vsel %vm5619_vm12, %v5621_v7, %v5617_v26  ;;  %9661 = vrcp.f32 %v13105_v43  ;;  %v5368_v62 = vpack.c.b16 %v5362_v28, %v5361_v5  ;;  %vm5631_vm15 = vmor %vm5629_vm14, %vm5630_vm13  ;;  %v5650_v63 = vand.u32 2147483648, %v13105_v43 }
 0x6e0   : > { %v13112_v39 = vmul.f32 %v5622_v0, %v13051_v51  ;;  %v5626_v24 = vsub.f32 1.0, %v5625_v27  ;;  %v5360_v51 = vunpack.c.l.b16 %v5185_v44  ;;  %v5648_v60 = vand.u32 2147483647, %v13105_v43  ;;  %v15547_v0 = vld [vmem:[#allocation23_spill] sm:$0xff] }
 0x6e1   : > { %v5242_v14 = vpop.f32.mrf.mxu0  ;;  %5380 = vmatpush.bf16.msrb.mxu1 %v5369_v55  ;;  %vm5644_vm4 = vweird.f32 %v13105_v43  ;;  %v5651_v47 = vor.u32 1.1754944e-38, %v5650_v63 }
 0x6e2   : > { %v5627_v22 = vmul.f32 %v9658_v8, %v5626_v24  ;;  %v13119_v53 = vadd.f32 %v5242_v14, %v15545_v16  ;;  %6114 = vrot.lane.b32.xlu2 %v13112_v39, %s10242_s27  ;;  %v5367_v41 = vpack.c.b16 %v5360_v51, %v5359_v52  ;;  %vm5649_vm5 = vcmp.eq.f32.partialorder %v5648_v60, 8.507059e+37 }
 0x6e4   : > { %v9660_v49 = vpop.eup %9659  ;;  %v5628_v29 = vadd.f32 %v9658_v8, %v5627_v22  ;;  %v8917_v13 = vmul.f32 -1.442695, %v13119_v53 }
 0x6e5   : > { %v9662_v48 = vpop.eup %9661  ;;  %v5538_v11 = vadd.f32 1.0, %v9660_v49  ;;  %5381 = vmatpush.bf16.msrb.mxu1 %v5368_v62 }
 0x6e6   : > { %v5632_v45 = vsel %vm5631_vm15, %v9658_v8, %v5628_v29  ;;  %v5640_v31 = vmul.f32 %v9662_v48, %v13105_v43  ;;  %9663 = vpow2.f32 %v8917_v13  ;;  %vm5645_vm3 = vweird.f32 %v9662_v48  ;;  %v15548_v13 = vld [vmem:[#allocation6_spill] sm:$0xff] }
 0x6e7   : > { %v5637_v40 = vsel %vm5634_vm0, %v5636_v37, %v5632_v45  ;;  %9665 = vrcp.f32 %v5538_v11  ;;  %vm5646_vm1 = vmor %vm5644_vm4, %vm5645_vm3  ;;  %v5665_v43 = vand.u32 2147483648, %v5538_v11  ;;  %v5663_v44 = vand.u32 2147483647, %v5538_v11 }
 0x6e8   : > { %v13127_v4 = vmul.f32 %v5637_v40, %v13059_v54  ;;  %v5641_v17 = vsub.f32 1.0, %v5640_v31  ;;  %vm5659_vm7 = vweird.f32 %v5538_v11 }
 0x6e9   : > { %v5278_v23 = vpop.f32.mrf.mxu1  ;;  %5382 = vmatpush.bf16.msrb.mxu1 %v5367_v41  ;;  %vm5664_vm9 = vcmp.eq.f32.partialorder %v5663_v44, 8.507059e+37 }
 0x6ea   : > { %v5642_v21 = vmul.f32 %v9662_v48, %v5641_v17  ;;  %v13132_v15 = vadd.f32 %v5278_v23, %v15546_v38  ;;  %6116 = vrot.lane.b32.xlu0 %v13127_v4, %s10242_s27 }
 0x6ec   : > { %v9664_v30 = vpop.eup %9663  ;;  %v5643_v10 = vadd.f32 %v9662_v48, %v5642_v21  ;;  %v8918_v54 = vmul.f32 -1.442695, %v13132_v15  ;;  %8906 = vmatmul.msk.bf16.vlgmr.msrb.gmra.mxu1 %vm1850_vm2, %v15422_v59 }
 0x6ed   : > { %v9666_v12 = vpop.eup %9665  ;;  %v5539_v18 = vadd.f32 1.0, %v9664_v30 }
 0x6ee   : > { %v5647_v19 = vsel %vm5646_vm1, %v9662_v48, %v5643_v10  ;;  %v5655_v8 = vmul.f32 %v9666_v12, %v5538_v11  ;;  %9667 = vpow2.f32 %v8918_v54  ;;  %vm5660_vm6 = vweird.f32 %v9666_v12  ;;  %v15549_v10 = vld [vmem:[#allocation7_spill] sm:$0xff] }
 0x6ef   : > { %v5652_v46 = vsel %vm5649_vm5, %v5651_v47, %v5647_v19  ;;  %9669 = vrcp.f32 %v5539_v18  ;;  %vm5661_vm8 = vmor %vm5659_vm7, %vm5660_vm6  ;;  %v5680_v51 = vand.u32 2147483648, %v5539_v18  ;;  %v5678_v29 = vand.u32 2147483647, %v5539_v18 }
 0x6f0   : > { %v13141_v61 = vmul.f32 %v5652_v46, %v13073_v1  ;;  %v5656_v7 = vsub.f32 1.0, %v5655_v8  ;;  %v5666_v1 = vor.u32 1.1754944e-38, %v5665_v43  ;;  %vm5674_vm11 = vweird.f32 %v5539_v18 }
 0x6f1   : > { %v5280_v26 = vpop.f32.mrf.mxu1  ;;  %vm5679_vm13 = vcmp.eq.f32.partialorder %v5678_v29, 8.507059e+37 }
 0x6f2   : > { %v5657_v27 = vmul.f32 %v9666_v12, %v5656_v7  ;;  %v13144_v28 = vadd.f32 %v5280_v26, %v15547_v0  ;;  %6118 = vrot.lane.b32.xlu1 %v13141_v61, %s10242_s27 }
 0x6f4   : > { %v9668_v59 = vpop.eup %9667  ;;  %v5658_v55 = vadd.f32 %v9666_v12, %v5657_v27  ;;  %v8919_v24 = vmul.f32 -1.442695, %v13144_v28 }
 0x6f5   : > { %v9670_v9 = vpop.eup %9669  ;;  %v5540_v5 = vadd.f32 1.0, %v9668_v59 }
 0x6f6   : > { %v5662_v33 = vsel %vm5661_vm8, %v9666_v12, %v5658_v55  ;;  %v5670_v14 = vmul.f32 %v9670_v9, %v5539_v18  ;;  %9671 = vpow2.f32 %v8919_v24  ;;  %vm5675_vm10 = vweird.f32 %v9670_v9  ;;  %v15550_v55 = vld [vmem:[#allocation28_spill] sm:$0xff] }
 0x6f7   : > { %v5667_v22 = vsel %vm5664_vm9, %v5666_v1, %v5662_v33  ;;  %9673 = vrcp.f32 %v5540_v5  ;;  %vm5676_vm12 = vmor %vm5674_vm11, %vm5675_vm10  ;;  %v5695_v21 = vand.u32 2147483648, %v5540_v5  ;;  %v5693_v30 = vand.u32 2147483647, %v5540_v5 }
 0x6f8   : > { %v13150_v6 = vmul.f32 %v5667_v22, %v13092_v35  ;;  %v5671_v16 = vsub.f32 1.0, %v5670_v14  ;;  %v5681_v35 = vor.u32 1.1754944e-38, %v5680_v51  ;;  %vm5689_vm15 = vweird.f32 %v5540_v5 }
 0x6f9   : > { %v5283_v49 = vpop.f32.mrf.mxu1  ;;  %vm5694_vm3 = vcmp.eq.f32.partialorder %v5693_v30, 8.507059e+37 }
 0x6fa   : > { %v5672_v62 = vmul.f32 %v9670_v9, %v5671_v16  ;;  %v13153_v48 = vadd.f32 %v5283_v49, %v15548_v13  ;;  %6120 = vrot.lane.b32.xlu2 %v13150_v6, %s10242_s27 }
 0x6fc   : > { %v9672_v52 = vpop.eup %9671  ;;  %v5673_v37 = vadd.f32 %v9670_v9, %v5672_v62  ;;  %v8920_v11 = vmul.f32 -1.442695, %v13153_v48  ;;  %8907 = vmatmul.msk.bf16.gmra.mxu1 %vm1850_vm2, %v15427_v57 }
 0x6fd   : > { %v9674_v45 = vpop.eup %9673  ;;  %v5541_v31 = vadd.f32 1.0, %v9672_v52 }
 0x6fe   : > { %v5677_v40 = vsel %vm5676_vm12, %v9670_v9, %v5673_v37  ;;  %v5685_v41 = vmul.f32 %v9674_v45, %v5540_v5  ;;  %9675 = vpow2.f32 %v8920_v11  ;;  %vm5690_vm14 = vweird.f32 %v9674_v45  ;;  %v15551_v11 = vld [vmem:[#allocation8_spill] sm:$0xff] }
 0x6ff   : > { %v5682_v17 = vsel %vm5679_vm13, %v5681_v35, %v5677_v40  ;;  %9677 = vrcp.f32 %v5541_v31  ;;  %vm5691_vm0 = vmor %vm5689_vm15, %vm5690_vm14  ;;  %v5710_v27 = vand.u32 2147483648, %v5541_v31  ;;  %v5708_v59 = vand.u32 2147483647, %v5541_v31 }
 0x700   : > { %v13161_v63 = vmul.f32 %v5682_v17, %v13119_v53  ;;  %v5686_v23 = vsub.f32 1.0, %v5685_v41  ;;  %v5696_v53 = vor.u32 1.1754944e-38, %v5695_v21  ;;  %vm5704_vm1 = vweird.f32 %v5541_v31 }
 0x701   : > { %v5285_v60 = vpop.f32.mrf.mxu1  ;;  %vm5709_vm6 = vcmp.eq.f32.partialorder %v5708_v59, 8.507059e+37 }
 0x702   : > { %v5687_v38 = vmul.f32 %v9674_v45, %v5686_v23  ;;  %v13164_v54 = vadd.f32 %v5285_v60, %v15549_v10  ;;  %6122 = vrot.lane.b32.xlu0 %v13161_v63, %s10242_s27 }
 0x704   : > { %v9676_v57 = vpop.eup %9675  ;;  %v5688_v12 = vadd.f32 %v9674_v45, %v5687_v38  ;;  %v8921_v47 = vmul.f32 -1.442695, %v13164_v54 }
 0x705   : > { %v9678_v18 = vpop.eup %9677  ;;  %v5542_v19 = vadd.f32 1.0, %v9676_v57 }
 0x706   : > { %v5692_v8 = vsel %vm5691_vm0, %v9674_v45, %v5688_v12  ;;  %v5700_v46 = vmul.f32 %v9678_v18, %v5541_v31  ;;  %9679 = vpow2.f32 %v8921_v47  ;;  %vm5705_vm4 = vweird.f32 %v9678_v18  ;;  %v15552_v47 = vld [vmem:[#allocation10_spill] sm:$0xff] }
 0x707   : > { %v5697_v7 = vsel %vm5694_vm3, %v5696_v53, %v5692_v8  ;;  %9681 = vrcp.f32 %v5542_v19  ;;  %vm5706_vm5 = vmor %vm5704_vm1, %vm5705_vm4  ;;  %v5725_v29 = vand.u32 2147483648, %v5542_v19  ;;  %v5723_v37 = vand.u32 2147483647, %v5542_v19 }
 0x708   : > { %v13170_v43 = vmul.f32 %v5697_v7, %v13132_v15  ;;  %v5701_v26 = vsub.f32 1.0, %v5700_v46  ;;  %v5711_v15 = vor.u32 1.1754944e-38, %v5710_v27  ;;  %vm5719_vm8 = vweird.f32 %v5542_v19 }
 0x709   : > { %v5288_v44 = vpop.f32.mrf.mxu1  ;;  %vm5724_vm10 = vcmp.eq.f32.partialorder %v5723_v37, 8.507059e+37 }
 0x70a   : > { %v5702_v0 = vmul.f32 %v9678_v18, %v5701_v26  ;;  %v13173_v24 = vadd.f32 %v5288_v44, %v15550_v55  ;;  %6124 = vrot.lane.b32.xlu1 %v13170_v43, %s10242_s27 }
 0x70c   : > { %v9680_v9 = vpop.eup %9679  ;;  %v5703_v1 = vadd.f32 %v9678_v18, %v5702_v0  ;;  %v8922_v5 = vmul.f32 -1.442695, %v13173_v24  ;;  %8908 = vmatmul.msk.bf16.gmra.mxu1 %vm1850_vm2, %v15432_v56 }
 0x70d   : > { %v9682_v33 = vpop.eup %9681  ;;  %v5543_v14 = vadd.f32 1.0, %v9680_v9 }
 0x70e   : > { %v5707_v22 = vsel %vm5706_vm5, %v9678_v18, %v5703_v1  ;;  %v5715_v16 = vmul.f32 %v9682_v33, %v5542_v19  ;;  %9683 = vpow2.f32 %v8922_v5  ;;  %vm5720_vm7 = vweird.f32 %v9682_v33 }
 0x70f   : > { %v5712_v51 = vsel %vm5709_vm6, %v5711_v15, %v5707_v22  ;;  %9685 = vrcp.f32 %v5543_v14  ;;  %vm5721_vm9 = vmor %vm5719_vm8, %vm5720_vm7  ;;  %v5740_v30 = vand.u32 2147483648, %v5543_v14  ;;  %v5738_v12 = vand.u32 2147483647, %v5543_v14 }
 0x710   : > { %v13181_v49 = vmul.f32 %v5712_v51, %v13144_v28  ;;  %v5716_v62 = vsub.f32 1.0, %v5715_v16  ;;  %v5726_v28 = vor.u32 1.1754944e-38, %v5725_v29  ;;  %vm5734_vm12 = vweird.f32 %v5543_v14 }
 0x711   : > { %v5290_v13 = vpop.f32.mrf.mxu1  ;;  %vm5739_vm14 = vcmp.eq.f32.partialorder %v5738_v12, 8.507059e+37 }
 0x712   : > { %v5717_v52 = vmul.f32 %v9682_v33, %v5716_v62  ;;  %v13184_v45 = vadd.f32 %v5290_v13, %v15551_v11  ;;  %6126 = vrot.lane.b32.xlu2 %v13181_v49, %s10242_s27 }
 0x714   : > { %v9684_v56 = vpop.eup %9683  ;;  %v5718_v35 = vadd.f32 %v9682_v33, %v5717_v52  ;;  %v8923_v31 = vmul.f32 -1.442695, %v13184_v45 }
 0x715   : > { %v9686_v40 = vpop.eup %9685  ;;  %v5544_v41 = vadd.f32 1.0, %v9684_v56 }
 0x716   : > { %v5722_v17 = vsel %vm5721_vm9, %v9682_v33, %v5718_v35  ;;  %v5730_v23 = vmul.f32 %v9686_v40, %v5543_v14  ;;  %9687 = vpow2.f32 %v8923_v31  ;;  %vm5735_vm11 = vweird.f32 %v9686_v40  ;;  %v15553_v33 = vld [vmem:[#allocation32_spill] sm:$0xff] }
 0x717   : > { %v5727_v21 = vsel %vm5724_vm10, %v5726_v28, %v5722_v17  ;;  %9689 = vrcp.f32 %v5544_v41  ;;  %vm5736_vm13 = vmor %vm5734_vm12, %vm5735_vm11  ;;  %v5755_v55 = vand.u32 2147483648, %v5544_v41  ;;  %v5753_v5 = vand.u32 2147483647, %v5544_v41 }
 0x718   : > { %v13190_v60 = vmul.f32 %v5727_v21, %v13153_v48  ;;  %v5731_v38 = vsub.f32 1.0, %v5730_v23  ;;  %v5741_v48 = vor.u32 1.1754944e-38, %v5740_v30 }
 0x719   : > { %v5293_v10 = vpop.f32.mrf.mxu1  ;;  %v5756_v51 = vor.u32 1.1754944e-38, %v5755_v55  ;;  %vm5754_vm3 = vcmp.eq.f32.partialorder %v5753_v5, 8.507059e+37 }
 0x71a   : > { %v5732_v57 = vmul.f32 %v9686_v40, %v5731_v38  ;;  %v13193_v18 = vadd.f32 %v5293_v10, %v15552_v47  ;;  %6128 = vrot.lane.b32.xlu0 %v13190_v60, %s10242_s27 }
 0x71c   : > { %v9688_v53 = vpop.eup %9687  ;;  %v5733_v19 = vadd.f32 %v9686_v40, %v5732_v57  ;;  %v8924_v8 = vmul.f32 -1.442695, %v13193_v18  ;;  %8909 = vmatmul.msk.bf16.gmra.mxu1 %vm1850_vm2, %v15437_v36  ;;  %vm5749_vm2 = vweird.f32 %v5544_v41 }
 0x71d   : > { %v9690_v46 = vpop.eup %9689  ;;  %v5545_v7 = vadd.f32 1.0, %v9688_v53 }
 0x71e   : > { %v5737_v26 = vsel %vm5736_vm13, %v9686_v40, %v5733_v19  ;;  %v5745_v27 = vmul.f32 %v9690_v46, %v5544_v41  ;;  %9691 = vpow2.f32 %v8924_v8  ;;  %vm5750_vm15 = vweird.f32 %v9690_v46 }
 0x71f   : > { %v5742_v44 = vsel %vm5739_vm14, %v5741_v48, %v5737_v26  ;;  %9693 = vrcp.f32 %v5545_v7  ;;  %vm5751_vm0 = vmor %vm5749_vm2, %vm5750_vm15  ;;  %v5770_v35 = vand.u32 2147483648, %v5545_v7  ;;  %v5768_v41 = vand.u32 2147483647, %v5545_v7 }
 0x720   : > { %v13201_v0 = vmul.f32 %v5742_v44, %v13164_v54  ;;  %v5746_v59 = vsub.f32 1.0, %v5745_v27  ;;  %vm5764_vm1 = vweird.f32 %v5545_v7 }
 0x721   : > { %v5295_v9 = vpop.f32.mrf.mxu1  ;;  %v5771_v30 = vor.u32 1.1754944e-38, %v5770_v35  ;;  %vm5769_vm6 = vcmp.eq.f32.partialorder %v5768_v41, 8.507059e+37 }
 0x722   : > { %v5747_v1 = vmul.f32 %v9690_v46, %v5746_v59  ;;  %v13204_v15 = vadd.f32 %v5295_v9, %v15553_v33  ;;  %6130 = vrot.lane.b32.xlu1 %v13201_v0, %s10242_s27 }
 0x724   : > { %v9692_v36 = vpop.eup %9691  ;;  %v5748_v14 = vadd.f32 %v9690_v46, %v5747_v1  ;;  %v8925_v22 = vmul.f32 -1.442695, %v13204_v15  ;;  %v6109_v16 = vpop.permute.xlu2 %6108 }
 0x725   : > { %v9694_v54 = vpop.eup %9693  ;;  %v5546_v62 = vadd.f32 1.0, %v9692_v36  ;;  %v13210_v29 = vadd.f32 %v6109_v16, %v13056_v42 }
 0x726   : > { %v5752_v13 = vsel %vm5751_vm0, %v9690_v46, %v5748_v14  ;;  %v5760_v52 = vmul.f32 %v9694_v54, %v5545_v7  ;;  %9695 = vpow2.f32 %v8925_v22  ;;  %vm5765_vm4 = vweird.f32 %v9694_v54 }
 0x727   : > { %v5757_v37 = vsel %vm5754_vm3, %v5756_v51, %v5752_v13  ;;  %9697 = vrcp.f32 %v5546_v62  ;;  %v8942_v31 = vmul.f32 -0.5, %v13210_v29  ;;  %vm5766_vm5 = vmor %vm5764_vm1, %vm5765_vm4  ;;  %v5785_v19 = vand.u32 2147483648, %v5546_v62 }
 0x728   : > { %v13213_v11 = vmul.f32 %v5757_v37, %v13173_v24  ;;  %v5761_v56 = vsub.f32 1.0, %v5760_v52  ;;  %v5783_v48 = vand.u32 2147483647, %v5546_v62  ;;  %vm5779_vm8 = vweird.f32 %v5546_v62 }
 0x729   : > { %v5331_v40 = vpop.f32.mrf.mxu0  ;;  %v6300_v17 = vmul.f32 1.442695, %v8942_v31  ;;  %v5786_v55 = vor.u32 1.1754944e-38, %v5785_v19 }
 0x72a   : > { %v5762_v28 = vmul.f32 %v9694_v54, %v5761_v56  ;;  %v13217_v42 = vadd.f32 %v5331_v40, %v12410_v50  ;;  %6132 = vrot.lane.b32.xlu2 %v13213_v11, %s10242_s27  ;;  %vm5784_vm10 = vcmp.eq.f32.partialorder %v5783_v48, 8.507059e+37 }
 0x72b   : > { %9699 = vpow2.f32 %v6300_v17 }
 0x72c   : > { %v9696_v23 = vpop.eup %9695  ;;  %v5763_v21 = vadd.f32 %v9694_v54, %v5762_v28  ;;  %v8926_v24 = vmul.f32 -1.442695, %v13217_v42 }
 0x72d   : > { %v9698_v38 = vpop.eup %9697  ;;  %v5547_v10 = vadd.f32 1.0, %v9696_v23 }
 0x72e   : > { %v5767_v57 = vsel %vm5766_vm5, %v9694_v54, %v5763_v21  ;;  %v5775_v12 = vmul.f32 %v9698_v38, %v5546_v62  ;;  %9701 = vpow2.f32 %v8926_v24  ;;  %vm5780_vm7 = vweird.f32 %v9698_v38 }
 0x72f   : > { %v5772_v50 = vsel %vm5769_vm6, %v5771_v30, %v5767_v57  ;;  %9703 = vrcp.f32 %v5547_v10  ;;  %vm5781_vm9 = vmor %vm5779_vm8, %vm5780_vm7  ;;  %v5798_v22 = vand.u32 2147483647, %v5547_v10  ;;  %v5800_v16 = vand.u32 2147483648, %v5547_v10 }
 0x730   : > { %v13223_v47 = vmul.f32 %v5772_v50, %v13184_v45  ;;  %v5776_v53 = vsub.f32 1.0, %v5775_v12  ;;  %vm5794_vm12 = vweird.f32 %v5547_v10 }
 0x731   : > { %v5333_v8 = vpop.f32.mrf.mxu0  ;;  %v9700_v26 = vpop.eup %9699  ;;  %v5801_v56 = vor.u32 1.1754944e-38, %v5800_v16  ;;  %vm5799_vm14 = vcmp.eq.f32.partialorder %v5798_v22, 8.507059e+37 }
 0x732   : > { %v5777_v46 = vmul.f32 %v9698_v38, %v5776_v53  ;;  %v13226_v7 = vadd.f32 %v5333_v8, %v12434_v32  ;;  %6134 = vrot.lane.b32.xlu0 %v13223_v47, %s10242_s27  ;;  %v13230_v59 = vadd.f32 1.0, %v9700_v26 }
 0x734   : > { %v9702_v27 = vpop.eup %9701  ;;  %v5778_v44 = vadd.f32 %v9698_v38, %v5777_v46  ;;  %v8927_v33 = vmul.f32 -1.442695, %v13226_v7  ;;  %9705 = vrcp.f32 %v13230_v59 }
 0x735   : > { %v9704_v45 = vpop.eup %9703  ;;  %v5548_v9 = vadd.f32 1.0, %v9702_v27 }
 0x736   : > { %v5782_v1 = vsel %vm5781_vm9, %v9698_v38, %v5778_v44  ;;  %v5790_v5 = vmul.f32 %v9704_v45, %v5547_v10  ;;  %vm5795_vm11 = vweird.f32 %v9704_v45  ;;  %vm6401_vm9 = vweird.f32 %v13230_v59 }
 0x737   : > { %v5787_v32 = vsel %vm5784_vm10, %v5786_v55, %v5782_v1  ;;  %9707 = vrcp.f32 %v5548_v9  ;;  %vm5796_vm13 = vmor %vm5794_vm12, %vm5795_vm11  ;;  %vm5809_vm2 = vweird.f32 %v5548_v9 }
 0x738   : > { %v13235_v36 = vmul.f32 %v5787_v32, %v13193_v18  ;;  %v5791_v14 = vsub.f32 1.0, %v5790_v5  ;;  %9709 = vpow2.f32 %v8927_v33 }
 0x739   : > { %v5336_v54 = vpop.f32.mrf.mxu0 }
 0x73a   : > { %v5792_v51 = vmul.f32 %v9704_v45, %v5791_v14  ;;  %v13238_v62 = vadd.f32 %v5336_v54, %v12476_v25  ;;  %6136 = vrot.lane.b32.xlu1 %v13235_v36, %s10242_s27  ;;  %v13243_v37 = vpop.eup %9705 }
 0x73b   : > { %v6397_v23 = vmul.f32 %v13243_v37, %v13230_v59  ;;  %vm6402_vm4 = vweird.f32 %v13243_v37 }
 0x73c   : > { %v5793_v13 = vadd.f32 %v9704_v45, %v5792_v51  ;;  %v8928_v52 = vmul.f32 -1.442695, %v13238_v62  ;;  %v6115_v18 = vpop.permute.xlu2 %6114  ;;  %vm13306_vm10 = vmor %vm6401_vm9, %vm6402_vm4 }
 0x73d   : > { %v13246_v35 = vadd.f32 %v6115_v18, %v13112_v39  ;;  %v9708_v31 = vpop.eup %9707  ;;  %v5815_v39 = vand.u32 2147483648, %v5548_v9  ;;  %v6398_v53 = vsub.f32 1.0, %v6397_v23 }
 0x73e   : > { %v5797_v40 = vsel %vm5796_vm13, %v9704_v45, %v5793_v13  ;;  %9711 = vpow2.f32 %v8928_v52  ;;  %v5805_v28 = vmul.f32 %v9708_v31, %v5548_v9  ;;  %v9710_v41 = vpop.eup %9709  ;;  %vm5810_vm15 = vweird.f32 %v9708_v31 }
 0x73f   : > { %v5802_v25 = vsel %vm5799_vm14, %v5801_v56, %v5797_v40  ;;  %v8945_v21 = vmul.f32 -0.5, %v13246_v35  ;;  %v5549_v38 = vadd.f32 1.0, %v9710_v41  ;;  %vm5811_vm0 = vmor %vm5809_vm2, %vm5810_vm15  ;;  %v5816_v26 = vor.u32 1.1754944e-38, %v5815_v39 }
 0x740   : > { %v13249_v17 = vmul.f32 %v5802_v25, %v13204_v15  ;;  %v5806_v24 = vsub.f32 1.0, %v5805_v28  ;;  %v5813_v15 = vand.u32 2147483647, %v5548_v9  ;;  %v6399_v55 = vmul.f32 %v13243_v37, %v6398_v53 }
 0x741   : > { %v5338_v30 = vpop.f32.mrf.mxu0  ;;  %v6306_v10 = vmul.f32 1.442695, %v8945_v21  ;;  %9713 = vrcp.f32 %v5549_v38  ;;  %v5828_v54 = vand.u32 2147483647, %v5549_v38  ;;  %vm5824_vm5 = vweird.f32 %v5549_v38 }
 0x742   : > { %v13255_v57 = vadd.f32 %v5338_v30, %v12491_v34  ;;  %6138 = vrot.lane.b32.xlu2 %v13249_v17, %s10242_s27  ;;  %v5807_v12 = vmul.f32 %v9708_v31, %v5806_v24  ;;  %vm5814_vm3 = vcmp.eq.f32.partialorder %v5813_v15, 8.507059e+37  ;;  %v13277_v13 = vadd.f32 %v13243_v37, %v6399_v55  ;;  %v9114_v30 = vld [vmem:[%s15276_s6 + $0x8] sm:$0xff] }
 0x743   : > { %9715 = vpow2.f32 %v6306_v10  ;;  %vm13286_vm6 = vcmp.eq.f32.partialorder %v5828_v54, 8.507059e+37  ;;  %v6407_v15 = vand.u32 2147483648, %v13230_v59  ;;  %6999 = vmatpush.bf16.msrb.mxu3 %v9114_v30  ;;  %v6405_v53 = vand.u32 2147483647, %v13230_v59 }
 0x744   : > { %v9712_v50 = vpop.eup %9711  ;;  %v8929_v19 = vmul.f32 -1.442695, %v13255_v57  ;;  %v6111_v8 = vpop.permute.xlu0 %6110  ;;  %v5808_v46 = vadd.f32 %v9708_v31, %v5807_v12  ;;  %v13354_v28 = vmul.f32 0.5, %v13246_v35 }
 0x745   : > { %v13260_v48 = vadd.f32 1.0, %v9712_v50  ;;  %v13263_v34 = vadd.f32 %v6111_v8, %v13070_v58  ;;  %vm6406_vm14 = vcmp.eq.f32.partialorder %v6405_v53, 8.507059e+37 }
 0x746   : > { %9717 = vpow2.f32 %v8929_v19  ;;  %v5812_v27 = vsel %vm5811_vm0, %v9708_v31, %v5808_v46 }
 0x747   : > { %9719 = vrcp.f32 %v13260_v48  ;;  %v5817_v44 = vsel %vm5814_vm3, %v5816_v26, %v5812_v27  ;;  %v9714_v45 = vpop.eup %9713  ;;  %v8943_v1 = vmul.f32 -0.5, %v13263_v34  ;;  %v5845_v21 = vand.u32 2147483648, %v13260_v48 }
 0x748   : > { %v13268_v9 = vmul.f32 %v5817_v44, %v13217_v42  ;;  %v5820_v33 = vmul.f32 %v9714_v45, %v5549_v38  ;;  %v5830_v42 = vand.u32 2147483648, %v5549_v38  ;;  %vm5825_vm1 = vweird.f32 %v9714_v45 }
 0x749   : > { %v5341_v5 = vpop.f32.mrf.mxu0  ;;  %v9716_v58 = vpop.eup %9715  ;;  %v6302_v32 = vmul.f32 1.442695, %v8943_v1  ;;  %vm5826_vm7 = vmor %vm5824_vm5, %vm5825_vm1  ;;  %v5843_v12 = vand.u32 2147483647, %v13260_v48  ;;  %vm5839_vm11 = vweird.f32 %v13260_v48  ;;  %v6404_v27 = vsel %vm13306_vm10, %v13243_v37, %v13277_v13 }
 0x74a   : > { %v13272_v14 = vadd.f32 %v5341_v5, %v12506_v3  ;;  %6140 = vrot.lane.b32.xlu0 %v13268_v9, %s10242_s27  ;;  %v5821_v16 = vsub.f32 1.0, %v5820_v33  ;;  %v13283_v31 = vadd.f32 1.0, %v9716_v58  ;;  %v5831_v23 = vor.u32 1.1754944e-38, %v5830_v42 }
 0x74b   : > { %9721 = vpow2.f32 %v6302_v32  ;;  %v5846_v44 = vor.u32 1.1754944e-38, %v5845_v21  ;;  %vm5844_vm13 = vcmp.eq.f32.partialorder %v5843_v12, 8.507059e+37  ;;  %v6408_v33 = vor.u32 1.1754944e-38, %v6407_v15  ;;  %v15558_v12 = vld [vmem:[#allocation12_spill] sm:$0xff] }
 0x74c   : > { %v9718_v22 = vpop.eup %9717  ;;  %v5822_v52 = vmul.f32 %v9714_v45, %v5821_v16  ;;  %v6113_v3 = vpop.permute.xlu1 %6112  ;;  %v8930_v40 = vmul.f32 -1.442695, %v13272_v14  ;;  %v6236_v42 = vmul.f32 0.5, %v13210_v29  ;;  %vm6446_vm1 = vweird.f32 %v13283_v31 }
 0x74d   : > { %v9720_v51 = vpop.eup %9719  ;;  %v13281_v56 = vadd.f32 1.0, %v9718_v22  ;;  %v13293_v24 = vadd.f32 %v6113_v3, %v13085_v2  ;;  %v6409_v54 = vsel %vm6406_vm14, %v6408_v33, %v6404_v27  ;;  %vm6944_vm14 = vcmask 261120  }
 0x74e   : > { %v5835_v18 = vmul.f32 %v9720_v51, %v13260_v48  ;;  %v5823_v25 = vadd.f32 %v9714_v45, %v5822_v52  ;;  %vm5840_vm8 = vweird.f32 %v9720_v51 }
 0x74f   : > { %9723 = vrcp.f32 %v13281_v56  ;;  %vm5841_vm12 = vmor %vm5839_vm11, %vm5840_vm8  ;;  %v5860_v52 = vand.u32 2147483648, %v13281_v56  ;;  %vm5854_vm2 = vweird.f32 %v13281_v56 }
 0x750   : > { %v5836_v41 = vsub.f32 1.0, %v5835_v18  ;;  %9725 = vpow2.f32 %v8930_v40  ;;  %v5827_v39 = vsel %vm5826_vm7, %v9714_v45, %v5823_v25  ;;  %v8944_v45 = vmul.f32 -0.5, %v13293_v24 }
 0x751   : > { %v5343_v38 = vpop.f32.mrf.mxu0  ;;  %v5832_v50 = vsel %vm13286_vm6, %v5831_v23, %v5827_v39  ;;  %9727 = vrcp.f32 %v13283_v31  ;;  %v9722_v26 = vpop.eup %9721  ;;  %v5858_v40 = vand.u32 2147483647, %v13281_v56  ;;  %v13351_v25 = vmul.f32 %v6409_v54, %v6236_v42 }
 0x752   : > { %v5837_v10 = vmul.f32 %v9720_v51, %v5836_v41  ;;  %v13312_v19 = vmul.f32 %v5832_v50, %v13226_v7  ;;  %v13322_v59 = vadd.f32 %v5343_v38, %v12515_v20  ;;  %v9113_v7 = vld [vmem:[%s15276_s6] sm:$0xff]  ;;  %v13327_v1 = vadd.f32 1.0, %v9722_v26 }
 0x753   : > { %v6304_v32 = vmul.f32 1.442695, %v8944_v45  ;;  %7000 = vmatpush.bf16.msrb.mxu3 %v9113_v7  ;;  %v13359_v41 = vmul.f32 0.5, %v13263_v34  ;;  %v6450_v39 = vand.u32 2147483647, %v13283_v31  ;;  %v5861_v35 = vor.u32 1.1754944e-38, %v5860_v52 }
 0x754   : > { %v5838_v8 = vadd.f32 %v9720_v51, %v5837_v10  ;;  %v6121_v46 = vpop.permute.xlu2 %6120  ;;  %6142 = vrot.lane.b32.xlu1 %v13312_v19, %s10242_s27  ;;  %9729 = vrcp.f32 %v13327_v1  ;;  %v6452_v10 = vand.u32 2147483648, %v13283_v31  ;;  %vm5859_vm3 = vcmp.eq.f32.partialorder %v5858_v40, 8.507059e+37 }
 0x755   : > { %v9724_v48 = vpop.eup %9723  ;;  %v13332_v37 = vadd.f32 %v6121_v46, %v13150_v6  ;;  %v8931_v6 = vmul.f32 -1.442695, %v13322_v59  ;;  %9731 = vpow2.f32 %v6304_v32  ;;  %v6422_v45 = vand.u32 2147483648, %v13327_v1 }
 0x756   : > { %v5842_v55 = vsel %vm5841_vm12, %v9720_v51, %v5838_v8  ;;  %v9726_v5 = vpop.eup %9725  ;;  %v5850_v20 = vmul.f32 %v9724_v48, %v13281_v56  ;;  %vm5855_vm15 = vweird.f32 %v9724_v48  ;;  %vm6416_vm6 = vweird.f32 %v13327_v1 }
 0x757   : > { %v5847_v58 = vsel %vm5844_vm13, %v5846_v44, %v5842_v55  ;;  %v13339_v16 = vpop.eup %9727  ;;  %v13341_v13 = vadd.f32 1.0, %v9726_v5  ;;  %v8948_v18 = vmul.f32 -0.5, %v13332_v37  ;;  %vm5856_vm0 = vmor %vm5854_vm2, %vm5855_vm15  ;;  %v6423_v42 = vor.u32 1.1754944e-38, %v6422_v45 }
 0x758   : > { %v13336_v22 = vmul.f32 %v5847_v58, %v13238_v62  ;;  %v5851_v51 = vsub.f32 1.0, %v5850_v20  ;;  %v6442_v29 = vmul.f32 %v13339_v16, %v13283_v31  ;;  %vm6447_vm4 = vweird.f32 %v13339_v16 }
 0x759   : > { %v5346_v3 = vpop.f32.mrf.mxu0  ;;  %9733 = vrcp.f32 %v13341_v13  ;;  %v6312_v21 = vmul.f32 1.442695, %v8948_v18  ;;  %v5875_v52 = vand.u32 2147483648, %v13341_v13  ;;  %vm13396_vm9 = vcmp.eq.f32.partialorder %v6450_v39, 8.507059e+37  ;;  %vm13418_vm15 = vmor %vm6446_vm1, %vm6447_vm4 }
 0x75a   : > { %6144 = vrot.lane.b32.xlu2 %v13336_v22, %s10242_s27  ;;  %v5852_v62 = vmul.f32 %v9724_v48, %v5851_v51  ;;  %9735 = vpow2.f32 %v8931_v6  ;;  %v9730_v30 = vpop.eup %9729  ;;  %v13366_v15 = vadd.f32 %v5346_v3, %v15558_v12  ;;  %v6443_v2 = vsub.f32 1.0, %v6442_v29 }
 0x75b   : > { %v6412_v34 = vmul.f32 %v9730_v30, %v13327_v1  ;;  %9737 = vpow2.f32 %v6312_v21  ;;  %v9732_v56 = vpop.eup %9731  ;;  %vm6417_vm5 = vweird.f32 %v9730_v30  ;;  %v5873_v3 = vand.u32 2147483647, %v13341_v13 }
 0x75c   : > { %v5853_v23 = vadd.f32 %v9724_v48, %v5852_v62  ;;  %v6117_v38 = vpop.permute.xlu0 %6116  ;;  %v8932_v8 = vmul.f32 -1.442695, %v13366_v15  ;;  %v13377_v7 = vadd.f32 1.0, %v9732_v56  ;;  %v6444_v33 = vmul.f32 %v13339_v16, %v6443_v2  ;;  %vm6418_vm7 = vmor %vm6416_vm6, %vm6417_vm5 }
 0x75d   : > { %v13371_v46 = vadd.f32 %v6117_v38, %v13127_v4  ;;  %v6413_v44 = vsub.f32 1.0, %v6412_v34  ;;  %vm5869_vm11 = vweird.f32 %v13341_v13  ;;  %vm5874_vm13 = vcmp.eq.f32.partialorder %v5873_v3, 8.507059e+37 }
 0x75e   : > { %v5857_v50 = vsel %vm5856_vm0, %v9724_v48, %v5853_v23  ;;  %v13380_v48 = vor.u32 1.1754944e-38, %v6452_v10  ;;  %9739 = vpow2.f32 %v8932_v8  ;;  %v15561_v23 = vld [vmem:[#allocation15_spill] sm:$0xff]  ;;  %vm6431_vm0 = vweird.f32 %v13377_v7 }
 0x75f   : > { %v5862_v53 = vsel %vm5859_vm3, %v5861_v35, %v5857_v50  ;;  %v9734_v26 = vpop.eup %9733  ;;  %v6414_v4 = vmul.f32 %v9730_v30, %v6413_v44  ;;  %9741 = vrcp.f32 %v13377_v7  ;;  %v8946_v32 = vmul.f32 -0.5, %v13371_v46 }
 0x760   : > { %v13374_v27 = vmul.f32 %v5862_v53, %v13255_v57  ;;  %v5865_v55 = vmul.f32 %v9734_v26, %v13341_v13  ;;  %v9736_v5 = vpop.eup %9735  ;;  %v6420_v57 = vand.u32 2147483647, %v13327_v1  ;;  %vm5870_vm8 = vweird.f32 %v9734_v26 }
 0x761   : > { %v13389_v20 = vadd.f32 1.0, %v9736_v5  ;;  %v5348_v54 = vpop.f32.mrf.mxu0  ;;  %v9738_v51 = vpop.eup %9737  ;;  %v6415_v6 = vadd.f32 %v9730_v30, %v6414_v4  ;;  %v6308_v35 = vmul.f32 1.442695, %v8946_v32  ;;  %v6445_v50 = vadd.f32 %v13339_v16, %v6444_v33  ;;  %vm5871_vm12 = vmor %vm5869_vm11, %vm5870_vm8 }
 0x762   : > { %6146 = vrot.lane.b32.xlu0 %v13374_v27, %s10242_s27  ;;  %v5866_v58 = vsub.f32 1.0, %v5865_v55  ;;  %vm6421_vm10 = vcmp.eq.f32.partialorder %v6420_v57, 8.507059e+37  ;;  %v13400_v29 = vadd.f32 1.0, %v9738_v51  ;;  %v13403_v1 = vadd.f32 %v5348_v54, %v15561_v23 }
 0x763   : > { %9743 = vrcp.f32 %v13389_v20  ;;  %v6419_v40 = vsel %vm6418_vm7, %v9730_v30, %v6415_v6  ;;  %v5876_v30 = vor.u32 1.1754944e-38, %v5875_v52  ;;  %v6238_v44 = vmul.f32 0.5, %v13293_v24 }
 0x764   : > { %v5867_v18 = vmul.f32 %v9734_v26, %v5866_v58  ;;  %v9740_v21 = vpop.eup %9739  ;;  %v6424_v38 = vsel %vm6421_vm10, %v6423_v42, %v6419_v40  ;;  %9745 = vrcp.f32 %v13400_v29  ;;  %v6119_v2 = vpop.permute.xlu1 %6118  ;;  %v8933_v45 = vmul.f32 -1.442695, %v13403_v1 }
 0x765   : > { %v9742_v12 = vpop.eup %9741  ;;  %v6877_v39 = vmul.f32 %v6424_v38, %v13359_v41  ;;  %v13425_v4 = vadd.f32 1.0, %v9740_v21  ;;  %9747 = vpow2.f32 %v6308_v35  ;;  %v6449_v24 = vsel %vm13418_vm15, %v13339_v16, %v6445_v50 }
 0x766   : > { %v5868_v10 = vadd.f32 %v9734_v26, %v5867_v18  ;;  %v6427_v56 = vmul.f32 %v9742_v12, %v13377_v7  ;;  %v13433_v31 = vadd.f32 %v6119_v2, %v13141_v61  ;;  %vm6432_vm2 = vweird.f32 %v9742_v12 }
 0x767   : > { %v6908_v13 = vpack.c.bf16 %v6877_v39, %v13351_v25  ;;  %v6435_v25 = vand.u32 2147483647, %v13377_v7  ;;  %9749 = vrcp.f32 %v13425_v4  ;;  %v5890_v32 = vand.u32 2147483648, %v13389_v20  ;;  %vm13452_vm3 = vmor %vm6431_vm0, %vm6432_vm2 }
 0x768   : > { %v5872_v34 = vsel %vm5871_vm12, %v9734_v26, %v5868_v10  ;;  %v6428_v5 = vsub.f32 1.0, %v6427_v56  ;;  %v13444_v54 = vmul.f32 0.5, %v13332_v37  ;;  %9751 = vpow2.f32 %v8933_v45  ;;  %v15566_v10 = vld [vmem:[#allocation37_spill] sm:$0xff] }
 0x769   : > { %v5384_v53 = vpop.f32.mrf.mxu1  ;;  %v5877_v8 = vsel %vm5874_vm13, %v5876_v30, %v5872_v34  ;;  %v9744_v41 = vpop.eup %9743  ;;  %8982 = vmatmul.msk.bf16.vlgmr.msrb.gmra.mxu3 %vm6944_vm14, %v6908_v13  ;;  %v6454_v61 = vsel %vm13396_vm9, %v13380_v48, %v6449_v24  ;;  %v5888_v37 = vand.u32 2147483647, %v13389_v20  ;;  %v8947_v18 = vmul.f32 -0.5, %v13433_v31 }
 0x76a   : > { %v13423_v55 = vmul.f32 %v5877_v8, %v13272_v14  ;;  %v5880_v57 = vmul.f32 %v9744_v41, %v13389_v20  ;;  %v6429_v33 = vmul.f32 %v9742_v12, %v6428_v5  ;;  %v6437_v14 = vand.u32 2147483648, %v13377_v7  ;;  %v13440_v58 = vpop.eup %9745 }
 0x76b   : > { %v6487_v6 = vmul.f32 %v13440_v58, %v13400_v29  ;;  %vm5885_vm4 = vweird.f32 %v9744_v41  ;;  %v9748_v40 = vpop.eup %9747  ;;  %vm6436_vm1 = vcmp.eq.f32.partialorder %v6435_v25, 8.507059e+37  ;;  %vm5884_vm5 = vweird.f32 %v13389_v20 }
 0x76c   : > { %6148 = vrot.lane.b32.xlu1 %v13423_v55, %s10242_s27  ;;  %v5881_v16 = vsub.f32 1.0, %v5880_v57  ;;  %v6430_v51 = vadd.f32 %v9742_v12, %v6429_v33  ;;  %v6127_v3 = vpop.permute.xlu2 %6126  ;;  %v6438_v7 = vor.u32 1.1754944e-38, %v6437_v14  ;;  %v5891_v21 = vor.u32 1.1754944e-38, %v5890_v32  ;;  %vm5886_vm6 = vmor %vm5884_vm5, %vm5885_vm4 }
 0x76d   : > { %v13461_v38 = vadd.f32 1.0, %v9748_v40  ;;  %v13464_v35 = vadd.f32 %v5384_v53, %v15566_v10  ;;  %v9750_v50 = vpop.eup %9749  ;;  %v6488_v30 = vsub.f32 1.0, %v6487_v6  ;;  %v6310_v34 = vmul.f32 1.442695, %v8947_v18 }
 0x76e   : > { %v5882_v52 = vmul.f32 %v9744_v41, %v5881_v16  ;;  %v6434_v48 = vsel %vm13452_vm3, %v9742_v12, %v6430_v51  ;;  %v13468_v12 = vadd.f32 %v6127_v3, %v13181_v49  ;;  %v9752_v56 = vpop.eup %9751  ;;  %vm5889_vm7 = vcmp.eq.f32.partialorder %v5888_v37, 8.507059e+37  ;;  %v15567_v37 = vld [vmem:[#allocation17_spill] sm:$0xff] }
 0x76f   : > { %v6439_v39 = vsel %vm6436_vm1, %v6438_v7, %v6434_v48  ;;  %v5895_v20 = vmul.f32 %v9750_v50, %v13425_v4  ;;  %9753 = vrcp.f32 %v13461_v38  ;;  %v6879_v13 = vmul.f32 %v6454_v61, %v13354_v28 }
 0x770   : > { %v5883_v23 = vadd.f32 %v9744_v41, %v5882_v52  ;;  %vm6491_vm8 = vweird.f32 %v13400_v29  ;;  %v5905_v8 = vand.u32 2147483648, %v13425_v4  ;;  %v6878_v45 = vmul.f32 %v6439_v39, %v6238_v44 }
 0x771   : > { %v5386_v62 = vpop.f32.mrf.mxu1  ;;  %v5896_v49 = vsub.f32 1.0, %v5895_v20  ;;  %v8934_v5 = vmul.f32 -1.442695, %v13464_v35  ;;  %v13480_v24 = vadd.f32 1.0, %v9752_v56  ;;  %9755 = vpow2.f32 %v6310_v34 }
 0x772   : > { %v5887_v2 = vsel %vm5886_vm6, %v9744_v41, %v5883_v23  ;;  %v6489_v41 = vmul.f32 %v13440_v58, %v6488_v30  ;;  %v8951_v25 = vmul.f32 -0.5, %v13468_v12  ;;  %v6495_v28 = vand.u32 2147483647, %v13400_v29 }
 0x773   : > { %v5892_v53 = vsel %vm5889_vm7, %v5891_v21, %v5887_v2  ;;  %v5897_v57 = vmul.f32 %v9750_v50, %v5896_v49  ;;  %vm5900_vm9 = vweird.f32 %v9750_v50  ;;  %v5903_v33 = vand.u32 2147483647, %v13425_v4  ;;  %v15568_v21 = vld [vmem:[#allocation19_spill] sm:$0xff] }
 0x774   : > { %v13476_v26 = vmul.f32 %v5892_v53, %v13322_v59  ;;  %vm6492_vm10 = vweird.f32 %v13440_v58  ;;  %v6497_v59 = vand.u32 2147483648, %v13400_v29  ;;  %vm5899_vm11 = vweird.f32 %v13425_v4  ;;  %v6123_v44 = vpop.permute.xlu0 %6122 }
 0x775   : > { %9757 = vrcp.f32 %v13480_v24  ;;  %v13491_v16 = vpop.eup %9753  ;;  %v6909_v32 = vpack.c.bf16 %v6879_v13, %v6878_v45  ;;  %v5898_v61 = vadd.f32 %v9750_v50, %v5897_v57  ;;  %v6318_v51 = vmul.f32 1.442695, %v8951_v25  ;;  %vm5901_vm12 = vmor %vm5899_vm11, %vm5900_vm9 }
 0x776   : > { %6150 = vrot.lane.b32.xlu2 %v13476_v26, %s10242_s27  ;;  %9759 = vpow2.f32 %v8934_v5  ;;  %v6490_v6 = vadd.f32 %v13440_v58, %v6489_v41  ;;  %v5906_v42 = vor.u32 1.1754944e-38, %v5905_v8  ;;  %v6457_v52 = vmul.f32 %v13491_v16, %v13461_v38  ;;  %vm13512_vm15 = vmor %vm6491_vm8, %vm6492_vm10 }
 0x777   : > { %v13498_v4 = vadd.f32 %v5386_v62, %v15567_v37  ;;  %v5902_v18 = vsel %vm5901_vm12, %v9750_v50, %v5898_v61  ;;  %vm5904_vm13 = vcmp.eq.f32.partialorder %v5903_v33, 8.507059e+37  ;;  %9761 = vpow2.f32 %v6318_v51  ;;  %v9756_v40 = vpop.eup %9755 }
 0x778   : > { %v13501_v3 = vadd.f32 %v6123_v44, %v13161_v63  ;;  %v5907_v48 = vsel %vm5904_vm13, %v5906_v42, %v5902_v18  ;;  %v6458_v7 = vsub.f32 1.0, %v6457_v52  ;;  %v13520_v50 = vmul.f32 0.5, %v13371_v46 }
 0x779   : > { %v5389_v14 = vpop.f32.mrf.mxu1  ;;  %8983 = vmatmul.msk.bf16.gmra.mxu3 %vm6944_vm14, %v6909_v32  ;;  %v8935_v23 = vmul.f32 -1.442695, %v13498_v4  ;;  %v13517_v63 = vmul.f32 %v5907_v48, %v13366_v15  ;;  %v13522_v39 = vadd.f32 1.0, %v9756_v40  ;;  %v6494_v56 = vsel %vm13512_vm15, %v13440_v58, %v6490_v6 }
 0x77a   : > { %v13506_v10 = vadd.f32 %v5389_v14, %v15568_v21  ;;  %v8949_v30 = vmul.f32 -0.5, %v13501_v3  ;;  %v6498_v29 = vor.u32 1.1754944e-38, %v6497_v59  ;;  %v6465_v2 = vand.u32 2147483647, %v13461_v38 }
 0x77b   : > { %v9758_v34 = vpop.eup %9757  ;;  %9763 = vpow2.f32 %v8935_v23  ;;  %v6467_v15 = vand.u32 2147483648, %v13461_v38  ;;  %6152 = vrot.lane.b32.xlu0 %v13517_v63, %s10242_s27  ;;  %vm6496_vm2 = vcmp.eq.f32.partialorder %v6495_v28, 8.507059e+37  ;;  %v6459_v53 = vmul.f32 %v13491_v16, %v6458_v7 }
 0x77c   : > { %v9760_v20 = vpop.eup %9759  ;;  %v5910_v13 = vmul.f32 %v9758_v34, %v13480_v24  ;;  %9765 = vrcp.f32 %v13522_v39  ;;  %v8936_v46 = vmul.f32 -1.442695, %v13506_v10  ;;  %v13537_v58 = vmul.f32 0.5, %v13433_v31  ;;  %v6125_v44 = vpop.permute.xlu1 %6124 }
 0x77d   : > { %v13539_v8 = vadd.f32 1.0, %v9760_v20  ;;  %v9762_v45 = vpop.eup %9761  ;;  %v6499_v49 = vsel %vm6496_vm2, %v6498_v29, %v6494_v56  ;;  %vm6461_vm0 = vweird.f32 %v13461_v38  ;;  %v6314_v41 = vmul.f32 1.442695, %v8949_v30 }
 0x77e   : > { %v5911_v5 = vsub.f32 1.0, %v5910_v13  ;;  %vm13542_vm3 = vcmp.eq.f32.partialorder %v6465_v2, 8.507059e+37  ;;  %v5918_v57 = vand.u32 2147483647, %v13480_v24  ;;  %v5920_v28 = vand.u32 2147483648, %v13480_v24 }
 0x77f   : > { %9767 = vrcp.f32 %v13539_v8  ;;  %v6468_v33 = vor.u32 1.1754944e-38, %v6467_v15  ;;  %vm5915_vm4 = vweird.f32 %v9758_v34  ;;  %v6460_v32 = vadd.f32 %v13491_v16, %v6459_v53 }
 0x780   : > { %v5912_v59 = vmul.f32 %v9758_v34, %v5911_v5  ;;  %9769 = vpow2.f32 %v8936_v46  ;;  %vm6462_vm1 = vweird.f32 %v13491_v16  ;;  %v13553_v61 = vadd.f32 1.0, %v9762_v45 }
 0x781   : > { %v13549_v31 = vpop.f32.mrf.mxu1  ;;  %v9764_v14 = vpop.eup %9763  ;;  %9771 = vpow2.f32 %v6314_v41  ;;  %v13556_v6 = vmul.f32 %v6499_v49, %v13444_v54  ;;  %vm5914_vm5 = vweird.f32 %v13480_v24  ;;  %vm5919_vm7 = vcmp.eq.f32.partialorder %v5918_v57, 8.507059e+37  ;;  %vm13567_vm8 = vmor %vm6461_vm0, %vm6462_vm1 }
 0x782   : > { %v9766_v51 = vpop.eup %9765  ;;  %v5913_v42 = vadd.f32 %v9758_v34, %v5912_v59  ;;  %v13559_v52 = vadd.f32 1.0, %v9764_v14  ;;  %vm5916_vm6 = vmor %vm5914_vm5, %vm5915_vm4  ;;  %v5921_v37 = vor.u32 1.1754944e-38, %v5920_v28  ;;  %v13563_v40 = vadd.f32 %v6125_v44, %v13170_v43 }
 0x783   : > { %v6472_v18 = vmul.f32 %v9766_v51, %v13522_v39  ;;  %v6480_v7 = vand.u32 2147483647, %v13522_v39  ;;  %v6482_v24 = vand.u32 2147483648, %v13522_v39  ;;  %9773 = vrcp.f32 %v13553_v61 }
 0x784   : > { %v5917_v54 = vsel %vm5916_vm6, %v9758_v34, %v5913_v42  ;;  %v6464_v21 = vsel %vm13567_vm8, %v13491_v16, %v6460_v32  ;;  %9775 = vrcp.f32 %v13559_v52  ;;  %vm6476_vm9 = vweird.f32 %v13522_v39 }
 0x785   : > { %v9768_v23 = vpop.eup %9767  ;;  %v5922_v43 = vsel %vm5919_vm7, %v5921_v37, %v5917_v54  ;;  %v6473_v62 = vsub.f32 1.0, %v6472_v18  ;;  %v13584_v56 = vmul.f32 0.5, %v13501_v3  ;;  %vm6477_vm10 = vweird.f32 %v9766_v51  ;;  %v15579_v18 = vld [vmem:[#allocation66_spill] sm:$0xff] }
 0x786   : > { %v9770_v38 = vpop.eup %9769  ;;  %v13579_v30 = vmul.f32 %v5922_v43, %v13403_v1  ;;  %v5925_v34 = vmul.f32 %v9768_v23, %v13539_v8  ;;  %v5933_v16 = vand.u32 2147483647, %v13539_v8  ;;  %v5935_v20 = vand.u32 2147483648, %v13539_v8  ;;  %vm6478_vm13 = vmor %vm6476_vm9, %vm6477_vm10 }
 0x787   : > { %v9772_v29 = vpop.eup %9771  ;;  %v6474_v2 = vmul.f32 %v9766_v51, %v6473_v62  ;;  %v6469_v15 = vsel %vm13542_vm3, %v6468_v33, %v6464_v21  ;;  %vm13590_vm11 = vcmp.eq.f32.partialorder %v6480_v7, 8.507059e+37  ;;  %v6483_v53 = vor.u32 1.1754944e-38, %v6482_v24 }
 0x788   : > { %v5926_v13 = vsub.f32 1.0, %v5925_v34  ;;  %v13594_v46 = vadd.f32 1.0, %v9772_v29  ;;  %6154 = vrot.lane.b32.xlu1 %v13579_v30, %s10242_s27  ;;  %vm5929_vm12 = vweird.f32 %v13539_v8  ;;  %v8950_v45 = vmul.f32 -0.5, %v13563_v40 }
 0x789   : > { %v6475_v3 = vadd.f32 %v9766_v51, %v6474_v2  ;;  %v5394_v49 = vpop.f32.mrf.mxu1  ;;  %v13600_v5 = vpop.eup %9773  ;;  %vm5930_vm15 = vweird.f32 %v9768_v23  ;;  %v13605_v25 = vadd.f32 1.0, %v9770_v38  ;;  %v6880_v28 = vmul.f32 %v6469_v15, %v13520_v50 }
 0x78a   : > { %v5927_v41 = vmul.f32 %v9768_v23, %v5926_v13  ;;  %9777 = vrcp.f32 %v13594_v46  ;;  %v9776_v57 = vpop.eup %9775  ;;  %vm13608_vm2 = vcmp.eq.f32.partialorder %v5933_v16, 8.507059e+37  ;;  %v5936_v44 = vor.u32 1.1754944e-38, %v5935_v20  ;;  %vm5931_vm0 = vmor %vm5929_vm12, %vm5930_vm15  ;;  %v6133_v38 = vpop.permute.xlu2 %6132 }
 0x78b   : > { %v6479_v33 = vsel %vm6478_vm13, %v9766_v51, %v6475_v3  ;;  %v5940_v32 = vmul.f32 %v9776_v57, %v13559_v52  ;;  %v5948_v42 = vand.u32 2147483647, %v13559_v52  ;;  %v5950_v50 = vand.u32 2147483648, %v13559_v52 }
 0x78c   : > { %v6484_v14 = vsel %vm13590_vm11, %v6483_v53, %v6479_v33  ;;  %v5928_v39 = vadd.f32 %v9768_v23, %v5927_v41  ;;  %v6316_v51 = vmul.f32 1.442695, %v8950_v45  ;;  %v13622_v48 = vadd.f32 %v13549_v31, %v15579_v18  ;;  %v6129_v16 = vpop.permute.xlu0 %6128  ;;  %v15584_v53 = vld [vmem:[#allocation25_spill] sm:$0xff] }
 0x78d   : > { %v6881_v37 = vmul.f32 %v6484_v14, %v13537_v58  ;;  %v6532_v7 = vmul.f32 %v13600_v5, %v13553_v61  ;;  %v5941_v24 = vsub.f32 1.0, %v5940_v32  ;;  %9779 = vrcp.f32 %v13605_v25  ;;  %v15585_v18 = vld [vmem:[#allocation21_spill] sm:$0xff] }
 0x78e   : > { %v5932_v54 = vsel %vm5931_vm0, %v9768_v23, %v5928_v39  ;;  %vm5944_vm3 = vweird.f32 %v13559_v52  ;;  %v6510_v8 = vand.u32 2147483647, %v13594_v46  ;;  %vm5945_vm4 = vweird.f32 %v9776_v57 }
 0x78f   : > { %v6910_v21 = vpack.c.bf16 %v6881_v37, %v6880_v28  ;;  %v5937_v58 = vsel %vm13608_vm2, %v5936_v44, %v5932_v54  ;;  %v5942_v31 = vmul.f32 %v9776_v57, %v5941_v24  ;;  %v6512_v23 = vand.u32 2147483648, %v13594_v46  ;;  %vm5946_vm6 = vmor %vm5944_vm3, %vm5945_vm4 }
 0x790   : > { %v9778_v43 = vpop.eup %9777  ;;  %v13632_v62 = vmul.f32 %v5937_v58, %v13464_v35  ;;  %vm13635_vm1 = vcmp.eq.f32.partialorder %v5948_v42, 8.507059e+37  ;;  %v5951_v29 = vor.u32 1.1754944e-38, %v5950_v50  ;;  %9781 = vpow2.f32 %v6316_v51 }
 0x791   : > { %v6502_v2 = vmul.f32 %v9778_v43, %v13594_v46  ;;  %8984 = vmatmul.msk.bf16.gmra.mxu3 %vm6944_vm14, %v6910_v21  ;;  %v6533_v20 = vsub.f32 1.0, %v6532_v7  ;;  %v5943_v15 = vadd.f32 %v9776_v57, %v5942_v31  ;;  %vm6506_vm5 = vweird.f32 %v13594_v46  ;;  %v5396_v41 = vpop.f32.mrf.mxu1 }
 0x792   : > { %v8937_v35 = vmul.f32 -1.442695, %v13622_v48  ;;  %6156 = vrot.lane.b32.xlu2 %v13632_v62, %s10242_s27  ;;  %vm13647_vm7 = vcmp.eq.f32.partialorder %v6510_v8, 8.507059e+37  ;;  %v13652_v3 = vadd.f32 %v6133_v38, %v13213_v11  ;;  %v13655_v45 = vadd.f32 %v5394_v49, %v15584_v53 }
 0x793   : > { %v6503_v1 = vsub.f32 1.0, %v6502_v2  ;;  %v9780_v28 = vpop.eup %9779  ;;  %v5947_v33 = vsel %vm5946_vm6, %v9776_v57, %v5943_v15  ;;  %v6513_v59 = vor.u32 1.1754944e-38, %v6512_v23  ;;  %v13658_v44 = vadd.f32 %v6129_v16, %v13190_v60 }
 0x794   : > { %9783 = vpow2.f32 %v8937_v35  ;;  %v5952_v52 = vsel %vm13635_vm1, %v5951_v29, %v5947_v33  ;;  %vm6507_vm8 = vweird.f32 %v9778_v43  ;;  %v5955_v39 = vmul.f32 %v9780_v28, %v13605_v25  ;;  %v6131_v7 = vpop.permute.xlu1 %6130 }
 0x795   : > { %v6504_v14 = vmul.f32 %v9778_v43, %v6503_v1  ;;  %v6534_v11 = vmul.f32 %v13600_v5, %v6533_v20  ;;  %v13665_v49 = vmul.f32 %v5952_v52, %v13498_v4  ;;  %v8954_v32 = vmul.f32 -0.5, %v13652_v3  ;;  %vm6508_vm11 = vmor %vm6506_vm5, %vm6507_vm8 }
 0x796   : > { %v8938_v57 = vmul.f32 -1.442695, %v13655_v45  ;;  %v9782_v42 = vpop.eup %9781  ;;  %vm6536_vm9 = vweird.f32 %v13553_v61  ;;  %v5956_v37 = vsub.f32 1.0, %v5955_v39  ;;  %vm5959_vm10 = vweird.f32 %v13605_v25 }
 0x797   : > { %v6505_v60 = vadd.f32 %v9778_v43, %v6504_v14  ;;  %v8952_v50 = vmul.f32 -0.5, %v13658_v44  ;;  %v5965_v51 = vand.u32 2147483648, %v13605_v25  ;;  %v13675_v4 = vadd.f32 1.0, %v9782_v42  ;;  %6158 = vrot.lane.b32.xlu0 %v13665_v49, %s10242_s27 }
 0x798   : > { %9785 = vpow2.f32 %v8938_v57  ;;  %v13678_v54 = vadd.f32 %v5396_v41, %v15585_v18  ;;  %v5957_v21 = vmul.f32 %v9780_v28, %v5956_v37  ;;  %vm5960_vm12 = vweird.f32 %v9780_v28 }
 0x799   : > { %v6509_v24 = vsel %vm6508_vm11, %v9778_v43, %v6505_v60  ;;  %v5963_v58 = vand.u32 2147483647, %v13605_v25  ;;  %9787 = vrcp.f32 %v13675_v4  ;;  %v6324_v31 = vmul.f32 1.442695, %v8954_v32  ;;  %vm5961_vm15 = vmor %vm5959_vm10, %vm5960_vm12 }
 0x79a   : > { %v9784_v8 = vpop.eup %9783  ;;  %v6514_v46 = vsel %vm13647_vm7, %v6513_v59, %v6509_v24  ;;  %v6320_v23 = vmul.f32 1.442695, %v8952_v50  ;;  %v5958_v34 = vadd.f32 %v9780_v28, %v5957_v21  ;;  %v13690_v2 = vadd.f32 %v6131_v7, %v13201_v0  ;;  %v15588_v59 = vld [vmem:[#allocation69_spill] sm:$0xff] }
 0x79b   : > { %v6883_v38 = vmul.f32 %v6514_v46, %v13584_v56  ;;  %v13687_v29 = vadd.f32 1.0, %v9784_v8  ;;  %v6535_v43 = vadd.f32 %v13600_v5, %v6534_v11  ;;  %vm6537_vm13 = vweird.f32 %v13600_v5  ;;  %v5399_v56 = vpop.f32.mrf.mxu1 }
 0x79c   : > { %v5966_v16 = vor.u32 1.1754944e-38, %v5965_v51  ;;  %v8939_v20 = vmul.f32 -1.442695, %v13678_v54  ;;  %v5962_v35 = vsel %vm5961_vm15, %v9780_v28, %v5958_v34  ;;  %vm5964_vm2 = vcmp.eq.f32.partialorder %v5963_v58, 8.507059e+37  ;;  %vm13711_vm0 = vmor %vm6536_vm9, %vm6537_vm13 }
 0x79d   : > { %v6911_v15 = vpack.c.bf16 %v6883_v38, %v13556_v6  ;;  %9789 = vrcp.f32 %v13687_v29  ;;  %v6540_v0 = vand.u32 2147483647, %v13553_v61  ;;  %v6542_v13 = vand.u32 2147483648, %v13553_v61 }
 0x79e   : > { %v9786_v1 = vpop.eup %9785  ;;  %v5967_v53 = vsel %vm5964_vm2, %v5966_v16, %v5962_v35  ;;  %9791 = vpow2.f32 %v6324_v31  ;;  %v8953_v6 = vmul.f32 -0.5, %v13690_v2  ;;  %v13716_v52 = vadd.f32 %v5399_v56, %v15588_v59 }
 0x79f   : > { %v13702_v25 = vmul.f32 %v5967_v53, %v13506_v10  ;;  %v13704_v41 = vadd.f32 1.0, %v9786_v1  ;;  %9793 = vpow2.f32 %v6320_v23  ;;  %v9788_v28 = vpop.eup %9787  ;;  %v6539_v10 = vsel %vm13711_vm0, %v13600_v5, %v6535_v43 }
 0x7a0   : > { %9795 = vpow2.f32 %v8939_v20  ;;  %v6517_v14 = vmul.f32 %v9788_v28, %v13675_v4  ;;  %v6525_v39 = vand.u32 2147483647, %v13675_v4  ;;  %v6245_v61 = vmul.f32 0.5, %v13468_v12 }
 0x7a1   : > { %9797 = vrcp.f32 %v13704_v41  ;;  %8985 = vmatmul.msk.bf16.gmra.mxu3 %vm6944_vm14, %v6911_v15  ;;  %6160 = vrot.lane.b32.xlu1 %v13702_v25, %s10242_s27  ;;  %v6543_v11 = vor.u32 1.1754944e-38, %v6542_v13  ;;  %v6322_v32 = vmul.f32 1.442695, %v8953_v6  ;;  %vm6541_vm3 = vcmp.eq.f32.partialorder %v6540_v0, 8.507059e+37 }
 0x7a2   : > { %v6518_v42 = vsub.f32 1.0, %v6517_v14  ;;  %v6527_v5 = vand.u32 2147483648, %v13675_v4  ;;  %v8940_v60 = vmul.f32 -1.442695, %v13716_v52  ;;  %v6244_v51 = vmul.f32 0.5, %v13563_v40 }
 0x7a3   : > { %v9790_v57 = vpop.eup %9789  ;;  %v6544_v50 = vsel %vm6541_vm3, %v6543_v11, %v6539_v10  ;;  %vm6521_vm4 = vweird.f32 %v13675_v4  ;;  %vm6522_vm1 = vweird.f32 %v9788_v28  ;;  %vm13733_vm5 = vcmp.eq.f32.partialorder %v6525_v39, 8.507059e+37 }
 0x7a4   : > { %v9792_v37 = vpop.eup %9791  ;;  %v5970_v18 = vmul.f32 %v9790_v57, %v13687_v29  ;;  %v6519_v24 = vmul.f32 %v9788_v28, %v6518_v42  ;;  %v5978_v21 = vand.u32 2147483647, %v13687_v29  ;;  %v5980_v46 = vand.u32 2147483648, %v13687_v29  ;;  %vm6523_vm6 = vmor %vm6521_vm4, %vm6522_vm1  ;;  %v6135_v35 = vpop.permute.xlu0 %6134 }
 0x7a5   : > { %v9794_v7 = vpop.eup %9793  ;;  %9799 = vpow2.f32 %v6322_v32  ;;  %v6528_v38 = vor.u32 1.1754944e-38, %v6527_v5  ;;  %vm5975_vm7 = vweird.f32 %v9790_v57  ;;  %v13745_v16 = vadd.f32 1.0, %v9792_v37 }
 0x7a6   : > { %v9796_v58 = vpop.eup %9795  ;;  %v5971_v8 = vsub.f32 1.0, %v5970_v18  ;;  %v13739_v31 = vadd.f32 1.0, %v9794_v7  ;;  %v6520_v23 = vadd.f32 %v9788_v28, %v6519_v24  ;;  %9801 = vpow2.f32 %v8940_v60 }
 0x7a7   : > { %v9798_v40 = vpop.eup %9797  ;;  %v13741_v34 = vadd.f32 1.0, %v9796_v58  ;;  %vm5974_vm8 = vweird.f32 %v13687_v29  ;;  %vm13749_vm9 = vcmp.eq.f32.partialorder %v5978_v21, 8.507059e+37  ;;  %v5981_v1 = vor.u32 1.1754944e-38, %v5980_v46 }
 0x7a8   : > { %v5972_v43 = vmul.f32 %v9790_v57, %v5971_v8  ;;  %v5985_v20 = vmul.f32 %v9798_v40, %v13704_v41  ;;  %v6524_v15 = vsel %vm6523_vm6, %v9788_v28, %v6520_v23  ;;  %9803 = vrcp.f32 %v13739_v31  ;;  %vm5976_vm10 = vmor %vm5974_vm8, %vm5975_vm7  ;;  %v15593_v23 = vld [vmem:[#allocation30_spill] sm:$0xff] }
 0x7a9   : > { %v6529_v56 = vsel %vm13733_vm5, %v6528_v38, %v6524_v15  ;;  %v5993_v53 = vand.u32 2147483647, %v13704_v41  ;;  %v5995_v6 = vand.u32 2147483648, %v13704_v41  ;;  %9805 = vrcp.f32 %v13741_v34 }
 0x7aa   : > { %v5973_v4 = vadd.f32 %v9790_v57, %v5972_v43  ;;  %v5986_v0 = vsub.f32 1.0, %v5985_v20  ;;  %v6884_v13 = vmul.f32 %v6529_v56, %v6244_v51  ;;  %9807 = vrcp.f32 %v13745_v16  ;;  %v5401_v51 = vpop.f32.mrf.mxu1 }
 0x7ab   : > { %v9800_v29 = vpop.eup %9799  ;;  %vm5990_vm11 = vweird.f32 %v9798_v40  ;;  %v6885_v10 = vmul.f32 %v6544_v50, %v6245_v61  ;;  %vm5989_vm12 = vweird.f32 %v13704_v41  ;;  %v13767_v32 = vmul.f32 0.5, %v13658_v44  ;;  %v6139_v41 = vpop.permute.xlu2 %6138 }
 0x7ac   : > { %v5977_v28 = vsel %vm5976_vm10, %v9790_v57, %v5973_v4  ;;  %v5987_v33 = vmul.f32 %v9798_v40, %v5986_v0  ;;  %v9802_v59 = vpop.eup %9801  ;;  %vm5991_vm13 = vmor %vm5989_vm12, %vm5990_vm11  ;;  %v5996_v5 = vor.u32 1.1754944e-38, %v5995_v6  ;;  %v13771_v60 = vadd.f32 1.0, %v9800_v29 }
 0x7ad   : > { %v5982_v14 = vsel %vm13749_vm9, %v5981_v1, %v5977_v28  ;;  %v6912_v57 = vpack.c.bf16 %v6885_v10, %v6884_v13  ;;  %v13773_v61 = vadd.f32 1.0, %v9802_v59  ;;  %vm5994_vm15 = vcmp.eq.f32.partialorder %v5993_v53, 8.507059e+37 }
 0x7ae   : > { %v13763_v39 = vmul.f32 %v5982_v14, %v13622_v48  ;;  %v5988_v11 = vadd.f32 %v9798_v40, %v5987_v33  ;;  %v13769_v42 = vpop.eup %9803  ;;  %v6555_v50 = vand.u32 2147483647, %v13739_v31  ;;  %v6557_v7 = vand.u32 2147483648, %v13739_v31 }
 0x7af   : > { %v6547_v48 = vmul.f32 %v13769_v42, %v13739_v31  ;;  %v9806_v44 = vpop.eup %9805  ;;  %v13782_v24 = vmul.f32 0.5, %v13690_v2  ;;  %9809 = vrcp.f32 %v13771_v60  ;;  %v6008_v46 = vand.u32 2147483647, %v13741_v34 }
 0x7b0   : > { %v5992_v37 = vsel %vm5991_vm13, %v9798_v40, %v5988_v11  ;;  %6162 = vrot.lane.b32.xlu2 %v13763_v39, %s10242_s27  ;;  %v13786_v12 = vpop.eup %9807  ;;  %v6000_v8 = vmul.f32 %v9806_v44, %v13741_v34  ;;  %v6010_v40 = vand.u32 2147483648, %v13741_v34  ;;  %9811 = vrcp.f32 %v13773_v61 }
 0x7b1   : > { %v5997_v18 = vsel %vm5994_vm15, %v5996_v5, %v5992_v37  ;;  %8986 = vmatmul.msk.bf16.gmra.mxu3 %vm6944_vm14, %v6912_v57  ;;  %v6548_v58 = vsub.f32 1.0, %v6547_v48  ;;  %v13796_v2 = vadd.f32 %v6139_v41, %v13249_v17  ;;  %v13799_v38 = vadd.f32 %v5401_v51, %v15593_v23 }
 0x7b2   : > { %v13789_v21 = vmul.f32 %v5997_v18, %v13655_v45  ;;  %vm6551_vm2 = vweird.f32 %v13739_v31  ;;  %vm13803_vm0 = vcmp.eq.f32.partialorder %v6555_v50, 8.507059e+37  ;;  %v6001_v20 = vsub.f32 1.0, %v6000_v8 }
 0x7b3   : > { %v6549_v43 = vmul.f32 %v13769_v42, %v6548_v58  ;;  %v13811_v15 = vmul.f32 %v13786_v12, %v13745_v16  ;;  %vm6552_vm3 = vweird.f32 %v13769_v42  ;;  %v6558_v17 = vor.u32 1.1754944e-38, %v6557_v7 }
 0x7b4   : > { %6164 = vrot.lane.b32.xlu0 %v13789_v21, %s10242_s27  ;;  %vm6004_vm4 = vweird.f32 %v13741_v34  ;;  %v6002_v4 = vmul.f32 %v9806_v44, %v6001_v20  ;;  %vm6005_vm1 = vweird.f32 %v9806_v44  ;;  %vm13816_vm5 = vcmp.eq.f32.partialorder %v6008_v46, 8.507059e+37  ;;  %vm13825_vm7 = vmor %vm6551_vm2, %vm6552_vm3  ;;  %v6145_v23 = vpop.permute.xlu2 %6144 }
 0x7b5   : > { %v6550_v56 = vadd.f32 %v13769_v42, %v6549_v43  ;;  %v9810_v0 = vpop.eup %9809  ;;  %v6011_v13 = vor.u32 1.1754944e-38, %v6010_v40  ;;  %vm6566_vm6 = vweird.f32 %v13771_v60  ;;  %v8957_v53 = vmul.f32 -0.5, %v13796_v2  ;;  %vm6006_vm8 = vmor %vm6004_vm4, %vm6005_vm1 }
 0x7b6   : > { %v8941_v6 = vmul.f32 -1.442695, %v13799_v38  ;;  %v6003_v28 = vadd.f32 %v9806_v44, %v6002_v4  ;;  %v6562_v33 = vmul.f32 %v9810_v0, %v13771_v60  ;;  %v6570_v59 = vand.u32 2147483647, %v13771_v60  ;;  %v9812_v14 = vpop.eup %9811 }
 0x7b7   : > { %v13832_v10 = vadd.f32 %v6135_v35, %v13223_v47  ;;  %v6572_v11 = vand.u32 2147483648, %v13771_v60  ;;  %vm6019_vm9 = vweird.f32 %v13773_v61  ;;  %v6330_v31 = vmul.f32 1.442695, %v8957_v53  ;;  %v6137_v47 = vpop.permute.xlu1 %6136 }
 0x7b8   : > { %9813 = vpow2.f32 %v8941_v6  ;;  %v6554_v57 = vsel %vm13825_vm7, %v13769_v42, %v6550_v56  ;;  %v6007_v5 = vsel %vm6006_vm8, %v9806_v44, %v6003_v28  ;;  %v6563_v37 = vsub.f32 1.0, %v6562_v33 }
 0x7b9   : > { %v6015_v48 = vmul.f32 %v9812_v14, %v13773_v61  ;;  %v6012_v50 = vsel %vm13816_vm5, %v6011_v13, %v6007_v5  ;;  %vm6567_vm10 = vweird.f32 %v9810_v0  ;;  %v6023_v34 = vand.u32 2147483647, %v13773_v61 }
 0x7ba   : > { %v6025_v41 = vand.u32 2147483648, %v13773_v61  ;;  %v13847_v51 = vmul.f32 %v6012_v50, %v13678_v54  ;;  %v6564_v18 = vmul.f32 %v9810_v0, %v6563_v37  ;;  %v8955_v42 = vmul.f32 -0.5, %v13832_v10  ;;  %vm6568_vm13 = vmor %vm6566_vm6, %vm6567_vm10 }
 0x7bb   : > { %v6016_v7 = vsub.f32 1.0, %v6015_v48  ;;  %v6559_v44 = vsel %vm13803_vm0, %v6558_v17, %v6554_v57  ;;  %vm13852_vm11 = vcmp.eq.f32.partialorder %v6570_v59, 8.507059e+37  ;;  %9815 = vpow2.f32 %v6330_v31 }
 0x7bc   : > { %v13857_v8 = vadd.f32 %v6137_v47, %v13235_v36  ;;  %v6565_v46 = vadd.f32 %v9810_v0, %v6564_v18  ;;  %vm6020_vm12 = vweird.f32 %v9812_v14  ;;  %v6326_v54 = vmul.f32 1.442695, %v8955_v42  ;;  %6166 = vrot.lane.b32.xlu1 %v13847_v51, %s10242_s27  ;;  %v6141_v43 = vpop.permute.xlu0 %6140 }
 0x7bd   : > { %v6017_v40 = vmul.f32 %v9812_v14, %v6016_v7  ;;  %v6573_v45 = vor.u32 1.1754944e-38, %v6572_v11  ;;  %vm13864_vm15 = vcmp.eq.f32.partialorder %v6023_v34, 8.507059e+37  ;;  %v6026_v36 = vor.u32 1.1754944e-38, %v6025_v41  ;;  %vm6021_vm2 = vmor %vm6019_vm9, %vm6020_vm12 }
 0x7be   : > { %v9814_v20 = vpop.eup %9813  ;;  %v8956_v35 = vmul.f32 -0.5, %v13857_v8  ;;  %v6569_v56 = vsel %vm6568_vm13, %v9810_v0, %v6565_v46  ;;  %9817 = vpow2.f32 %v6326_v54  ;;  %v6886_v13 = vmul.f32 %v6559_v44, %v13767_v32 }
 0x7bf   : > { %v6018_v4 = vadd.f32 %v9812_v14, %v6017_v40  ;;  %v5563_v1 = vadd.f32 1.0, %v9814_v20  ;;  %v6574_v53 = vsel %vm13852_vm11, %v6573_v45, %v6569_v56  ;;  %v13876_v60 = vadd.f32 %v6145_v23, %v13336_v22 }
 0x7c0   : > { %v13879_v6 = vadd.f32 %v6141_v43, %v13268_v9  ;;  %v6887_v0 = vmul.f32 %v6574_v53, %v13782_v24  ;;  %v6328_v28 = vmul.f32 1.442695, %v8956_v35  ;;  %v6578_v22 = vsub.f32 1.0, %v13811_v15 }
 0x7c1   : > { %v6022_v29 = vsel %vm6021_vm2, %v9812_v14, %v6018_v4  ;;  %9819 = vrcp.f32 %v5563_v1  ;;  %v9816_v33 = vpop.eup %9815  ;;  %v8960_v31 = vmul.f32 -0.5, %v13876_v60  ;;  %v6038_v42 = vand.u32 2147483647, %v5563_v1 }
 0x7c2   : > { %v6027_v32 = vsel %vm13864_vm15, %v6026_v36, %v6022_v29  ;;  %v6913_v11 = vpack.c.bf16 %v6887_v0, %v6886_v13  ;;  %v13889_v57 = vadd.f32 1.0, %v9816_v33  ;;  %9821 = vpow2.f32 %v6328_v28 }
 0x7c3   : > { %v13885_v61 = vmul.f32 %v6027_v32, %v13716_v52  ;;  %v8958_v24 = vmul.f32 -0.5, %v13879_v6  ;;  %v6579_v47 = vmul.f32 %v13786_v12, %v6578_v22  ;;  %v6336_v50 = vmul.f32 1.442695, %v8960_v31 }
 0x7c4   : > { %v9818_v9 = vpop.eup %9817  ;;  %8987 = vmatmul.msk.bf16.gmra.mxu3 %vm6944_vm14, %v6913_v11  ;;  %vm6582_vm3 = vweird.f32 %v13786_v12  ;;  %v6585_v46 = vand.u32 2147483647, %v13745_v16  ;;  %v6587_v54 = vand.u32 2147483648, %v13745_v16  ;;  %vm6034_vm4 = vweird.f32 %v5563_v1 }
 0x7c5   : > { %6168 = vrot.lane.b32.xlu2 %v13885_v61, %s10242_s27  ;;  %v13898_v52 = vadd.f32 1.0, %v9818_v9  ;;  %v6332_v15 = vmul.f32 1.442695, %v8958_v24  ;;  %v6580_v58 = vadd.f32 %v13786_v12, %v6579_v47  ;;  %vm6581_vm1 = vweird.f32 %v13745_v16 }
 0x7c6   : > { %v6143_v59 = vpop.permute.xlu1 %6142  ;;  %vm13915_vm6 = vmor %vm6581_vm1, %vm6582_vm3  ;;  %vm6039_vm7 = vcmp.eq.f32.partialorder %v6038_v42, 8.507059e+37  ;;  %vm6586_vm8 = vcmp.eq.f32.partialorder %v6585_v46, 8.507059e+37  ;;  %v6588_v16 = vor.u32 1.1754944e-38, %v6587_v54  ;;  %v6248_v22 = vmul.f32 0.5, %v13652_v3 }
 0x7c7   : > { %v13896_v14 = vadd.f32 %v6143_v59, %v13312_v19  ;;  %v9820_v5 = vpop.eup %9819  ;;  %9823 = vrcp.f32 %v13898_v52  ;;  %v6040_v19 = vand.u32 2147483648, %v5563_v1  ;;  %v6584_v4 = vsel %vm13915_vm6, %v13786_v12, %v6580_v58 }
 0x7c8   : > { %v6030_v48 = vmul.f32 %v9820_v5, %v5563_v1  ;;  %9825 = vrcp.f32 %v13889_v57  ;;  %v9822_v18 = vpop.eup %9821  ;;  %vm6035_vm0 = vweird.f32 %v9820_v5  ;;  %v6600_v0 = vand.u32 2147483647, %v13898_v52 }
 0x7c9   : > { %v8959_v37 = vmul.f32 -0.5, %v13896_v14  ;;  %9827 = vpow2.f32 %v6332_v15  ;;  %v13904_v44 = vadd.f32 1.0, %v9822_v18  ;;  %vm6036_vm5 = vmor %vm6034_vm4, %vm6035_vm0  ;;  %v6041_v20 = vor.u32 1.1754944e-38, %v6040_v19 }
 0x7ca   : > { %v6031_v41 = vsub.f32 1.0, %v6030_v48  ;;  %v6602_v29 = vand.u32 2147483648, %v13898_v52  ;;  %v6589_v31 = vsel %vm6586_vm8, %v6588_v16, %v6584_v4  ;;  %v6249_v9 = vmul.f32 0.5, %v13832_v10 }
 0x7cb   : > { %v6334_v34 = vmul.f32 1.442695, %v8959_v37  ;;  %vm6596_vm10 = vweird.f32 %v13898_v52  ;;  %vm6601_vm12 = vcmp.eq.f32.partialorder %v6600_v0, 8.507059e+37  ;;  %vm6611_vm2 = vweird.f32 %v13904_v44 }
 0x7cc   : > { %v6032_v7 = vmul.f32 %v9820_v5, %v6031_v41  ;;  %v6603_v15 = vor.u32 1.1754944e-38, %v6602_v29  ;;  %vm6626_vm0 = vweird.f32 %v13889_v57 }
 0x7cd   : > { %9829 = vpow2.f32 %v6334_v34  ;;  %v9824_v40 = vpop.eup %9823  ;;  %v6888_v34 = vmul.f32 %v6589_v31, %v6248_v22 }
 0x7ce   : > { %9831 = vpow2.f32 %v6336_v50  ;;  %v6033_v23 = vadd.f32 %v9820_v5, %v6032_v7  ;;  %v13911_v43 = vpop.eup %9825  ;;  %v6592_v45 = vmul.f32 %v9824_v40, %v13898_v52  ;;  %vm6597_vm9 = vweird.f32 %v9824_v40 }
 0x7cf   : > { %9833 = vrcp.f32 %v13904_v44  ;;  %v9828_v17 = vpop.eup %9827  ;;  %v6622_v33 = vmul.f32 %v13911_v43, %v13889_v57  ;;  %vm6598_vm11 = vmor %vm6596_vm10, %vm6597_vm9  ;;  %vm6627_vm15 = vweird.f32 %v13911_v43 }
 0x7d0   : > { %v6037_v35 = vsel %vm6036_vm5, %v9820_v5, %v6033_v23  ;;  %v6593_v13 = vsub.f32 1.0, %v6592_v45  ;;  %v6151_v12 = vpop.permute.xlu2 %6150  ;;  %v6615_v45 = vand.u32 2147483647, %v13904_v44  ;;  %vm13990_vm4 = vmor %vm6626_vm0, %vm6627_vm15 }
 0x7d1   : > { %v6042_v1 = vsel %vm6039_vm7, %v6041_v20, %v6037_v35  ;;  %v13944_v3 = vadd.f32 %v6151_v12, %v13476_v26  ;;  %v6623_v37 = vsub.f32 1.0, %v6622_v33  ;;  %v6617_v20 = vand.u32 2147483648, %v13904_v44 }
 0x7d2   : > { %v13923_v53 = vmul.f32 %v6042_v1, %v13799_v38  ;;  %v6594_v32 = vmul.f32 %v9824_v40, %v6593_v13  ;;  %v13934_v38 = vadd.f32 1.0, %v9828_v17  ;;  %v6632_v35 = vand.u32 2147483648, %v13889_v57 }
 0x7d3   : > { %v9830_v56 = vpop.eup %9829  ;;  %v8963_v19 = vmul.f32 -0.5, %v13944_v3  ;;  %v6624_v7 = vmul.f32 %v13911_v43, %v6623_v37  ;;  %vm6616_vm1 = vcmp.eq.f32.partialorder %v6615_v45, 8.507059e+37 }
 0x7d4   : > { %v9832_v28 = vpop.eup %9831  ;;  %v13929_v59 = vadd.f32 1.0, %v9830_v56  ;;  %6170 = vrot.lane.b32.xlu0 %v13923_v53, %s10242_s27  ;;  %v6595_v24 = vadd.f32 %v9824_v40, %v6594_v32  ;;  %v6147_v52 = vpop.permute.xlu0 %6146  ;;  %v6633_v12 = vor.u32 1.1754944e-38, %v6632_v35  ;;  %v6253_v56 = vmul.f32 0.5, %v13896_v14  ;;  %s9118_s27 = sshll.u32 %s10321_s17, 8  ;;  %s8312_s17 = scalar_lea.sflag [#allocation3], %s403_s20 }
 0x7d5   : > { %v13931_v11 = vpop.eup %9833  ;;  %v13946_v50 = vadd.f32 1.0, %v9832_v28  ;;  %v13954_v26 = vadd.f32 %v6147_v52, %v13374_v27  ;;  %v6342_v46 = vmul.f32 1.442695, %v8963_v19  ;;  %v6625_v27 = vadd.f32 %v13911_v43, %v6624_v7  ;;  %s8324_s12 = scalar_lea.hbm %s15280_s10, %s9118_s27 }
 0x7d6   : > { %v6607_v5 = vmul.f32 %v13931_v11, %v13904_v44  ;;  %9835 = vrcp.f32 %v13929_v59  ;;  %v6599_v48 = vsel %vm6598_vm11, %v9824_v40, %v6595_v24  ;;  %vm6612_vm13 = vweird.f32 %v13931_v11  ;;  %s8327_s25 = sshll.u32 %s8324_s12, 4  ;;  %s8328_s25 = int_to_ptr.hbm [resolvable:$true] %s8327_s25 }
 0x7d7   : > { %v6604_v10 = vsel %vm6601_vm12, %v6603_v15, %v6599_v48  ;;  %9837 = vrcp.f32 %v13934_v38  ;;  %v8961_v36 = vmul.f32 -0.5, %v13954_v26  ;;  %vm13973_vm3 = vmor %vm6611_vm2, %vm6612_vm13  ;;  %v6630_v44 = vand.u32 2147483647, %v13889_v57  ;;  %s10190_s28 = sshra.s32 %s8328_s25, 4  ;;  %s10191_s28 = int_to_ptr.hbm [resolvable:$true] %s10190_s28 }
 0x7d8   : > { %v6608_v47 = vsub.f32 1.0, %v6607_v5  ;;  %v6889_v41 = vmul.f32 %v6604_v10, %v6249_v9  ;;  %9839 = vrcp.f32 %v13946_v50  ;;  %v6629_v57 = vsel %vm13990_vm4, %v13911_v43, %v6625_v27  ;;  %s10192_s18 = scalar_lea.hbm %s10191_s28, 256  ;;  %p10197_p0 = scmp.lt.s32.totalorder %s10191_s28, %s15280_s10 }
 0x7d9   : > { %9841 = vpow2.f32 %v6342_v46  ;;  %v6338_v0 = vmul.f32 1.442695, %v8961_v36  ;;  %vm6631_vm5 = vcmp.eq.f32.partialorder %v6630_v44, 8.507059e+37  ;;  %v6250_v9 = vmul.f32 0.5, %v13857_v8  ;;  %p10193_p11 = scmp.ne.s32.totalorder %s10191_s28, %s10192_s18  ;;  %p10198_p1 = scmp.lt.s32.totalorder %s10196_s30, %s10192_s18 }
 0x7da   : > { %v6609_v18 = vmul.f32 %v13931_v11, %v6608_v47  ;;  %v6914_v42 = vpack.c.bf16 %v6889_v41, %v6888_v34  ;;  %v6634_v15 = vsel %vm6631_vm5, %v6633_v12, %v6629_v57  ;;  %v6251_v43 = vmul.f32 0.5, %v13796_v2  ;;  %v14008_v47 = vld [vmem:[%s15277_s7] ss:$0 sm:$0xff] }
 0x7db   : > { %9843 = vpow2.f32 %v6338_v0  ;;  %v6647_v41 = vand.u32 2147483648, %v13934_v38  ;;  %vm6656_vm6 = vweird.f32 %v13929_v59  ;;  %v6662_v27 = vand.u32 2147483648, %v13929_v59  ;;  %p10194_p12 = pnand %p10193_p11, %p10338_p5  ;;  %p10199_p2 = por %p10198_p1, %p10197_p0 }
 0x7dc   : > { %v13956_v58 = vpop.eup %9835  ;;  %v6610_v40 = vadd.f32 %v13931_v11, %v6609_v18  ;;  %8988 = vmatmul.msk.bf16.gmra.mxu3 %vm6944_vm14, %v6914_v42  ;;  %v6891_v34 = vmul.f32 %v6634_v15, %v6251_v43  ;;  %v6677_v35 = vand.u32 2147483648, %v13946_v50  ;;  %vm6641_vm11 = vweird.f32 %v13934_v38 }
 0x7dd   : > { %v13961_v23 = vpop.eup %9837  ;;  %v6652_v17 = vmul.f32 %v13956_v58, %v13929_v59  ;;  %vm6657_vm7 = vweird.f32 %v13956_v58  ;;  %v6648_v29 = vor.u32 1.1754944e-38, %v6647_v41  ;;  %vm6671_vm15 = vweird.f32 %v13946_v50  ;;  %p10195_p13 = pneg %p10194_p12 }
 0x7de   : > { %v6149_v54 = vpop.permute.xlu1 %6148  ;;  %v13980_v1 = vpop.eup %9839  ;;  %v6614_v13 = vsel %vm13973_vm3, %v13931_v11, %v6610_v40  ;;  %v6637_v16 = vmul.f32 %v13961_v23, %v13934_v38  ;;  %vm6642_vm8 = vweird.f32 %v13961_v23  ;;  %vm14038_vm9 = vmor %vm6656_vm6, %vm6657_vm7  ;;  %v6252_v43 = vmul.f32 0.5, %v13879_v6 }
 0x7df   : > { %v13978_v4 = vadd.f32 %v6149_v54, %v13423_v55  ;;  %v6618_v55 = vor.u32 1.1754944e-38, %v6617_v20  ;;  %v6653_v33 = vsub.f32 1.0, %v6652_v17  ;;  %v9842_v32 = vpop.eup %9841  ;;  %v6667_v22 = vmul.f32 %v13980_v1, %v13946_v50  ;;  %vm14052_vm12 = vmor %vm6641_vm11, %vm6642_vm8  ;;  %p10200_p3 = pnand %p10199_p2, %p10195_p13 }
 0x7e0   : > { %v6638_v24 = vsub.f32 1.0, %v6637_v16  ;;  %v14001_v5 = vadd.f32 1.0, %v9842_v32  ;;  %v6660_v20 = vand.u32 2147483647, %v13929_v59  ;;  %vm6672_vm10 = vweird.f32 %v13980_v1 }
 0x7e1   : > { %v8962_v28 = vmul.f32 -0.5, %v13978_v4  ;;  %v6619_v11 = vsel %vm6616_vm1, %v6618_v55, %v6614_v13  ;;  %v6654_v48 = vmul.f32 %v13956_v58, %v6653_v33  ;;  %v6668_v10 = vsub.f32 1.0, %v6667_v22  ;;  %v9844_v52 = vpop.eup %9843  ;;  %vm14079_vm0 = vmor %vm6671_vm15, %vm6672_vm10 }
 0x7e2   : > { %v6890_v37 = vmul.f32 %v6619_v11, %v6250_v9  ;;  %v6639_v8 = vmul.f32 %v13961_v23, %v6638_v24  ;;  %v14014_v2 = vadd.f32 1.0, %v9844_v52  ;;  %v6663_v55 = vor.u32 1.1754944e-38, %v6662_v27 }
 0x7e3   : > { %v6340_v31 = vmul.f32 1.442695, %v8962_v28  ;;  %v6655_v7 = vadd.f32 %v13956_v58, %v6654_v48  ;;  %v6669_v54 = vmul.f32 %v13980_v1, %v6668_v10  ;;  %vm6661_vm13 = vcmp.eq.f32.partialorder %v6660_v20, 8.507059e+37 }
 0x7e4   : > { %v6915_v19 = vpack.c.bf16 %v6891_v34, %v6890_v37  ;;  %v6640_v45 = vadd.f32 %v13961_v23, %v6639_v8  ;;  %v6678_v34 = vor.u32 1.1754944e-38, %v6677_v35  ;;  %v6254_v20 = vmul.f32 0.5, %v13876_v60 }
 0x7e5   : > { %9845 = vpow2.f32 %v6340_v31  ;;  %v6659_v14 = vsel %vm14038_vm9, %v13956_v58, %v6655_v7  ;;  %v6670_v57 = vadd.f32 %v13980_v1, %v6669_v54  ;;  %v14096_v27 = vmul.f32 0.5, %v13944_v3 }
 0x7e6   : > { %9847 = vrcp.f32 %v14001_v5  ;;  %v6644_v33 = vsel %vm14052_vm12, %v13961_v23, %v6640_v45  ;;  %v6664_v32 = vsel %vm6661_vm13, %v6663_v55, %v6659_v14  ;;  %v6255_v35 = vmul.f32 0.5, %v13954_v26 }
 0x7e7   : > { %9849 = vrcp.f32 %v14014_v2  ;;  %v6893_v37 = vmul.f32 %v6664_v32, %v6253_v56  ;;  %v6692_v60 = vand.u32 2147483648, %v14014_v2  ;;  %vm6686_vm1 = vweird.f32 %v14014_v2 }
 0x7e8   : > { %v6690_v26 = vand.u32 2147483647, %v14014_v2  ;;  %v14114_v59 = vmul.f32 0.5, %v13978_v4  ;;  %vm6716_vm5 = vweird.f32 %v14001_v5 }
 0x7ea   : > { %vm6691_vm9 = vcmp.eq.f32.partialorder %v6690_v26, 8.507059e+37 }
 0x7eb   : > { %v9846_v40 = vpop.eup %9845 }
 0x7ec   : > { %v7002_v18 = vpop.f32.mrf.mxu3  ;;  %v6157_v42 = vpop.permute.xlu2 %6156  ;;  %8989 = vmatmul.msk.bf16.gmra.mxu3 %vm6944_vm14, %v6915_v19  ;;  %v14042_v13 = vadd.f32 1.0, %v9846_v40 }
 0x7ed   : > { %v14019_v46 = vadd.f32 %v14008_v47, %v7002_v18  ;;  %v14029_v17 = vadd.f32 %v6157_v42, %v13632_v62  ;;  %v6153_v16 = vpop.permute.xlu0 %6152  ;;  %v14044_v0 = vpop.eup %9847  ;;  %v6645_v62 = vand.u32 2147483647, %v13934_v38 }
 0x7ee   : > { %v14062_v38 = vadd.f32 %v6153_v16, %v13517_v63  ;;  %v14064_v58 = vpop.eup %9849  ;;  %v6712_v12 = vmul.f32 %v14044_v0, %v14001_v5  ;;  %v6675_v63 = vand.u32 2147483647, %v13946_v50  ;;  %v6674_v50 = vsel %vm14079_vm0, %v13980_v1, %v6670_v57 }
 0x7ef   : > { %v8998_v36 = vmul.f32 -1.442695, %v14019_v46  ;;  %v8966_v28 = vmul.f32 -0.5, %v14029_v17  ;;  %vm6646_vm2 = vcmp.eq.f32.partialorder %v6645_v62, 8.507059e+37  ;;  %v6682_v23 = vmul.f32 %v14064_v58, %v14014_v2 }
 0x7f0   : > { %v8964_v31 = vmul.f32 -0.5, %v14062_v38  ;;  %v6649_v9 = vsel %vm6646_vm2, %v6648_v29, %v6644_v33  ;;  %v6713_v8 = vsub.f32 1.0, %v6712_v12  ;;  %vm6676_vm3 = vcmp.eq.f32.partialorder %v6675_v63, 8.507059e+37 }
 0x7f1   : > { %9851 = vpow2.f32 %v8998_v36  ;;  %v6348_v11 = vmul.f32 1.442695, %v8966_v28  ;;  %v6683_v48 = vsub.f32 1.0, %v6682_v23  ;;  %v6892_v18 = vmul.f32 %v6649_v9, %v6252_v43 }
 0x7f2   : > { %9853 = vrcp.f32 %v14042_v13  ;;  %v6344_v10 = vmul.f32 1.442695, %v8964_v31  ;;  %v6679_v6 = vsel %vm6676_vm3, %v6678_v34, %v6674_v50  ;;  %v6714_v45 = vmul.f32 %v14044_v0, %v6713_v8 }
 0x7f3   : > { %9855 = vpow2.f32 %v6348_v11  ;;  %v6684_v19 = vmul.f32 %v14064_v58, %v6683_v48  ;;  %v6916_v40 = vpack.c.bf16 %v6893_v37, %v6892_v18  ;;  %vm6687_vm4 = vweird.f32 %v14064_v58 }
 0x7f4   : > { %v7004_v22 = vpop.f32.mrf.mxu3  ;;  %9857 = vpow2.f32 %v6344_v10  ;;  %v14104_v16 = vmul.f32 %v6679_v6, %v6254_v20  ;;  %v6720_v62 = vand.u32 2147483647, %v14001_v5  ;;  %v6715_v28 = vadd.f32 %v14044_v0, %v6714_v45  ;;  %vm14125_vm7 = vmor %vm6686_vm1, %vm6687_vm4 }
 0x7f5   : > { %v14075_v24 = vadd.f32 %v14008_v47, %v7004_v22  ;;  %v6685_v56 = vadd.f32 %v14064_v58, %v6684_v19  ;;  %vm6717_vm6 = vweird.f32 %v14044_v0  ;;  %v6693_v22 = vor.u32 1.1754944e-38, %v6692_v60 }
 0x7f6   : > { %vm14138_vm8 = vcmp.eq.f32.partialorder %v6720_v62, 8.507059e+37  ;;  %v6705_v63 = vand.u32 2147483647, %v14042_v13  ;;  %vm14154_vm10 = vmor %vm6716_vm5, %vm6717_vm6  ;;  %vm6701_vm11 = vweird.f32 %v14042_v13  ;;  %v14167_v50 = vmul.f32 0.5, %v14029_v17 }
 0x7f7   : > { %v9852_v52 = vpop.eup %9851  ;;  %v8999_v41 = vmul.f32 -1.442695, %v14075_v24  ;;  %v6689_v57 = vsel %vm14125_vm7, %v14064_v58, %v6685_v56  ;;  %v6719_v10 = vsel %vm14154_vm10, %v14044_v0, %v6715_v28 }
 0x7f8   : > { %v14089_v7 = vadd.f32 1.0, %v9852_v52  ;;  %v14091_v42 = vpop.eup %9853  ;;  %v6694_v43 = vsel %vm6691_vm9, %v6693_v22, %v6689_v57  ;;  %vm14170_vm12 = vcmp.eq.f32.partialorder %v6705_v63, 8.507059e+37 }
 0x7f9   : > { %9859 = vpow2.f32 %v8999_v41  ;;  %v9856_v1 = vpop.eup %9855  ;;  %v6697_v44 = vmul.f32 %v14091_v42, %v14042_v13  ;;  %v6895_v41 = vmul.f32 %v6694_v43, %v6255_v35  ;;  %vm6702_vm13 = vweird.f32 %v14091_v42 }
 0x7fa   : > { %9861 = vrcp.f32 %v14089_v7  ;;  %v6155_v54 = vpop.permute.xlu1 %6154  ;;  %v9858_v14 = vpop.eup %9857  ;;  %v14116_v29 = vadd.f32 1.0, %v9856_v1  ;;  %v7219_v17 = vand.u32 2147483647, %v14089_v7  ;;  %v7221_v20 = vand.u32 2147483648, %v14089_v7  ;;  %vm14207_vm0 = vmor %vm6701_vm11, %vm6702_vm13 }
 0x7fb   : > { %v14109_v3 = vadd.f32 %v6155_v54, %v13579_v30  ;;  %v6722_v30 = vand.u32 2147483648, %v14001_v5  ;;  %v6698_v33 = vsub.f32 1.0, %v6697_v44  ;;  %v14134_v32 = vadd.f32 1.0, %v9858_v14 }
 0x7fc   : > { %v7007_v36 = vpop.f32.mrf.mxu3  ;;  %8990 = vmatmul.msk.bf16.gmra.mxu3 %vm6944_vm14, %v6916_v40  ;;  %9863 = vrcp.f32 %v14116_v29  ;;  %v6707_v5 = vand.u32 2147483648, %v14042_v13  ;;  %v9116_v40 = vld [vmem:[%s15278_s8 + $0x8] sm:$0xff]  ;;  %v14193_v44 = vmul.f32 0.5, %v14062_v38  ;;  %v6917_v14 = vpack.c.bf16 %v6895_v41, %v14104_v16  ;;  %v9115_v16 = vld [vmem:[%s15278_s8] sm:$0xff] }
 0x7fd   : > { %v8965_v31 = vmul.f32 -0.5, %v14109_v3  ;;  %v14148_v58 = vadd.f32 %v14008_v47, %v7007_v36  ;;  %v6723_v15 = vor.u32 1.1754944e-38, %v6722_v30  ;;  %v6699_v52 = vmul.f32 %v14091_v42, %v6698_v33  ;;  %7812 = vmatpush.bf16.msra.mxu0 %v9116_v40 }
 0x7fe   : > { %v6708_v35 = vor.u32 1.1754944e-38, %v6707_v5  ;;  %vm7215_vm2 = vweird.f32 %v14089_v7  ;;  %vm14213_vm3 = vcmp.eq.f32.partialorder %v7219_v17, 8.507059e+37  ;;  %v7222_v2 = vor.u32 1.1754944e-38, %v7221_v20 }
 0x7ff   : > { %v9860_v55 = vpop.eup %9859  ;;  %v6346_v8 = vmul.f32 1.442695, %v8965_v31  ;;  %v9000_v0 = vmul.f32 -1.442695, %v14148_v58  ;;  %v6724_v6 = vsel %vm14138_vm8, %v6723_v15, %v6719_v10  ;;  %v6700_v1 = vadd.f32 %v14091_v42, %v6699_v52 }
 0x800   : > { %v14129_v4 = vpop.eup %9861  ;;  %v14136_v12 = vadd.f32 1.0, %v9860_v55  ;;  %v14198_v60 = vmul.f32 %v6724_v6, %v14096_v27  ;;  %v6767_v11 = vand.u32 2147483648, %v14116_v29  ;;  %vm6761_vm7 = vweird.f32 %v14116_v29 }
 0x801   : > { %v7211_v23 = vmul.f32 %v14129_v4, %v14089_v7  ;;  %vm7216_vm15 = vweird.f32 %v14129_v4  ;;  %v6704_v13 = vsel %vm14207_vm0, %v14091_v42, %v6700_v1  ;;  %7813 = vmatpush.bf16.msra.mxu0 %v9115_v16  ;;  %v6765_v40 = vand.u32 2147483647, %v14116_v29 }
 0x802   : > { %9865 = vrcp.f32 %v14136_v12  ;;  %v14185_v54 = vpop.eup %9863  ;;  %vm14228_vm4 = vmor %vm7215_vm2, %vm7216_vm15  ;;  %v7234_v9 = vand.u32 2147483647, %v14136_v12  ;;  %vm7230_vm5 = vweird.f32 %v14136_v12  ;;  %vm6731_vm10 = vweird.f32 %v14134_v32 }
 0x803   : > { %v7212_v37 = vsub.f32 1.0, %v7211_v23  ;;  %9867 = vrcp.f32 %v14134_v32  ;;  %v6757_v28 = vmul.f32 %v14185_v54, %v14116_v29  ;;  %vm6762_vm9 = vweird.f32 %v14185_v54 }
 0x804   : > { %v7009_v48 = vpop.f32.mrf.mxu3  ;;  %9869 = vpow2.f32 %v6346_v8  ;;  %vm7235_vm8 = vcmp.eq.f32.partialorder %v7234_v9, 8.507059e+37  ;;  %vm14323_vm2 = vcmp.eq.f32.partialorder %v6765_v40, 8.507059e+37 }
 0x805   : > { %v7213_v34 = vmul.f32 %v14129_v4, %v7212_v37  ;;  %v14176_v19 = vadd.f32 %v14008_v47, %v7009_v48  ;;  %9871 = vpow2.f32 %v9000_v0  ;;  %v6709_v37 = vsel %vm14170_vm12, %v6708_v35, %v6704_v13  ;;  %vm14303_vm12 = vmor %vm6761_vm7, %vm6762_vm9 }
 0x806   : > { %v14259_v0 = vmul.f32 0.5, %v14109_v3  ;;  %v6896_v6 = vmul.f32 %v6709_v37, %v14114_v59  ;;  %v6735_v13 = vand.u32 2147483647, %v14134_v32 }
 0x807   : > { %v9001_v45 = vmul.f32 -1.442695, %v14176_v19  ;;  %v7214_v56 = vadd.f32 %v14129_v4, %v7213_v34 }
 0x808   : > { %v9866_v36 = vpop.eup %9865 }
 0x809   : > { %v14195_v62 = vpop.eup %9867  ;;  %v7226_v26 = vmul.f32 %v9866_v36, %v14136_v12  ;;  %9873 = vpow2.f32 %v9001_v45  ;;  %v7218_v22 = vsel %vm14228_vm4, %v14129_v4, %v7214_v56  ;;  %vm7231_vm1 = vweird.f32 %v9866_v36  ;;  %v6159_v43 = vpop.permute.xlu0 %6158 }
 0x80a   : > { %v6163_v55 = vpop.permute.xlu2 %6162  ;;  %v9870_v33 = vpop.eup %9869  ;;  %v6727_v42 = vmul.f32 %v14195_v62, %v14134_v32  ;;  %v6758_v4 = vsub.f32 1.0, %v6757_v28  ;;  %v7223_v10 = vsel %vm14213_vm3, %v7222_v2, %v7218_v22  ;;  %vm7232_vm6 = vmor %vm7230_vm5, %vm7231_vm1  ;;  %v14255_v18 = vadd.f32 %v6159_v43, %v13665_v49 }
 0x80b   : > { %v14218_v7 = vadd.f32 %v6163_v55, %v13763_v39  ;;  %v7227_v57 = vsub.f32 1.0, %v7226_v26  ;;  %v7236_v39 = vand.u32 2147483648, %v14136_v12  ;;  %v9872_v31 = vpop.eup %9871  ;;  %v14241_v15 = vadd.f32 1.0, %v9870_v33 }
 0x80c   : > { %8991 = vmatmul.msk.bf16.gmra.mxu3 %vm6944_vm14, %v6917_v14  ;;  %v14247_v48 = vadd.f32 1.0, %v9872_v31  ;;  %v6728_v8 = vsub.f32 1.0, %v6727_v42  ;;  %v6759_v17 = vmul.f32 %v14185_v54, %v6758_v4  ;;  %v14264_v45 = vor.u32 1.1754944e-38, %v6767_v11 }
 0x80d   : > { %v8969_v23 = vmul.f32 -0.5, %v14218_v7  ;;  %v7228_v63 = vmul.f32 %v9866_v36, %v7227_v57  ;;  %v7237_v5 = vor.u32 1.1754944e-38, %v7236_v39  ;;  %9875 = vrcp.f32 %v14241_v15 }
 0x80e   : > { %9877 = vrcp.f32 %v14247_v48  ;;  %v7690_v49 = vmul.f32 %v7223_v10, %v14019_v46  ;;  %v6729_v3 = vmul.f32 %v14195_v62, %v6728_v8  ;;  %v8967_v59 = vmul.f32 -0.5, %v14255_v18 }
 0x80f   : > { %v7229_v52 = vadd.f32 %v9866_v36, %v7228_v63  ;;  %v9874_v34 = vpop.eup %9873  ;;  %v6354_v41 = vmul.f32 1.442695, %v8969_v23  ;;  %v6737_v55 = vand.u32 2147483648, %v14134_v32  ;;  %v14285_v28 = vadd.f32 %v14185_v54, %v6759_v17 }
 0x810   : > { %v14268_v56 = vadd.f32 1.0, %v9874_v34  ;;  %v6350_v16 = vmul.f32 1.442695, %v8967_v59  ;;  %v14297_v2 = vadd.f32 %v14195_v62, %v6729_v3  ;;  %vm6732_vm11 = vweird.f32 %v14195_v62 }
 0x811   : > { %v7233_v12 = vsel %vm7232_vm6, %v9866_v36, %v7229_v52  ;;  %9879 = vpow2.f32 %v6354_v41  ;;  %v6918_v39 = vpack.c.bf16 %v14198_v60, %v6896_v6  ;;  %v6764_v23 = vsel %vm14303_vm12, %v14185_v54, %v14285_v28  ;;  %vm14316_vm13 = vmor %vm6731_vm10, %vm6732_vm11 }
 0x812   : > { %v7238_v1 = vsel %vm7235_vm8, %v7237_v5, %v7233_v12  ;;  %9881 = vrcp.f32 %v14268_v56  ;;  %v6738_v31 = vor.u32 1.1754944e-38, %v6737_v55  ;;  %v6750_v60 = vand.u32 2147483647, %v14241_v15 }
 0x813   : > { %v6161_v20 = vpop.permute.xlu1 %6160  ;;  %v7691_v35 = vmul.f32 %v7238_v1, %v14075_v24  ;;  %v14275_v26 = vpop.eup %9875  ;;  %9883 = vpow2.f32 %v6350_v16  ;;  %v6752_v43 = vand.u32 2147483648, %v14241_v15  ;;  %v6734_v32 = vsel %vm14316_vm13, %v14195_v62, %v14297_v2 }
 0x814   : > { %v7012_v36 = vpop.f32.mrf.mxu3  ;;  %v14280_v46 = vadd.f32 %v6161_v20, %v13702_v25  ;;  %v14282_v24 = vpop.eup %9877  ;;  %v6742_v27 = vmul.f32 %v14275_v26, %v14241_v15  ;;  %vm6747_vm15 = vweird.f32 %v14275_v26  ;;  %vm6746_vm0 = vweird.f32 %v14241_v15 }
 0x815   : > { %v14273_v14 = vadd.f32 %v14008_v47, %v7012_v36  ;;  %v7722_v38 = vpack.c.bf16 %v7691_v35, %v7690_v49  ;;  %v7241_v30 = vmul.f32 %v14282_v24, %v14247_v48  ;;  %vm7245_vm3 = vweird.f32 %v14247_v48  ;;  %vm14342_vm1 = vmor %vm6746_vm0, %vm6747_vm15 }
 0x816   : > { %v6743_v57 = vsub.f32 1.0, %v6742_v27  ;;  %v8968_v22 = vmul.f32 -0.5, %v14280_v46  ;;  %vm7246_vm4 = vweird.f32 %v14282_v24  ;;  %vm14346_vm5 = vcmp.eq.f32.partialorder %v6750_v60, 8.507059e+37 }
 0x817   : > { %v9002_v25 = vmul.f32 -1.442695, %v14273_v14  ;;  %9038 = vmatmul.msk.bf16.vlgmr.msra.gmra.mxu0 %vm6944_vm14, %v7722_v38  ;;  %v7242_v11 = vsub.f32 1.0, %v7241_v30  ;;  %v9880_v42 = vpop.eup %9879  ;;  %v7251_v12 = vand.u32 2147483648, %v14247_v48  ;;  %v6753_v1 = vor.u32 1.1754944e-38, %v6752_v43  ;;  %vm14362_vm6 = vmor %vm7245_vm3, %vm7246_vm4 }
 0x818   : > { %v6744_v63 = vmul.f32 %v14275_v26, %v6743_v57  ;;  %v9882_v29 = vpop.eup %9881  ;;  %v6352_v4 = vmul.f32 1.442695, %v8968_v22  ;;  %v14336_v34 = vadd.f32 1.0, %v9880_v42  ;;  %v7249_v20 = vand.u32 2147483647, %v14247_v48 }
 0x819   : > { %9885 = vpow2.f32 %v9002_v25  ;;  %v7243_v37 = vmul.f32 %v14282_v24, %v7242_v11  ;;  %v7256_v8 = vmul.f32 %v9882_v29, %v14268_v56  ;;  %v9884_v41 = vpop.eup %9883  ;;  %v7264_v36 = vand.u32 2147483647, %v14268_v56 }
 0x81a   : > { %v6745_v52 = vadd.f32 %v14275_v26, %v6744_v63  ;;  %9887 = vpow2.f32 %v6352_v4  ;;  %v7266_v3 = vand.u32 2147483648, %v14268_v56  ;;  %v14368_v59 = vadd.f32 1.0, %v9884_v41 }
 0x81b   : > { %v7244_v5 = vadd.f32 %v14282_v24, %v7243_v37  ;;  %v7257_v49 = vsub.f32 1.0, %v7256_v8  ;;  %9889 = vrcp.f32 %v14336_v34  ;;  %vm7261_vm7 = vweird.f32 %v9882_v29 }
 0x81c   : > { %v7014_v54 = vpop.f32.mrf.mxu3  ;;  %8992 = vmatmul.msk.bf16.gmra.mxu3 %vm6944_vm14, %v6918_v39  ;;  %v6749_v40 = vsel %vm14342_vm1, %v14275_v26, %v6745_v52  ;;  %v7252_v28 = vor.u32 1.1754944e-38, %v7251_v12  ;;  %9891 = vrcp.f32 %v14368_v59  ;;  %vm6736_vm8 = vcmp.eq.f32.partialorder %v6735_v13, 8.507059e+37 }
 0x81d   : > { %v14352_v6 = vadd.f32 %v14008_v47, %v7014_v54  ;;  %v7248_v26 = vsel %vm14362_vm6, %v14282_v24, %v7244_v5  ;;  %v7258_v38 = vmul.f32 %v9882_v29, %v7257_v49  ;;  %v6754_v48 = vsel %vm14346_vm5, %v6753_v1, %v6749_v40 }
 0x81e   : > { %vm7250_vm9 = vcmp.eq.f32.partialorder %v7249_v20, 8.507059e+37  ;;  %vm7260_vm10 = vweird.f32 %v14268_v56  ;;  %v6739_v2 = vsel %vm6736_vm8, %v6738_v31, %v6734_v32  ;;  %v7267_v39 = vor.u32 1.1754944e-38, %v7266_v3 }
 0x81f   : > { %v9886_v17 = vpop.eup %9885  ;;  %v9003_v27 = vmul.f32 -1.442695, %v14352_v6  ;;  %v7259_v16 = vadd.f32 %v9882_v29, %v7258_v38  ;;  %v6169_v30 = vpop.permute.xlu2 %6168  ;;  %v7253_v57 = vsel %vm7250_vm9, %v7252_v28, %v7248_v26  ;;  %vm7262_vm11 = vmor %vm7260_vm10, %vm7261_vm7  ;;  %v6769_v33 = vsel %vm14323_vm2, %v14264_v45, %v6764_v23 }
 0x820   : > { %v14370_v55 = vadd.f32 1.0, %v9886_v17  ;;  %v9888_v24 = vpop.eup %9887  ;;  %v6899_v11 = vmul.f32 %v6754_v48, %v14259_v0  ;;  %vm7265_vm12 = vcmp.eq.f32.partialorder %v7264_v36, 8.507059e+37  ;;  %v14389_v56 = vadd.f32 %v6169_v30, %v13885_v61 }
 0x821   : > { %v7263_v13 = vsel %vm7262_vm11, %v9882_v29, %v7259_v16  ;;  %v14386_v42 = vadd.f32 1.0, %v9888_v24  ;;  %v14391_v31 = vpop.eup %9889  ;;  %v6898_v63 = vmul.f32 %v6739_v2, %v14193_v44  ;;  %v7692_v60 = vmul.f32 %v7253_v57, %v14148_v58 }
 0x822   : > { %9893 = vrcp.f32 %v14370_v55  ;;  %v7268_v22 = vsel %vm7265_vm12, %v7267_v39, %v7263_v13  ;;  %v6812_v9 = vand.u32 2147483648, %v14336_v34  ;;  %v9892_v0 = vpop.eup %9891  ;;  %v6261_v23 = vmul.f32 0.5, %v14255_v18 }
 0x823   : > { %9895 = vpow2.f32 %v9003_v27  ;;  %v7693_v45 = vmul.f32 %v7268_v22, %v14176_v19  ;;  %v14400_v29 = vmul.f32 %v6769_v33, %v14167_v50  ;;  %v6919_v61 = vpack.c.bf16 %v6899_v11, %v6898_v63 }
 0x824   : > { %v7017_v25 = vpop.f32.mrf.mxu3  ;;  %9897 = vrcp.f32 %v14386_v42  ;;  %v6772_v37 = vmul.f32 %v9892_v0, %v14368_v59  ;;  %v6810_v58 = vand.u32 2147483647, %v14336_v34  ;;  %v14407_v54 = vmul.f32 0.5, %v14280_v46 }
 0x825   : > { %v7723_v43 = vpack.c.bf16 %v7693_v45, %v7692_v60  ;;  %v8972_v19 = vmul.f32 -0.5, %v14389_v56  ;;  %v14411_v18 = vadd.f32 %v14008_v47, %v7017_v25  ;;  %v6802_v50 = vmul.f32 %v14391_v31, %v14336_v34 }
 0x826   : > { %v6165_v4 = vpop.permute.xlu0 %6164  ;;  %v14415_v10 = vor.u32 1.1754944e-38, %v6812_v9  ;;  %v6773_v32 = vsub.f32 1.0, %v6772_v37  ;;  %v6780_v46 = vand.u32 2147483647, %v14368_v59  ;;  %v6782_v41 = vand.u32 2147483648, %v14368_v59 }
 0x827   : > { %9039 = vmatmul.msk.bf16.gmra.mxu0 %vm6944_vm14, %v7723_v43  ;;  %v6360_v62 = vmul.f32 1.442695, %v8972_v19  ;;  %v14423_v15 = vadd.f32 %v6165_v4, %v13789_v21  ;;  %vm6777_vm13 = vweird.f32 %v9892_v0  ;;  %v9004_v40 = vmul.f32 -1.442695, %v14411_v18 }
 0x828   : > { %v14403_v44 = vpop.eup %9893  ;;  %v6774_v12 = vmul.f32 %v9892_v0, %v6773_v32  ;;  %vm6776_vm15 = vweird.f32 %v14368_v59  ;;  %v6803_v35 = vsub.f32 1.0, %v6802_v50  ;;  %vm6781_vm0 = vcmp.eq.f32.partialorder %v6780_v46, 8.507059e+37 }
 0x829   : > { %v7271_v52 = vmul.f32 %v14403_v44, %v14370_v55  ;;  %v9896_v8 = vpop.eup %9895  ;;  %9899 = vpow2.f32 %v6360_v62  ;;  %v8970_v49 = vmul.f32 -0.5, %v14423_v15  ;;  %vm6778_vm2 = vmor %vm6776_vm15, %vm6777_vm13  ;;  %v6783_v26 = vor.u32 1.1754944e-38, %v6782_v41 }
 0x82a   : > { %v14425_v17 = vadd.f32 1.0, %v9896_v8  ;;  %v14429_v1 = vpop.eup %9897  ;;  %v6775_v36 = vadd.f32 %v9892_v0, %v6774_v12  ;;  %v7279_v38 = vand.u32 2147483647, %v14370_v55  ;;  %v7281_v48 = vand.u32 2147483648, %v14370_v55 }
 0x82b   : > { %v7272_v20 = vsub.f32 1.0, %v7271_v52  ;;  %v6787_v21 = vmul.f32 %v14429_v1, %v14386_v42  ;;  %vm6806_vm3 = vweird.f32 %v14336_v34  ;;  %vm6807_vm4 = vweird.f32 %v14391_v31 }
 0x82c   : > { %v7019_v5 = vpop.f32.mrf.mxu3  ;;  %8993 = vmatmul.msk.bf16.gmra.mxu3 %vm6944_vm14, %v6919_v61  ;;  %9901 = vrcp.f32 %v14425_v17  ;;  %v6779_v59 = vsel %vm6778_vm2, %v9892_v0, %v6775_v36  ;;  %v6356_v25 = vmul.f32 1.442695, %v8970_v49  ;;  %v6804_v24 = vmul.f32 %v14391_v31, %v6803_v35  ;;  %vm14496_vm11 = vmor %vm6806_vm3, %vm6807_vm4 }
 0x82d   : > { %v14436_v3 = vadd.f32 %v14008_v47, %v7019_v5  ;;  %v6788_v28 = vsub.f32 1.0, %v6787_v21  ;;  %9903 = vpow2.f32 %v9004_v40  ;;  %v6784_v16 = vsel %vm6781_vm0, %v6783_v26, %v6779_v59 }
 0x82e   : > { %v6167_v27 = vpop.permute.xlu1 %6166  ;;  %v7273_v30 = vmul.f32 %v14403_v44, %v7272_v20  ;;  %vm7275_vm1 = vweird.f32 %v14370_v55  ;;  %v6901_v11 = vmul.f32 %v6784_v16, %v6261_v23  ;;  %9905 = vpow2.f32 %v6356_v25 }
 0x82f   : > { %v6789_v2 = vmul.f32 %v14429_v1, %v6788_v28  ;;  %v9005_v57 = vmul.f32 -1.442695, %v14436_v3  ;;  %v9900_v33 = vpop.eup %9899  ;;  %v14449_v13 = vadd.f32 %v6167_v27, %v13847_v51  ;;  %vm7276_vm5 = vweird.f32 %v14403_v44 }
 0x830   : > { %vm14455_vm6 = vcmp.eq.f32.partialorder %v7279_v38, 8.507059e+37  ;;  %v7282_v60 = vor.u32 1.1754944e-38, %v7281_v48  ;;  %v14459_v9 = vadd.f32 1.0, %v9900_v33  ;;  %v7274_v0 = vadd.f32 %v14403_v44, %v7273_v30  ;;  %vm14476_vm9 = vmor %vm7275_vm1, %vm7276_vm5 }
 0x831   : > { %9907 = vpow2.f32 %v9005_v57  ;;  %v8971_v23 = vmul.f32 -0.5, %v14449_v13  ;;  %v6790_v43 = vadd.f32 %v14429_v1, %v6789_v2  ;;  %vm6791_vm7 = vweird.f32 %v14386_v42 }
 0x832   : > { %v9902_v45 = vpop.eup %9901  ;;  %vm6792_vm8 = vweird.f32 %v14429_v1  ;;  %v6805_v4 = vadd.f32 %v14391_v31, %v6804_v24  ;;  %v6920_v19 = vpack.c.bf16 %v6901_v11, %v14400_v29  ;;  %v6795_v50 = vand.u32 2147483647, %v14386_v42 }
 0x833   : > { %v9904_v61 = vpop.eup %9903  ;;  %v7286_v37 = vmul.f32 %v9902_v45, %v14425_v17  ;;  %v6797_v32 = vand.u32 2147483648, %v14386_v42  ;;  %9909 = vrcp.f32 %v14459_v9  ;;  %v6358_v46 = vmul.f32 1.442695, %v8971_v23  ;;  %vm14486_vm10 = vmor %vm6791_vm7, %vm6792_vm8 }
 0x834   : > { %v7022_v39 = vpop.f32.mrf.mxu3  ;;  %v14481_v8 = vadd.f32 1.0, %v9904_v61  ;;  %v9906_v41 = vpop.eup %9905  ;;  %v7278_v29 = vsel %vm14476_vm9, %v14403_v44, %v7274_v0  ;;  %v7294_v55 = vand.u32 2147483647, %v14425_v17  ;;  %v7296_v62 = vand.u32 2147483648, %v14425_v17 }
 0x835   : > { %v14452_v22 = vadd.f32 %v14008_v47, %v7022_v39  ;;  %v7287_v5 = vsub.f32 1.0, %v7286_v37  ;;  %v6794_v44 = vsel %vm14486_vm10, %v14429_v1, %v6790_v43  ;;  %vm7291_vm12 = vweird.f32 %v9902_v45 }
 0x836   : > { %v6809_v49 = vsel %vm14496_vm11, %v14391_v31, %v6805_v4  ;;  %v6798_v35 = vor.u32 1.1754944e-38, %v6797_v32  ;;  %v14507_v36 = vadd.f32 1.0, %v9906_v41  ;;  %vm6796_vm13 = vcmp.eq.f32.partialorder %v6795_v50, 8.507059e+37 }
 0x837   : > { %v9006_v51 = vmul.f32 -1.442695, %v14452_v22  ;;  %v7288_v40 = vmul.f32 %v9902_v45, %v7287_v5  ;;  %v9908_v20 = vpop.eup %9907  ;;  %vm7290_vm15 = vweird.f32 %v14425_v17  ;;  %vm6811_vm2 = vcmp.eq.f32.partialorder %v6810_v58, 8.507059e+37 }
 0x838   : > { %v14510_v26 = vadd.f32 1.0, %v9908_v20  ;;  %v7283_v1 = vsel %vm14455_vm6, %v7282_v60, %v7278_v29  ;;  %v6799_v38 = vsel %vm6796_vm13, %v6798_v35, %v6794_v44  ;;  %vm7292_vm0 = vmor %vm7290_vm15, %vm7291_vm12  ;;  %v7297_v31 = vor.u32 1.1754944e-38, %v7296_v62 }
 0x839   : > { %9911 = vpow2.f32 %v9006_v51  ;;  %v7289_v21 = vadd.f32 %v9902_v45, %v7288_v40  ;;  %v14518_v48 = vpop.eup %9909  ;;  %v6814_v28 = vsel %vm6811_vm2, %v14415_v10, %v6809_v49  ;;  %vm7295_vm3 = vcmp.eq.f32.partialorder %v7294_v55, 8.507059e+37 }
 0x83a   : > { %9913 = vrcp.f32 %v14481_v8  ;;  %v6263_v34 = vmul.f32 0.5, %v14218_v7  ;;  %v7694_v30 = vmul.f32 %v7283_v1, %v14273_v14  ;;  %v6902_v25 = vmul.f32 %v6799_v38, %v14407_v54 }
 0x83b   : > { %9915 = vpow2.f32 %v6358_v46  ;;  %v7293_v17 = vsel %vm7292_vm0, %v9902_v45, %v7289_v21  ;;  %v7309_v33 = vand.u32 2147483647, %v14481_v8  ;;  %v7311_v60 = vand.u32 2147483648, %v14481_v8 }
 0x83c   : > { %8994 = vmatmul.msk.bf16.gmra.mxu3 %vm6944_vm14, %v6920_v19  ;;  %v7024_v59 = vpop.f32.mrf.mxu3  ;;  %9917 = vrcp.f32 %v14507_v36  ;;  %v7298_v58 = vsel %vm7295_vm3, %v7297_v31, %v7293_v17  ;;  %v6903_v57 = vmul.f32 %v6814_v28, %v6263_v34  ;;  %v14536_v14 = vmul.f32 0.5, %v14449_v13 }
 0x83d   : > { %9919 = vrcp.f32 %v14510_v26  ;;  %v7695_v24 = vmul.f32 %v7298_v58, %v14352_v6  ;;  %v14532_v7 = vadd.f32 %v14008_v47, %v7024_v59  ;;  %v14542_v45 = vmul.f32 %v14518_v48, %v14459_v9 }
 0x83e   : > { %v6921_v6 = vpack.c.bf16 %v6903_v57, %v6902_v25  ;;  %vm7305_vm4 = vweird.f32 %v14481_v8  ;;  %vm14551_vm5 = vcmp.eq.f32.partialorder %v7309_v33, 8.507059e+37  ;;  %v6825_v43 = vand.u32 2147483647, %v14507_v36 }
 0x83f   : > { %v9912_v27 = vpop.eup %9911  ;;  %v7724_v39 = vpack.c.bf16 %v7695_v24, %v7694_v30  ;;  %v9007_v4 = vmul.f32 -1.442695, %v14532_v7  ;;  %v7312_v50 = vor.u32 1.1754944e-38, %v7311_v60  ;;  %v6827_v52 = vand.u32 2147483648, %v14507_v36  ;;  %v14615_v60 = vld [vmem:[%s15277_s7] ss:$0 sm:$0xff] }
 0x840   : > { %v9914_v16 = vpop.eup %9913  ;;  %v14545_v0 = vadd.f32 1.0, %v9912_v27  ;;  %vm6821_vm7 = vweird.f32 %v14507_v36  ;;  %v7324_v55 = vand.u32 2147483647, %v14510_v26  ;;  %v7326_v62 = vand.u32 2147483648, %v14510_v26 }
 0x841   : > { %v9916_v2 = vpop.eup %9915  ;;  %v7301_v10 = vmul.f32 %v9914_v16, %v14481_v8  ;;  %9040 = vmatmul.msk.bf16.gmra.mxu0 %vm6944_vm14, %v7724_v39  ;;  %vm7306_vm1 = vweird.f32 %v9914_v16  ;;  %v6848_v8 = vsub.f32 1.0, %v14542_v45  ;;  %vm14571_vm8 = vcmp.eq.f32.partialorder %v6825_v43, 8.507059e+37 }
 0x842   : > { %v14529_v11 = vadd.f32 1.0, %v9916_v2  ;;  %v14538_v54 = vpop.eup %9917  ;;  %vm14560_vm6 = vmor %vm7305_vm4, %vm7306_vm1  ;;  %vm7320_vm9 = vweird.f32 %v14510_v26  ;;  %v6828_v35 = vor.u32 1.1754944e-38, %v6827_v52  ;;  %vm7325_vm13 = vcmp.eq.f32.partialorder %v7324_v55, 8.507059e+37 }
 0x843   : > { %v7302_v63 = vsub.f32 1.0, %v7301_v10  ;;  %v9920_v23 = vpop.eup %9919  ;;  %v6817_v13 = vmul.f32 %v14538_v54, %v14507_v36  ;;  %vm6822_vm11 = vweird.f32 %v14538_v54  ;;  %v7327_v59 = vor.u32 1.1754944e-38, %v7326_v62 }
 0x844   : > { %9921 = vrcp.f32 %v14529_v11  ;;  %v7316_v37 = vmul.f32 %v9920_v23, %v14510_v26  ;;  %vm7321_vm10 = vweird.f32 %v9920_v23  ;;  %v6840_v17 = vand.u32 2147483647, %v14529_v11  ;;  %vm14598_vm15 = vmor %vm6821_vm7, %vm6822_vm11 }
 0x845   : > { %v7303_v51 = vmul.f32 %v9914_v16, %v7302_v63  ;;  %v6818_v32 = vsub.f32 1.0, %v6817_v13  ;;  %9923 = vrcp.f32 %v14545_v0  ;;  %vm7322_vm12 = vmor %vm7320_vm9, %vm7321_vm10  ;;  %vm6836_vm0 = vweird.f32 %v14529_v11 }
 0x846   : > { %v7317_v41 = vsub.f32 1.0, %v7316_v37  ;;  %v6171_v12 = vpop.permute.xlu0 %6170  ;;  %9925 = vpow2.f32 %v9007_v4  ;;  %vm6841_vm4 = vcmp.eq.f32.partialorder %v6840_v17, 8.507059e+37  ;;  %vm6851_vm7 = vweird.f32 %v14459_v9 }
 0x847   : > { %v7304_v19 = vadd.f32 %v9914_v16, %v7303_v51  ;;  %v7027_v5 = vpop.f32.mrf.mxu3  ;;  %v6819_v42 = vmul.f32 %v14538_v54, %v6818_v32  ;;  %v14582_v31 = vadd.f32 %v6171_v12, %v13923_v53 }
 0x848   : > { %v7318_v20 = vmul.f32 %v9920_v23, %v7317_v41  ;;  %v14586_v26 = vadd.f32 %v14008_v47, %v7027_v5 }
 0x849   : > { %v7308_v29 = vsel %vm14560_vm6, %v9914_v16, %v7304_v19  ;;  %v6820_v1 = vadd.f32 %v14538_v54, %v6819_v42  ;;  %v6842_v16 = vand.u32 2147483648, %v14529_v11  ;;  %v8973_v53 = vmul.f32 -0.5, %v14582_v31 }
 0x84a   : > { %v9922_v44 = vpop.eup %9921  ;;  %v7313_v49 = vsel %vm14551_vm5, %v7312_v50, %v7308_v29  ;;  %v7319_v38 = vadd.f32 %v9920_v23, %v7318_v20  ;;  %v9008_v36 = vmul.f32 -1.442695, %v14586_v26  ;;  %v6849_v50 = vmul.f32 %v14518_v48, %v6848_v8 }
 0x84b   : > { %v6832_v21 = vmul.f32 %v9922_v44, %v14529_v11  ;;  %v14589_v27 = vpop.eup %9923  ;;  %v7696_v34 = vmul.f32 %v7313_v49, %v14411_v18  ;;  %vm6837_vm2 = vweird.f32 %v9922_v44  ;;  %v6824_v57 = vsel %vm14598_vm15, %v14538_v54, %v6820_v1 }
 0x84c   : > { %8995 = vmatmul.msk.bf16.gmra.mxu3 %vm6944_vm14, %v6921_v6  ;;  %v7323_v58 = vsel %vm7322_vm12, %v9920_v23, %v7319_v38  ;;  %v7331_v24 = vmul.f32 %v14589_v27, %v14545_v0  ;;  %v9926_v2 = vpop.eup %9925  ;;  %v6362_v39 = vmul.f32 1.442695, %v8973_v53  ;;  %vm6838_vm3 = vmor %vm6836_vm0, %vm6837_vm2  ;;  %v6843_v54 = vor.u32 1.1754944e-38, %v6842_v16 }
 0x84d   : > { %v6833_v28 = vsub.f32 1.0, %v6832_v21  ;;  %v7328_v30 = vsel %vm7325_vm13, %v7327_v59, %v7323_v58  ;;  %v14610_v63 = vadd.f32 1.0, %v9926_v2  ;;  %v6829_v51 = vsel %vm14571_vm8, %v6828_v35, %v6824_v57 }
 0x84e   : > { %v7697_v10 = vmul.f32 %v7328_v30, %v14436_v3  ;;  %v7332_v3 = vsub.f32 1.0, %v7331_v24  ;;  %9927 = vpow2.f32 %v6362_v39  ;;  %v6264_v11 = vmul.f32 0.5, %v14423_v15 }
 0x84f   : > { %v6834_v25 = vmul.f32 %v9922_v44, %v6833_v28  ;;  %v7029_v18 = vpop.f32.mrf.mxu3  ;;  %9929 = vrcp.f32 %v14610_v63  ;;  %v6266_v15 = vmul.f32 0.5, %v14389_v56  ;;  %vm7336_vm1 = vweird.f32 %v14589_v27 }
 0x850   : > { %v14618_v6 = vadd.f32 %v14615_v60, %v7029_v18  ;;  %v7725_v23 = vpack.c.bf16 %v7697_v10, %v7696_v34  ;;  %9931 = vpow2.f32 %v9008_v36  ;;  %v6904_v4 = vmul.f32 %v6829_v51, %v6264_v11 }
 0x851   : > { %v6835_v33 = vadd.f32 %v9922_v44, %v6834_v25  ;;  %v7333_v19 = vmul.f32 %v14589_v27, %v7332_v3  ;;  %v6850_v45 = vadd.f32 %v14518_v48, %v6849_v50  ;;  %vm6852_vm5 = vweird.f32 %v14518_v48 }
 0x852   : > { %9041 = vmatmul.msk.bf16.gmra.mxu0 %vm6944_vm14, %v7725_v23  ;;  %v9009_v37 = vmul.f32 -1.442695, %v14618_v6  ;;  %v7341_v8 = vand.u32 2147483648, %v14545_v0  ;;  %vm7335_vm6 = vweird.f32 %v14545_v0  ;;  %v7339_v56 = vand.u32 2147483647, %v14545_v0  ;;  %vm14655_vm9 = vmor %vm6851_vm7, %vm6852_vm5 }
 0x853   : > { %v6839_v13 = vsel %vm6838_vm3, %v9922_v44, %v6835_v33  ;;  %v7334_v29 = vadd.f32 %v14589_v27, %v7333_v19  ;;  %v6855_v44 = vand.u32 2147483647, %v14459_v9  ;;  %vm14649_vm8 = vmor %vm7335_vm6, %vm7336_vm1  ;;  %v7354_v20 = vand.u32 2147483647, %v14610_v63 }
 0x854   : > { %v6844_v61 = vsel %vm6841_vm4, %v6843_v54, %v6839_v13  ;;  %9933 = vpow2.f32 %v9009_v37  ;;  %v9928_v32 = vpop.eup %9927  ;;  %v7356_v49 = vand.u32 2147483648, %v14610_v63  ;;  %v7342_v38 = vor.u32 1.1754944e-38, %v7341_v8 }
 0x855   : > { %v6905_v43 = vmul.f32 %v6844_v61, %v14536_v14  ;;  %v9930_v5 = vpop.eup %9929  ;;  %v14632_v46 = vadd.f32 1.0, %v9928_v32  ;;  %v6857_v14 = vand.u32 2147483648, %v14459_v9  ;;  %v7338_v35 = vsel %vm14649_vm8, %v14589_v27, %v7334_v29 }
 0x856   : > { %v9932_v41 = vpop.eup %9931  ;;  %v7346_v42 = vmul.f32 %v9930_v5, %v14610_v63  ;;  %vm7351_vm10 = vweird.f32 %v9930_v5  ;;  %v6854_v9 = vsel %vm14655_vm9, %v14518_v48, %v6850_v45  ;;  %vm7340_vm11 = vcmp.eq.f32.partialorder %v7339_v56, 8.507059e+37 }
 0x857   : > { %v6922_v52 = vpack.c.bf16 %v6905_v43, %v6904_v4  ;;  %9935 = vrcp.f32 %v14632_v46  ;;  %v14644_v62 = vadd.f32 1.0, %v9932_v41  ;;  %v6858_v1 = vor.u32 1.1754944e-38, %v6857_v14 }
 0x858   : > { %v7347_v55 = vsub.f32 1.0, %v7346_v42  ;;  %vm7350_vm12 = vweird.f32 %v14610_v63  ;;  %vm6856_vm13 = vcmp.eq.f32.partialorder %v6855_v44, 8.507059e+37  ;;  %v7343_v58 = vsel %vm7340_vm11, %v7342_v38, %v7338_v35 }
 0x859   : > { %9937 = vrcp.f32 %v14644_v62  ;;  %vm7352_vm15 = vmor %vm7350_vm12, %vm7351_vm10  ;;  %v7357_v16 = vor.u32 1.1754944e-38, %v7356_v49  ;;  %v6859_v48 = vsel %vm6856_vm13, %v6858_v1, %v6854_v9  ;;  %vm7355_vm2 = vcmp.eq.f32.partialorder %v7354_v20, 8.507059e+37 }
 0x85a   : > { %v9934_v12 = vpop.eup %9933  ;;  %v7348_v21 = vmul.f32 %v9930_v5, %v7347_v55  ;;  %v6870_v25 = vand.u32 2147483647, %v14632_v46  ;;  %v6872_v24 = vand.u32 2147483648, %v14632_v46  ;;  %v7698_v57 = vmul.f32 %v7343_v58, %v14452_v22 }
 0x85b   : > { %v14666_v59 = vadd.f32 1.0, %v9934_v12  ;;  %v6906_v36 = vmul.f32 %v6859_v48, %v6266_v15  ;;  %v6267_v23 = vmul.f32 0.5, %v14582_v31  ;;  %vm6866_vm3 = vweird.f32 %v14632_v46 }
 0x85c   : > { %8996 = vmatmul.msk.bf16.gmra.mxu3 %vm6944_vm14, %v6922_v52  ;;  %v7349_v17 = vadd.f32 %v9930_v5, %v7348_v21  ;;  %vm14682_vm4 = vcmp.eq.f32.partialorder %v6870_v25, 8.507059e+37  ;;  %v6873_v22 = vor.u32 1.1754944e-38, %v6872_v24  ;;  %vm7365_vm1 = vweird.f32 %v14644_v62 }
 0x85d   : > { %v9936_v27 = vpop.eup %9935  ;;  %9939 = vrcp.f32 %v14666_v59  ;;  %v7369_v37 = vand.u32 2147483647, %v14644_v62  ;;  %v7371_v4 = vand.u32 2147483648, %v14644_v62  ;;  %v7384_v32 = vand.u32 2147483647, %v14666_v59 }
 0x85e   : > { %v7353_v53 = vsel %vm7352_vm15, %v9930_v5, %v7349_v17  ;;  %v6862_v47 = vmul.f32 %v9936_v27, %v14632_v46  ;;  %vm6867_vm0 = vweird.f32 %v9936_v27  ;;  %v7386_v41 = vand.u32 2147483648, %v14666_v59 }
 0x85f   : > { %v7032_v28 = vpop.f32.mrf.mxu3  ;;  %v7358_v30 = vsel %vm7355_vm2, %v7357_v16, %v7353_v53  ;;  %v9938_v2 = vpop.eup %9937  ;;  %vm6868_vm5 = vmor %vm6866_vm3, %vm6867_vm0  ;;  %vm7370_vm9 = vcmp.eq.f32.partialorder %v7369_v37, 8.507059e+37  ;;  %v7372_v8 = vor.u32 1.1754944e-38, %v7371_v4  ;;  %vm7380_vm10 = vweird.f32 %v14666_v59 }
 0x860   : > { %v14670_v34 = vadd.f32 %v14615_v60, %v7032_v28  ;;  %v7699_v10 = vmul.f32 %v7358_v30, %v14532_v7  ;;  %v6863_v39 = vsub.f32 1.0, %v6862_v47  ;;  %v7361_v33 = vmul.f32 %v9938_v2, %v14644_v62 }
 0x861   : > { %vm7366_vm6 = vweird.f32 %v9938_v2  ;;  %v7387_v44 = vor.u32 1.1754944e-38, %v7386_v41  ;;  %vm7385_vm12 = vcmp.eq.f32.partialorder %v7384_v32, 8.507059e+37 }
 0x862   : > { %v9010_v18 = vmul.f32 -1.442695, %v14670_v34  ;;  %v7726_v63 = vpack.c.bf16 %v7699_v10, %v7698_v57  ;;  %v6864_v54 = vmul.f32 %v9936_v27, %v6863_v39  ;;  %v7362_v13 = vsub.f32 1.0, %v7361_v33  ;;  %vm7367_vm8 = vmor %vm7365_vm1, %vm7366_vm6 }
 0x863   : > { %v9940_v3 = vpop.eup %9939 }
 0x864   : > { %9941 = vpow2.f32 %v9010_v18  ;;  %v6865_v11 = vadd.f32 %v9936_v27, %v6864_v54  ;;  %v7376_v61 = vmul.f32 %v9940_v3, %v14666_v59  ;;  %9042 = vmatmul.msk.bf16.gmra.mxu0 %vm6944_vm14, %v7726_v63  ;;  %v7363_v31 = vmul.f32 %v9938_v2, %v7362_v13 }
 0x865   : > { %vm7381_vm7 = vweird.f32 %v9940_v3 }
 0x866   : > { %v6869_v19 = vsel %vm6868_vm5, %v9936_v27, %v6865_v11  ;;  %v7377_v50 = vsub.f32 1.0, %v7376_v61  ;;  %v7364_v46 = vadd.f32 %v9938_v2, %v7363_v31  ;;  %vm7382_vm11 = vmor %vm7380_vm10, %vm7381_vm7 }
 0x867   : > { %v7034_v7 = vpop.f32.mrf.mxu3  ;;  %v6874_v15 = vsel %vm14682_vm4, %v6873_v22, %v6869_v19 }
 0x868   : > { %v14689_v43 = vadd.f32 %v14615_v60, %v7034_v7  ;;  %v6907_v14 = vmul.f32 %v6874_v15, %v6267_v23  ;;  %v7378_v29 = vmul.f32 %v9940_v3, %v7377_v50  ;;  %v7368_v45 = vsel %vm7367_vm8, %v9938_v2, %v7364_v46 }
 0x869   : > { %v7373_v12 = vsel %vm7370_vm9, %v7372_v8, %v7368_v45 }
 0x86a   : > { %v9011_v52 = vmul.f32 -1.442695, %v14689_v43  ;;  %v9942_v5 = vpop.eup %9941  ;;  %v6923_v56 = vpack.c.bf16 %v6907_v14, %v6906_v36  ;;  %v7379_v55 = vadd.f32 %v9940_v3, %v7378_v29  ;;  %v7700_v35 = vmul.f32 %v7373_v12, %v14586_v26 }
 0x86b   : > { %v7190_v42 = vadd.f32 1.0, %v9942_v5 }
 0x86c   : > { %9943 = vpow2.f32 %v9011_v52  ;;  %v7383_v20 = vsel %vm7382_vm11, %v9940_v3, %v7379_v55  ;;  %8997 = vmatmul.msk.bf16.gmra.mxu3 %vm6944_vm14, %v6923_v56 }
 0x86d   : > { %9945 = vrcp.f32 %v7190_v42  ;;  %v7388_v49 = vsel %vm7385_vm12, %v7387_v44, %v7383_v20  ;;  %v7401_v25 = vand.u32 2147483648, %v7190_v42  ;;  %vm7395_vm15 = vweird.f32 %v7190_v42 }
 0x86e   : > { %v7701_v21 = vmul.f32 %v7388_v49, %v14618_v6  ;;  %v7399_v24 = vand.u32 2147483647, %v7190_v42 }
 0x86f   : > { %v7037_v40 = vpop.f32.mrf.mxu3  ;;  %v7402_v23 = vor.u32 1.1754944e-38, %v7401_v25 }
 0x870   : > { %v14705_v62 = vadd.f32 %v14615_v60, %v7037_v40  ;;  %v7727_v59 = vpack.c.bf16 %v7701_v21, %v7700_v35  ;;  %vm7400_vm3 = vcmp.eq.f32.partialorder %v7399_v24, 8.507059e+37 }
 0x872   : > { %v9944_v0 = vpop.eup %9943  ;;  %v9012_v9 = vmul.f32 -1.442695, %v14705_v62 }
 0x873   : > { %v7191_v1 = vadd.f32 1.0, %v9944_v0  ;;  %v9946_v38 = vpop.eup %9945 }
 0x874   : > { %9947 = vpow2.f32 %v9012_v9  ;;  %v7391_v28 = vmul.f32 %v9946_v38, %v7190_v42  ;;  %9043 = vmatmul.msk.bf16.gmra.mxu0 %vm6944_vm14, %v7727_v59  ;;  %vm7396_vm13 = vweird.f32 %v9946_v38 }
 0x875   : > { %9949 = vrcp.f32 %v7191_v1  ;;  %vm14718_vm2 = vmor %vm7395_vm15, %vm7396_vm13  ;;  %v7414_v57 = vand.u32 2147483647, %v7191_v1  ;;  %v7416_v10 = vand.u32 2147483648, %v7191_v1  ;;  %vm7410_vm4 = vweird.f32 %v7191_v1 }
 0x876   : > { %v7392_v17 = vsub.f32 1.0, %v7391_v28 }
 0x877   : > { %v7039_v27 = vpop.f32.mrf.mxu3  ;;  %v7417_v7 = vor.u32 1.1754944e-38, %v7416_v10  ;;  %vm7415_vm5 = vcmp.eq.f32.partialorder %v7414_v57, 8.507059e+37 }
 0x878   : > { %v14711_v58 = vadd.f32 %v14615_v60, %v7039_v27  ;;  %v7393_v16 = vmul.f32 %v9946_v38, %v7392_v17 }
 0x87a   : > { %v9948_v48 = vpop.eup %9947  ;;  %v9013_v26 = vmul.f32 -1.442695, %v14711_v58  ;;  %v7394_v47 = vadd.f32 %v9946_v38, %v7393_v16 }
 0x87b   : > { %v9950_v6 = vpop.eup %9949  ;;  %v14715_v53 = vadd.f32 1.0, %v9948_v48 }
 0x87c   : > { %v7406_v30 = vmul.f32 %v9950_v6, %v7191_v1  ;;  %9951 = vpow2.f32 %v9013_v26  ;;  %v7398_v36 = vsel %vm14718_vm2, %v9946_v38, %v7394_v47  ;;  %vm7411_vm0 = vweird.f32 %v9950_v6  ;;  %v14755_v1 = vld [vmem:[%s15279_s9] ss:$0 sm:$0xff] }
 0x87d   : > { %9953 = vrcp.f32 %v14715_v53  ;;  %v7403_v13 = vsel %vm7400_vm3, %v7402_v23, %v7398_v36  ;;  %vm7412_vm1 = vmor %vm7410_vm4, %vm7411_vm0  ;;  %vm7425_vm7 = vweird.f32 %v14715_v53  ;;  %v7429_v45 = vand.u32 2147483647, %v14715_v53 }
 0x87e   : > { %v7407_v18 = vsub.f32 1.0, %v7406_v30  ;;  %v7702_v4 = vmul.f32 %v7403_v13, %v14670_v34 }
 0x87f   : > { %v7042_v39 = vpop.f32.mrf.mxu3  ;;  %vm7430_vm10 = vcmp.eq.f32.partialorder %v7429_v45, 8.507059e+37 }
 0x880   : > { %v7408_v33 = vmul.f32 %v9950_v6, %v7407_v18  ;;  %v14725_v63 = vadd.f32 %v14615_v60, %v7042_v39 }
 0x882   : > { %v9952_v54 = vpop.eup %9951  ;;  %v7409_v3 = vadd.f32 %v9950_v6, %v7408_v33  ;;  %v9014_v51 = vmul.f32 -1.442695, %v14725_v63 }
 0x883   : > { %v9954_v22 = vpop.eup %9953  ;;  %v7193_v11 = vadd.f32 1.0, %v9952_v54 }
 0x884   : > { %v7413_v61 = vsel %vm7412_vm1, %v9950_v6, %v7409_v3  ;;  %v7421_v31 = vmul.f32 %v9954_v22, %v14715_v53  ;;  %9955 = vpow2.f32 %v9014_v51  ;;  %vm7426_vm6 = vweird.f32 %v9954_v22 }
 0x885   : > { %v7418_v37 = vsel %vm7415_vm5, %v7417_v7, %v7413_v61  ;;  %9957 = vrcp.f32 %v7193_v11  ;;  %vm14742_vm8 = vmor %vm7425_vm7, %vm7426_vm6  ;;  %v7444_v55 = vand.u32 2147483647, %v7193_v11  ;;  %v7446_v12 = vand.u32 2147483648, %v7193_v11 }
 0x886   : > { %v7703_v19 = vmul.f32 %v7418_v37, %v14689_v43  ;;  %v7422_v50 = vsub.f32 1.0, %v7421_v31  ;;  %v7431_v43 = vand.u32 2147483648, %v14715_v53  ;;  %vm7440_vm11 = vweird.f32 %v7193_v11 }
 0x887   : > { %v7044_v32 = vpop.f32.mrf.mxu3  ;;  %v7447_v28 = vor.u32 1.1754944e-38, %v7446_v12  ;;  %vm7445_vm13 = vcmp.eq.f32.partialorder %v7444_v55, 8.507059e+37 }
 0x888   : > { %v7728_v52 = vpack.c.bf16 %v7703_v19, %v7702_v4  ;;  %v7423_v5 = vmul.f32 %v9954_v22, %v7422_v50  ;;  %v14732_v15 = vadd.f32 %v14615_v60, %v7044_v32  ;;  %v7432_v0 = vor.u32 1.1754944e-38, %v7431_v43 }
 0x88a   : > { %v9956_v46 = vpop.eup %9955  ;;  %v9015_v41 = vmul.f32 -1.442695, %v14732_v15  ;;  %9044 = vmatmul.msk.bf16.gmra.mxu0 %vm6944_vm14, %v7728_v52  ;;  %v7424_v42 = vadd.f32 %v9954_v22, %v7423_v5 }
 0x88b   : > { %v9958_v14 = vpop.eup %9957  ;;  %v14736_v29 = vadd.f32 1.0, %v9956_v46 }
 0x88c   : > { %v7436_v34 = vmul.f32 %v9958_v14, %v7193_v11  ;;  %9959 = vpow2.f32 %v9015_v41  ;;  %v7428_v40 = vsel %vm14742_vm8, %v9954_v22, %v7424_v42  ;;  %vm7441_vm9 = vweird.f32 %v9958_v14 }
 0x88d   : > { %9961 = vrcp.f32 %v14736_v29  ;;  %v7433_v59 = vsel %vm7430_vm10, %v7432_v0, %v7428_v40  ;;  %vm7442_vm12 = vmor %vm7440_vm11, %vm7441_vm9  ;;  %v7461_v23 = vand.u32 2147483648, %v14736_v29  ;;  %vm7455_vm2 = vweird.f32 %v14736_v29 }
 0x88e   : > { %v7437_v8 = vsub.f32 1.0, %v7436_v34  ;;  %v7704_v6 = vmul.f32 %v7433_v59, %v14705_v62  ;;  %v7459_v54 = vand.u32 2147483647, %v14736_v29 }
 0x88f   : > { %v7047_v44 = vpop.f32.mrf.mxu3  ;;  %v7462_v4 = vor.u32 1.1754944e-38, %v7461_v23 }
 0x890   : > { %v7438_v20 = vmul.f32 %v9958_v14, %v7437_v8  ;;  %v14749_v49 = vadd.f32 %v14615_v60, %v7047_v44  ;;  %vm7460_vm4 = vcmp.eq.f32.partialorder %v7459_v54, 8.507059e+37 }
 0x892   : > { %v9960_v35 = vpop.eup %9959  ;;  %v7439_v21 = vadd.f32 %v9958_v14, %v7438_v20  ;;  %v9016_v9 = vmul.f32 -1.442695, %v14749_v49 }
 0x893   : > { %v9962_v38 = vpop.eup %9961  ;;  %v7195_v17 = vadd.f32 1.0, %v9960_v35 }
 0x894   : > { %v7815_v27 = vpop.f32.mrf.mxu0  ;;  %v7443_v16 = vsel %vm7442_vm12, %v9958_v14, %v7439_v21  ;;  %v7451_v48 = vmul.f32 %v9962_v38, %v14736_v29  ;;  %9963 = vpow2.f32 %v9016_v9  ;;  %vm7456_vm15 = vweird.f32 %v9962_v38 }
 0x895   : > { %v7448_v26 = vsel %vm7445_vm13, %v7447_v28, %v7443_v16  ;;  %9965 = vrcp.f32 %v7195_v17  ;;  %v14761_v30 = vadd.f32 %v14755_v1, %v7815_v27  ;;  %vm14778_vm0 = vmor %vm7455_vm2, %vm7456_vm15  ;;  %v7474_v13 = vand.u32 2147483647, %v7195_v17 }
 0x896   : > { %v7705_v53 = vmul.f32 %v7448_v26, %v14711_v58  ;;  %v7452_v47 = vsub.f32 1.0, %v7451_v48  ;;  %v7476_v7 = vand.u32 2147483648, %v7195_v17  ;;  %vm7470_vm1 = vweird.f32 %v7195_v17 }
 0x897   : > { %v7049_v25 = vpop.f32.mrf.mxu3  ;;  %7895 = vmax.xlane.f32.xlu1 %v14761_v30  ;;  %vm7475_vm6 = vcmp.eq.f32.partialorder %v7474_v13, 8.507059e+37 }
 0x898   : > { %v7729_v24 = vpack.c.bf16 %v7705_v53, %v7704_v6  ;;  %v7453_v18 = vmul.f32 %v9962_v38, %v7452_v47  ;;  %v14764_v2 = vadd.f32 %v14615_v60, %v7049_v25  ;;  %v7477_v46 = vor.u32 1.1754944e-38, %v7476_v7 }
 0x89a   : > { %v9964_v57 = vpop.eup %9963  ;;  %v9017_v10 = vmul.f32 -1.442695, %v14764_v2  ;;  %9045 = vmatmul.msk.bf16.gmra.mxu0 %vm6944_vm14, %v7729_v24  ;;  %v7454_v36 = vadd.f32 %v9962_v38, %v7453_v18 }
 0x89b   : > { %v9966_v62 = vpop.eup %9965  ;;  %v14769_v39 = vadd.f32 1.0, %v9964_v57 }
 0x89c   : > { %v7817_v58 = vpop.f32.mrf.mxu0  ;;  %v7466_v33 = vmul.f32 %v9966_v62, %v7195_v17  ;;  %9967 = vpow2.f32 %v9017_v10  ;;  %v7458_v61 = vsel %vm14778_vm0, %v9962_v38, %v7454_v36  ;;  %vm7471_vm3 = vweird.f32 %v9966_v62 }
 0x89d   : > { %9969 = vrcp.f32 %v14769_v39  ;;  %v14776_v51 = vadd.f32 %v14755_v1, %v7817_v58  ;;  %v7463_v5 = vsel %vm7460_vm4, %v7462_v4, %v7458_v61  ;;  %vm7472_vm5 = vmor %vm7470_vm1, %vm7471_vm3  ;;  %vm7485_vm8 = vweird.f32 %v14769_v39 }
 0x89e   : > { %v7467_v3 = vsub.f32 1.0, %v7466_v33  ;;  %v7706_v34 = vmul.f32 %v7463_v5, %v14725_v63  ;;  %v7491_v9 = vand.u32 2147483648, %v14769_v39  ;;  %v7489_v59 = vand.u32 2147483647, %v14769_v39 }
 0x89f   : > { %v7052_v11 = vpop.f32.mrf.mxu3  ;;  %7897 = vmax.xlane.f32.xlu2 %v14776_v51 }
 0x8a0   : > { %v7468_v31 = vmul.f32 %v9966_v62, %v7467_v3  ;;  %v14785_v37 = vadd.f32 %v14615_v60, %v7052_v11  ;;  %v7492_v25 = vor.u32 1.1754944e-38, %v7491_v9  ;;  %vm7490_vm11 = vcmp.eq.f32.partialorder %v7489_v59, 8.507059e+37 }
 0x8a2   : > { %v9968_v19 = vpop.eup %9967  ;;  %v7469_v50 = vadd.f32 %v9966_v62, %v7468_v31  ;;  %v9018_v32 = vmul.f32 -1.442695, %v14785_v37 }
 0x8a3   : > { %v9970_v52 = vpop.eup %9969  ;;  %v7197_v41 = vadd.f32 1.0, %v9968_v19 }
 0x8a4   : > { %v7473_v14 = vsel %vm7472_vm5, %v9966_v62, %v7469_v50  ;;  %v7481_v29 = vmul.f32 %v9970_v52, %v14769_v39  ;;  %9971 = vpow2.f32 %v9018_v32  ;;  %v7820_v56 = vpop.f32.mrf.mxu0  ;;  %vm7486_vm7 = vweird.f32 %v9970_v52 }
 0x8a5   : > { %v7478_v42 = vsel %vm7475_vm6, %v7477_v46, %v7473_v14  ;;  %9973 = vrcp.f32 %v7197_v41  ;;  %v14796_v40 = vadd.f32 %v14755_v1, %v7820_v56  ;;  %vm14806_vm9 = vmor %vm7485_vm8, %vm7486_vm7  ;;  %v7504_v27 = vand.u32 2147483647, %v7197_v41 }
 0x8a6   : > { %v7707_v43 = vmul.f32 %v7478_v42, %v14732_v15  ;;  %v7482_v45 = vsub.f32 1.0, %v7481_v29  ;;  %v7506_v16 = vand.u32 2147483648, %v7197_v41  ;;  %vm7500_vm12 = vweird.f32 %v7197_v41 }
 0x8a7   : > { %v7054_v8 = vpop.f32.mrf.mxu3  ;;  %7899 = vmax.xlane.f32.xlu0 %v14796_v40  ;;  %vm7505_vm15 = vcmp.eq.f32.partialorder %v7504_v27, 8.507059e+37 }
 0x8a8   : > { %v7730_v55 = vpack.c.bf16 %v7707_v43, %v7706_v34  ;;  %v7483_v12 = vmul.f32 %v9970_v52, %v7482_v45  ;;  %v14793_v44 = vadd.f32 %v14615_v60, %v7054_v8  ;;  %v7507_v39 = vor.u32 1.1754944e-38, %v7506_v16 }
 0x8aa   : > { %v9972_v20 = vpop.eup %9971  ;;  %v9019_v0 = vmul.f32 -1.442695, %v14793_v44  ;;  %9046 = vmatmul.msk.bf16.gmra.mxu0 %vm6944_vm14, %v7730_v55  ;;  %v7484_v63 = vadd.f32 %v9970_v52, %v7483_v12 }
 0x8ab   : > { %v9974_v35 = vpop.eup %9973  ;;  %v14800_v15 = vadd.f32 1.0, %v9972_v20 }
 0x8ac   : > { %v7496_v21 = vmul.f32 %v9974_v35, %v7197_v41  ;;  %9975 = vpow2.f32 %v9019_v0  ;;  %v7488_v17 = vsel %vm14806_vm9, %v9970_v52, %v7484_v63  ;;  %v7822_v26 = vpop.f32.mrf.mxu0  ;;  %vm7501_vm10 = vweird.f32 %v9974_v35 }
 0x8ad   : > { %9977 = vrcp.f32 %v14800_v15  ;;  %v14817_v47 = vadd.f32 %v14755_v1, %v7822_v26  ;;  %v7493_v62 = vsel %vm7490_vm11, %v7492_v25, %v7488_v17  ;;  %vm7502_vm13 = vmor %vm7500_vm12, %vm7501_vm10  ;;  %v7521_v52 = vand.u32 2147483648, %v14800_v15 }
 0x8ae   : > { %v7497_v28 = vsub.f32 1.0, %v7496_v21  ;;  %v7708_v54 = vmul.f32 %v7493_v62, %v14749_v49  ;;  %vm7515_vm0 = vweird.f32 %v14800_v15 }
 0x8af   : > { %v7057_v48 = vpop.f32.mrf.mxu3  ;;  %7901 = vmax.xlane.f32.xlu2 %v14817_v47  ;;  %v7522_v45 = vor.u32 1.1754944e-38, %v7521_v52 }
 0x8b0   : > { %v7498_v6 = vmul.f32 %v9974_v35, %v7497_v28  ;;  %v14814_v53 = vadd.f32 %v14615_v60, %v7057_v48 }
 0x8b2   : > { %v9976_v24 = vpop.eup %9975  ;;  %v7499_v18 = vadd.f32 %v9974_v35, %v7498_v6  ;;  %v9020_v57 = vmul.f32 -1.442695, %v14814_v53 }
 0x8b3   : > { %v9978_v10 = vpop.eup %9977  ;;  %v7199_v58 = vadd.f32 1.0, %v9976_v24 }
 0x8b4   : > { %v7503_v36 = vsel %vm7502_vm13, %v9974_v35, %v7499_v18  ;;  %v7511_v33 = vmul.f32 %v9978_v10, %v14800_v15  ;;  %9979 = vpow2.f32 %v9020_v57  ;;  %vm7516_vm2 = vweird.f32 %v9978_v10 }
 0x8b5   : > { %v7508_v23 = vsel %vm7505_vm15, %v7507_v39, %v7503_v36  ;;  %9981 = vrcp.f32 %v7199_v58  ;;  %vm14835_vm3 = vmor %vm7515_vm0, %vm7516_vm2  ;;  %v7534_v41 = vand.u32 2147483647, %v7199_v58  ;;  %v7536_v14 = vand.u32 2147483648, %v7199_v58 }
 0x8b6   : > { %v7709_v3 = vmul.f32 %v7508_v23, %v14764_v2  ;;  %v7512_v22 = vsub.f32 1.0, %v7511_v33  ;;  %v7519_v2 = vand.u32 2147483647, %v14800_v15  ;;  %vm7530_vm5 = vweird.f32 %v7199_v58 }
 0x8b7   : > { %v7059_v13 = vpop.f32.mrf.mxu3  ;;  %v7537_v63 = vor.u32 1.1754944e-38, %v7536_v14  ;;  %vm7535_vm7 = vcmp.eq.f32.partialorder %v7534_v41, 8.507059e+37 }
 0x8b8   : > { %v7731_v7 = vpack.c.bf16 %v7709_v3, %v7708_v54  ;;  %v7513_v11 = vmul.f32 %v9978_v10, %v7512_v22  ;;  %v14825_v61 = vadd.f32 %v14615_v60, %v7059_v13  ;;  %vm7520_vm1 = vcmp.eq.f32.partialorder %v7519_v2, 8.507059e+37 }
 0x8ba   : > { %v9980_v31 = vpop.eup %9979  ;;  %v9021_v4 = vmul.f32 -1.442695, %v14825_v61  ;;  %9047 = vmatmul.msk.bf16.gmra.mxu0 %vm6944_vm14, %v7731_v7  ;;  %v7514_v32 = vadd.f32 %v9978_v10, %v7513_v11 }
 0x8bb   : > { %v9982_v19 = vpop.eup %9981  ;;  %v14829_v50 = vadd.f32 1.0, %v9980_v31 }
 0x8bc   : > { %v7526_v49 = vmul.f32 %v9982_v19, %v7199_v58  ;;  %9983 = vpow2.f32 %v9021_v4  ;;  %v7518_v42 = vsel %vm14835_vm3, %v9978_v10, %v7514_v32  ;;  %vm7531_vm4 = vweird.f32 %v9982_v19 }
 0x8bd   : > { %9985 = vrcp.f32 %v14829_v50  ;;  %v7523_v35 = vsel %vm7520_vm1, %v7522_v45, %v7518_v42  ;;  %vm7532_vm6 = vmor %vm7530_vm5, %vm7531_vm4  ;;  %v7549_v62 = vand.u32 2147483647, %v14829_v50  ;;  %v7551_v39 = vand.u32 2147483648, %v14829_v50 }
 0x8be   : > { %v7527_v5 = vsub.f32 1.0, %v7526_v49  ;;  %v7825_v8 = vpop.f32.mrf.mxu0  ;;  %v7710_v59 = vmul.f32 %v7523_v35, %v14785_v37  ;;  %vm7545_vm9 = vweird.f32 %v14829_v50 }
 0x8bf   : > { %v7062_v29 = vpop.f32.mrf.mxu3  ;;  %v14846_v20 = vadd.f32 %v14755_v1, %v7825_v8  ;;  %vm7550_vm12 = vcmp.eq.f32.partialorder %v7549_v62, 8.507059e+37  ;;  %v7552_v7 = vor.u32 1.1754944e-38, %v7551_v39 }
 0x8c0   : > { %v7528_v34 = vmul.f32 %v9982_v19, %v7527_v5  ;;  %v14842_v43 = vadd.f32 %v14615_v60, %v7062_v29 }
 0x8c1   : > { %7903 = vmax.xlane.f32.xlu1 %v14846_v20 }
 0x8c2   : > { %v9984_v56 = vpop.eup %9983  ;;  %v7529_v55 = vadd.f32 %v9982_v19, %v7528_v34  ;;  %v9022_v12 = vmul.f32 -1.442695, %v14842_v43 }
 0x8c3   : > { %v9986_v0 = vpop.eup %9985  ;;  %v7201_v15 = vadd.f32 1.0, %v9984_v56 }
 0x8c4   : > { %v7533_v21 = vsel %vm7532_vm6, %v9982_v19, %v7529_v55  ;;  %v7541_v9 = vmul.f32 %v9986_v0, %v14829_v50  ;;  %9987 = vpow2.f32 %v9022_v12  ;;  %vm7546_vm8 = vweird.f32 %v9986_v0 }
 0x8c5   : > { %v7538_v38 = vsel %vm7535_vm7, %v7537_v63, %v7533_v21  ;;  %9989 = vrcp.f32 %v7201_v15  ;;  %vm14867_vm10 = vmor %vm7545_vm9, %vm7546_vm8  ;;  %v7564_v33 = vand.u32 2147483647, %v7201_v15  ;;  %v7566_v23 = vand.u32 2147483648, %v7201_v15 }
 0x8c6   : > { %v7711_v28 = vmul.f32 %v7538_v38, %v14793_v44  ;;  %v7542_v17 = vsub.f32 1.0, %v7541_v9  ;;  %v7827_v6 = vpop.f32.mrf.mxu0  ;;  %vm7560_vm13 = vweird.f32 %v7201_v15 }
 0x8c7   : > { %v7064_v27 = vpop.f32.mrf.mxu3  ;;  %v14858_v18 = vadd.f32 %v14755_v1, %v7827_v6  ;;  %v7567_v2 = vor.u32 1.1754944e-38, %v7566_v23  ;;  %vm7565_vm2 = vcmp.eq.f32.partialorder %v7564_v33, 8.507059e+37 }
 0x8c8   : > { %v7732_v16 = vpack.c.bf16 %v7711_v28, %v7710_v59  ;;  %v7543_v48 = vmul.f32 %v9986_v0, %v7542_v17  ;;  %v14853_v26 = vadd.f32 %v14615_v60, %v7064_v27 }
 0x8c9   : > { %7905 = vmax.xlane.f32.xlu2 %v14858_v18 }
 0x8ca   : > { %v9988_v25 = vpop.eup %9987  ;;  %v9023_v24 = vmul.f32 -1.442695, %v14853_v26  ;;  %9048 = vmatmul.msk.bf16.gmra.mxu0 %vm6944_vm14, %v7732_v16  ;;  %v7544_v44 = vadd.f32 %v9986_v0, %v7543_v48 }
 0x8cb   : > { %v9990_v57 = vpop.eup %9989  ;;  %v14860_v37 = vadd.f32 1.0, %v9988_v25 }
 0x8cc   : > { %v7556_v10 = vmul.f32 %v9990_v57, %v7201_v15  ;;  %9991 = vpow2.f32 %v9023_v24  ;;  %v7548_v3 = vsel %vm14867_vm10, %v9986_v0, %v7544_v44  ;;  %vm7561_vm11 = vweird.f32 %v9990_v57 }
 0x8cd   : > { %9993 = vrcp.f32 %v14860_v37  ;;  %v7553_v49 = vsel %vm7550_vm12, %v7552_v7, %v7548_v3  ;;  %vm7562_vm15 = vmor %vm7560_vm13, %vm7561_vm11  ;;  %v7581_v21 = vand.u32 2147483648, %v14860_v37  ;;  %vm7575_vm3 = vweird.f32 %v14860_v37 }
 0x8ce   : > { %v7557_v58 = vsub.f32 1.0, %v7556_v10  ;;  %v7712_v14 = vmul.f32 %v7553_v49, %v14814_v53  ;;  %v7579_v9 = vand.u32 2147483647, %v14860_v37 }
 0x8cf   : > { %v7067_v54 = vpop.f32.mrf.mxu3  ;;  %v7830_v11 = vpop.f32.mrf.mxu0  ;;  %v7582_v25 = vor.u32 1.1754944e-38, %v7581_v21 }
 0x8d0   : > { %v7558_v22 = vmul.f32 %v9990_v57, %v7557_v58  ;;  %v14874_v13 = vadd.f32 %v14615_v60, %v7067_v54  ;;  %v14878_v50 = vadd.f32 %v14755_v1, %v7830_v11  ;;  %vm7580_vm5 = vcmp.eq.f32.partialorder %v7579_v9, 8.507059e+37 }
 0x8d2   : > { %v9992_v31 = vpop.eup %9991  ;;  %v7559_v4 = vadd.f32 %v9990_v57, %v7558_v22  ;;  %v9024_v19 = vmul.f32 -1.442695, %v14874_v13  ;;  %7907 = vmax.xlane.f32.xlu0 %v14878_v50 }
 0x8d3   : > { %v9994_v32 = vpop.eup %9993  ;;  %v7203_v52 = vadd.f32 1.0, %v9992_v31 }
 0x8d4   : > { %v7563_v5 = vsel %vm7562_vm15, %v9990_v57, %v7559_v4  ;;  %v7571_v46 = vmul.f32 %v9994_v32, %v14860_v37  ;;  %9995 = vpow2.f32 %v9024_v19  ;;  %vm7576_vm0 = vweird.f32 %v9994_v32 }
 0x8d5   : > { %v7568_v41 = vsel %vm7565_vm2, %v7567_v2, %v7563_v5  ;;  %9997 = vrcp.f32 %v7203_v52  ;;  %vm14899_vm4 = vmor %vm7575_vm3, %vm7576_vm0  ;;  %v7594_v28 = vand.u32 2147483647, %v7203_v52  ;;  %v7596_v17 = vand.u32 2147483648, %v7203_v52 }
 0x8d6   : > { %v7713_v29 = vmul.f32 %v7568_v41, %v14825_v61  ;;  %v7572_v42 = vsub.f32 1.0, %v7571_v46  ;;  %vm7590_vm6 = vweird.f32 %v7203_v52 }
 0x8d7   : > { %v7069_v34 = vpop.f32.mrf.mxu3  ;;  %v7832_v55 = vpop.f32.mrf.mxu0  ;;  %v7597_v62 = vor.u32 1.1754944e-38, %v7596_v17  ;;  %vm7595_vm8 = vcmp.eq.f32.partialorder %v7594_v28, 8.507059e+37 }
 0x8d8   : > { %v7733_v45 = vpack.c.bf16 %v7713_v29, %v7712_v14  ;;  %v7573_v8 = vmul.f32 %v9994_v32, %v7572_v42  ;;  %v14885_v56 = vadd.f32 %v14615_v60, %v7069_v34  ;;  %v14890_v35 = vadd.f32 %v14755_v1, %v7832_v55 }
 0x8da   : > { %v9996_v12 = vpop.eup %9995  ;;  %v9025_v0 = vmul.f32 -1.442695, %v14885_v56  ;;  %9049 = vmatmul.msk.bf16.gmra.mxu0 %vm6944_vm14, %v7733_v45  ;;  %v7574_v61 = vadd.f32 %v9994_v32, %v7573_v8  ;;  %7909 = vmax.xlane.f32.xlu1 %v14890_v35 }
 0x8db   : > { %v9998_v63 = vpop.eup %9997  ;;  %v14892_v53 = vadd.f32 1.0, %v9996_v12 }
 0x8dc   : > { %v7586_v15 = vmul.f32 %v9998_v63, %v7203_v52  ;;  %9999 = vpow2.f32 %v9025_v0  ;;  %v7578_v16 = vsel %vm14899_vm4, %v9994_v32, %v7574_v61  ;;  %vm7591_vm1 = vweird.f32 %v9998_v63 }
 0x8dd   : > { %10001 = vrcp.f32 %v14892_v53  ;;  %v7583_v10 = vsel %vm7580_vm5, %v7582_v25, %v7578_v16  ;;  %vm7592_vm7 = vmor %vm7590_vm6, %vm7591_vm1  ;;  %v7611_v5 = vand.u32 2147483648, %v14892_v53  ;;  %vm7605_vm10 = vweird.f32 %v14892_v53 }
 0x8de   : > { %v7587_v38 = vsub.f32 1.0, %v7586_v15  ;;  %v7714_v54 = vmul.f32 %v7583_v10, %v14842_v43  ;;  %v7609_v46 = vand.u32 2147483647, %v14892_v53 }
 0x8df   : > { %v7072_v27 = vpop.f32.mrf.mxu3  ;;  %v7612_v8 = vor.u32 1.1754944e-38, %v7611_v5 }
 0x8e0   : > { %v7588_v48 = vmul.f32 %v9998_v63, %v7587_v38  ;;  %v14906_v6 = vadd.f32 %v14615_v60, %v7072_v27  ;;  %vm7610_vm13 = vcmp.eq.f32.partialorder %v7609_v46, 8.507059e+37  ;;  %v10174_v38 = vld [vmem:[%s15277_s7] ss:$0 sm:$0xff] }
 0x8e1   : > { %v7835_v23 = vpop.f32.mrf.mxu0 }
 0x8e2   : > { %v10000_v24 = vpop.eup %9999  ;;  %v7589_v57 = vadd.f32 %v9998_v63, %v7588_v48  ;;  %v9026_v37 = vmul.f32 -1.442695, %v14906_v6  ;;  %v14913_v7 = vadd.f32 %v14755_v1, %v7835_v23 }
 0x8e3   : > { %v10002_v44 = vpop.eup %10001  ;;  %v7205_v39 = vadd.f32 1.0, %v10000_v24 }
 0x8e4   : > { %v7593_v58 = vsel %vm7592_vm7, %v9998_v63, %v7589_v57  ;;  %v7601_v36 = vmul.f32 %v10002_v44, %v14892_v53  ;;  %10003 = vpow2.f32 %v9026_v37  ;;  %7911 = vmax.xlane.f32.xlu2 %v14913_v7  ;;  %vm7606_vm9 = vweird.f32 %v10002_v44 }
 0x8e5   : > { %v7598_v33 = vsel %vm7595_vm8, %v7597_v62, %v7593_v58  ;;  %10005 = vrcp.f32 %v7205_v39  ;;  %vm7607_vm11 = vmor %vm7605_vm10, %vm7606_vm9  ;;  %v7626_v29 = vand.u32 2147483648, %v7205_v39  ;;  %v7624_v45 = vand.u32 2147483647, %v7205_v39 }
 0x8e6   : > { %v7715_v3 = vmul.f32 %v7598_v33, %v14853_v26  ;;  %v7602_v22 = vsub.f32 1.0, %v7601_v36  ;;  %vm7620_vm15 = vweird.f32 %v7205_v39 }
 0x8e7   : > { %v7074_v11 = vpop.f32.mrf.mxu3  ;;  %v7627_v53 = vor.u32 1.1754944e-38, %v7626_v29  ;;  %vm7625_vm0 = vcmp.eq.f32.partialorder %v7624_v45, 8.507059e+37 }
 0x8e8   : > { %v7734_v31 = vpack.c.bf16 %v7715_v3, %v7714_v54  ;;  %v7603_v4 = vmul.f32 %v10002_v44, %v7602_v22  ;;  %v14916_v19 = vadd.f32 %v14615_v60, %v7074_v11 }
 0x8e9   : > { %v7837_v60 = vpop.f32.mrf.mxu0 }
 0x8ea   : > { %v10004_v32 = vpop.eup %10003  ;;  %v9027_v49 = vmul.f32 -1.442695, %v14916_v19  ;;  %9050 = vmatmul.msk.bf16.gmra.mxu0 %vm6944_vm14, %v7734_v31  ;;  %v7604_v26 = vadd.f32 %v10002_v44, %v7603_v4  ;;  %v14928_v14 = vadd.f32 %v14755_v1, %v7837_v60 }
 0x8eb   : > { %v10006_v43 = vpop.eup %10005  ;;  %v14921_v2 = vadd.f32 1.0, %v10004_v32 }
 0x8ec   : > { %v7616_v52 = vmul.f32 %v10006_v43, %v7205_v39  ;;  %10007 = vpow2.f32 %v9027_v49  ;;  %v7608_v42 = vsel %vm7607_vm11, %v10002_v44, %v7604_v26  ;;  %vm7621_vm12 = vweird.f32 %v10006_v43  ;;  %7913 = vmax.xlane.f32.xlu0 %v14928_v14 }
 0x8ed   : > { %10009 = vrcp.f32 %v14921_v2  ;;  %v7613_v63 = vsel %vm7610_vm13, %v7612_v8, %v7608_v42  ;;  %vm7622_vm2 = vmor %vm7620_vm15, %vm7621_vm12  ;;  %vm7635_vm4 = vweird.f32 %v14921_v2  ;;  %v7639_v33 = vand.u32 2147483647, %v14921_v2 }
 0x8ee   : > { %v7617_v41 = vsub.f32 1.0, %v7616_v52  ;;  %v7716_v27 = vmul.f32 %v7613_v63, %v14874_v13 }
 0x8ef   : > { %v7077_v15 = vpop.f32.mrf.mxu3  ;;  %vm7640_vm6 = vcmp.eq.f32.partialorder %v7639_v33, 8.507059e+37 }
 0x8f0   : > { %v7618_v34 = vmul.f32 %v10006_v43, %v7617_v41  ;;  %v14935_v59 = vadd.f32 %v10174_v38, %v7077_v15 }
 0x8f1   : > { %v7840_v17 = vpop.f32.mrf.mxu0 }
 0x8f2   : > { %v10008_v55 = vpop.eup %10007  ;;  %v7619_v12 = vadd.f32 %v10006_v43, %v7618_v34  ;;  %v9028_v25 = vmul.f32 -1.442695, %v14935_v59  ;;  %v14941_v24 = vadd.f32 %v14755_v1, %v7840_v17 }
 0x8f3   : > { %v10010_v0 = vpop.eup %10009  ;;  %v7207_v61 = vadd.f32 1.0, %v10008_v55 }
 0x8f4   : > { %v7623_v21 = vsel %vm7622_vm2, %v10006_v43, %v7619_v12  ;;  %v7631_v9 = vmul.f32 %v10010_v0, %v14921_v2  ;;  %7915 = vmax.xlane.f32.xlu1 %v14941_v24  ;;  %vm7636_vm3 = vweird.f32 %v10010_v0 }
 0x8f5   : > { %v7628_v28 = vsel %vm7625_vm0, %v7627_v53, %v7623_v21  ;;  %10011 = vrcp.f32 %v7207_v61  ;;  %vm7637_vm1 = vmor %vm7635_vm4, %vm7636_vm3  ;;  %v7654_v22 = vand.u32 2147483647, %v7207_v61  ;;  %v7656_v11 = vand.u32 2147483648, %v7207_v61 }
 0x8f6   : > { %v7717_v16 = vmul.f32 %v7628_v28, %v14885_v56  ;;  %v7632_v48 = vsub.f32 1.0, %v7631_v9  ;;  %10013 = vpow2.f32 %v9028_v25  ;;  %v7641_v56 = vand.u32 2147483648, %v14921_v2 }
 0x8f7   : > { %v7079_v10 = vpop.f32.mrf.mxu3  ;;  %vm7650_vm7 = vweird.f32 %v7207_v61  ;;  %v7657_v26 = vor.u32 1.1754944e-38, %v7656_v11  ;;  %vm7655_vm9 = vcmp.eq.f32.partialorder %v7654_v22, 8.507059e+37 }
 0x8f8   : > { %v7735_v57 = vpack.c.bf16 %v7717_v16, %v7716_v27  ;;  %v7633_v37 = vmul.f32 %v10010_v0, %v7632_v48  ;;  %v14945_v39 = vadd.f32 %v10174_v38, %v7079_v10  ;;  %v7642_v49 = vor.u32 1.1754944e-38, %v7641_v56 }
 0x8f9   : > { %v7842_v58 = vpop.f32.mrf.mxu0 }
 0x8fa   : > { %9051 = vmatmul.msk.bf16.gmra.mxu0 %vm6944_vm14, %v7735_v57  ;;  %v7634_v62 = vadd.f32 %v10010_v0, %v7633_v37  ;;  %v9029_v54 = vmul.f32 -1.442695, %v14945_v39  ;;  %v14952_v3 = vadd.f32 %v14755_v1, %v7842_v58 }
 0x8fb   : > { %v10012_v44 = vpop.eup %10011 }
 0x8fc   : > { %v7646_v13 = vmul.f32 %v10012_v44, %v7207_v61  ;;  %v10014_v36 = vpop.eup %10013  ;;  %v7638_v4 = vsel %vm7637_vm1, %v10010_v0, %v7634_v62  ;;  %vm7651_vm5 = vweird.f32 %v10012_v44  ;;  %10015 = vpow2.f32 %v9029_v54  ;;  %7917 = vmax.xlane.f32.xlu2 %v14952_v3 }
 0x8fd   : > { %v7208_v31 = vadd.f32 1.0, %v10014_v36  ;;  %v7643_v2 = vsel %vm7640_vm6, %v7642_v49, %v7638_v4  ;;  %vm7652_vm8 = vmor %vm7650_vm7, %vm7651_vm5 }
 0x8fe   : > { %v7647_v23 = vsub.f32 1.0, %v7646_v13  ;;  %v7718_v46 = vmul.f32 %v7643_v2, %v14906_v6 }
 0x8ff   : > { %10017 = vrcp.f32 %v7208_v31  ;;  %v7671_v21 = vand.u32 2147483648, %v7208_v31  ;;  %vm7665_vm11 = vweird.f32 %v7208_v31  ;;  %v7669_v38 = vand.u32 2147483647, %v7208_v31 }
 0x900   : > { %v7648_v32 = vmul.f32 %v10012_v44, %v7647_v23 }
 0x901   : > { %v7672_v25 = vor.u32 1.1754944e-38, %v7671_v21  ;;  %vm7670_vm15 = vcmp.eq.f32.partialorder %v7669_v38, 8.507059e+37 }
 0x902   : > { %v7649_v43 = vadd.f32 %v10012_v44, %v7648_v32  ;;  %v10016_v60 = vpop.eup %10015 }
 0x903   : > { %v7209_v42 = vadd.f32 1.0, %v10016_v60 }
 0x904   : > { %v7653_v52 = vsel %vm7652_vm8, %v10012_v44, %v7649_v43 }
 0x905   : > { %v7658_v5 = vsel %vm7655_vm9, %v7657_v26, %v7653_v52  ;;  %v10018_v29 = vpop.eup %10017  ;;  %10019 = vrcp.f32 %v7209_v42  ;;  %v7686_v17 = vand.u32 2147483648, %v7209_v42  ;;  %v7684_v48 = vand.u32 2147483647, %v7209_v42 }
 0x906   : > { %v7719_v41 = vmul.f32 %v7658_v5, %v14916_v19  ;;  %v7661_v8 = vmul.f32 %v10018_v29, %v7208_v31  ;;  %vm7666_vm10 = vweird.f32 %v10018_v29  ;;  %vm7680_vm2 = vweird.f32 %v7209_v42 }
 0x907   : > { %v7845_v34 = vpop.f32.mrf.mxu0  ;;  %vm7667_vm12 = vmor %vm7665_vm11, %vm7666_vm10  ;;  %vm7685_vm3 = vcmp.eq.f32.partialorder %v7684_v48, 8.507059e+37 }
 0x908   : > { %v7736_v45 = vpack.c.bf16 %v7719_v41, %v7718_v46  ;;  %v14958_v55 = vadd.f32 %v14755_v1, %v7845_v34  ;;  %v7662_v12 = vsub.f32 1.0, %v7661_v8 }
 0x90a   : > { %9052 = vmatmul.msk.bf16.gmra.mxu0 %vm6944_vm14, %v7736_v45  ;;  %7919 = vmax.xlane.f32.xlu0 %v14958_v55  ;;  %v7663_v0 = vmul.f32 %v10018_v29, %v7662_v12  ;;  %v7896_v63 = vpop.xlane.xlu1 %7895 }
 0x90b   : > { %v10020_v53 = vpop.eup %10019  ;;  %v7959_v9 = vsub.f32 %v14761_v30, %v7896_v63  ;;  %v7687_v30 = vor.u32 1.1754944e-38, %v7686_v17 }
 0x90c   : > { %v7664_v61 = vadd.f32 %v10018_v29, %v7663_v0  ;;  %v7676_v19 = vmul.f32 %v10020_v53, %v7209_v42  ;;  %vm7681_vm13 = vweird.f32 %v10020_v53 }
 0x90d   : > { %v7991_v57 = vmul.f32 1.442695, %v7959_v9  ;;  %vm7682_vm0 = vmor %vm7680_vm2, %vm7681_vm13 }
 0x90e   : > { %v7677_v28 = vsub.f32 1.0, %v7676_v19  ;;  %v7668_v27 = vsel %vm7667_vm12, %v10018_v29, %v7664_v61 }
 0x90f   : > { %v7847_v6 = vpop.f32.mrf.mxu0  ;;  %v7673_v10 = vsel %vm7670_vm15, %v7672_v25, %v7668_v27  ;;  %10021 = vpow2.f32 %v7991_v57 }
 0x910   : > { %v14963_v15 = vadd.f32 %v14755_v1, %v7847_v6  ;;  %v7678_v16 = vmul.f32 %v10020_v53, %v7677_v28  ;;  %v7720_v33 = vmul.f32 %v7673_v10, %v14935_v59 }
 0x912   : > { %7921 = vmax.xlane.f32.xlu1 %v14963_v15  ;;  %v7679_v37 = vadd.f32 %v10020_v53, %v7678_v16  ;;  %v7898_v44 = vpop.xlane.xlu2 %7897 }
 0x913   : > { %v7960_v36 = vsub.f32 %v14776_v51, %v7898_v44 }
 0x914   : > { %v7683_v13 = vsel %vm7682_vm0, %v10020_v53, %v7679_v37 }
 0x915   : > { %v7688_v58 = vsel %vm7685_vm3, %v7687_v30, %v7683_v13  ;;  %v7993_v22 = vmul.f32 1.442695, %v7960_v36  ;;  %v14975_v31 = vpop.eup %10021 }
 0x916   : > { %v7721_v23 = vmul.f32 %v7688_v58, %v14945_v39 }
 0x917   : > { %v7850_v62 = vpop.f32.mrf.mxu0  ;;  %10023 = vpow2.f32 %v7993_v22 }
 0x918   : > { %v14968_v56 = vadd.f32 %v14755_v1, %v7850_v62  ;;  %v7737_v54 = vpack.c.bf16 %v7721_v23, %v7720_v33 }
 0x91a   : > { %7923 = vmax.xlane.f32.xlu2 %v14968_v56  ;;  %9053 = vmatmul.msk.bf16.gmra.mxu0 %vm6944_vm14, %v7737_v54  ;;  %v7900_v11 = vpop.xlane.xlu0 %7899 }
 0x91b   : > { %v7961_v51 = vsub.f32 %v14796_v40, %v7900_v11 }
 0x91d   : > { %v7995_v59 = vmul.f32 1.442695, %v7961_v51  ;;  %v14983_v49 = vpop.eup %10023 }
 0x91f   : > { %v7852_v4 = vpop.f32.mrf.mxu0  ;;  %10025 = vpow2.f32 %v7995_v59 }
 0x920   : > { %v14978_v32 = vadd.f32 %v14755_v1, %v7852_v4 }
 0x922   : > { %7925 = vmax.xlane.f32.xlu0 %v14978_v32  ;;  %8055 = vadd.xlane.f32.xlu2 %v14975_v31  ;;  %v7902_v39 = vpop.xlane.xlu2 %7901 }
 0x923   : > { %v7962_v26 = vsub.f32 %v14817_v47, %v7902_v39  ;;  %v10175_v39 = vld [vmem:[%s15279_s9] ss:$0 sm:$0xff] }
 0x925   : > { %v7997_v40 = vmul.f32 1.442695, %v7962_v26  ;;  %v14991_v52 = vpop.eup %10025 }
 0x927   : > { %v7855_v43 = vpop.f32.mrf.mxu0  ;;  %10027 = vpow2.f32 %v7997_v40 }
 0x928   : > { %v14986_v2 = vadd.f32 %v14755_v1, %v7855_v43 }
 0x92a   : > { %7927 = vmax.xlane.f32.xlu1 %v14986_v2  ;;  %8057 = vadd.xlane.f32.xlu0 %v14983_v49 }
 0x92d   : > { %v14998_v46 = vpop.eup %10027 }
 0x92f   : > { %v7857_v5 = vpop.f32.mrf.mxu0 }
 0x930   : > { %v14994_v60 = vadd.f32 %v14755_v1, %v7857_v5 }
 0x932   : > { %7929 = vmax.xlane.f32.xlu2 %v14994_v60  ;;  %8059 = vadd.xlane.f32.xlu1 %v14991_v52 }
 0x934   : > { %v7904_v47 = vpop.xlane.xlu1 %7903 }
 0x935   : > { %v7963_v42 = vsub.f32 %v14846_v20, %v7904_v47 }
 0x937   : > { %v7860_v41 = vpop.f32.mrf.mxu0  ;;  %v7999_v34 = vmul.f32 1.442695, %v7963_v42 }
 0x938   : > { %v15001_v29 = vadd.f32 %v14755_v1, %v7860_v41 }
 0x939   : > { %10029 = vpow2.f32 %v7999_v34 }
 0x93a   : > { %7931 = vmax.xlane.f32.xlu0 %v15001_v29  ;;  %8061 = vadd.xlane.f32.xlu2 %v14998_v46 }
 0x93c   : > { %v7906_v8 = vpop.xlane.xlu2 %7905 }
 0x93d   : > { %v7964_v0 = vsub.f32 %v14858_v18, %v7906_v8 }
 0x93f   : > { %v7862_v45 = vpop.f32.mrf.mxu0  ;;  %v15010_v63 = vpop.eup %10029  ;;  %v8001_v53 = vmul.f32 1.442695, %v7964_v0 }
 0x940   : > { %v15007_v12 = vadd.f32 %v14755_v1, %v7862_v45 }
 0x941   : > { %10031 = vpow2.f32 %v8001_v53 }
 0x942   : > { %7933 = vmax.xlane.f32.xlu1 %v15007_v12  ;;  %8063 = vadd.xlane.f32.xlu0 %v15010_v63 }
 0x945   : > { %v7908_v6 = vpop.xlane.xlu0 %7907 }
 0x946   : > { %v7965_v19 = vsub.f32 %v14878_v50, %v7908_v6 }
 0x947   : > { %v7865_v20 = vpop.f32.mrf.mxu0  ;;  %v15018_v21 = vpop.eup %10031 }
 0x948   : > { %v15015_v61 = vadd.f32 %v14755_v1, %v7865_v20  ;;  %v8003_v18 = vmul.f32 1.442695, %v7965_v19 }
 0x94a   : > { %7935 = vmax.xlane.f32.xlu2 %v15015_v61  ;;  %8065 = vadd.xlane.f32.xlu1 %v15018_v21  ;;  %10033 = vpow2.f32 %v8003_v18 }
 0x94d   : > { %v7910_v38 = vpop.xlane.xlu1 %7909 }
 0x94e   : > { %v7966_v17 = vsub.f32 %v14890_v35, %v7910_v38 }
 0x94f   : > { %v7867_v9 = vpop.f32.mrf.mxu0 }
 0x950   : > { %v15023_v28 = vadd.f32 %v14755_v1, %v7867_v9  ;;  %v15026_v27 = vpop.eup %10033  ;;  %v8005_v50 = vmul.f32 1.442695, %v7966_v17 }
 0x952   : > { %7937 = vmax.xlane.f32.xlu0 %v15023_v28  ;;  %8067 = vadd.xlane.f32.xlu2 %v15026_v27  ;;  %10035 = vpow2.f32 %v8005_v50 }
 0x957   : > { %v7870_v16 = vpop.f32.mrf.mxu0  ;;  %v7912_v57 = vpop.xlane.xlu2 %7911 }
 0x958   : > { %v15031_v48 = vadd.f32 %v14755_v1, %v7870_v16  ;;  %v15033_v25 = vpop.eup %10035  ;;  %v7967_v35 = vsub.f32 %v14913_v7, %v7912_v57 }
 0x95a   : > { %7939 = vmax.xlane.f32.xlu1 %v15031_v48  ;;  %8069 = vadd.xlane.f32.xlu0 %v15033_v25  ;;  %v8007_v37 = vmul.f32 1.442695, %v7967_v35 }
 0x95c   : > { %10037 = vpow2.f32 %v8007_v37 }
 0x95f   : > { %v7872_v44 = vpop.f32.mrf.mxu0  ;;  %v7914_v30 = vpop.xlane.xlu0 %7913 }
 0x960   : > { %v15039_v10 = vadd.f32 %v14755_v1, %v7872_v44  ;;  %v7968_v62 = vsub.f32 %v14928_v14, %v7914_v30 }
 0x962   : > { %7941 = vmax.xlane.f32.xlu2 %v15039_v10  ;;  %v15043_v13 = vpop.eup %10037  ;;  %v8009_v58 = vmul.f32 1.442695, %v7968_v62 }
 0x963   : > { %8071 = vadd.xlane.f32.xlu1 %v15043_v13 }
 0x964   : > { %10039 = vpow2.f32 %v8009_v58 }
 0x967   : > { %v7875_v36 = vpop.f32.mrf.mxu0  ;;  %v7916_v33 = vpop.xlane.xlu1 %7915 }
 0x968   : > { %v15047_v7 = vadd.f32 %v14755_v1, %v7875_v36  ;;  %v7969_v23 = vsub.f32 %v14941_v24, %v7916_v33 }
 0x96a   : > { %7943 = vmax.xlane.f32.xlu0 %v15047_v7  ;;  %v15051_v54 = vpop.eup %10039  ;;  %v8011_v22 = vmul.f32 1.442695, %v7969_v23 }
 0x96b   : > { %8073 = vadd.xlane.f32.xlu2 %v15051_v54 }
 0x96c   : > { %10041 = vpow2.f32 %v8011_v22 }
 0x96f   : > { %v7877_v11 = vpop.f32.mrf.mxu0  ;;  %v7918_v26 = vpop.xlane.xlu2 %7917 }
 0x970   : > { %v15055_v14 = vadd.f32 %v14755_v1, %v7877_v11 }
 0x972   : > { %7945 = vmax.xlane.f32.xlu1 %v15055_v14  ;;  %v15058_v4 = vpop.eup %10041 }
 0x973   : > { %8075 = vadd.xlane.f32.xlu0 %v15058_v4 }
 0x977   : > { %v7880_v51 = vpop.f32.mrf.mxu0 }
 0x978   : > { %v15061_v59 = vadd.f32 %v14755_v1, %v7880_v51 }
 0x97a   : > { %7947 = vmax.xlane.f32.xlu2 %v15061_v59 }
 0x97d   : > { %v7920_v5 = vpop.xlane.xlu0 %7919 }
 0x97e   : > { %v7971_v1 = vsub.f32 %v14958_v55, %v7920_v5 }
 0x97f   : > { %v7882_v24 = vpop.f32.mrf.mxu0 }
 0x980   : > { %v15068_v43 = vadd.f32 %v10175_v39, %v7882_v24  ;;  %v8015_v42 = vmul.f32 1.442695, %v7971_v1 }
 0x982   : > { %7949 = vmax.xlane.f32.xlu0 %v15068_v43  ;;  %10043 = vpow2.f32 %v8015_v42 }
 0x985   : > { %v7922_v8 = vpop.xlane.xlu1 %7921 }
 0x986   : > { %v7972_v6 = vsub.f32 %v14963_v15, %v7922_v8 }
 0x987   : > { %v7885_v40 = vpop.f32.mrf.mxu0 }
 0x988   : > { %v15071_v41 = vadd.f32 %v10175_v39, %v7885_v40  ;;  %v15080_v18 = vpop.eup %10043  ;;  %v8017_v55 = vmul.f32 1.442695, %v7972_v6 }
 0x98a   : > { %7951 = vmax.xlane.f32.xlu1 %v15071_v41 }
 0x98d   : > { %v7924_v47 = vpop.xlane.xlu2 %7923 }
 0x98f   : > { %v7887_v34 = vpop.f32.mrf.mxu0 }
 0x990   : > { %v15075_v45 = vadd.f32 %v10175_v39, %v7887_v34 }
 0x992   : > { %7953 = vmax.xlane.f32.xlu2 %v15075_v45 }
 0x995   : > { %v7926_v0 = vpop.xlane.xlu0 %7925  ;;  %v8056_v53 = vpop.xlane.xlu2 %8055 }
 0x996   : > { %v7974_v20 = vsub.f32 %v14978_v32, %v7926_v0  ;;  %10045 = vrcp.f32 %v8056_v53  ;;  %v7970_v32 = vsub.f32 %v14952_v3, %v7918_v26 }
 0x997   : > { %v7890_v9 = vpop.f32.mrf.mxu0 }
 0x998   : > { %v8021_v19 = vmul.f32 1.442695, %v7974_v20  ;;  %v15083_v17 = vadd.f32 %v10175_v39, %v7890_v9  ;;  %v8013_v62 = vmul.f32 1.442695, %v7970_v32 }
 0x99a   : > { %10047 = vpow2.f32 %v8021_v19  ;;  %8079 = vadd.xlane.f32.xlu2 %v15080_v18  ;;  %7955 = vmax.xlane.f32.xlu0 %v15083_v17 }
 0x99c   : > { %v10046_v38 = vpop.eup %10045 }
 0x99d   : > { %v8151_v50 = vmul.f32 %v10046_v38, %v8056_v53  ;;  %v7928_v16 = vpop.xlane.xlu1 %7927  ;;  %v8058_v57 = vpop.xlane.xlu0 %8057 }
 0x99e   : > { %v7975_v15 = vsub.f32 %v14986_v2, %v7928_v16  ;;  %10049 = vrcp.f32 %v8058_v57 }
 0x99f   : > { %10051 = vpow2.f32 %v8017_v55  ;;  %v8183_v35 = vsub.f32 2.0, %v8151_v50  ;;  %v7892_v36 = vpop.f32.mrf.mxu0 }
 0x9a0   : > { %v15091_v37 = vpop.eup %10047  ;;  %v8023_v30 = vmul.f32 1.442695, %v7975_v15  ;;  %v15095_v23 = vadd.f32 %v10175_v39, %v7892_v36 }
 0x9a1   : > { %v8215_v44 = vmul.f32 %v10046_v38, %v8183_v35 }
 0x9a2   : > { %8085 = vadd.xlane.f32.xlu2 %v15091_v37  ;;  %10053 = vpow2.f32 %v8023_v30  ;;  %7957 = vmax.xlane.f32.xlu1 %v15095_v23 }
 0x9a3   : > { %v8247_v58 = vmul.f32 %v14975_v31, %v8215_v44  ;;  %v7973_v31 = vsub.f32 %v14968_v56, %v7924_v47 }
 0x9a4   : > { %v10050_v33 = vpop.eup %10049 }
 0x9a5   : > { %v15097_v2 = vpop.eup %10051  ;;  %8279 = vst [vmem:[%s15099_s26] sm:$0xff] %v8247_v58  ;;  %v8152_v3 = vmul.f32 %v10050_v33, %v8058_v57  ;;  %v7930_v22 = vpop.xlane.xlu2 %7929  ;;  %v8019_v26 = vmul.f32 1.442695, %v7973_v31 }
 0x9a6   : > { %v8060_v11 = vpop.xlane.xlu1 %8059  ;;  %8081 = vadd.xlane.f32.xlu0 %v15097_v2  ;;  %v7976_v0 = vsub.f32 %v14994_v60, %v7930_v22 }
 0x9a7   : > { %10055 = vrcp.f32 %v8060_v11  ;;  %v8184_v51 = vsub.f32 2.0, %v8152_v3 }
 0x9a8   : > { %10057 = vpow2.f32 %v8013_v62  ;;  %v15105_v39 = vpop.eup %10053  ;;  %v8025_v20 = vmul.f32 1.442695, %v7976_v0 }
 0x9a9   : > { %v8216_v24 = vmul.f32 %v10050_v33, %v8184_v51 }
 0x9ab   : > { %v8248_v40 = vmul.f32 %v14983_v49, %v8216_v24 }
 0x9ad   : > { %v10056_v5 = vpop.eup %10055  ;;  %8280 = vst [vmem:[%s15099_s26 + $0x8] sm:$0xff] %v8248_v40  ;;  %v7932_v34 = vpop.xlane.xlu0 %7931 }
 0x9ae   : > { %v15108_v1 = vpop.eup %10057  ;;  %v8153_v42 = vmul.f32 %v10056_v5, %v8060_v11  ;;  %v8062_v8 = vpop.xlane.xlu2 %8061  ;;  %8087 = vadd.xlane.f32.xlu0 %v15105_v39  ;;  %v7977_v56 = vsub.f32 %v15001_v29, %v7932_v34 }
 0x9af   : > { %8077 = vadd.xlane.f32.xlu1 %v15108_v1  ;;  %10059 = vrcp.f32 %v8062_v8 }
 0x9b0   : > { %10061 = vpow2.f32 %v8019_v26  ;;  %v8185_v47 = vsub.f32 2.0, %v8153_v42  ;;  %v8027_v49 = vmul.f32 1.442695, %v7977_v56 }
 0x9b2   : > { %v8217_v53 = vmul.f32 %v10056_v5, %v8185_v47  ;;  %10063 = vpow2.f32 %v8027_v49 }
 0x9b3   : > { %10065 = vpow2.f32 %v8025_v20 }
 0x9b4   : > { %v8249_v6 = vmul.f32 %v14991_v52, %v8217_v53 }
 0x9b5   : > { %v10060_v19 = vpop.eup %10059  ;;  %v7934_v9 = vpop.xlane.xlu1 %7933 }
 0x9b6   : > { %v15116_v55 = vpop.eup %10061  ;;  %8281 = vst [vmem:[%s15099_s26 + $0x10] sm:$0xff] %v8249_v6  ;;  %v8154_v60 = vmul.f32 %v10060_v19, %v8062_v8  ;;  %v7978_v29 = vsub.f32 %v15007_v12, %v7934_v9  ;;  %v8064_v38 = vpop.xlane.xlu0 %8063 }
 0x9b7   : > { %8083 = vadd.xlane.f32.xlu1 %v15116_v55  ;;  %10067 = vrcp.f32 %v8064_v38 }
 0x9b8   : > { %v8186_v50 = vsub.f32 2.0, %v8154_v60  ;;  %v15121_v16 = vpop.eup %10063  ;;  %v8029_v57 = vmul.f32 1.442695, %v7978_v29 }
 0x9b9   : > { %8091 = vadd.xlane.f32.xlu2 %v15121_v16  ;;  %v15125_v32 = vpop.eup %10065 }
 0x9ba   : > { %v8218_v15 = vmul.f32 %v10060_v19, %v8186_v50  ;;  %10069 = vpow2.f32 %v8029_v57 }
 0x9bc   : > { %v8250_v52 = vmul.f32 %v14998_v46, %v8218_v15 }
 0x9bd   : > { %v10068_v35 = vpop.eup %10067  ;;  %v7936_v44 = vpop.xlane.xlu2 %7935 }
 0x9be   : > { %8282 = vst [vmem:[%s15099_s26 + $0x18] sm:$0xff] %v8250_v52  ;;  %v8155_v12 = vmul.f32 %v10068_v35, %v8064_v38  ;;  %v7979_v30 = vsub.f32 %v15015_v61, %v7936_v44  ;;  %v8066_v62 = vpop.xlane.xlu1 %8065 }
 0x9bf   : > { %8089 = vadd.xlane.f32.xlu1 %v15125_v32  ;;  %10071 = vrcp.f32 %v8066_v62 }
 0x9c0   : > { %v15130_v58 = vpop.eup %10069  ;;  %v8187_v36 = vsub.f32 2.0, %v8155_v12  ;;  %v8031_v33 = vmul.f32 1.442695, %v7979_v30 }
 0x9c1   : > { %8093 = vadd.xlane.f32.xlu0 %v15130_v58 }
 0x9c2   : > { %v8219_v46 = vmul.f32 %v10068_v35, %v8187_v36  ;;  %10073 = vpow2.f32 %v8031_v33 }
 0x9c4   : > { %v8251_v3 = vmul.f32 %v15010_v63, %v8219_v46 }
 0x9c5   : > { %v10072_v22 = vpop.eup %10071  ;;  %v7938_v11 = vpop.xlane.xlu0 %7937 }
 0x9c6   : > { %8283 = vst [vmem:[%s15099_s26 + $0x20] sm:$0xff] %v8251_v3  ;;  %v8156_v31 = vmul.f32 %v10072_v22, %v8066_v62  ;;  %v7980_v51 = vsub.f32 %v15023_v28, %v7938_v11  ;;  %v8068_v61 = vpop.xlane.xlu2 %8067 }
 0x9c7   : > { %10075 = vrcp.f32 %v8068_v61 }
 0x9c8   : > { %v15136_v24 = vpop.eup %10073  ;;  %v8188_v26 = vsub.f32 2.0, %v8156_v31  ;;  %v8033_v40 = vmul.f32 1.442695, %v7980_v51 }
 0x9c9   : > { %8095 = vadd.xlane.f32.xlu1 %v15136_v24 }
 0x9ca   : > { %v8220_v5 = vmul.f32 %v10072_v22, %v8188_v26  ;;  %10077 = vpow2.f32 %v8033_v40 }
 0x9cc   : > { %v8252_v42 = vmul.f32 %v15018_v21, %v8220_v5 }
 0x9cd   : > { %v10076_v63 = vpop.eup %10075  ;;  %v7940_v34 = vpop.xlane.xlu1 %7939 }
 0x9ce   : > { %8284 = vst [vmem:[%s15099_s26 + $0x28] sm:$0xff] %v8252_v42  ;;  %v8157_v8 = vmul.f32 %v10076_v63, %v8068_v61  ;;  %v7981_v0 = vsub.f32 %v15031_v48, %v7940_v34  ;;  %v8070_v28 = vpop.xlane.xlu0 %8069 }
 0x9cf   : > { %10079 = vrcp.f32 %v8070_v28 }
 0x9d0   : > { %v15142_v56 = vpop.eup %10077  ;;  %v8189_v47 = vsub.f32 2.0, %v8157_v8  ;;  %v8035_v49 = vmul.f32 1.442695, %v7981_v0 }
 0x9d1   : > { %8097 = vadd.xlane.f32.xlu2 %v15142_v56 }
 0x9d2   : > { %v8221_v53 = vmul.f32 %v10076_v63, %v8189_v47  ;;  %10081 = vpow2.f32 %v8035_v49 }
 0x9d4   : > { %v8253_v20 = vmul.f32 %v15026_v27, %v8221_v53 }
 0x9d5   : > { %v10080_v21 = vpop.eup %10079  ;;  %v7942_v6 = vpop.xlane.xlu2 %7941 }
 0x9d6   : > { %8285 = vst [vmem:[%s15099_s26 + $0x30] sm:$0xff] %v8253_v20  ;;  %v8158_v19 = vmul.f32 %v10080_v21, %v8070_v28  ;;  %v7982_v60 = vsub.f32 %v15039_v10, %v7942_v6  ;;  %v8072_v50 = vpop.xlane.xlu1 %8071 }
 0x9d8   : > { %v15148_v48 = vpop.eup %10081  ;;  %v8190_v9 = vsub.f32 2.0, %v8158_v19  ;;  %v8037_v29 = vmul.f32 1.442695, %v7982_v60 }
 0x9d9   : > { %8099 = vadd.xlane.f32.xlu0 %v15148_v48 }
 0x9da   : > { %v8222_v38 = vmul.f32 %v10080_v21, %v8190_v9  ;;  %10083 = vpow2.f32 %v8037_v29 }
 0x9db   : > { %10085 = vrcp.f32 %v8072_v50 }
 0x9dc   : > { %v8254_v57 = vmul.f32 %v15033_v25, %v8222_v38 }
 0x9dd   : > { %v7944_v27 = vpop.xlane.xlu0 %7943 }
 0x9de   : > { %8286 = vst [vmem:[%s15099_s26 + $0x38] sm:$0xff] %v8254_v57  ;;  %v7983_v15 = vsub.f32 %v15047_v7, %v7944_v27  ;;  %v8074_v12 = vpop.xlane.xlu2 %8073 }
 0x9e0   : > { %v15154_v52 = vpop.eup %10083  ;;  %v8039_v35 = vmul.f32 1.442695, %v7983_v15 }
 0x9e1   : > { %v10086_v10 = vpop.eup %10085  ;;  %8101 = vadd.xlane.f32.xlu1 %v15154_v52 }
 0x9e2   : > { %v8159_v44 = vmul.f32 %v10086_v10, %v8072_v50  ;;  %10087 = vpow2.f32 %v8039_v35 }
 0x9e3   : > { %10089 = vrcp.f32 %v8074_v12 }
 0x9e4   : > { %v8191_v30 = vsub.f32 2.0, %v8159_v44 }
 0x9e5   : > { %v7946_v62 = vpop.xlane.xlu1 %7945 }
 0x9e6   : > { %v8223_v36 = vmul.f32 %v10086_v10, %v8191_v30  ;;  %v7984_v25 = vsub.f32 %v15055_v14, %v7946_v62  ;;  %v8076_v11 = vpop.xlane.xlu0 %8075 }
 0x9e8   : > { %v15158_v33 = vpop.eup %10087  ;;  %v8255_v7 = vmul.f32 %v15043_v13, %v8223_v36  ;;  %v8041_v46 = vmul.f32 1.442695, %v7984_v25 }
 0x9e9   : > { %v10090_v3 = vpop.eup %10089  ;;  %8103 = vadd.xlane.f32.xlu2 %v15158_v33 }
 0x9ea   : > { %8287 = vst [vmem:[%s15099_s26 + $0x40] sm:$0xff] %v8255_v7  ;;  %v8160_v22 = vmul.f32 %v10090_v3, %v8074_v12  ;;  %10091 = vpow2.f32 %v8041_v46 }
 0x9eb   : > { %10093 = vrcp.f32 %v8076_v11 }
 0x9ec   : > { %v8192_v31 = vsub.f32 2.0, %v8160_v22 }
 0x9ed   : > { %v7948_v51 = vpop.xlane.xlu2 %7947 }
 0x9ee   : > { %v8224_v61 = vmul.f32 %v10090_v3, %v8192_v31  ;;  %v7985_v26 = vsub.f32 %v15061_v59, %v7948_v51 }
 0x9f0   : > { %v15164_v14 = vpop.eup %10091  ;;  %v8256_v40 = vmul.f32 %v15051_v54, %v8224_v61  ;;  %v8043_v13 = vmul.f32 1.442695, %v7985_v26 }
 0x9f1   : > { %8105 = vadd.xlane.f32.xlu0 %v15164_v14  ;;  %v10094_v5 = vpop.eup %10093 }
 0x9f2   : > { %8288 = vst [vmem:[%s15099_s26 + $0x48] sm:$0xff] %v8256_v40  ;;  %10095 = vpow2.f32 %v8043_v13  ;;  %v8161_v42 = vmul.f32 %v10094_v5, %v8076_v11 }
 0x9f4   : > { %v8193_v63 = vsub.f32 2.0, %v8161_v42 }
 0x9f5   : > { %v7950_v34 = vpop.xlane.xlu0 %7949 }
 0x9f6   : > { %v7986_v8 = vsub.f32 %v15068_v43, %v7950_v34  ;;  %v8225_v0 = vmul.f32 %v10094_v5, %v8193_v63 }
 0x9f8   : > { %v15170_v28 = vpop.eup %10095  ;;  %v8045_v59 = vmul.f32 1.442695, %v7986_v8  ;;  %v8257_v47 = vmul.f32 %v15058_v4, %v8225_v0 }
 0x9f9   : > { %8107 = vadd.xlane.f32.xlu1 %v15170_v28 }
 0x9fa   : > { %10097 = vpow2.f32 %v8045_v59  ;;  %8289 = vst [vmem:[%s15099_s26 + $0x50] sm:$0xff] %v8257_v47 }
 0x9fd   : > { %v7952_v54 = vpop.xlane.xlu1 %7951 }
 0x9fe   : > { %v7987_v49 = vsub.f32 %v15071_v41, %v7952_v54 }
 0xa00   : > { %v15176_v53 = vpop.eup %10097  ;;  %v8047_v20 = vmul.f32 1.442695, %v7987_v49 }
 0xa01   : > { %8109 = vadd.xlane.f32.xlu2 %v15176_v53 }
 0xa02   : > { %10099 = vpow2.f32 %v8047_v20 }
 0xa05   : > { %v7954_v43 = vpop.xlane.xlu2 %7953 }
 0xa06   : > { %v7988_v21 = vsub.f32 %v15075_v45, %v7954_v43 }
 0xa08   : > { %v15180_v6 = vpop.eup %10099  ;;  %v8049_v19 = vmul.f32 1.442695, %v7988_v21 }
 0xa09   : > { %8111 = vadd.xlane.f32.xlu0 %v15180_v6 }
 0xa0a   : > { %10101 = vpow2.f32 %v8049_v19 }
 0xa0d   : > { %v8080_v4 = vpop.xlane.xlu2 %8079  ;;  %v7956_v41 = vpop.xlane.xlu0 %7955 }
 0xa0e   : > { %10103 = vrcp.f32 %v8080_v4  ;;  %v7989_v9 = vsub.f32 %v15083_v17, %v7956_v41 }
 0xa10   : > { %v15183_v60 = vpop.eup %10101  ;;  %v8051_v38 = vmul.f32 1.442695, %v7989_v9 }
 0xa11   : > { %8113 = vadd.xlane.f32.xlu1 %v15183_v60 }
 0xa12   : > { %10105 = vpow2.f32 %v8051_v38 }
 0xa14   : > { %v10104_v29 = vpop.eup %10103 }
 0xa15   : > { %v8163_v50 = vmul.f32 %v10104_v29, %v8080_v4  ;;  %v8086_v45 = vpop.xlane.xlu2 %8085  ;;  %v7958_v15 = vpop.xlane.xlu1 %7957 }
 0xa16   : > { %10107 = vrcp.f32 %v8086_v45  ;;  %v7990_v10 = vsub.f32 %v15095_v23, %v7958_v15 }
 0xa17   : > { %v8195_v57 = vsub.f32 2.0, %v8163_v50 }
 0xa18   : > { %v15189_v12 = vpop.eup %10105  ;;  %v8053_v30 = vmul.f32 1.442695, %v7990_v10 }
 0xa19   : > { %v8227_v27 = vmul.f32 %v10104_v29, %v8195_v57  ;;  %v8082_v35 = vpop.xlane.xlu0 %8081  ;;  %8115 = vadd.xlane.f32.xlu2 %v15189_v12 }
 0xa1a   : > { %10109 = vrcp.f32 %v8082_v35 }
 0xa1b   : > { %v8259_v44 = vmul.f32 %v15080_v18, %v8227_v27  ;;  %10111 = vpow2.f32 %v8053_v30 }
 0xa1c   : > { %v10108_v17 = vpop.eup %10107 }
 0xa1d   : > { %8291 = vst [vmem:[%s15099_s26 + $0x60] sm:$0xff] %v8259_v44  ;;  %v8166_v62 = vmul.f32 %v10108_v17, %v8086_v45 }
 0xa1f   : > { %v8198_v25 = vsub.f32 2.0, %v8166_v62 }
 0xa20   : > { %v10110_v36 = vpop.eup %10109 }
 0xa21   : > { %v8164_v7 = vmul.f32 %v10110_v36, %v8082_v35  ;;  %v8088_v3 = vpop.xlane.xlu0 %8087  ;;  %v8230_v23 = vmul.f32 %v10108_v17, %v8198_v25  ;;  %v15193_v18 = vpop.eup %10111 }
 0xa22   : > { %v8078_v46 = vpop.xlane.xlu1 %8077  ;;  %8117 = vadd.xlane.f32.xlu0 %v15193_v18 }
 0xa23   : > { %10113 = vrcp.f32 %v8078_v46  ;;  %v8196_v22 = vsub.f32 2.0, %v8164_v7  ;;  %v8262_v11 = vmul.f32 %v15091_v37, %v8230_v23 }
 0xa24   : > { %10115 = vrcp.f32 %v8088_v3 }
 0xa25   : > { %v8228_v31 = vmul.f32 %v10110_v36, %v8196_v22  ;;  %8294 = vst [vmem:[%s15099_s26 + $0x78] sm:$0xff] %v8262_v11 }
 0xa27   : > { %v8260_v51 = vmul.f32 %v15097_v2, %v8228_v31 }
 0xa29   : > { %v10114_v61 = vpop.eup %10113  ;;  %8292 = vst [vmem:[%s15099_s26 + $0x68] sm:$0xff] %v8260_v51 }
 0xa2a   : > { %v10116_v26 = vpop.eup %10115  ;;  %v8162_v40 = vmul.f32 %v10114_v61, %v8078_v46  ;;  %v8084_v13 = vpop.xlane.xlu1 %8083 }
 0xa2b   : > { %v8167_v5 = vmul.f32 %v10116_v26, %v8088_v3  ;;  %10117 = vrcp.f32 %v8084_v13 }
 0xa2c   : > { %v8194_v42 = vsub.f32 2.0, %v8162_v40  ;;  %v8092_v34 = vpop.xlane.xlu2 %8091 }
 0xa2d   : > { %v8199_v63 = vsub.f32 2.0, %v8167_v5  ;;  %10119 = vrcp.f32 %v8092_v34 }
 0xa2e   : > { %v8226_v8 = vmul.f32 %v10114_v61, %v8194_v42 }
 0xa2f   : > { %v8231_v37 = vmul.f32 %v10116_v26, %v8199_v63 }
 0xa30   : > { %v8258_v0 = vmul.f32 %v15108_v1, %v8226_v8 }
 0xa31   : > { %v10118_v59 = vpop.eup %10117  ;;  %v8263_v2 = vmul.f32 %v15105_v39, %v8231_v37 }
 0xa32   : > { %8290 = vst [vmem:[%s15099_s26 + $0x58] sm:$0xff] %v8258_v0  ;;  %v8165_v47 = vmul.f32 %v10118_v59, %v8084_v13  ;;  %v8090_v54 = vpop.xlane.xlu1 %8089 }
 0xa33   : > { %8295 = vst [vmem:[%s15099_s26 + $0x80] sm:$0xff] %v8263_v2  ;;  %10121 = vrcp.f32 %v8090_v54  ;;  %v10120_v49 = vpop.eup %10119 }
 0xa34   : > { %v8197_v20 = vsub.f32 2.0, %v8165_v47  ;;  %v8169_v43 = vmul.f32 %v10120_v49, %v8092_v34  ;;  %v8094_v21 = vpop.xlane.xlu0 %8093 }
 0xa35   : > { %10123 = vrcp.f32 %v8094_v21 }
 0xa36   : > { %v8229_v19 = vmul.f32 %v10118_v59, %v8197_v20  ;;  %v8201_v4 = vsub.f32 2.0, %v8169_v43 }
 0xa38   : > { %v8261_v41 = vmul.f32 %v15116_v55, %v8229_v19  ;;  %v8233_v9 = vmul.f32 %v10120_v49, %v8201_v4 }
 0xa39   : > { %v10122_v1 = vpop.eup %10121 }
 0xa3a   : > { %8293 = vst [vmem:[%s15099_s26 + $0x70] sm:$0xff] %v8261_v41  ;;  %v8168_v39 = vmul.f32 %v10122_v1, %v8090_v54  ;;  %v8265_v29 = vmul.f32 %v15121_v16, %v8233_v9 }
 0xa3b   : > { %v10124_v38 = vpop.eup %10123 }
 0xa3c   : > { %v8200_v50 = vsub.f32 2.0, %v8168_v39  ;;  %8297 = vst [vmem:[%s15099_s26 + $0x90] sm:$0xff] %v8265_v29  ;;  %v8170_v45 = vmul.f32 %v10124_v38, %v8094_v21  ;;  %v8096_v57 = vpop.xlane.xlu1 %8095 }
 0xa3d   : > { %10125 = vrcp.f32 %v8096_v57 }
 0xa3e   : > { %v8232_v27 = vmul.f32 %v10122_v1, %v8200_v50  ;;  %v8202_v15 = vsub.f32 2.0, %v8170_v45 }
 0xa40   : > { %v8264_v35 = vmul.f32 %v15125_v32, %v8232_v27  ;;  %v8234_v55 = vmul.f32 %v10124_v38, %v8202_v15 }
 0xa42   : > { %8296 = vst [vmem:[%s15099_s26 + $0x88] sm:$0xff] %v8264_v35  ;;  %v8266_v10 = vmul.f32 %v15130_v58, %v8234_v55 }
 0xa43   : > { %v10126_v44 = vpop.eup %10125 }
 0xa44   : > { %8298 = vst [vmem:[%s15099_s26 + $0x98] sm:$0xff] %v8266_v10  ;;  %v8171_v30 = vmul.f32 %v10126_v44, %v8096_v57  ;;  %v8098_v16 = vpop.xlane.xlu2 %8097 }
 0xa45   : > { %10127 = vrcp.f32 %v8098_v16 }
 0xa46   : > { %v8203_v17 = vsub.f32 2.0, %v8171_v30 }
 0xa48   : > { %v8235_v62 = vmul.f32 %v10126_v44, %v8203_v17 }
 0xa4a   : > { %v8267_v36 = vmul.f32 %v15136_v24, %v8235_v62 }
 0xa4b   : > { %v10128_v25 = vpop.eup %10127 }
 0xa4c   : > { %8299 = vst [vmem:[%s15099_s26 + $0xa0] sm:$0xff] %v8267_v36  ;;  %v8172_v7 = vmul.f32 %v10128_v25, %v8098_v16  ;;  %v8100_v46 = vpop.xlane.xlu0 %8099 }
 0xa4d   : > { %10129 = vrcp.f32 %v8100_v46 }
 0xa4e   : > { %v8204_v32 = vsub.f32 2.0, %v8172_v7 }
 0xa50   : > { %v8236_v3 = vmul.f32 %v10128_v25, %v8204_v32 }
 0xa52   : > { %v8268_v58 = vmul.f32 %v15142_v56, %v8236_v3 }
 0xa53   : > { %v10130_v23 = vpop.eup %10129 }
 0xa54   : > { %8300 = vst [vmem:[%s15099_s26 + $0xa8] sm:$0xff] %v8268_v58  ;;  %v8173_v22 = vmul.f32 %v10130_v23, %v8100_v46  ;;  %v8102_v11 = vpop.xlane.xlu1 %8101 }
 0xa55   : > { %10131 = vrcp.f32 %v8102_v11 }
 0xa56   : > { %v8205_v31 = vsub.f32 2.0, %v8173_v22 }
 0xa58   : > { %v8237_v51 = vmul.f32 %v10130_v23, %v8205_v31 }
 0xa5a   : > { %v8269_v24 = vmul.f32 %v15148_v48, %v8237_v51 }
 0xa5b   : > { %v10132_v61 = vpop.eup %10131 }
 0xa5c   : > { %8301 = vst [vmem:[%s15099_s26 + $0xb0] sm:$0xff] %v8269_v24  ;;  %v8174_v26 = vmul.f32 %v10132_v61, %v8102_v11  ;;  %v8104_v40 = vpop.xlane.xlu2 %8103 }
 0xa5d   : > { %10133 = vrcp.f32 %v8104_v40 }
 0xa5e   : > { %v8206_v13 = vsub.f32 2.0, %v8174_v26 }
 0xa60   : > { %v8238_v5 = vmul.f32 %v10132_v61, %v8206_v13 }
 0xa62   : > { %v8270_v56 = vmul.f32 %v15154_v52, %v8238_v5 }
 0xa63   : > { %v10134_v42 = vpop.eup %10133 }
 0xa64   : > { %8302 = vst [vmem:[%s15099_s26 + $0xb8] sm:$0xff] %v8270_v56  ;;  %v8175_v63 = vmul.f32 %v10134_v42, %v8104_v40  ;;  %v8106_v34 = vpop.xlane.xlu0 %8105 }
 0xa65   : > { %10135 = vrcp.f32 %v8106_v34 }
 0xa66   : > { %v8207_v8 = vsub.f32 2.0, %v8175_v63 }
 0xa68   : > { %v8239_v37 = vmul.f32 %v10134_v42, %v8207_v8 }
 0xa6a   : > { %v8271_v48 = vmul.f32 %v15158_v33, %v8239_v37 }
 0xa6b   : > { %v10136_v0 = vpop.eup %10135 }
 0xa6c   : > { %8303 = vst [vmem:[%s15099_s26 + $0xc0] sm:$0xff] %v8271_v48  ;;  %v8176_v59 = vmul.f32 %v10136_v0, %v8106_v34  ;;  %v8108_v2 = vpop.xlane.xlu1 %8107 }
 0xa6d   : > { %10137 = vrcp.f32 %v8108_v2 }
 0xa6e   : > { %v8208_v47 = vsub.f32 2.0, %v8176_v59 }
 0xa70   : > { %v8240_v54 = vmul.f32 %v10136_v0, %v8208_v47 }
 0xa72   : > { %v8272_v52 = vmul.f32 %v15164_v14, %v8240_v54 }
 0xa73   : > { %v10138_v49 = vpop.eup %10137 }
 0xa74   : > { %8304 = vst [vmem:[%s15099_s26 + $0xc8] sm:$0xff] %v8272_v52  ;;  %v8177_v20 = vmul.f32 %v10138_v49, %v8108_v2  ;;  %v8110_v43 = vpop.xlane.xlu2 %8109 }
 0xa75   : > { %10139 = vrcp.f32 %v8110_v43 }
 0xa76   : > { %v8209_v21 = vsub.f32 2.0, %v8177_v20 }
 0xa78   : > { %v8241_v19 = vmul.f32 %v10138_v49, %v8209_v21 }
 0xa7a   : > { %v8273_v33 = vmul.f32 %v15170_v28, %v8241_v19 }
 0xa7b   : > { %v10140_v4 = vpop.eup %10139 }
 0xa7c   : > { %8305 = vst [vmem:[%s15099_s26 + $0xd0] sm:$0xff] %v8273_v33  ;;  %v8178_v41 = vmul.f32 %v10140_v4, %v8110_v43  ;;  %v8112_v1 = vpop.xlane.xlu0 %8111 }
 0xa7d   : > { %10141 = vrcp.f32 %v8112_v1 }
 0xa7e   : > { %v8210_v9 = vsub.f32 2.0, %v8178_v41 }
 0xa80   : > { %v8242_v39 = vmul.f32 %v10140_v4, %v8210_v9 }
 0xa82   : > { %v8274_v14 = vmul.f32 %v15176_v53, %v8242_v39 }
 0xa83   : > { %v10142_v29 = vpop.eup %10141 }
 0xa84   : > { %8306 = vst [vmem:[%s15099_s26 + $0xd8] sm:$0xff] %v8274_v14  ;;  %v8179_v38 = vmul.f32 %v10142_v29, %v8112_v1  ;;  %v8114_v50 = vpop.xlane.xlu1 %8113 }
 0xa85   : > { %10143 = vrcp.f32 %v8114_v50 }
 0xa86   : > { %v8211_v45 = vsub.f32 2.0, %v8179_v38 }
 0xa88   : > { %v8243_v57 = vmul.f32 %v10142_v29, %v8211_v45 }
 0xa8a   : > { %v8275_v28 = vmul.f32 %v15180_v6, %v8243_v57 }
 0xa8b   : > { %v10144_v27 = vpop.eup %10143 }
 0xa8c   : > { %8307 = vst [vmem:[%s15099_s26 + $0xe0] sm:$0xff] %v8275_v28  ;;  %v8180_v15 = vmul.f32 %v10144_v27, %v8114_v50  ;;  %v8116_v10 = vpop.xlane.xlu2 %8115 }
 0xa8d   : > { %10145 = vrcp.f32 %v8116_v10 }
 0xa8e   : > { %v8212_v35 = vsub.f32 2.0, %v8180_v15 }
 0xa90   : > { %v8244_v55 = vmul.f32 %v10144_v27, %v8212_v35 }
 0xa92   : > { %v8276_v53 = vmul.f32 %v15183_v60, %v8244_v55 }
 0xa93   : > { %v10146_v44 = vpop.eup %10145 }
 0xa94   : > { %8308 = vst [vmem:[%s15099_s26 + $0xe8] sm:$0xff] %v8276_v53  ;;  %v8181_v30 = vmul.f32 %v10146_v44, %v8116_v10 }
 0xa95   : > { %v8118_v16 = vpop.xlane.xlu0 %8117 }
 0xa96   : > { %10147 = vrcp.f32 %v8118_v16  ;;  %v8213_v17 = vsub.f32 2.0, %v8181_v30 }
 0xa98   : > { %v8245_v6 = vmul.f32 %v10146_v44, %v8213_v17 }
 0xa9a   : > { %v8277_v62 = vmul.f32 %v15189_v12, %v8245_v6 }
 0xa9c   : > { %v10148_v36 = vpop.eup %10147  ;;  %8309 = vst [vmem:[%s15099_s26 + $0xf0] sm:$0xff] %v8277_v62 }
 0xa9d   : > { %v8182_v60 = vmul.f32 %v10148_v36, %v8118_v16 }
 0xa9f   : > { %v8214_v25 = vsub.f32 2.0, %v8182_v60 }
 0xaa1   : > { %v8246_v7 = vmul.f32 %v10148_v36, %v8214_v25 }
 0xaa3   : > { %v8278_v46 = vmul.f32 %v15193_v18, %v8246_v7 }
 0xaa5   : > { %8310 = vst [vmem:[%s15099_s26 + $0xf8] sm:$0xff] %v8278_v46 }
 0xaa6   : > { %10203 = shalt.err (!%p10200_p3)
}
 0xaa7   : > { %s10243_s20 = smov 128   ;;  %s10244_s26 = smov 8  }
 0xaa8   : > { %9204 = dma.vmem_to_hbm [thread:$0]  (%p10338_p5), %s8326_s29, 4096, %s8328_s25, %s8312_s17, %s10243_s20, %s10243_s20, %s10244_s26  }
 0xaa9 PF: > { %p9210_p4 = scmp.ge.s32.totalorder %s10238_s16, 2  ;;  %s8342_s21 = sand.u32 1, %s10226_s13  }
 0xaaa   : > { %s8343_s27 = scalar_lea.sflag [#allocation3], %s8342_s21 }
 0xaab   : > { %p9207_p7 = pnand %p9210_p4, %p10342_p6 }
 0xaad   : > { %p9208_p8 = pneg %p9207_p7 }
 0xaaf   : > { %10221 = dma.done.wait (%p9208_p8), %s8343_s27, 4096  }
 0xab0   : > { %10223 = vsyncadd (%p9208_p8), %s8343_s27, 4294963200  ;;  %p20_p9 = scmp.ge.s32.totalorder %s10325_s19, 4   ;;  %s15678_s13 = smov %s10230_s14 }
 0xab1   : > { %s15679_s14 = smov %s10234_s15  ;;  %s15680_s15 = smov %s10336_s22 }
 0xab2   : > { %s15681_s16 = smov %s10325_s19  ;;  %22 = sbr.rel (!%p20_p9) target bundleno = 3 (0x3), region = 106 }
 0xab7   :  { %8349 = vsyncpa [#allocation3], 1 }
 0xab8   :  { %8351 = vsyncpa [#allocation3 + $0x1], 1 }

</bundles_post_ra>
